<compile_context>
chip_gen: v5e
topology: v5e:2x2
jax: 0.10.0
libtpu: 0.0.40
codegen_flags: <defaults>
</compile_context>

<pallas_src>
import functools

import numpy as np
import jax
import jax.numpy as jnp
from jax import lax
from jax.experimental import pallas as pl
from jax.experimental.pallas import tpu as pltpu


# ----------------------------------------------------------------------------
# Tiling helper
# ----------------------------------------------------------------------------
def _pick_block_m(M, K, N, *, in_bytes=2, out_bytes=2, extra_row_bytes=0,
                  mult=16, target_bytes=4 << 20, max_bm=4096):
    """Row tile: multiple of 16 (bf16 sublane packing) or the full M.

    Sized so one (input + output) block is ~target_bytes (double-buffered by
    Pallas -> ~2x that live, well under the 48 MiB VMEM limit and v7x's 64 MiB
    physical VMEM).  When tiling, the number of grid steps is rounded up to an
    even count with balanced tiles so v7x's two TensorCores split the grid
    evenly under dimension_semantics=("parallel",).
    """
    per_row = K * in_bytes + N * out_bytes + extra_row_bytes
    cap = (target_bytes // per_row) // mult * mult
    cap = max(mult, min(max_bm, cap))
    if M <= cap:
        half = M // 2
        if M % 2 == 0 and half % mult == 0 and half >= 64:
            return half                  # exact 2-way split -> 2 balanced steps
        return M                         # single full-M block
    steps = -(-M // cap)                 # cdiv
    if steps % 2:
        steps += 1                       # even grid for v7x dual TensorCore
    bm = -(-M // steps)
    bm = -(-bm // mult) * mult
    return min(bm, cap)


_COMPILER_PARAMS = pltpu.CompilerParams(
    dimension_semantics=("parallel",),
    vmem_limit_bytes=48 << 20,           # <= ~48 MiB keeps v7x (64 MiB VMEM) safe
)


# ----------------------------------------------------------------------------
# Pallas kernels
# ----------------------------------------------------------------------------
def _linear_kernel(x_ref, w_ref, b_ref, o_ref, *, relu):
    # bf16 x bf16 -> f32 accumulate on the MXU, bias + ReLU on the VPU.
    y = jnp.dot(x_ref[...], w_ref[...], preferred_element_type=jnp.float32)
    y = y + b_ref[...]
    if relu:
        y = jnp.maximum(y, 0.0)
    o_ref[...] = y.astype(o_ref.dtype)


def pallas_linear(x, w, b, *, relu, out_dtype=jnp.bfloat16):
    """y = x @ w + b (optionally ReLU).  x:(M,K) bf16, w:(K,N) bf16, b:(1,N) f32."""
    M, K = x.shape
    Kw, N = w.shape
    assert K == Kw
    bm = _pick_block_m(M, K, N,
                       in_bytes=x.dtype.itemsize,
                       out_bytes=jnp.dtype(out_dtype).itemsize)
    return pl.pallas_call(
        functools.partial(_linear_kernel, relu=relu),
        out_shape=jax.ShapeDtypeStruct((M, N), out_dtype),
        grid=(pl.cdiv(M, bm),),
        in_specs=[
            pl.BlockSpec((bm, K), lambda i: (i, 0)),
            pl.BlockSpec((K, N), lambda i: (0, 0)),
            pl.BlockSpec((1, N), lambda i: (0, 0)),
        ],
        out_specs=pl.BlockSpec((bm, N), lambda i: (i, 0)),
        compiler_params=_COMPILER_PARAMS,
    )(x, w, b)


def _fc_heads_kernel(x_ref, fcw_ref, fcb_ref, hw_ref, hb_ref, o_ref, *, n_actions):
    """Fused fc(3136->512)+ReLU, policy+value heads, log-softmax/entropy.

    Output tile layout (lane-dense, 128 wide, f32):
      cols [0, A)   : log-softmax of policy logits
      col  A        : entropy of the categorical distribution
      col  A + 1    : value head output
      cols >= A + 2 : zeros
    """
    h = jnp.dot(x_ref[...], fcw_ref[...], preferred_element_type=jnp.float32)
    h = jnp.maximum(h + fcb_ref[...], 0.0).astype(jnp.bfloat16)      # (bm, 512)
    y = jnp.dot(h, hw_ref[...], preferred_element_type=jnp.float32)
    y = y + hb_ref[...]                                              # (bm, 128)

    col = lax.broadcasted_iota(jnp.int32, y.shape, 1)                # hoisted mask
    is_logit = col < n_actions

    neg_inf = jnp.full_like(y, -jnp.inf)
    m = jnp.max(jnp.where(is_logit, y, neg_inf), axis=-1, keepdims=True)
    e = jnp.where(is_logit, jnp.exp(y - m), 0.0)
    s = jnp.sum(e, axis=-1, keepdims=True)
    lse = m + jnp.log(s)
    lp = y - lse                                                     # log-softmax
    p = e * pl.reciprocal(s, approx=True)                            # EUP divide
    ent = -jnp.sum(jnp.where(is_logit, p * lp, 0.0), axis=-1, keepdims=True)

    out = jnp.where(is_logit, lp, 0.0)
    out = jnp.where(col == n_actions, ent, out)                      # entropy col
    out = jnp.where(col == n_actions + 1, y, out)                    # value col
    o_ref[...] = out


def pallas_fc_heads(flat, fc_w, fc_b, head_w, head_b, n_actions):
    """flat:(B,3136) bf16 -> packed (B,128) f32 [log_probs | entropy | value]."""
    M, K = flat.shape
    Kf, H = fc_w.shape
    Hh, N = head_w.shape
    assert K == Kf and H == Hh and N == 128
    bm = _pick_block_m(M, K, N,
                       in_bytes=flat.dtype.itemsize, out_bytes=4,
                       extra_row_bytes=H * 6)   # f32 + bf16 hidden row lives in VMEM
    return pl.pallas_call(
        functools.partial(_fc_heads_kernel, n_actions=n_actions),
        out_shape=jax.ShapeDtypeStruct((M, N), jnp.float32),
        grid=(pl.cdiv(M, bm),),
        in_specs=[
            pl.BlockSpec((bm, K), lambda i: (i, 0)),
            pl.BlockSpec((K, H), lambda i: (0, 0)),
            pl.BlockSpec((1, H), lambda i: (0, 0)),
            pl.BlockSpec((H, N), lambda i: (0, 0)),
            pl.BlockSpec((1, N), lambda i: (0, 0)),
        ],
        out_specs=pl.BlockSpec((bm, N), lambda i: (i, 0)),
        compiler_params=_COMPILER_PARAMS,
    )(flat, fc_w, fc_b, head_w, head_b)


# ----------------------------------------------------------------------------
# Glue: NHWC im2col (pure layout, single materialization, no transposes)
# ----------------------------------------------------------------------------
def im2col_nhwc(x, k, stride):
    """x: (B, H, W, C) -> (B*Ho*Wo, k*k*C), feature order (kh, kw, c)."""
    B, H, W, C = x.shape
    Ho = (H - k) // stride + 1
    Wo = (W - k) // stride + 1
    cols = []
    for kh in range(k):
        for kw in range(k):
            cols.append(x[:, kh:kh + stride * Ho:stride,
                          kw:kw + stride * Wo:stride, :])      # (B, Ho, Wo, C)
    p = jnp.concatenate(cols, axis=-1)                         # (B, Ho, Wo, k*k*C)
    return p.reshape(B * Ho * Wo, k * k * C), Ho, Wo


def conv_linear(p, w_packed, b_packed, cout, pack):
    """Conv-as-matmul with lane-dense (128-wide) input and output blocks.

    w_packed = kron(I_pack, W) is block-diagonal, so reshaping the im2col
    matrix (M,K)->(M/pack, pack*K) (metadata only) and multiplying yields the
    row-major memory layout of the (M, cout) result packed into 128 lanes.
    """
    M, K = p.shape
    if pack > 1 and M % pack == 0:
        x = p.reshape(M // pack, pack * K)
        return pallas_linear(x, w_packed, b_packed, relu=True)
    # Fallback (odd M): the unpacked weight/bias is the top-left block of the
    # block-diagonal packed weight.  Output is lane-sparse but still correct.
    w = w_packed[:K, :cout]
    b = b_packed[:, :cout]
    return pallas_linear(p, w, b, relu=True)


# ----------------------------------------------------------------------------
# Parameter init (deterministic, shapes from ppo_net.__init__)
# ----------------------------------------------------------------------------
def init_params(key, in_ch, n_actions):
    # TODO(synk): torch uses orthogonal_ init; we use deterministic scaled
    # normal init (same shapes) — forward-pass semantics are unaffected.
    assert n_actions + 2 <= 128
    ks = jax.random.split(key, 6)

    def w(k, shape, gain):
        fan_in = shape[0]
        return jax.random.normal(k, shape, jnp.float32) * (gain / np.sqrt(fan_in))

    # Conv weights in matmul layout (kh*kw*Cin, Cout) matching the NHWC im2col
    # feature order (kh, kw, c).
    c1 = w(ks[0], (8 * 8 * in_ch, 32), np.sqrt(2))
    c2 = w(ks[1], (4 * 4 * 32, 64), np.sqrt(2))
    c3 = w(ks[2], (3 * 3 * 64, 64), np.sqrt(2))

    # fc weight generated with rows in torch's NCHW-flatten order (c, h, w),
    # then permuted ONCE to NHWC-flatten order (h, w, c) so the channels-last
    # flatten needs no runtime transpose.
    fc_chw = w(ks[3], (64 * 7 * 7, 512), np.sqrt(2))
    fc = fc_chw.reshape(64, 7, 7, 512).transpose(1, 2, 0, 3).reshape(64 * 7 * 7, 512)

    pi_w = w(ks[4], (512, n_actions), 0.01)
    v_w = w(ks[5], (512, 1), 1.0)

    # Fused, lane-dense head weight (512, 128):
    #   cols [0, A) -> policy, col A -> (entropy slot, unused), col A+1 -> value.
    head_w = jnp.zeros((512, 128), jnp.float32)
    head_w = head_w.at[:, :n_actions].set(pi_w)
    head_w = head_w.at[:, n_actions + 1].set(v_w[:, 0])

    def pack_conv(wm, cout):
        pk = 128 // cout                                   # lane-packing factor
        wp = jnp.kron(jnp.eye(pk, dtype=wm.dtype), wm)     # block-diagonal (pk*K, 128)
        bp = jnp.zeros((1, pk * cout), jnp.float32)        # conv biases zero-init
        return wp.astype(jnp.bfloat16), bp

    c1_w, c1_b = pack_conv(c1, 32)     # (1024, 128)
    c2_w, c2_b = pack_conv(c2, 64)     # (1024, 128)
    c3_w, c3_b = pack_conv(c3, 64)     # (1152, 128)

    return {
        "c1_w": c1_w, "c1_b": c1_b,
        "c2_w": c2_w, "c2_b": c2_b,
        "c3_w": c3_w, "c3_b": c3_b,
        "fc_w": fc.astype(jnp.bfloat16), "fc_b": jnp.zeros((1, 512), jnp.float32),
        "head_w": head_w.astype(jnp.bfloat16),
        "head_b": jnp.zeros((1, 128), jnp.float32),
    }


# ----------------------------------------------------------------------------
# Forward pass (== ppo_net.forward)
# ----------------------------------------------------------------------------
def ppo_forward(params, x, n_actions, sample_key, action=None):
    """x: (B, C, 84, 84) float32 NCHW (like torch).  Returns
    (action (B,), log_prob (B,), entropy (B,), value (B,1))."""
    B = x.shape[0]
    # Single layout change + bf16 cast at the boundary; everything downstream
    # stays channels-last so no per-layer transposes are needed.
    x = jnp.transpose(x, (0, 2, 3, 1)).astype(jnp.bfloat16)

    # conv1 8x8/4 + ReLU (lane-packed x4 -> 128-wide output)
    p, Ho, Wo = im2col_nhwc(x, 8, 4)
    x = conv_linear(p, params["c1_w"], params["c1_b"], 32, 4).reshape(B, Ho, Wo, 32)

    # conv2 4x4/2 + ReLU (lane-packed x2)
    p, Ho, Wo = im2col_nhwc(x, 4, 2)
    x = conv_linear(p, params["c2_w"], params["c2_b"], 64, 2).reshape(B, Ho, Wo, 64)

    # conv3 3x3/1 + ReLU (lane-packed x2)
    p, Ho, Wo = im2col_nhwc(x, 3, 1)
    x = conv_linear(p, params["c3_w"], params["c3_b"], 64, 2).reshape(B, Ho, Wo, 64)

    # Flatten (NHWC order; fc_w rows were permuted at init to compensate) and
    # run the fused fc + policy/value heads + log-softmax/entropy kernel.
    flat = x.reshape(B, Ho * Wo * 64)
    packed = pallas_fc_heads(flat, params["fc_w"], params["fc_b"],
                             params["head_w"], params["head_b"], n_actions)

    log_probs = packed[:, :n_actions]
    entropy = packed[:, n_actions]
    value = packed[:, n_actions + 1:n_actions + 2]

    if action is None:
        # Categorical sampling via Gumbel-max (torch RNG not reproducible).
        g = jax.random.gumbel(sample_key, log_probs.shape, jnp.float32)
        action = jnp.argmax(log_probs + g, axis=-1).astype(jnp.int32)

    logp = jnp.take_along_axis(log_probs, action[:, None], axis=-1)[:, 0]
    return action, logp, entropy, value


# ----------------------------------------------------------------------------
if __name__ == "__main__":
    key = jax.random.PRNGKey(0)
    pkey, xkey, skey = jax.random.split(key, 3)

    B, C, A = 2, 4, 6                     # batch, frame-stack channels, actions
    # Spatial must be 84x84: the architecture hard-codes Linear(64*7*7, 512).
    x = jax.random.uniform(xkey, (B, C, 84, 84), jnp.float32)

    params = init_params(pkey, C, A)

    fwd = jax.jit(lambda p, xx, k: ppo_forward(p, xx, A, k))
    action, logp, entropy, value = fwd(params, x, skey)
    jax.block_until_ready((action, logp, entropy, value))

    assert action.shape == (B,)
    assert logp.shape == (B,)
    assert entropy.shape == (B,)
    assert value.shape == (B, 1)
    print("KERNEL_OK")
</pallas_src>

<mosaic_0001>
module attributes {stable_mosaic.version = 11 : i64} {
  func.func @_linear_kernel(%arg0: i32, %arg1: memref<200x1024xbf16, #tpu.memory_space<vmem>>, %arg2: memref<1024x128xbf16, #tpu.memory_space<vmem>>, %arg3: memref<1x128xf32, #tpu.memory_space<vmem>>, %arg4: memref<200x128xbf16, #tpu.memory_space<vmem>>) attributes {dimension_semantics = [#tpu.dimension_semantics<parallel>], iteration_bounds = array<i64: 1>, scalar_prefetch = 0 : i64, scratch_operands = 0 : i64, tpu.core_type = #tpu.core_type<tc>, window_params = [{transform_indices = @transform_0, window_bounds = array<i64: 200, 1024>}, {pipeline_mode = #tpu.pipeline_mode<synchronous>, transform_indices = @transform_1, window_bounds = array<i64: 1024, 128>}, {pipeline_mode = #tpu.pipeline_mode<synchronous>, transform_indices = @transform_2, window_bounds = array<i64: 1, 128>}, {transform_indices = @transform_3, window_bounds = array<i64: 200, 128>}]} {
    %c0 = arith.constant 0 : index
    %c0_0 = arith.constant 0 : index
    %0 = vector.load %arg1[%c0, %c0_0] : memref<200x1024xbf16, #tpu.memory_space<vmem>>, vector<200x1024xbf16>
    %c0_1 = arith.constant 0 : index
    %c0_2 = arith.constant 0 : index
    %1 = vector.load %arg2[%c0_1, %c0_2] : memref<1024x128xbf16, #tpu.memory_space<vmem>>, vector<1024x128xbf16>
    %cst = arith.constant dense<0.000000e+00> : vector<200x128xf32>
    %2 = tpu.matmul %0, %1, %cst {dimension_numbers = #tpu.dot_dimension_numbers<[1], [0], [0], [1], [0, 0, 1, 1], [], []>} : vector<200x1024xbf16>, vector<1024x128xbf16>, vector<200x128xf32> -> vector<200x128xf32>
    %c0_3 = arith.constant 0 : index
    %c0_4 = arith.constant 0 : index
    %3 = vector.load %arg3[%c0_3, %c0_4] : memref<1x128xf32, #tpu.memory_space<vmem>>, vector<1x128xf32>
    %4 = vector.broadcast %3 : vector<1x128xf32> to vector<200x128xf32>
    %5 = arith.addf %2, %4 : vector<200x128xf32>
    %cst_5 = arith.constant 0.000000e+00 : f32
    %6 = vector.broadcast %cst_5 : f32 to vector<200x128xf32>
    %7 = arith.maximumf %5, %6 : vector<200x128xf32>
    %8 = arith.truncf %7 : vector<200x128xf32> to vector<200x128xbf16>
    %c0_6 = arith.constant 0 : index
    %c0_7 = arith.constant 0 : index
    %9 = vector.load %arg4[%c0_6, %c0_7] : memref<200x128xbf16, #tpu.memory_space<vmem>>, vector<200x128xbf16>
    tpu.vector_store %arg4[%c0_6, %c0_7], %8 {strides = array<i32>} : memref<200x128xbf16, #tpu.memory_space<vmem>>, vector<200x128xbf16>,
    return
  }
  func.func @transform_0(%arg0: i32) -> (i32, i32) {
    %c0_i32 = arith.constant 0 : i32
    %c0_i32_0 = arith.constant 0 : i32
    return %arg0, %c0_i32 : i32, i32
  }
  func.func @transform_1(%arg0: i32) -> (i32, i32) {
    %c0_i32 = arith.constant 0 : i32
    %c0_i32_0 = arith.constant 0 : i32
    %c0_i32_1 = arith.constant 0 : i32
    return %c0_i32, %c0_i32_0 : i32, i32
  }
  func.func @transform_2(%arg0: i32) -> (i32, i32) {
    %c0_i32 = arith.constant 0 : i32
    %c0_i32_0 = arith.constant 0 : i32
    %c0_i32_1 = arith.constant 0 : i32
    return %c0_i32, %c0_i32_0 : i32, i32
  }
  func.func @transform_3(%arg0: i32) -> (i32, i32) {
    %c0_i32 = arith.constant 0 : i32
    %c0_i32_0 = arith.constant 0 : i32
    return %arg0, %c0_i32 : i32, i32
  }
}

module attributes {stable_mosaic.version = 11 : i64} {
  func.func @_linear_kernel(%arg0: i32, %arg1: memref<81x1024xbf16, #tpu.memory_space<vmem>>, %arg2: memref<1024x128xbf16, #tpu.memory_space<vmem>>, %arg3: memref<1x128xf32, #tpu.memory_space<vmem>>, %arg4: memref<81x128xbf16, #tpu.memory_space<vmem>>) attributes {dimension_semantics = [#tpu.dimension_semantics<parallel>], iteration_bounds = array<i64: 1>, scalar_prefetch = 0 : i64, scratch_operands = 0 : i64, tpu.core_type = #tpu.core_type<tc>, window_params = [{transform_indices = @transform_0, window_bounds = array<i64: 81, 1024>}, {pipeline_mode = #tpu.pipeline_mode<synchronous>, transform_indices = @transform_1, window_bounds = array<i64: 1024, 128>}, {pipeline_mode = #tpu.pipeline_mode<synchronous>, transform_indices = @transform_2, window_bounds = array<i64: 1, 128>}, {transform_indices = @transform_3, window_bounds = array<i64: 81, 128>}]} {
    %c0 = arith.constant 0 : index
    %c0_0 = arith.constant 0 : index
    %0 = vector.load %arg1[%c0, %c0_0] : memref<81x1024xbf16, #tpu.memory_space<vmem>>, vector<81x1024xbf16>
    %c0_1 = arith.constant 0 : index
    %c0_2 = arith.constant 0 : index
    %1 = vector.load %arg2[%c0_1, %c0_2] : memref<1024x128xbf16, #tpu.memory_space<vmem>>, vector<1024x128xbf16>
    %cst = arith.constant dense<0.000000e+00> : vector<81x128xf32>
    %2 = tpu.matmul %0, %1, %cst {dimension_numbers = #tpu.dot_dimension_numbers<[1], [0], [0], [1], [0, 0, 1, 1], [], []>} : vector<81x1024xbf16>, vector<1024x128xbf16>, vector<81x128xf32> -> vector<81x128xf32>
    %c0_3 = arith.constant 0 : index
    %c0_4 = arith.constant 0 : index
    %3 = vector.load %arg3[%c0_3, %c0_4] : memref<1x128xf32, #tpu.memory_space<vmem>>, vector<1x128xf32>
    %4 = vector.broadcast %3 : vector<1x128xf32> to vector<81x128xf32>
    %5 = arith.addf %2, %4 : vector<81x128xf32>
    %cst_5 = arith.constant 0.000000e+00 : f32
    %6 = vector.broadcast %cst_5 : f32 to vector<81x128xf32>
    %7 = arith.maximumf %5, %6 : vector<81x128xf32>
    %8 = arith.truncf %7 : vector<81x128xf32> to vector<81x128xbf16>
    %c0_6 = arith.constant 0 : index
    %c0_7 = arith.constant 0 : index
    %9 = vector.load %arg4[%c0_6, %c0_7] : memref<81x128xbf16, #tpu.memory_space<vmem>>, vector<81x128xbf16>
    tpu.vector_store %arg4[%c0_6, %c0_7], %8 {strides = array<i32>} : memref<81x128xbf16, #tpu.memory_space<vmem>>, vector<81x128xbf16>,
    return
  }
  func.func @transform_0(%arg0: i32) -> (i32, i32) {
    %c0_i32 = arith.constant 0 : i32
    %c0_i32_0 = arith.constant 0 : i32
    return %arg0, %c0_i32 : i32, i32
  }
  func.func @transform_1(%arg0: i32) -> (i32, i32) {
    %c0_i32 = arith.constant 0 : i32
    %c0_i32_0 = arith.constant 0 : i32
    %c0_i32_1 = arith.constant 0 : i32
    return %c0_i32, %c0_i32_0 : i32, i32
  }
  func.func @transform_2(%arg0: i32) -> (i32, i32) {
    %c0_i32 = arith.constant 0 : i32
    %c0_i32_0 = arith.constant 0 : i32
    %c0_i32_1 = arith.constant 0 : i32
    return %c0_i32, %c0_i32_0 : i32, i32
  }
  func.func @transform_3(%arg0: i32) -> (i32, i32) {
    %c0_i32 = arith.constant 0 : i32
    %c0_i32_0 = arith.constant 0 : i32
    return %arg0, %c0_i32 : i32, i32
  }
}

module attributes {stable_mosaic.version = 11 : i64} {
  func.func @_fc_heads_kernel(%arg0: i32, %arg1: memref<2x3136xbf16, #tpu.memory_space<vmem>>, %arg2: memref<3136x512xbf16, #tpu.memory_space<vmem>>, %arg3: memref<1x512xf32, #tpu.memory_space<vmem>>, %arg4: memref<512x128xbf16, #tpu.memory_space<vmem>>, %arg5: memref<1x128xf32, #tpu.memory_space<vmem>>, %arg6: memref<2x128xf32, #tpu.memory_space<vmem>>) attributes {dimension_semantics = [#tpu.dimension_semantics<parallel>], iteration_bounds = array<i64: 1>, scalar_prefetch = 0 : i64, scratch_operands = 0 : i64, tpu.core_type = #tpu.core_type<tc>, window_params = [{transform_indices = @transform_0, window_bounds = array<i64: 2, 3136>}, {pipeline_mode = #tpu.pipeline_mode<synchronous>, transform_indices = @transform_1, window_bounds = array<i64: 3136, 512>}, {pipeline_mode = #tpu.pipeline_mode<synchronous>, transform_indices = @transform_2, window_bounds = array<i64: 1, 512>}, {pipeline_mode = #tpu.pipeline_mode<synchronous>, transform_indices = @transform_3, window_bounds = array<i64: 512, 128>}, {pipeline_mode = #tpu.pipeline_mode<synchronous>, transform_indices = @transform_4, window_bounds = array<i64: 1, 128>}, {transform_indices = @transform_5, window_bounds = array<i64: 2, 128>}]} {
    %c0 = arith.constant 0 : index
    %c0_0 = arith.constant 0 : index
    %0 = vector.load %arg1[%c0, %c0_0] : memref<2x3136xbf16, #tpu.memory_space<vmem>>, vector<2x3136xbf16>
    %c0_1 = arith.constant 0 : index
    %c0_2 = arith.constant 0 : index
    %1 = vector.load %arg2[%c0_1, %c0_2] : memref<3136x512xbf16, #tpu.memory_space<vmem>>, vector<3136x512xbf16>
    %cst = arith.constant dense<0.000000e+00> : vector<2x512xf32>
    %2 = tpu.matmul %0, %1, %cst {dimension_numbers = #tpu.dot_dimension_numbers<[1], [0], [0], [1], [0, 0, 1, 1], [], []>} : vector<2x3136xbf16>, vector<3136x512xbf16>, vector<2x512xf32> -> vector<2x512xf32>
    %c0_3 = arith.constant 0 : index
    %c0_4 = arith.constant 0 : index
    %3 = vector.load %arg3[%c0_3, %c0_4] : memref<1x512xf32, #tpu.memory_space<vmem>>, vector<1x512xf32>
    %4 = vector.broadcast %3 : vector<1x512xf32> to vector<2x512xf32>
    %5 = arith.addf %2, %4 : vector<2x512xf32>
    %cst_5 = arith.constant 0.000000e+00 : f32
    %6 = vector.broadcast %cst_5 : f32 to vector<2x512xf32>
    %7 = arith.maximumf %5, %6 : vector<2x512xf32>
    %8 = arith.truncf %7 : vector<2x512xf32> to vector<2x512xbf16>
    %c0_6 = arith.constant 0 : index
    %c0_7 = arith.constant 0 : index
    %9 = vector.load %arg4[%c0_6, %c0_7] : memref<512x128xbf16, #tpu.memory_space<vmem>>, vector<512x128xbf16>
    %cst_8 = arith.constant dense<0.000000e+00> : vector<2x128xf32>
    %10 = tpu.matmul %8, %9, %cst_8 {dimension_numbers = #tpu.dot_dimension_numbers<[1], [0], [0], [1], [0, 0, 1, 1], [], []>} : vector<2x512xbf16>, vector<512x128xbf16>, vector<2x128xf32> -> vector<2x128xf32>
    %c0_9 = arith.constant 0 : index
    %c0_10 = arith.constant 0 : index
    %11 = vector.load %arg5[%c0_9, %c0_10] : memref<1x128xf32, #tpu.memory_space<vmem>>, vector<1x128xf32>
    %12 = vector.broadcast %11 : vector<1x128xf32> to vector<2x128xf32>
    %13 = arith.addf %10, %12 : vector<2x128xf32>
    %14 = tpu.iota {dimensions = array<i32: 1>} : vector<2x128xi32>
    %c6_i32 = arith.constant 6 : i32
    %15 = vector.broadcast %c6_i32 : i32 to vector<2x128xi32>
    %16 = arith.cmpi slt, %14, %15 : vector<2x128xi32>
    %cst_11 = arith.constant 0xFF800000 : f32
    %17 = vector.broadcast %cst_11 : f32 to vector<2x128xf32>
    %18 = arith.select %16, %13, %17 : vector<2x128xi1>, vector<2x128xf32>
    %cst_12 = arith.constant dense<0xFF800000> : vector<2xf32>
    %19 = vector.multi_reduction <maximumf>, %18, %cst_12 [1] : vector<2x128xf32> to vector<2xf32>
    %20 = vector.shape_cast %19 : vector<2xf32> to vector<2x1xf32>
    %21 = vector.broadcast %20 : vector<2x1xf32> to vector<2x128xf32>
    %22 = arith.subf %13, %21 : vector<2x128xf32>
    %23 = math.exp %22 : vector<2x128xf32>
    %cst_13 = arith.constant 0.000000e+00 : f32
    %24 = vector.broadcast %cst_13 : f32 to vector<2x128xf32>
    %25 = arith.select %16, %23, %24 : vector<2x128xi1>, vector<2x128xf32>
    %cst_14 = arith.constant dense<0.000000e+00> : vector<2xf32>
    %26 = vector.multi_reduction <add>, %25, %cst_14 [1] : vector<2x128xf32> to vector<2xf32>
    %27 = vector.shape_cast %26 : vector<2xf32> to vector<2x1xf32>
    %28 = math.log %27 : vector<2x1xf32>
    %29 = arith.addf %20, %28 : vector<2x1xf32>
    %30 = vector.broadcast %29 : vector<2x1xf32> to vector<2x128xf32>
    %31 = arith.subf %13, %30 : vector<2x128xf32>
    %32 = tpu.reciprocal %27 {approx = true} : vector<2x1xf32> -> vector<2x1xf32>
    %33 = vector.broadcast %32 : vector<2x1xf32> to vector<2x128xf32>
    %34 = arith.mulf %25, %33 : vector<2x128xf32>
    %35 = arith.mulf %34, %31 : vector<2x128xf32>
    %cst_15 = arith.constant 0.000000e+00 : f32
    %36 = vector.broadcast %cst_15 : f32 to vector<2x128xf32>
    %37 = arith.select %16, %35, %36 : vector<2x128xi1>, vector<2x128xf32>
    %cst_16 = arith.constant dense<0.000000e+00> : vector<2xf32>
    %38 = vector.multi_reduction <add>, %37, %cst_16 [1] : vector<2x128xf32> to vector<2xf32>
    %39 = vector.shape_cast %38 : vector<2xf32> to vector<2x1xf32>
    %cst_17 = arith.constant 0.000000e+00 : f32
    %40 = vector.broadcast %cst_17 : f32 to vector<2x1xf32>
    %41 = arith.subf %40, %39 : vector<2x1xf32>
    %cst_18 = arith.constant 0.000000e+00 : f32
    %42 = vector.broadcast %cst_18 : f32 to vector<2x128xf32>
    %43 = arith.select %16, %31, %42 : vector<2x128xi1>, vector<2x128xf32>
    %c6_i32_19 = arith.constant 6 : i32
    %44 = vector.broadcast %c6_i32_19 : i32 to vector<2x128xi32>
    %45 = arith.cmpi eq, %14, %44 : vector<2x128xi32>
    %46 = vector.shape_cast %41 : vector<2x1xf32> to vector<2x1xf32>
    %47 = vector.broadcast %46 : vector<2x1xf32> to vector<2x128xf32>
    %48 = arith.select %45, %47, %43 : vector<2x128xi1>, vector<2x128xf32>
    %c7_i32 = arith.constant 7 : i32
    %49 = vector.broadcast %c7_i32 : i32 to vector<2x128xi32>
    %50 = arith.cmpi eq, %14, %49 : vector<2x128xi32>
    %51 = arith.select %50, %13, %48 : vector<2x128xi1>, vector<2x128xf32>
    %c0_20 = arith.constant 0 : index
    %c0_21 = arith.constant 0 : index
    %52 = vector.load %arg6[%c0_20, %c0_21] : memref<2x128xf32, #tpu.memory_space<vmem>>, vector<2x128xf32>
    tpu.vector_store %arg6[%c0_20, %c0_21], %51 {strides = array<i32>} : memref<2x128xf32, #tpu.memory_space<vmem>>, vector<2x128xf32>,
    return
  }
  func.func @transform_0(%arg0: i32) -> (i32, i32) {
    %c0_i32 = arith.constant 0 : i32
    %c0_i32_0 = arith.constant 0 : i32
    return %arg0, %c0_i32 : i32, i32
  }
  func.func @transform_1(%arg0: i32) -> (i32, i32) {
    %c0_i32 = arith.constant 0 : i32
    %c0_i32_0 = arith.constant 0 : i32
    %c0_i32_1 = arith.constant 0 : i32
    return %c0_i32, %c0_i32_0 : i32, i32
  }
  func.func @transform_2(%arg0: i32) -> (i32, i32) {
    %c0_i32 = arith.constant 0 : i32
    %c0_i32_0 = arith.constant 0 : i32
    %c0_i32_1 = arith.constant 0 : i32
    return %c0_i32, %c0_i32_0 : i32, i32
  }
  func.func @transform_3(%arg0: i32) -> (i32, i32) {
    %c0_i32 = arith.constant 0 : i32
    %c0_i32_0 = arith.constant 0 : i32
    %c0_i32_1 = arith.constant 0 : i32
    return %c0_i32, %c0_i32_0 : i32, i32
  }
  func.func @transform_4(%arg0: i32) -> (i32, i32) {
    %c0_i32 = arith.constant 0 : i32
    %c0_i32_0 = arith.constant 0 : i32
    %c0_i32_1 = arith.constant 0 : i32
    return %c0_i32, %c0_i32_0 : i32, i32
  }
  func.func @transform_5(%arg0: i32) -> (i32, i32) {
    %c0_i32 = arith.constant 0 : i32
    %c0_i32_0 = arith.constant 0 : i32
    return %arg0, %c0_i32 : i32, i32
  }
}

module attributes {stable_mosaic.version = 11 : i64} {
  func.func @_linear_kernel(%arg0: i32, %arg1: memref<49x1152xbf16, #tpu.memory_space<vmem>>, %arg2: memref<1152x128xbf16, #tpu.memory_space<vmem>>, %arg3: memref<1x128xf32, #tpu.memory_space<vmem>>, %arg4: memref<49x128xbf16, #tpu.memory_space<vmem>>) attributes {dimension_semantics = [#tpu.dimension_semantics<parallel>], iteration_bounds = array<i64: 1>, scalar_prefetch = 0 : i64, scratch_operands = 0 : i64, tpu.core_type = #tpu.core_type<tc>, window_params = [{transform_indices = @transform_0, window_bounds = array<i64: 49, 1152>}, {pipeline_mode = #tpu.pipeline_mode<synchronous>, transform_indices = @transform_1, window_bounds = array<i64: 1152, 128>}, {pipeline_mode = #tpu.pipeline_mode<synchronous>, transform_indices = @transform_2, window_bounds = array<i64: 1, 128>}, {transform_indices = @transform_3, window_bounds = array<i64: 49, 128>}]} {
    %c0 = arith.constant 0 : index
    %c0_0 = arith.constant 0 : index
    %0 = vector.load %arg1[%c0, %c0_0] : memref<49x1152xbf16, #tpu.memory_space<vmem>>, vector<49x1152xbf16>
    %c0_1 = arith.constant 0 : index
    %c0_2 = arith.constant 0 : index
    %1 = vector.load %arg2[%c0_1, %c0_2] : memref<1152x128xbf16, #tpu.memory_space<vmem>>, vector<1152x128xbf16>
    %cst = arith.constant dense<0.000000e+00> : vector<49x128xf32>
    %2 = tpu.matmul %0, %1, %cst {dimension_numbers = #tpu.dot_dimension_numbers<[1], [0], [0], [1], [0, 0, 1, 1], [], []>} : vector<49x1152xbf16>, vector<1152x128xbf16>, vector<49x128xf32> -> vector<49x128xf32>
    %c0_3 = arith.constant 0 : index
    %c0_4 = arith.constant 0 : index
    %3 = vector.load %arg3[%c0_3, %c0_4] : memref<1x128xf32, #tpu.memory_space<vmem>>, vector<1x128xf32>
    %4 = vector.broadcast %3 : vector<1x128xf32> to vector<49x128xf32>
    %5 = arith.addf %2, %4 : vector<49x128xf32>
    %cst_5 = arith.constant 0.000000e+00 : f32
    %6 = vector.broadcast %cst_5 : f32 to vector<49x128xf32>
    %7 = arith.maximumf %5, %6 : vector<49x128xf32>
    %8 = arith.truncf %7 : vector<49x128xf32> to vector<49x128xbf16>
    %c0_6 = arith.constant 0 : index
    %c0_7 = arith.constant 0 : index
    %9 = vector.load %arg4[%c0_6, %c0_7] : memref<49x128xbf16, #tpu.memory_space<vmem>>, vector<49x128xbf16>
    tpu.vector_store %arg4[%c0_6, %c0_7], %8 {strides = array<i32>} : memref<49x128xbf16, #tpu.memory_space<vmem>>, vector<49x128xbf16>,
    return
  }
  func.func @transform_0(%arg0: i32) -> (i32, i32) {
    %c0_i32 = arith.constant 0 : i32
    %c0_i32_0 = arith.constant 0 : i32
    return %arg0, %c0_i32 : i32, i32
  }
  func.func @transform_1(%arg0: i32) -> (i32, i32) {
    %c0_i32 = arith.constant 0 : i32
    %c0_i32_0 = arith.constant 0 : i32
    %c0_i32_1 = arith.constant 0 : i32
    return %c0_i32, %c0_i32_0 : i32, i32
  }
  func.func @transform_2(%arg0: i32) -> (i32, i32) {
    %c0_i32 = arith.constant 0 : i32
    %c0_i32_0 = arith.constant 0 : i32
    %c0_i32_1 = arith.constant 0 : i32
    return %c0_i32, %c0_i32_0 : i32, i32
  }
  func.func @transform_3(%arg0: i32) -> (i32, i32) {
    %c0_i32 = arith.constant 0 : i32
    %c0_i32_0 = arith.constant 0 : i32
    return %arg0, %c0_i32 : i32, i32
  }
}

</mosaic_0001>

<bundles_post_ra>
// kernel: _lambda_.4
= control target key start
LH: loop header
LB: loop body
LE: loop exit
PB: predicated region body
PF: predicated region fallthrough
CT: control target
= control target key end

     0   :  { %s3617_s1 = inlined_call_operand.vmem [shape: bf16[1024,128], index: 1, kind: input, shape index: {}]   ;;  %s3618_s2 = inlined_call_operand.vmem [shape: f32[1,128], index: 2, kind: input, shape index: {}]   ;;  %s3619_s0 = inlined_call_operand.vmem [shape: bf16[200,1024], index: 0, kind: input, shape index: {}]   ;;  %s3620_s3 = inlined_call_operand.vmem [shape: bf16[200,128], index: 3, kind: output, shape index: {}]  }
   0x1   :  { %v2544_v0 = vld [vmem:[%s3617_s1 + $0x38] sm:$0xff]  ;;  %v2543_v4 = vld [vmem:[%s3617_s1 + $0x30] sm:$0xff]  ;;  %v2542_v8 = vld [vmem:[%s3617_s1 + $0x28] sm:$0xff] }
   0x2   :  { %v2552_v1 = vld [vmem:[%s3617_s1 + $0x78] sm:$0xff]  ;;  %1138 = vmatpush.bf16.msra.mxu0 %v2544_v0  ;;  %v2551_v5 = vld [vmem:[%s3617_s1 + $0x70] sm:$0xff]  ;;  %v2550_v9 = vld [vmem:[%s3617_s1 + $0x68] sm:$0xff] }
   0x3   :  { %v2560_v2 = vld [vmem:[%s3617_s1 + $0xb8] sm:$0xff]  ;;  %1211 = vmatpush.bf16.msra.mxu1 %v2552_v1  ;;  %v2559_v6 = vld [vmem:[%s3617_s1 + $0xb0] sm:$0xff]  ;;  %v2558_v10 = vld [vmem:[%s3617_s1 + $0xa8] sm:$0xff] }
   0x4   :  { %v2568_v3 = vld [vmem:[%s3617_s1 + $0xf8] sm:$0xff]  ;;  %1284 = vmatpush.bf16.msra.mxu2 %v2560_v2  ;;  %v2567_v7 = vld [vmem:[%s3617_s1 + $0xf0] sm:$0xff]  ;;  %v2566_v11 = vld [vmem:[%s3617_s1 + $0xe8] sm:$0xff] }
   0x5   :  { %1357 = vmatpush.bf16.msra.mxu3 %v2568_v3  ;;  %v2541_v12 = vld [vmem:[%s3617_s1 + $0x20] sm:$0xff]  ;;  %v2540_v16 = vld [vmem:[%s3617_s1 + $0x18] sm:$0xff]  ;;  %v2539_v20 = vld [vmem:[%s3617_s1 + $0x10] sm:$0xff] }
   0x6   :  { %1139 = vmatpush.bf16.msra.mxu0 %v2543_v4  ;;  %v2549_v13 = vld [vmem:[%s3617_s1 + $0x60] sm:$0xff]  ;;  %v2548_v17 = vld [vmem:[%s3617_s1 + $0x58] sm:$0xff]  ;;  %v2547_v21 = vld [vmem:[%s3617_s1 + $0x50] sm:$0xff] }
   0x7   :  { %1212 = vmatpush.bf16.msra.mxu1 %v2551_v5  ;;  %v2557_v14 = vld [vmem:[%s3617_s1 + $0xa0] sm:$0xff]  ;;  %v2556_v18 = vld [vmem:[%s3617_s1 + $0x98] sm:$0xff]  ;;  %v2555_v22 = vld [vmem:[%s3617_s1 + $0x90] sm:$0xff] }
   0x8   :  { %1285 = vmatpush.bf16.msra.mxu2 %v2559_v6  ;;  %v2565_v15 = vld [vmem:[%s3617_s1 + $0xe0] sm:$0xff]  ;;  %v2564_v19 = vld [vmem:[%s3617_s1 + $0xd8] sm:$0xff]  ;;  %v2563_v23 = vld [vmem:[%s3617_s1 + $0xd0] sm:$0xff] }
   0x9   :  { %1358 = vmatpush.bf16.msra.mxu3 %v2567_v7  ;;  %v2538_v24 = vld [vmem:[%s3617_s1 + $0x8] sm:$0xff]  ;;  %v2537_v28 = vld [vmem:[%s3617_s1] sm:$0xff]  ;;  %v2592_v40 = vld [vmem:[%s3617_s1 + $0x1b8] sm:$0xff] }
   0xa   :  { %1140 = vmatpush.bf16.msra.mxu0 %v2542_v8  ;;  %v2546_v25 = vld [vmem:[%s3617_s1 + $0x48] sm:$0xff]  ;;  %v2545_v29 = vld [vmem:[%s3617_s1 + $0x40] sm:$0xff]  ;;  %v2600_v41 = vld [vmem:[%s3617_s1 + $0x1f8] sm:$0xff] }
   0xb   :  { %1213 = vmatpush.bf16.msra.mxu1 %v2550_v9  ;;  %v2554_v26 = vld [vmem:[%s3617_s1 + $0x88] sm:$0xff]  ;;  %v2553_v30 = vld [vmem:[%s3617_s1 + $0x80] sm:$0xff]  ;;  %v2576_v46 = vld [vmem:[%s3617_s1 + $0x138] sm:$0xff] }
   0xc   :  { %1286 = vmatpush.bf16.msra.mxu2 %v2558_v10  ;;  %v2562_v27 = vld [vmem:[%s3617_s1 + $0xc8] sm:$0xff]  ;;  %v2561_v31 = vld [vmem:[%s3617_s1 + $0xc0] sm:$0xff]  ;;  %v2584_v47 = vld [vmem:[%s3617_s1 + $0x178] sm:$0xff] }
   0xd   :  { %1359 = vmatpush.bf16.msra.mxu3 %v2566_v11  ;;  %v1803_v32 = vld [vmem:[%s3619_s0] sm:$0xf]  ;;  %v2441_v34 = vld [vmem:[%s3619_s0 + $0x4] sm:$0xf]  ;;  %v1811_v36 = vld [vmem:[%s3619_s0 + $0x8] sm:$0xf] }
   0xe   :  { %1141 = vmatpush.bf16.msra.mxu0 %v2541_v12  ;;  %v2445_v33 = vld [vmem:[%s3619_s0 + $0x1c] sm:$0xf0]  ;;  %v1805_v35 = vld [vmem:[%s3619_s0 + $0x20] sm:$0xf0]  ;;  %v2446_v37 = vld [vmem:[%s3619_s0 + $0x24] sm:$0xf0] }
   0xf   :  { %1214 = vmatpush.bf16.msra.mxu1 %v2549_v13  ;;  %v2442_v38 = vld [vmem:[%s3619_s0 + $0xc] sm:$0xf]  ;;  %v1804_v42 = vor.u32 %v2445_v33, %v1803_v32  ;;  %v1808_v43 = vor.u32 %v2441_v34, %v1805_v35  ;;  %v1812_v44 = vor.u32 %v2446_v37, %v1811_v36  ;;  %v2591_v48 = vld [vmem:[%s3617_s1 + $0x1b0] sm:$0xff]  ;;  %v1835_v52 = vld [vmem:[%s3619_s0 + $0x40] sm:$0xf] }
  0x10   :  { %1287 = vmatpush.bf16.msra.mxu2 %v2557_v14  ;;  %v1813_v39 = vld [vmem:[%s3619_s0 + $0x28] sm:$0xf0]  ;;  %v2599_v49 = vld [vmem:[%s3617_s1 + $0x1f0] sm:$0xff]  ;;  %v2453_v53 = vld [vmem:[%s3619_s0 + $0x5c] sm:$0xf0] }
  0x11   :  { %1360 = vmatpush.bf16.msra.mxu3 %v2565_v15  ;;  %v1816_v45 = vor.u32 %v2442_v38, %v1813_v39  ;;  %v2575_v50 = vld [vmem:[%s3617_s1 + $0x130] sm:$0xff]  ;;  %v2449_v54 = vld [vmem:[%s3619_s0 + $0x44] sm:$0xf]  ;;  %v1843_v56 = vld [vmem:[%s3619_s0 + $0x48] sm:$0xf]  ;;  %v1836_v60 = vor.u32 %v2453_v53, %v1835_v52 }
  0x12   :  { %1142 = vmatpush.bf16.msra.mxu0 %v2540_v16  ;;  %v2583_v51 = vld [vmem:[%s3617_s1 + $0x170] sm:$0xff]  ;;  %v1837_v55 = vld [vmem:[%s3619_s0 + $0x60] sm:$0xf0]  ;;  %v2454_v57 = vld [vmem:[%s3619_s0 + $0x64] sm:$0xf0] }
  0x13   :  { %1215 = vmatpush.bf16.msra.mxu1 %v2548_v17  ;;  %v2450_v58 = vld [vmem:[%s3619_s0 + $0x4c] sm:$0xf]  ;;  %v1840_v61 = vor.u32 %v2449_v54, %v1837_v55  ;;  %v1844_v62 = vor.u32 %v2454_v57, %v1843_v56  ;;  %v1867_v4 = vld [vmem:[%s3619_s0 + $0x80] sm:$0xf]  ;;  %v2457_v6 = vld [vmem:[%s3619_s0 + $0x84] sm:$0xf] }
  0x14   :  { %1288 = vmatpush.bf16.msra.mxu2 %v2556_v18  ;;  %v1845_v59 = vld [vmem:[%s3619_s0 + $0x68] sm:$0xf0]  ;;  %v2461_v5 = vld [vmem:[%s3619_s0 + $0x9c] sm:$0xf0]  ;;  %v1869_v7 = vld [vmem:[%s3619_s0 + $0xa0] sm:$0xf0] }
  0x15   :  { %1361 = vmatpush.bf16.msra.mxu3 %v2564_v19  ;;  %v1848_v63 = vor.u32 %v2450_v58, %v1845_v59  ;;  %v2590_v0 = vld [vmem:[%s3617_s1 + $0x1a8] sm:$0xff]  ;;  %v1868_v12 = vor.u32 %v2461_v5, %v1867_v4  ;;  %v1872_v13 = vor.u32 %v2457_v6, %v1869_v7  ;;  %v2589_v16 = vld [vmem:[%s3617_s1 + $0x1a0] sm:$0xff] }
  0x16   :  { %1143 = vmatpush.bf16.msra.mxu0 %v2539_v20  ;;  %v2598_v1 = vld [vmem:[%s3617_s1 + $0x1e8] sm:$0xff]  ;;  %v2597_v17 = vld [vmem:[%s3617_s1 + $0x1e0] sm:$0xff] }
  0x17   :  { %1216 = vmatpush.bf16.msra.mxu1 %v2547_v21  ;;  %v2574_v2 = vld [vmem:[%s3617_s1 + $0x128] sm:$0xff]  ;;  %v1899_v18 = vld [vmem:[%s3619_s0 + $0xc0] sm:$0xf]  ;;  %v2465_v20 = vld [vmem:[%s3619_s0 + $0xc4] sm:$0xf] }
  0x18   :  { %1289 = vmatpush.bf16.msra.mxu2 %v2555_v22  ;;  %v2582_v3 = vld [vmem:[%s3617_s1 + $0x168] sm:$0xff]  ;;  %v2469_v19 = vld [vmem:[%s3619_s0 + $0xdc] sm:$0xf0]  ;;  %v1901_v21 = vld [vmem:[%s3619_s0 + $0xe0] sm:$0xf0] }
  0x19   :  { %1362 = vmatpush.bf16.msra.mxu3 %v2563_v23  ;;  %v1875_v8 = vld [vmem:[%s3619_s0 + $0x88] sm:$0xf]  ;;  %v2458_v10 = vld [vmem:[%s3619_s0 + $0x8c] sm:$0xf]  ;;  %v1931_v32 = vld [vmem:[%s3619_s0 + $0x100] sm:$0xf] }
  0x1a   :  { %1144 = vmatpush.bf16.msra.mxu0 %v2538_v24  ;;  %v2462_v9 = vld [vmem:[%s3619_s0 + $0xa4] sm:$0xf0]  ;;  %v1877_v11 = vld [vmem:[%s3619_s0 + $0xa8] sm:$0xf0]  ;;  %v2477_v33 = vld [vmem:[%s3619_s0 + $0x11c] sm:$0xf0] }
  0x1b   :  { %1217 = vmatpush.bf16.msra.mxu1 %v2546_v25  ;;  %v1876_v14 = vor.u32 %v2462_v9, %v1875_v8  ;;  %v1880_v15 = vor.u32 %v2458_v10, %v1877_v11  ;;  %v1907_v22 = vld [vmem:[%s3619_s0 + $0xc8] sm:$0xf]  ;;  %v2466_v24 = vld [vmem:[%s3619_s0 + $0xcc] sm:$0xf]  ;;  %v2473_v34 = vld [vmem:[%s3619_s0 + $0x104] sm:$0xf] }
  0x1c   :  { %1290 = vmatpush.bf16.msra.mxu2 %v2554_v26  ;;  %v2470_v23 = vld [vmem:[%s3619_s0 + $0xe4] sm:$0xf0]  ;;  %v1909_v25 = vld [vmem:[%s3619_s0 + $0xe8] sm:$0xf0]  ;;  %v1900_v26 = vor.u32 %v2469_v19, %v1899_v18  ;;  %v1933_v35 = vld [vmem:[%s3619_s0 + $0x120] sm:$0xf0] }
  0x1d   :  { %1363 = vmatpush.bf16.msra.mxu3 %v2562_v27  ;;  %v1904_v27 = vor.u32 %v2465_v20, %v1901_v21  ;;  %v1939_v36 = vld [vmem:[%s3619_s0 + $0x108] sm:$0xf]  ;;  %v2474_v38 = vld [vmem:[%s3619_s0 + $0x10c] sm:$0xf]  ;;  %v2587_v8 = vld [vmem:[%s3617_s1 + $0x190] sm:$0xff] }
  0x1e   :  { %1145 = vmatpush.bf16.msra.mxu0 %v2537_v28  ;;  %v1908_v28 = vor.u32 %v2470_v23, %v1907_v22  ;;  %v2478_v37 = vld [vmem:[%s3619_s0 + $0x124] sm:$0xf0]  ;;  %v1941_v39 = vld [vmem:[%s3619_s0 + $0x128] sm:$0xf0]  ;;  %v2595_v9 = vld [vmem:[%s3617_s1 + $0x1d0] sm:$0xff] }
  0x1f   :  { %1218 = vmatpush.bf16.msra.mxu1 %v2545_v29  ;;  %v1912_v29 = vor.u32 %v2466_v24, %v1909_v25  ;;  %v1971_v52 = vld [vmem:[%s3619_s0 + $0x148] sm:$0xf]  ;;  %v2482_v54 = vld [vmem:[%s3619_s0 + $0x14c] sm:$0xf]  ;;  %v2571_v10 = vld [vmem:[%s3617_s1 + $0x110] sm:$0xff] }
  0x20   :  { %1291 = vmatpush.bf16.msra.mxu2 %v2553_v30  ;;  %v2573_v30 = vld [vmem:[%s3617_s1 + $0x120] sm:$0xff]  ;;  %v2486_v53 = vld [vmem:[%s3619_s0 + $0x164] sm:$0xf0]  ;;  %v1973_v55 = vld [vmem:[%s3619_s0 + $0x168] sm:$0xf0] }
  0x21   :  { %1364 = vmatpush.bf16.msra.mxu3 %v2561_v31  ;;  %1146 = vmatmul.bf16.vlgmr.msra.gmra.mxu0 %v1804_v42  ;;  %v2581_v31 = vld [vmem:[%s3617_s1 + $0x160] sm:$0xff]  ;;  %v1940_v42 = vor.u32 %v2478_v37, %v1939_v36  ;;  %v1972_v58 = vor.u32 %v2486_v53, %v1971_v52  ;;  %v1976_v59 = vor.u32 %v2482_v54, %v1973_v55  ;;  %v2498_v18 = vld [vmem:[%s3619_s0 + $0x1cc] sm:$0xf] }
  0x22   :  { %1219 = vmatmul.bf16.vlgmr.msra.gmra.mxu1 %v1808_v43  ;;  %1430 = vmatpush.bf16.msrb.mxu0 %v2576_v46  ;;  %v1944_v43 = vor.u32 %v2474_v38, %v1941_v39  ;;  %v2572_v46 = vld [vmem:[%s3617_s1 + $0x118] sm:$0xff]  ;;  %v2027_v11 = vld [vmem:[%s3619_s0 + $0x1c0] sm:$0xf]  ;;  %v2037_v19 = vld [vmem:[%s3619_s0 + $0x1e8] sm:$0xf0] }
  0x23   :  { %1292 = vmatmul.bf16.vlgmr.msra.gmra.mxu2 %v1812_v44  ;;  %1503 = vmatpush.bf16.msrb.mxu1 %v2584_v47  ;;  %v2588_v44 = vld [vmem:[%s3617_s1 + $0x198] sm:$0xff]  ;;  %v2040_v23 = vor.u32 %v2498_v18, %v2037_v19  ;;  %v3056_v24 = vld [vmem:[%s3618_s2] ss:$0 sm:$0xff]  ;;  %v2513_v55 = vld [vmem:[%s3619_s0 + $0x244] sm:$0xf] }
  0x24   :  { %1576 = vmatpush.bf16.msrb.mxu2 %v2592_v40  ;;  %1365 = vmatmul.bf16.vlgmr.msra.gmra.mxu3 %v1816_v45  ;;  %v1932_v40 = vor.u32 %v2477_v33, %v1931_v32  ;;  %v2596_v45 = vld [vmem:[%s3617_s1 + $0x1d8] sm:$0xff]  ;;  %v2059_v25 = vld [vmem:[%s3619_s0 + $0x200] sm:$0xf]  ;;  %v2069_v32 = vld [vmem:[%s3619_s0 + $0x228] sm:$0xf0] }
  0x25   :  { %1649 = vmatpush.bf16.msrb.mxu3 %v2600_v41  ;;  %v1936_v41 = vor.u32 %v2473_v34, %v1933_v35  ;;  %v2580_v47 = vld [vmem:[%s3617_s1 + $0x158] sm:$0xff]  ;;  %v2091_v53 = vld [vmem:[%s3619_s0 + $0x240] sm:$0xf]  ;;  %v2521_v18 = vld [vmem:[%s3619_s0 + $0x284] sm:$0xf] }
  0x26   :  { %1431 = vmatpush.bf16.msrb.mxu0 %v2575_v50  ;;  %v2481_v50 = vld [vmem:[%s3619_s0 + $0x144] sm:$0xf]  ;;  %v2517_v54 = vld [vmem:[%s3619_s0 + $0x25c] sm:$0xf0] }
  0x27   :  { %1504 = vmatpush.bf16.msrb.mxu1 %v2583_v51  ;;  %v1965_v51 = vld [vmem:[%s3619_s0 + $0x160] sm:$0xf0] }
  0x28   :  { %1577 = vmatpush.bf16.msrb.mxu2 %v2591_v48  ;;  %v1963_v48 = vld [vmem:[%s3619_s0 + $0x140] sm:$0xf]  ;;  %v1968_v57 = vor.u32 %v2481_v50, %v1965_v51 }
  0x29   :  { %1650 = vmatpush.bf16.msrb.mxu3 %v2599_v49  ;;  %v2485_v49 = vld [vmem:[%s3619_s0 + $0x15c] sm:$0xf0] }
  0x2a   :  { %1432 = vmatpush.bf16.msrb.mxu0 %v2574_v2  ;;  %v1964_v56 = vor.u32 %v2485_v49, %v1963_v48  ;;  %v2490_v2 = vld [vmem:[%s3619_s0 + $0x18c] sm:$0xf] }
  0x2b   :  { %1505 = vmatpush.bf16.msrb.mxu1 %v2582_v3  ;;  %v2005_v3 = vld [vmem:[%s3619_s0 + $0x1a8] sm:$0xf0] }
  0x2c   :  { %1578 = vmatpush.bf16.msrb.mxu2 %v2590_v0  ;;  %v2003_v0 = vld [vmem:[%s3619_s0 + $0x188] sm:$0xf]  ;;  %v2008_v7 = vor.u32 %v2490_v2, %v2005_v3 }
  0x2d   :  { %1651 = vmatpush.bf16.msrb.mxu3 %v2598_v1  ;;  %v2494_v1 = vld [vmem:[%s3619_s0 + $0x1a4] sm:$0xf0] }
  0x2e   :  { %1433 = vmatpush.bf16.msrb.mxu0 %v2573_v30  ;;  %v2004_v6 = vor.u32 %v2494_v1, %v2003_v0  ;;  %v2510_v30 = vld [vmem:[%s3619_s0 + $0x224] sm:$0xf0] }
  0x2f   :  { %1506 = vmatpush.bf16.msrb.mxu1 %v2581_v31  ;;  %v2506_v31 = vld [vmem:[%s3619_s0 + $0x20c] sm:$0xf] }
  0x30   :  { %1579 = vmatpush.bf16.msrb.mxu2 %v2589_v16  ;;  %v2035_v16 = vld [vmem:[%s3619_s0 + $0x1c8] sm:$0xf]  ;;  %v2072_v38 = vor.u32 %v2506_v31, %v2069_v32 }
  0x31   :  { %1151 = vmatmul.bf16.gmra.mxu0 %v1836_v60  ;;  %1652 = vmatpush.bf16.msrb.mxu3 %v2597_v17  ;;  %v1995_v60 = vld [vmem:[%s3619_s0 + $0x180] sm:$0xf]  ;;  %v2502_v17 = vld [vmem:[%s3619_s0 + $0x1e4] sm:$0xf0] }
  0x32   :  { %1224 = vmatmul.bf16.gmra.mxu1 %v1840_v61  ;;  %1434 = vmatpush.bf16.msrb.mxu0 %v2572_v46  ;;  %v2493_v61 = vld [vmem:[%s3619_s0 + $0x19c] sm:$0xf0]  ;;  %v2036_v22 = vor.u32 %v2502_v17, %v2035_v16 }
  0x33   :  { %1297 = vmatmul.bf16.gmra.mxu2 %v1844_v62  ;;  %1507 = vmatpush.bf16.msrb.mxu1 %v2580_v47  ;;  %v2489_v62 = vld [vmem:[%s3619_s0 + $0x184] sm:$0xf]  ;;  %v1996_v4 = vor.u32 %v2493_v61, %v1995_v60  ;;  %v2101_v60 = vld [vmem:[%s3619_s0 + $0x268] sm:$0xf0]  ;;  %v2123_v16 = vld [vmem:[%s3619_s0 + $0x280] sm:$0xf] }
  0x34   :  { %1370 = vmatmul.bf16.gmra.mxu3 %v1848_v63  ;;  %1580 = vmatpush.bf16.msrb.mxu2 %v2588_v44  ;;  %v1997_v63 = vld [vmem:[%s3619_s0 + $0x1a0] sm:$0xf0]  ;;  %v2578_v44 = vld [vmem:[%s3617_s1 + $0x148] sm:$0xff]  ;;  %v2525_v17 = vld [vmem:[%s3619_s0 + $0x29c] sm:$0xf0] }
  0x35   :  { %1653 = vmatpush.bf16.msrb.mxu3 %v2596_v45  ;;  %v2000_v5 = vor.u32 %v2489_v62, %v1997_v63  ;;  %v2092_v63 = vor.u32 %v2517_v54, %v2091_v53  ;;  %v2124_v32 = vor.u32 %v2525_v17, %v2123_v16  ;;  %v2529_v53 = vld [vmem:[%s3619_s0 + $0x2c4] sm:$0xf]  ;;  %v111_v16 = vld [vmem:[%s3619_s0 + $0x308] sm:$0xff] }
  0x36   :  { %1435 = vmatpush.bf16.msrb.mxu0 %v2571_v10  ;;  %v2157_v54 = vld [vmem:[%s3619_s0 + $0x2e0] sm:$0xf0] }
  0x38   :  { %1581 = vmatpush.bf16.msrb.mxu2 %v2587_v8 }
  0x39   :  { %1654 = vmatpush.bf16.msrb.mxu3 %v2595_v9 }
  0x41   :  { %1156 = vmatmul.bf16.gmra.mxu0 %v1868_v12  ;;  %v2501_v12 = vld [vmem:[%s3619_s0 + $0x1dc] sm:$0xf0] }
  0x42   :  { %1229 = vmatmul.bf16.gmra.mxu1 %v1872_v13  ;;  %v2579_v13 = vld [vmem:[%s3617_s1 + $0x150] sm:$0xff]  ;;  %v2028_v20 = vor.u32 %v2501_v12, %v2027_v11 }
  0x43   :  { %1302 = vmatmul.bf16.gmra.mxu2 %v1876_v14  ;;  %v2497_v14 = vld [vmem:[%s3619_s0 + $0x1c4] sm:$0xf]  ;;  %1508 = vmatpush.bf16.msrb.mxu1 %v2579_v13 }
  0x44   :  { %1375 = vmatmul.bf16.gmra.mxu3 %v1880_v15  ;;  %v2029_v15 = vld [vmem:[%s3619_s0 + $0x1e0] sm:$0xf0] }
  0x45   :  { %v2032_v21 = vor.u32 %v2497_v14, %v2029_v15 }
  0x47   :  { %1509 = vmatpush.bf16.msrb.mxu1 %v2578_v44 }
  0x51   :  { %1161 = vmatmul.bf16.gmra.mxu0 %v1900_v26  ;;  %v2509_v26 = vld [vmem:[%s3619_s0 + $0x21c] sm:$0xf0] }
  0x52   :  { %1234 = vmatmul.bf16.gmra.mxu1 %v1904_v27  ;;  %v2505_v27 = vld [vmem:[%s3619_s0 + $0x204] sm:$0xf]  ;;  %v2060_v33 = vor.u32 %v2509_v26, %v2059_v25  ;;  %v2131_v25 = vld [vmem:[%s3619_s0 + $0x288] sm:$0xf] }
  0x53   :  { %1307 = vmatmul.bf16.gmra.mxu2 %v1908_v28  ;;  %v2061_v28 = vld [vmem:[%s3619_s0 + $0x220] sm:$0xf0] }
  0x54   :  { %1380 = vmatmul.bf16.gmra.mxu3 %v1912_v29  ;;  %v2067_v29 = vld [vmem:[%s3619_s0 + $0x208] sm:$0xf]  ;;  %v2064_v34 = vor.u32 %v2505_v27, %v2061_v28  ;;  %v2577_v26 = vld [vmem:[%s3617_s1 + $0x140] sm:$0xff]  ;;  %v2522_v28 = vld [vmem:[%s3619_s0 + $0x28c] sm:$0xf] }
  0x55   :  { %v2068_v37 = vor.u32 %v2510_v30, %v2067_v29  ;;  %v2526_v27 = vld [vmem:[%s3619_s0 + $0x2a4] sm:$0xf0]  ;;  %v2133_v29 = vld [vmem:[%s3619_s0 + $0x2a8] sm:$0xf0]  ;;  %1510 = vmatpush.bf16.msrb.mxu1 %v2577_v26 }
  0x61   :  { %1166 = vmatmul.bf16.gmra.mxu0 %v1932_v40  ;;  %v2586_v40 = vld [vmem:[%s3617_s1 + $0x188] sm:$0xff] }
  0x62   :  { %1239 = vmatmul.bf16.gmra.mxu1 %v1936_v41  ;;  %1582 = vmatpush.bf16.msrb.mxu2 %v2586_v40 }
  0x63   :  { %1312 = vmatmul.bf16.gmra.mxu2 %v1940_v42  ;;  %v2594_v42 = vld [vmem:[%s3617_s1 + $0x1c8] sm:$0xff] }
  0x64   :  { %1385 = vmatmul.bf16.gmra.mxu3 %v1944_v43  ;;  %v2570_v43 = vld [vmem:[%s3617_s1 + $0x108] sm:$0xff] }
  0x65   :  { %1655 = vmatpush.bf16.msrb.mxu3 %v2594_v42  ;;  %1436 = vmatpush.bf16.msrb.mxu0 %v2570_v43 }
  0x71   :  { %1171 = vmatmul.bf16.gmra.mxu0 %v1964_v56  ;;  %v2093_v56 = vld [vmem:[%s3619_s0 + $0x260] sm:$0xf0] }
  0x72   :  { %1244 = vmatmul.bf16.gmra.mxu1 %v1968_v57  ;;  %v2099_v57 = vld [vmem:[%s3619_s0 + $0x248] sm:$0xf]  ;;  %v2096_v0 = vor.u32 %v2513_v55, %v2093_v56 }
  0x73   :  { %1317 = vmatmul.bf16.gmra.mxu2 %v1972_v58  ;;  %v2518_v58 = vld [vmem:[%s3619_s0 + $0x264] sm:$0xf0] }
  0x74   :  { %1390 = vmatmul.bf16.gmra.mxu3 %v1976_v59  ;;  %v2514_v59 = vld [vmem:[%s3619_s0 + $0x24c] sm:$0xf]  ;;  %v2163_v55 = vld [vmem:[%s3619_s0 + $0x2c8] sm:$0xf] }
  0x75   :  { %v2534_v56 = vld [vmem:[%s3619_s0 + $0x2e4] sm:$0xf0] }
  0x81   :  { %1176 = vmatmul.bf16.gmra.mxu0 %v1996_v4  ;;  %v2100_v4 = vor.u32 %v2518_v58, %v2099_v57  ;;  %v2530_v57 = vld [vmem:[%s3619_s0 + $0x2cc] sm:$0xf] }
  0x82   :  { %1249 = vmatmul.bf16.gmra.mxu1 %v2000_v5  ;;  %v2104_v5 = vor.u32 %v2514_v59, %v2101_v60  ;;  %v2165_v58 = vld [vmem:[%s3619_s0 + $0x2e8] sm:$0xf0] }
  0x83   :  { %1322 = vmatmul.bf16.gmra.mxu2 %v2004_v6 }
  0x84   :  { %1395 = vmatmul.bf16.gmra.mxu3 %v2008_v7 }
  0x91   :  { %1181 = vmatmul.bf16.gmra.mxu0 %v2028_v20  ;;  %v2585_v20 = vld [vmem:[%s3617_s1 + $0x180] sm:$0xff] }
  0x92   :  { %1254 = vmatmul.bf16.gmra.mxu1 %v2032_v21  ;;  %v2593_v21 = vld [vmem:[%s3617_s1 + $0x1c0] sm:$0xff]  ;;  %1583 = vmatpush.bf16.msrb.mxu2 %v2585_v20 }
  0x93   :  { %1327 = vmatmul.bf16.gmra.mxu2 %v2036_v22  ;;  %v2569_v22 = vld [vmem:[%s3617_s1 + $0x100] sm:$0xff]  ;;  %1656 = vmatpush.bf16.msrb.mxu3 %v2593_v21  ;;  %v540_v21 = vunpack.c.l.b16 %v111_v16 }
  0x94   :  { %1400 = vmatmul.bf16.gmra.mxu3 %v2040_v23  ;;  %v2125_v23 = vld [vmem:[%s3619_s0 + $0x2a0] sm:$0xf0]  ;;  %1437 = vmatpush.bf16.msrb.mxu0 %v2569_v22  ;;  %v541_v22 = vunpack.c.h.b16 %v111_v16  ;;  %v2451_v16 = vld [vmem:[%s3619_s0 + $0x54] sm:$0xf] }
  0x9e   :  { %v1147_v35 = vpop.f32.mrf.mxu0 }
  0x9f   :  { %v1220_v36 = vpop.f32.mrf.mxu1  ;;  %v1148_v39 = vadd.f32 %v3056_v24, %v1147_v35 }
  0xa1   :  { %v1221_v41 = vadd.f32 %v1220_v36, %v1148_v39  ;;  %1186 = vmatmul.bf16.gmra.mxu0 %v2060_v33  ;;  %v2128_v33 = vor.u32 %v2521_v18, %v2125_v23 }
  0xa2   :  { %1259 = vmatmul.bf16.gmra.mxu1 %v2064_v34 }
  0xa3   :  { %1332 = vmatmul.bf16.gmra.mxu2 %v2068_v37  ;;  %v2132_v37 = vor.u32 %v2526_v27, %v2131_v25 }
  0xa4   :  { %1405 = vmatmul.bf16.gmra.mxu3 %v2072_v38  ;;  %v2136_v38 = vor.u32 %v2522_v28, %v2133_v29 }
  0xa6   :  { %v1293_v45 = vpop.f32.mrf.mxu2  ;;  %v1149_v48 = vpop.f32.mrf.mxu0 }
  0xa7   :  { %v1366_v46 = vpop.f32.mrf.mxu3  ;;  %v1294_v47 = vadd.f32 %v1293_v45, %v1221_v41  ;;  %v1222_v49 = vpop.f32.mrf.mxu1  ;;  %v1150_v50 = vadd.f32 %v3056_v24, %v1149_v48 }
  0xa9   :  { %v3096_v51 = vadd.f32 %v1366_v46, %v1294_v47  ;;  %v1223_v52 = vadd.f32 %v1222_v49, %v1150_v50  ;;  %v2155_v50 = vld [vmem:[%s3619_s0 + $0x2c0] sm:$0xf] }
  0xae   :  { %v1295_v61 = vpop.f32.mrf.mxu2  ;;  %v1152_v2 = vpop.f32.mrf.mxu0 }
  0xaf   :  { %v1368_v62 = vpop.f32.mrf.mxu3  ;;  %v1296_v1 = vadd.f32 %v1295_v61, %v1223_v52  ;;  %v1225_v3 = vpop.f32.mrf.mxu1  ;;  %v1153_v6 = vadd.f32 %v3056_v24, %v1152_v2  ;;  %v2533_v52 = vld [vmem:[%s3619_s0 + $0x2dc] sm:$0xf0]  ;;  %v2164_v2 = vor.u32 %v2534_v56, %v2163_v55 }
  0xb0   :  { %v2156_v61 = vor.u32 %v2533_v52, %v2155_v50  ;;  %v1827_v50 = vld [vmem:[%s3619_s0 + $0x18] sm:$0xf] }
  0xb1   :  { %v3123_v7 = vadd.f32 %v1368_v62, %v1296_v1  ;;  %v1226_v8 = vadd.f32 %v1225_v3, %v1153_v6  ;;  %1191 = vmatmul.bf16.gmra.mxu0 %v2092_v63  ;;  %v2160_v62 = vor.u32 %v2529_v53, %v2157_v54  ;;  %v2168_v3 = vor.u32 %v2530_v57, %v2165_v58  ;;  %v2448_v52 = vld [vmem:[%s3619_s0 + $0x34] sm:$0xf0]  ;;  %v2444_v53 = vld [vmem:[%s3619_s0 + $0x1c] sm:$0xf] }
  0xb2   :  { %1264 = vmatmul.bf16.gmra.mxu1 %v2096_v0  ;;  %v1829_v54 = vld [vmem:[%s3619_s0 + $0x38] sm:$0xf0] }
  0xb3   :  { %1337 = vmatmul.bf16.gmra.mxu2 %v2100_v4 }
  0xb4   :  { %1410 = vmatmul.bf16.gmra.mxu3 %v2104_v5 }
  0xb6   :  { %v1298_v9 = vpop.f32.mrf.mxu2  ;;  %v1154_v12 = vpop.f32.mrf.mxu0 }
  0xb7   :  { %v1371_v10 = vpop.f32.mrf.mxu3  ;;  %v1299_v11 = vadd.f32 %v1298_v9, %v1226_v8  ;;  %v1227_v13 = vpop.f32.mrf.mxu1  ;;  %v1155_v14 = vadd.f32 %v3056_v24, %v1154_v12 }
  0xb9   :  { %v3126_v15 = vadd.f32 %v1371_v10, %v1299_v11  ;;  %v1228_v19 = vadd.f32 %v1227_v13, %v1155_v14  ;;  %v110_v13 = vld [vmem:[%s3619_s0 + $0x300] sm:$0xff] }
  0xba   :  { %v539_v20 = vunpack.c.h.b16 %v110_v13 }
  0xbc   :  { %v643_v27 = vpack.c.b16 %v539_v20, %v539_v20  ;;  %v2456_v20 = vld [vmem:[%s3619_s0 + $0x74] sm:$0xf0] }
  0xbe   :  { %v1300_v30 = vpop.f32.mrf.mxu2  ;;  %v1157_v35 = vpop.f32.mrf.mxu0 }
  0xbf   :  { %v1373_v31 = vpop.f32.mrf.mxu3  ;;  %v1301_v34 = vadd.f32 %v1300_v30, %v1228_v19  ;;  %v1230_v36 = vpop.f32.mrf.mxu1  ;;  %v1158_v39 = vadd.f32 %v3056_v24, %v1157_v35  ;;  %v538_v19 = vunpack.c.l.b16 %v110_v13  ;;  %v1851_v13 = vld [vmem:[%s3619_s0 + $0x50] sm:$0xf] }
  0xc1   :  { %v3165_v40 = vadd.f32 %v1373_v31, %v1301_v34  ;;  %v1231_v41 = vadd.f32 %v1230_v36, %v1158_v39  ;;  %1196 = vmatmul.bf16.gmra.mxu0 %v2124_v32  ;;  %v642_v26 = vpack.c.b16 %v538_v19, %v538_v19  ;;  %v644_v31 = vpack.c.b16 %v540_v21, %v540_v21  ;;  %v1859_v19 = vld [vmem:[%s3619_s0 + $0x58] sm:$0xf]  ;;  %v2452_v21 = vld [vmem:[%s3619_s0 + $0x5c] sm:$0xf] }
  0xc2   :  { %1269 = vmatmul.bf16.gmra.mxu1 %v2128_v33  ;;  %v645_v32 = vpack.c.b16 %v541_v22, %v541_v22  ;;  %v1861_v22 = vld [vmem:[%s3619_s0 + $0x78] sm:$0xf0] }
  0xc3   :  { %1342 = vmatmul.bf16.gmra.mxu2 %v2132_v37 }
  0xc4   :  { %1415 = vmatmul.bf16.gmra.mxu3 %v2136_v38 }
  0xc6   :  { %v1303_v42 = vpop.f32.mrf.mxu2  ;;  %v1159_v45 = vpop.f32.mrf.mxu0 }
  0xc7   :  { %v1376_v43 = vpop.f32.mrf.mxu3  ;;  %v1304_v44 = vadd.f32 %v1303_v42, %v1231_v41  ;;  %v1232_v46 = vpop.f32.mrf.mxu1  ;;  %v1160_v47 = vadd.f32 %v3056_v24, %v1159_v45  ;;  %v1819_v45 = vld [vmem:[%s3619_s0 + $0x10] sm:$0xf] }
  0xc9   :  { %v3168_v48 = vadd.f32 %v1376_v43, %v1304_v44  ;;  %v1233_v49 = vadd.f32 %v1232_v46, %v1160_v47  ;;  %v2447_v46 = vld [vmem:[%s3619_s0 + $0x2c] sm:$0xf0]  ;;  %v2443_v47 = vld [vmem:[%s3619_s0 + $0x14] sm:$0xf] }
  0xca   :  { %v1820_v57 = vor.u32 %v2447_v46, %v1819_v45 }
  0xce   :  { %v1305_v59 = vpop.f32.mrf.mxu2  ;;  %v1162_v0 = vpop.f32.mrf.mxu0 }
  0xcf   :  { %v1378_v60 = vpop.f32.mrf.mxu3  ;;  %v1306_v63 = vadd.f32 %v1305_v59, %v1233_v49  ;;  %v1235_v1 = vpop.f32.mrf.mxu1  ;;  %v1163_v4 = vadd.f32 %v3056_v24, %v1162_v0  ;;  %v1821_v49 = vld [vmem:[%s3619_s0 + $0x30] sm:$0xf0] }
  0xd0   :  { %v1824_v58 = vor.u32 %v2443_v47, %v1821_v49  ;;  %v1883_v47 = vld [vmem:[%s3619_s0 + $0x90] sm:$0xf] }
  0xd1   :  { %v3195_v5 = vadd.f32 %v1378_v60, %v1306_v63  ;;  %v1236_v6 = vadd.f32 %v1235_v1, %v1163_v4  ;;  %1201 = vmatmul.bf16.gmra.mxu0 %v2156_v61  ;;  %v1832_v63 = vor.u32 %v2444_v53, %v1829_v54  ;;  %v2463_v49 = vld [vmem:[%s3619_s0 + $0xac] sm:$0xf0]  ;;  %v1891_v53 = vld [vmem:[%s3619_s0 + $0x98] sm:$0xf] }
  0xd2   :  { %1274 = vmatmul.bf16.gmra.mxu1 %v2160_v62  ;;  %v1828_v62 = vor.u32 %v2448_v52, %v1827_v50  ;;  %v2459_v50 = vld [vmem:[%s3619_s0 + $0x94] sm:$0xf]  ;;  %v2464_v54 = vld [vmem:[%s3619_s0 + $0xb4] sm:$0xf0] }
  0xd3   :  { %1347 = vmatmul.bf16.gmra.mxu2 %v2164_v2  ;;  %v1885_v52 = vld [vmem:[%s3619_s0 + $0xb0] sm:$0xf0] }
  0xd4   :  { %1420 = vmatmul.bf16.gmra.mxu3 %v2168_v3 }
  0xd6   :  { %v1308_v8 = vpop.f32.mrf.mxu2  ;;  %v1164_v11 = vpop.f32.mrf.mxu0 }
  0xd7   :  { %v1381_v9 = vpop.f32.mrf.mxu3  ;;  %v1309_v10 = vadd.f32 %v1308_v8, %v1236_v6  ;;  %v1237_v12 = vpop.f32.mrf.mxu1  ;;  %v1165_v14 = vadd.f32 %v3056_v24, %v1164_v11 }
  0xd9   :  { %v3204_v17 = vadd.f32 %v1381_v9, %v1309_v10  ;;  %v1238_v18 = vadd.f32 %v1237_v12, %v1165_v14  ;;  %v2455_v14 = vld [vmem:[%s3619_s0 + $0x6c] sm:$0xf0] }
  0xde   :  { %v1310_v23 = vpop.f32.mrf.mxu2  ;;  %v1167_v29 = vpop.f32.mrf.mxu0 }
  0xdf   :  { %v1383_v25 = vpop.f32.mrf.mxu3  ;;  %v1311_v28 = vadd.f32 %v1310_v23, %v1238_v18  ;;  %v1240_v30 = vpop.f32.mrf.mxu1  ;;  %v1168_v33 = vadd.f32 %v3056_v24, %v1167_v29  ;;  %v1853_v18 = vld [vmem:[%s3619_s0 + $0x70] sm:$0xf0] }
  0xe1   :  { %v3207_v34 = vadd.f32 %v1383_v25, %v1311_v28  ;;  %v1241_v35 = vadd.f32 %v1240_v30, %v1168_v33  ;;  %1206 = vmatmul.bf16.gmra.mxu0 %v642_v26  ;;  %v1852_v26 = vor.u32 %v2455_v14, %v1851_v13 }
  0xe2   :  { %1279 = vmatmul.bf16.gmra.mxu1 %v643_v27  ;;  %v1856_v27 = vor.u32 %v2451_v16, %v1853_v18 }
  0xe3   :  { %1352 = vmatmul.bf16.gmra.mxu2 %v644_v31  ;;  %v1860_v31 = vor.u32 %v2456_v20, %v1859_v19  ;;  %v1915_v19 = vld [vmem:[%s3619_s0 + $0xd0] sm:$0xf] }
  0xe4   :  { %1425 = vmatmul.bf16.gmra.mxu3 %v645_v32  ;;  %v1864_v32 = vor.u32 %v2452_v21, %v1861_v22  ;;  %v2471_v20 = vld [vmem:[%s3619_s0 + $0xec] sm:$0xf0]  ;;  %v2467_v21 = vld [vmem:[%s3619_s0 + $0xd4] sm:$0xf] }
  0xe5   :  { %v1917_v22 = vld [vmem:[%s3619_s0 + $0xf0] sm:$0xf0] }
  0xe6   :  { %v1313_v36 = vpop.f32.mrf.mxu2  ;;  %v1169_v39 = vpop.f32.mrf.mxu0 }
  0xe7   :  { %v1386_v37 = vpop.f32.mrf.mxu3  ;;  %v1314_v38 = vadd.f32 %v1313_v36, %v1241_v35  ;;  %v1242_v41 = vpop.f32.mrf.mxu1  ;;  %v1170_v42 = vadd.f32 %v3056_v24, %v1169_v39 }
  0xe9   :  { %v3210_v43 = vadd.f32 %v1386_v37, %v1314_v38  ;;  %v1243_v44 = vadd.f32 %v1242_v41, %v1170_v42 }
  0xee   :  { %v1315_v55 = vpop.f32.mrf.mxu2  ;;  %v1172_v60 = vpop.f32.mrf.mxu0 }
  0xef   :  { %v1388_v56 = vpop.f32.mrf.mxu3  ;;  %v1316_v59 = vadd.f32 %v1315_v55, %v1243_v44  ;;  %v1245_v61 = vpop.f32.mrf.mxu1  ;;  %v1173_v0 = vadd.f32 %v3056_v24, %v1172_v60  ;;  %v2460_v55 = vld [vmem:[%s3619_s0 + $0x9c] sm:$0xf]  ;;  %v1888_v60 = vor.u32 %v2459_v50, %v1885_v52 }
  0xf1   :  { %v3237_v1 = vadd.f32 %v1388_v56, %v1316_v59  ;;  %v1246_v2 = vadd.f32 %v1245_v61, %v1173_v0  ;;  %1438 = vmatmul.bf16.vlgmr.msrb.gmra.mxu0 %v1820_v57  ;;  %v1893_v56 = vld [vmem:[%s3619_s0 + $0xb8] sm:$0xf0]  ;;  %v1884_v59 = vor.u32 %v2463_v49, %v1883_v47  ;;  %v1892_v0 = vor.u32 %v2464_v54, %v1891_v53 }
  0xf2   :  { %1511 = vmatmul.bf16.vlgmr.msrb.gmra.mxu1 %v1824_v58 }
  0xf3   :  { %1584 = vmatmul.bf16.vlgmr.msrb.gmra.mxu2 %v1828_v62 }
  0xf4   :  { %1657 = vmatmul.bf16.vlgmr.msrb.gmra.mxu3 %v1832_v63 }
  0xf6   :  { %v1318_v3 = vpop.f32.mrf.mxu2  ;;  %v1174_v8 = vpop.f32.mrf.mxu0 }
  0xf7   :  { %v1391_v4 = vpop.f32.mrf.mxu3  ;;  %v1319_v6 = vadd.f32 %v1318_v3, %v1246_v2  ;;  %v1247_v9 = vpop.f32.mrf.mxu1  ;;  %v1175_v10 = vadd.f32 %v3056_v24, %v1174_v8  ;;  %v1896_v2 = vor.u32 %v2460_v55, %v1893_v56  ;;  %v1947_v55 = vld [vmem:[%s3619_s0 + $0x110] sm:$0xf] }
  0xf8   :  { %v2479_v56 = vld [vmem:[%s3619_s0 + $0x12c] sm:$0xf0] }
  0xf9   :  { %v3240_v11 = vadd.f32 %v1391_v4, %v1319_v6  ;;  %v1248_v12 = vadd.f32 %v1247_v9, %v1175_v10 }
  0xfe   :  { %v1320_v23 = vpop.f32.mrf.mxu2  ;;  %v1177_v29 = vpop.f32.mrf.mxu0 }
  0xff   :  { %v1393_v25 = vpop.f32.mrf.mxu3  ;;  %v1321_v28 = vadd.f32 %v1320_v23, %v1248_v12  ;;  %v1250_v30 = vpop.f32.mrf.mxu1  ;;  %v1178_v33 = vadd.f32 %v3056_v24, %v1177_v29  ;;  %v1923_v23 = vld [vmem:[%s3619_s0 + $0xd8] sm:$0xf] }
 0x101   :  { %v3267_v35 = vadd.f32 %v1393_v25, %v1321_v28  ;;  %v1251_v36 = vadd.f32 %v1250_v30, %v1178_v33  ;;  %1443 = vmatmul.bf16.gmra.mxu0 %v1852_v26  ;;  %v2472_v25 = vld [vmem:[%s3619_s0 + $0xf4] sm:$0xf0]  ;;  %v2468_v26 = vld [vmem:[%s3619_s0 + $0xdc] sm:$0xf]  ;;  %v1916_v30 = vor.u32 %v2471_v20, %v1915_v19 }
 0x102   :  { %1516 = vmatmul.bf16.gmra.mxu1 %v1856_v27  ;;  %v1925_v27 = vld [vmem:[%s3619_s0 + $0xf8] sm:$0xf0] }
 0x103   :  { %1589 = vmatmul.bf16.gmra.mxu2 %v1860_v31  ;;  %v1920_v31 = vor.u32 %v2467_v21, %v1917_v22 }
 0x104   :  { %1662 = vmatmul.bf16.gmra.mxu3 %v1864_v32 }
 0x106   :  { %v1323_v37 = vpop.f32.mrf.mxu2  ;;  %v1179_v41 = vpop.f32.mrf.mxu0 }
 0x107   :  { %v1396_v38 = vpop.f32.mrf.mxu3  ;;  %v1324_v39 = vadd.f32 %v1323_v37, %v1251_v36  ;;  %v1252_v42 = vpop.f32.mrf.mxu1  ;;  %v1180_v44 = vadd.f32 %v3056_v24, %v1179_v41  ;;  %v1924_v37 = vor.u32 %v2472_v25, %v1923_v23 }
 0x109   :  { %v3270_v45 = vadd.f32 %v1396_v38, %v1324_v39  ;;  %v1253_v46 = vadd.f32 %v1252_v42, %v1180_v44  ;;  %v1928_v38 = vor.u32 %v2468_v26, %v1925_v27 }
 0x10e   :  { %v1325_v57 = vpop.f32.mrf.mxu2  ;;  %v1182_v62 = vpop.f32.mrf.mxu0 }
 0x10f   :  { %v1398_v58 = vpop.f32.mrf.mxu3  ;;  %v1326_v61 = vadd.f32 %v1325_v57, %v1253_v46  ;;  %v1255_v63 = vpop.f32.mrf.mxu1  ;;  %v1183_v3 = vadd.f32 %v3056_v24, %v1182_v62  ;;  %v2475_v57 = vld [vmem:[%s3619_s0 + $0x114] sm:$0xf]  ;;  %v1957_v62 = vld [vmem:[%s3619_s0 + $0x138] sm:$0xf0] }
 0x111   :  { %v3297_v4 = vadd.f32 %v1398_v58, %v1326_v61  ;;  %v1256_v6 = vadd.f32 %v1255_v63, %v1183_v3  ;;  %1448 = vmatmul.bf16.gmra.mxu0 %v1884_v59  ;;  %v1949_v58 = vld [vmem:[%s3619_s0 + $0x130] sm:$0xf0]  ;;  %v1955_v59 = vld [vmem:[%s3619_s0 + $0x118] sm:$0xf]  ;;  %v2476_v61 = vld [vmem:[%s3619_s0 + $0x11c] sm:$0xf] }
 0x112   :  { %1521 = vmatmul.bf16.gmra.mxu1 %v1888_v60  ;;  %v2480_v60 = vld [vmem:[%s3619_s0 + $0x134] sm:$0xf0]  ;;  %v1952_v3 = vor.u32 %v2475_v57, %v1949_v58 }
 0x113   :  { %1594 = vmatmul.bf16.gmra.mxu2 %v1892_v0 }
 0x114   :  { %1667 = vmatmul.bf16.gmra.mxu3 %v1896_v2  ;;  %v1948_v2 = vor.u32 %v2479_v56, %v1947_v55 }
 0x116   :  { %v1328_v8 = vpop.f32.mrf.mxu2  ;;  %v1184_v12 = vpop.f32.mrf.mxu0 }
 0x117   :  { %v1401_v9 = vpop.f32.mrf.mxu3  ;;  %v1329_v10 = vadd.f32 %v1328_v8, %v1256_v6  ;;  %v1257_v13 = vpop.f32.mrf.mxu1  ;;  %v1185_v14 = vadd.f32 %v3056_v24, %v1184_v12  ;;  %v1960_v12 = vor.u32 %v2476_v61, %v1957_v62 }
 0x119   :  { %v3300_v16 = vadd.f32 %v1401_v9, %v1329_v10  ;;  %v1258_v18 = vadd.f32 %v1257_v13, %v1185_v14  ;;  %v1956_v10 = vor.u32 %v2480_v60, %v1955_v59 }
 0x11e   :  { %v1330_v28 = vpop.f32.mrf.mxu2  ;;  %v1187_v33 = vpop.f32.mrf.mxu0 }
 0x11f   :  { %v1403_v29 = vpop.f32.mrf.mxu3  ;;  %v1331_v32 = vadd.f32 %v1330_v28, %v1258_v18  ;;  %v1260_v36 = vpop.f32.mrf.mxu1  ;;  %v1188_v39 = vadd.f32 %v3056_v24, %v1187_v33  ;;  %v1979_v28 = vld [vmem:[%s3619_s0 + $0x150] sm:$0xf]  ;;  %v2488_v33 = vld [vmem:[%s3619_s0 + $0x174] sm:$0xf0] }
 0x121   :  { %v3327_v41 = vadd.f32 %v1403_v29, %v1331_v32  ;;  %v1261_v42 = vadd.f32 %v1260_v36, %v1188_v39  ;;  %1453 = vmatmul.bf16.gmra.mxu0 %v1916_v30  ;;  %v2487_v29 = vld [vmem:[%s3619_s0 + $0x16c] sm:$0xf0]  ;;  %v2483_v30 = vld [vmem:[%s3619_s0 + $0x154] sm:$0xf]  ;;  %v1987_v32 = vld [vmem:[%s3619_s0 + $0x158] sm:$0xf] }
 0x122   :  { %1526 = vmatmul.bf16.gmra.mxu1 %v1920_v31  ;;  %v1981_v31 = vld [vmem:[%s3619_s0 + $0x170] sm:$0xf0]  ;;  %v2484_v36 = vld [vmem:[%s3619_s0 + $0x15c] sm:$0xf] }
 0x123   :  { %1599 = vmatmul.bf16.gmra.mxu2 %v1924_v37  ;;  %v1989_v37 = vld [vmem:[%s3619_s0 + $0x178] sm:$0xf0] }
 0x124   :  { %1672 = vmatmul.bf16.gmra.mxu3 %v1928_v38 }
 0x126   :  { %v1333_v44 = vpop.f32.mrf.mxu2  ;;  %v1189_v49 = vpop.f32.mrf.mxu0 }
 0x127   :  { %v1406_v46 = vpop.f32.mrf.mxu3  ;;  %v1334_v47 = vadd.f32 %v1333_v44, %v1261_v42  ;;  %v1262_v50 = vpop.f32.mrf.mxu1  ;;  %v1190_v52 = vadd.f32 %v3056_v24, %v1189_v49  ;;  %v1980_v42 = vor.u32 %v2487_v29, %v1979_v28  ;;  %v1984_v44 = vor.u32 %v2483_v30, %v1981_v31 }
 0x129   :  { %v3330_v53 = vadd.f32 %v1406_v46, %v1334_v47  ;;  %v1263_v54 = vadd.f32 %v1262_v50, %v1190_v52  ;;  %v1988_v50 = vor.u32 %v2488_v33, %v1987_v32  ;;  %v1992_v52 = vor.u32 %v2484_v36, %v1989_v37 }
 0x12e   :  { %v1335_v63 = vpop.f32.mrf.mxu2  ;;  %v1192_v8 = vpop.f32.mrf.mxu0 }
 0x12f   :  { %v1408_v0 = vpop.f32.mrf.mxu3  ;;  %v1336_v6 = vadd.f32 %v1335_v63, %v1263_v54  ;;  %v1265_v9 = vpop.f32.mrf.mxu1  ;;  %v1193_v13 = vadd.f32 %v3056_v24, %v1192_v8  ;;  %v2013_v8 = vld [vmem:[%s3619_s0 + $0x1b0] sm:$0xf0] }
 0x131   :  { %v3357_v14 = vadd.f32 %v1408_v0, %v1336_v6  ;;  %v1266_v18 = vadd.f32 %v1265_v9, %v1193_v13  ;;  %1458 = vmatmul.bf16.gmra.mxu0 %v1948_v2  ;;  %v2011_v2 = vld [vmem:[%s3619_s0 + $0x190] sm:$0xf]  ;;  %v2491_v6 = vld [vmem:[%s3619_s0 + $0x194] sm:$0xf]  ;;  %v2019_v9 = vld [vmem:[%s3619_s0 + $0x198] sm:$0xf] }
 0x132   :  { %1531 = vmatmul.bf16.gmra.mxu1 %v1952_v3  ;;  %v2495_v3 = vld [vmem:[%s3619_s0 + $0x1ac] sm:$0xf0]  ;;  %v2021_v13 = vld [vmem:[%s3619_s0 + $0x1b8] sm:$0xf0] }
 0x133   :  { %1604 = vmatmul.bf16.gmra.mxu2 %v1956_v10  ;;  %v2496_v10 = vld [vmem:[%s3619_s0 + $0x1b4] sm:$0xf0] }
 0x134   :  { %1677 = vmatmul.bf16.gmra.mxu3 %v1960_v12  ;;  %v2492_v12 = vld [vmem:[%s3619_s0 + $0x19c] sm:$0xf] }
 0x135   :  { %v2024_v28 = vor.u32 %v2492_v12, %v2021_v13 }
 0x136   :  { %v1338_v19 = vpop.f32.mrf.mxu2  ;;  %v1194_v22 = vpop.f32.mrf.mxu0 }
 0x137   :  { %v1411_v20 = vpop.f32.mrf.mxu3  ;;  %v1339_v21 = vadd.f32 %v1338_v19, %v1266_v18  ;;  %v1267_v23 = vpop.f32.mrf.mxu1  ;;  %v1195_v25 = vadd.f32 %v3056_v24, %v1194_v22 }
 0x139   :  { %v3360_v26 = vadd.f32 %v1411_v20, %v1339_v21  ;;  %v1268_v27 = vadd.f32 %v1267_v23, %v1195_v25  ;;  %v2012_v20 = vor.u32 %v2495_v3, %v2011_v2  ;;  %v2016_v21 = vor.u32 %v2491_v6, %v2013_v8 }
 0x13e   :  { %v1340_v38 = vpop.f32.mrf.mxu2  ;;  %v1197_v47 = vpop.f32.mrf.mxu0 }
 0x13f   :  { %v1413_v39 = vpop.f32.mrf.mxu3  ;;  %v1341_v46 = vadd.f32 %v1340_v38, %v1268_v27  ;;  %v1270_v49 = vpop.f32.mrf.mxu1  ;;  %v1198_v54 = vadd.f32 %v3056_v24, %v1197_v47  ;;  %v2020_v27 = vor.u32 %v2496_v10, %v2019_v9  ;;  %v2503_v47 = vld [vmem:[%s3619_s0 + $0x1ec] sm:$0xf0] }
 0x141   :  { %v3387_v55 = vadd.f32 %v1413_v39, %v1341_v46  ;;  %v1271_v56 = vadd.f32 %v1270_v49, %v1198_v54  ;;  %1463 = vmatmul.bf16.gmra.mxu0 %v1980_v42  ;;  %v2043_v46 = vld [vmem:[%s3619_s0 + $0x1d0] sm:$0xf]  ;;  %v2499_v49 = vld [vmem:[%s3619_s0 + $0x1d4] sm:$0xf]  ;;  %v2504_v54 = vld [vmem:[%s3619_s0 + $0x1f4] sm:$0xf0] }
 0x142   :  { %1536 = vmatmul.bf16.gmra.mxu1 %v1984_v44 }
 0x143   :  { %1609 = vmatmul.bf16.gmra.mxu2 %v1988_v50  ;;  %v2045_v50 = vld [vmem:[%s3619_s0 + $0x1f0] sm:$0xf0] }
 0x144   :  { %1682 = vmatmul.bf16.gmra.mxu3 %v1992_v52  ;;  %v2051_v52 = vld [vmem:[%s3619_s0 + $0x1d8] sm:$0xf] }
 0x145   :  { %v2052_v3 = vor.u32 %v2504_v54, %v2051_v52 }
 0x146   :  { %v1343_v57 = vpop.f32.mrf.mxu2  ;;  %v1199_v60 = vpop.f32.mrf.mxu0 }
 0x147   :  { %v1416_v58 = vpop.f32.mrf.mxu3  ;;  %v1344_v59 = vadd.f32 %v1343_v57, %v1271_v56  ;;  %v1272_v61 = vpop.f32.mrf.mxu1  ;;  %v1200_v62 = vadd.f32 %v3056_v24, %v1199_v60  ;;  %v2500_v56 = vld [vmem:[%s3619_s0 + $0x1dc] sm:$0xf]  ;;  %v2044_v60 = vor.u32 %v2503_v47, %v2043_v46 }
 0x148   :  { %v2053_v57 = vld [vmem:[%s3619_s0 + $0x1f8] sm:$0xf0] }
 0x149   :  { %v3390_v63 = vadd.f32 %v1416_v58, %v1344_v59  ;;  %v1273_v0 = vadd.f32 %v1272_v61, %v1200_v62  ;;  %v2048_v61 = vor.u32 %v2499_v49, %v2045_v50  ;;  %v2056_v6 = vor.u32 %v2500_v56, %v2053_v57 }
 0x14e   :  { %v1345_v18 = vpop.f32.mrf.mxu2  ;;  %v1202_v23 = vpop.f32.mrf.mxu0 }
 0x14f   :  { %v1418_v19 = vpop.f32.mrf.mxu3  ;;  %v1346_v22 = vadd.f32 %v1345_v18, %v1273_v0  ;;  %v1275_v25 = vpop.f32.mrf.mxu1  ;;  %v1203_v29 = vadd.f32 %v3056_v24, %v1202_v23  ;;  %v2507_v23 = vld [vmem:[%s3619_s0 + $0x214] sm:$0xf] }
 0x151   :  { %v3417_v30 = vadd.f32 %v1418_v19, %v1346_v22  ;;  %v1276_v31 = vadd.f32 %v1275_v25, %v1203_v29  ;;  %1468 = vmatmul.bf16.gmra.mxu0 %v2012_v20  ;;  %v2075_v22 = vld [vmem:[%s3619_s0 + $0x210] sm:$0xf]  ;;  %v2077_v25 = vld [vmem:[%s3619_s0 + $0x230] sm:$0xf0]  ;;  %v2508_v29 = vld [vmem:[%s3619_s0 + $0x21c] sm:$0xf] }
 0x152   :  { %1541 = vmatmul.bf16.gmra.mxu1 %v2016_v21 }
 0x153   :  { %1614 = vmatmul.bf16.gmra.mxu2 %v2020_v27  ;;  %v2083_v27 = vld [vmem:[%s3619_s0 + $0x218] sm:$0xf] }
 0x154   :  { %1687 = vmatmul.bf16.gmra.mxu3 %v2024_v28  ;;  %v2512_v28 = vld [vmem:[%s3619_s0 + $0x234] sm:$0xf0] }
 0x156   :  { %v1348_v32 = vpop.f32.mrf.mxu2  ;;  %v1204_v37 = vpop.f32.mrf.mxu0 }
 0x157   :  { %v1421_v33 = vpop.f32.mrf.mxu3  ;;  %v1349_v36 = vadd.f32 %v1348_v32, %v1276_v31  ;;  %v1277_v38 = vpop.f32.mrf.mxu1  ;;  %v1205_v39 = vadd.f32 %v3056_v24, %v1204_v37  ;;  %v2085_v31 = vld [vmem:[%s3619_s0 + $0x238] sm:$0xf0]  ;;  %v2080_v37 = vor.u32 %v2507_v23, %v2077_v25 }
 0x158   :  { %v2088_v46 = vor.u32 %v2508_v29, %v2085_v31 }
 0x159   :  { %v3420_v42 = vadd.f32 %v1421_v33, %v1349_v36  ;;  %v1278_v44 = vadd.f32 %v1277_v38, %v1205_v39 }
 0x15e   :  { %v1350_v58 = vpop.f32.mrf.mxu2  ;;  %v1207_v0 = vpop.f32.mrf.mxu0 }
 0x15f   :  { %v1423_v59 = vpop.f32.mrf.mxu3  ;;  %v1351_v62 = vadd.f32 %v1350_v58, %v1278_v44  ;;  %v1280_v2 = vpop.f32.mrf.mxu1  ;;  %v1208_v8 = vadd.f32 %v3056_v24, %v1207_v0  ;;  %v2511_v24 = vld [vmem:[%s3619_s0 + $0x22c] sm:$0xf0]  ;;  %v2084_v44 = vor.u32 %v2512_v28, %v2083_v27  ;;  %v2516_v0 = vld [vmem:[%s3619_s0 + $0x25c] sm:$0xf] }
 0x160   :  { %v2076_v36 = vor.u32 %v2511_v24, %v2075_v22  ;;  %v2107_v58 = vld [vmem:[%s3619_s0 + $0x250] sm:$0xf] }
 0x161   :  { %v3447_v9 = vadd.f32 %v1423_v59, %v1351_v62  ;;  %v1281_v10 = vadd.f32 %v1280_v2, %v1208_v8  ;;  %1473 = vmatmul.bf16.gmra.mxu0 %v2044_v60  ;;  %v2519_v59 = vld [vmem:[%s3619_s0 + $0x26c] sm:$0xf0]  ;;  %v2520_v62 = vld [vmem:[%s3619_s0 + $0x274] sm:$0xf0]  ;;  %v2117_v2 = vld [vmem:[%s3619_s0 + $0x278] sm:$0xf0] }
 0x162   :  { %1546 = vmatmul.bf16.gmra.mxu1 %v2048_v61  ;;  %v2109_v61 = vld [vmem:[%s3619_s0 + $0x270] sm:$0xf0]  ;;  %v2120_v24 = vor.u32 %v2516_v0, %v2117_v2 }
 0x163   :  { %1619 = vmatmul.bf16.gmra.mxu2 %v2052_v3 }
 0x164   :  { %1692 = vmatmul.bf16.gmra.mxu3 %v2056_v6 }
 0x166   :  { %v1353_v12 = vpop.f32.mrf.mxu2  ;;  %v1209_v19 = vpop.f32.mrf.mxu0 }
 0x167   :  { %v1426_v13 = vpop.f32.mrf.mxu3  ;;  %v1354_v18 = vadd.f32 %v1353_v12, %v1281_v10  ;;  %v1282_v20 = vpop.f32.mrf.mxu1  ;;  %v2108_v10 = vor.u32 %v2519_v59, %v2107_v58 }
 0x169   :  { %v3449_v21 = vadd.f32 %v1426_v13, %v1354_v18 }
 0x16e   :  { %v1355_v32 = vpop.f32.mrf.mxu2  ;;  %v1439_v38 = vpop.f32.mrf.mxu0 }
 0x16f   :  { %v1428_v33 = vpop.f32.mrf.mxu3  ;;  %v1512_v39 = vpop.f32.mrf.mxu1  ;;  %v1440_v47 = vadd.f32 %v1439_v38, %v3096_v51  ;;  %v2515_v51 = vld [vmem:[%s3619_s0 + $0x254] sm:$0xf] }
 0x170   :  { %v2112_v12 = vor.u32 %v2515_v51, %v2109_v61 }
 0x171   :  { %1478 = vmatmul.bf16.gmra.mxu0 %v2076_v36  ;;  %v1513_v56 = vadd.f32 %v1512_v39, %v1440_v47  ;;  %v2139_v39 = vld [vmem:[%s3619_s0 + $0x290] sm:$0xf]  ;;  %v2141_v47 = vld [vmem:[%s3619_s0 + $0x2b0] sm:$0xf0] }
 0x172   :  { %1551 = vmatmul.bf16.gmra.mxu1 %v2080_v37 }
 0x173   :  { %1624 = vmatmul.bf16.gmra.mxu2 %v2084_v44  ;;  %v2527_v44 = vld [vmem:[%s3619_s0 + $0x2ac] sm:$0xf0] }
 0x174   :  { %1697 = vmatmul.bf16.gmra.mxu3 %v2088_v46  ;;  %v2523_v46 = vld [vmem:[%s3619_s0 + $0x294] sm:$0xf]  ;;  %v2140_v58 = vor.u32 %v2527_v44, %v2139_v39 }
 0x175   :  { %v2144_v59 = vor.u32 %v2523_v46, %v2141_v47 }
 0x176   :  { %v1585_v49 = vpop.f32.mrf.mxu2  ;;  %v1441_v52 = vpop.f32.mrf.mxu0 }
 0x177   :  { %v1658_v50 = vpop.f32.mrf.mxu3  ;;  %v1514_v54 = vpop.f32.mrf.mxu1  ;;  %v1442_v57 = vadd.f32 %v1441_v52, %v3123_v7  ;;  %v1586_v60 = vadd.f32 %v1585_v49, %v1513_v56  ;;  %v2115_v7 = vld [vmem:[%s3619_s0 + $0x258] sm:$0xf]  ;;  %v2149_v52 = vld [vmem:[%s3619_s0 + $0x2b8] sm:$0xf0] }
 0x178   :  { %v2116_v22 = vor.u32 %v2520_v62, %v2115_v7  ;;  %v2528_v49 = vld [vmem:[%s3619_s0 + $0x2b4] sm:$0xf0] }
 0x179   :  { %v1515_v3 = vadd.f32 %v1514_v54, %v1442_v57  ;;  %v1659_v13 = vadd.f32 %v1658_v50, %v1586_v60  ;;  %v2524_v50 = vld [vmem:[%s3619_s0 + $0x29c] sm:$0xf] }
 0x17a   :  { %v2152_v0 = vor.u32 %v2524_v50, %v2149_v52 }
 0x17b   :  { %v1722_v25 = vmax.f32 %v1659_v13, 0.0 }
 0x17e   :  { %v1587_v6 = vpop.f32.mrf.mxu2  ;;  %v1444_v19 = vpop.f32.mrf.mxu0 }
 0x17f   :  { %v1660_v8 = vpop.f32.mrf.mxu3  ;;  %v1588_v18 = vadd.f32 %v1587_v6, %v1515_v3  ;;  %v1517_v20 = vpop.f32.mrf.mxu1  ;;  %v1445_v29 = vadd.f32 %v1444_v19, %v3126_v15 }
 0x181   :  { %v1661_v23 = vadd.f32 %v1660_v8, %v1588_v18  ;;  %1483 = vmatmul.bf16.gmra.mxu0 %v2108_v10  ;;  %v1518_v37 = vadd.f32 %v1517_v20, %v1445_v29  ;;  %v2532_v29 = vld [vmem:[%s3619_s0 + $0x2dc] sm:$0xf] }
 0x182   :  { %1556 = vmatmul.bf16.gmra.mxu1 %v2112_v12 }
 0x183   :  { %v1723_v27 = vmax.f32 %v1661_v23, 0.0  ;;  %1629 = vmatmul.bf16.gmra.mxu2 %v2116_v22  ;;  %v2535_v23 = vld [vmem:[%s3619_s0 + $0x2ec] sm:$0xf0] }
 0x184   :  { %1702 = vmatmul.bf16.gmra.mxu3 %v2120_v24  ;;  %v2171_v24 = vld [vmem:[%s3619_s0 + $0x2d0] sm:$0xf] }
 0x185   :  { %v2604_v28 = vpack.c.bf16 %v1723_v27, %v1722_v25  ;;  %v2531_v25 = vld [vmem:[%s3619_s0 + $0x2d4] sm:$0xf] }
 0x186   :  { %v1590_v31 = vpop.f32.mrf.mxu2  ;;  %v1446_v33 = vpop.f32.mrf.mxu0  ;;  %v2173_v27 = vld [vmem:[%s3619_s0 + $0x2f0] sm:$0xf0] }
 0x187   :  { %v1663_v32 = vpop.f32.mrf.mxu3  ;;  %2605 = vst [vmem:[%s3620_s3] sm:$0xff] %v2604_v28   ;;  %v1519_v36 = vpop.f32.mrf.mxu1  ;;  %v1447_v38 = vadd.f32 %v1446_v33, %v3165_v40  ;;  %v1591_v15 = vadd.f32 %v1590_v31, %v1518_v37  ;;  %v2147_v40 = vld [vmem:[%s3619_s0 + $0x298] sm:$0xf]  ;;  %v2181_v31 = vld [vmem:[%s3619_s0 + $0x2f8] sm:$0xf0]  ;;  %v2172_v37 = vor.u32 %v2535_v23, %v2171_v24 }
 0x188   :  { %v2148_v62 = vor.u32 %v2528_v49, %v2147_v40  ;;  %v2536_v28 = vld [vmem:[%s3619_s0 + $0x2f4] sm:$0xf0]  ;;  %v2184_v40 = vor.u32 %v2532_v29, %v2181_v31 }
 0x189   :  { %v1520_v54 = vadd.f32 %v1519_v36, %v1447_v38  ;;  %v1664_v60 = vadd.f32 %v1663_v32, %v1591_v15  ;;  %v2176_v38 = vor.u32 %v2531_v25, %v2173_v27 }
 0x18b   :  { %v1724_v3 = vmax.f32 %v1664_v60, 0.0 }
 0x18e   :  { %v1592_v56 = vpop.f32.mrf.mxu2  ;;  %v1449_v61 = vpop.f32.mrf.mxu0 }
 0x18f   :  { %v1665_v57 = vpop.f32.mrf.mxu3  ;;  %v1593_v51 = vadd.f32 %v1592_v56, %v1520_v54  ;;  %v1522_v7 = vpop.f32.mrf.mxu1  ;;  %v1450_v10 = vadd.f32 %v1449_v61, %v3168_v48  ;;  %v113_v61 = vld [vmem:[%s3619_s0 + $0x318] sm:$0xff] }
 0x191   :  { %v1666_v2 = vadd.f32 %v1665_v57, %v1593_v51  ;;  %1488 = vmatmul.bf16.gmra.mxu0 %v2140_v58  ;;  %v1523_v20 = vadd.f32 %v1522_v7, %v1450_v10  ;;  %v112_v51 = vld [vmem:[%s3619_s0 + $0x310] sm:$0xff] }
 0x192   :  { %1561 = vmatmul.bf16.gmra.mxu1 %v2144_v59 }
 0x193   :  { %v1725_v6 = vmax.f32 %v1666_v2, 0.0  ;;  %1634 = vmatmul.bf16.gmra.mxu2 %v2148_v62 }
 0x194   :  { %1707 = vmatmul.bf16.gmra.mxu3 %v2152_v0  ;;  %v543_v0 = vunpack.c.h.b16 %v112_v51 }
 0x195   :  { %v2609_v8 = vpack.c.bf16 %v1725_v6, %v1724_v3  ;;  %v544_v3 = vunpack.c.l.b16 %v113_v61  ;;  %v545_v6 = vunpack.c.h.b16 %v113_v61 }
 0x196   :  { %v1595_v12 = vpop.f32.mrf.mxu2  ;;  %v1451_v18 = vpop.f32.mrf.mxu0 }
 0x197   :  { %v1668_v13 = vpop.f32.mrf.mxu3  ;;  %2661 = vst [vmem:[%s3620_s3 + $0x8] sm:$0xff] %v2609_v8   ;;  %v1524_v19 = vpop.f32.mrf.mxu1  ;;  %v1452_v22 = vadd.f32 %v1451_v18, %v3195_v5  ;;  %v1596_v48 = vadd.f32 %v1595_v12, %v1523_v20  ;;  %v2179_v5 = vld [vmem:[%s3619_s0 + $0x2d8] sm:$0xf]  ;;  %v647_v18 = vpack.c.b16 %v543_v0, %v543_v0  ;;  %v648_v23 = vpack.c.b16 %v544_v3, %v544_v3 }
 0x198   :  { %v2180_v47 = vor.u32 %v2536_v28, %v2179_v5 }
 0x199   :  { %v1525_v32 = vadd.f32 %v1524_v19, %v1452_v22  ;;  %v1669_v39 = vadd.f32 %v1668_v13, %v1596_v48  ;;  %v649_v48 = vpack.c.b16 %v545_v6, %v545_v6 }
 0x19b   :  { %v1726_v50 = vmax.f32 %v1669_v39, 0.0 }
 0x19e   :  { %v1597_v33 = vpop.f32.mrf.mxu2  ;;  %v1454_v15 = vpop.f32.mrf.mxu0 }
 0x19f   :  { %v1670_v36 = vpop.f32.mrf.mxu3  ;;  %v1598_v44 = vadd.f32 %v1597_v33, %v1525_v32  ;;  %v1527_v46 = vpop.f32.mrf.mxu1  ;;  %v1455_v56 = vadd.f32 %v1454_v15, %v3204_v17  ;;  %v542_v17 = vunpack.c.l.b16 %v112_v51 }
 0x1a1   :  { %v1671_v49 = vadd.f32 %v1670_v36, %v1598_v44  ;;  %1493 = vmatmul.bf16.gmra.mxu0 %v2172_v37  ;;  %v1528_v7 = vadd.f32 %v1527_v46, %v1455_v56  ;;  %v646_v13 = vpack.c.b16 %v542_v17, %v542_v17 }
 0x1a2   :  { %1566 = vmatmul.bf16.gmra.mxu1 %v2176_v38 }
 0x1a3   :  { %v1727_v52 = vmax.f32 %v1671_v49, 0.0  ;;  %1639 = vmatmul.bf16.gmra.mxu2 %v2180_v47 }
 0x1a4   :  { %1712 = vmatmul.bf16.gmra.mxu3 %v2184_v40 }
 0x1a5   :  { %v2614_v54 = vpack.c.bf16 %v1727_v52, %v1726_v50 }
 0x1a6   :  { %v1600_v57 = vpop.f32.mrf.mxu2  ;;  %v1456_v59 = vpop.f32.mrf.mxu0 }
 0x1a7   :  { %v1673_v58 = vpop.f32.mrf.mxu3  ;;  %2662 = vst [vmem:[%s3620_s3 + $0x10] sm:$0xff] %v2614_v54   ;;  %v1529_v60 = vpop.f32.mrf.mxu1  ;;  %v1457_v62 = vadd.f32 %v1456_v59, %v3207_v34  ;;  %v1601_v2 = vadd.f32 %v1600_v57, %v1528_v7 }
 0x1a9   :  { %v1530_v8 = vadd.f32 %v1529_v60, %v1457_v62  ;;  %v1674_v19 = vadd.f32 %v1673_v58, %v1601_v2 }
 0x1ab   :  { %v1728_v34 = vmax.f32 %v1674_v19, 0.0 }
 0x1ae   :  { %v1602_v10 = vpop.f32.mrf.mxu2  ;;  %v1459_v22 = vpop.f32.mrf.mxu0 }
 0x1af   :  { %v1675_v12 = vpop.f32.mrf.mxu3  ;;  %v1603_v20 = vadd.f32 %v1602_v10, %v1530_v8  ;;  %v1532_v24 = vpop.f32.mrf.mxu1  ;;  %v1460_v28 = vadd.f32 %v1459_v22, %v3210_v43 }
 0x1b1   :  { %v1676_v25 = vadd.f32 %v1675_v12, %v1603_v20  ;;  %1498 = vmatmul.bf16.gmra.mxu0 %v646_v13  ;;  %v1533_v36 = vadd.f32 %v1532_v24, %v1460_v28 }
 0x1b2   :  { %1571 = vmatmul.bf16.gmra.mxu1 %v647_v18 }
 0x1b3   :  { %v1729_v27 = vmax.f32 %v1676_v25, 0.0  ;;  %1644 = vmatmul.bf16.gmra.mxu2 %v648_v23 }
 0x1b4   :  { %1717 = vmatmul.bf16.gmra.mxu3 %v649_v48 }
 0x1b5   :  { %v2619_v5 = vpack.c.bf16 %v1729_v27, %v1728_v34 }
 0x1b6   :  { %v1605_v29 = vpop.f32.mrf.mxu2  ;;  %v1461_v32 = vpop.f32.mrf.mxu0 }
 0x1b7   :  { %v1678_v31 = vpop.f32.mrf.mxu3  ;;  %2663 = vst [vmem:[%s3620_s3 + $0x18] sm:$0xff] %v2619_v5   ;;  %v1534_v33 = vpop.f32.mrf.mxu1  ;;  %v1462_v37 = vadd.f32 %v1461_v32, %v3237_v1  ;;  %v1606_v38 = vadd.f32 %v1605_v29, %v1533_v36 }
 0x1b9   :  { %v1535_v39 = vadd.f32 %v1534_v33, %v1462_v37  ;;  %v1679_v46 = vadd.f32 %v1678_v31, %v1606_v38 }
 0x1bb   :  { %v1730_v50 = vmax.f32 %v1679_v46, 0.0 }
 0x1be   :  { %v1607_v44 = vpop.f32.mrf.mxu2  ;;  %v1464_v40 = vpop.f32.mrf.mxu0 }
 0x1bf   :  { %v1680_v15 = vpop.f32.mrf.mxu3  ;;  %v1608_v47 = vadd.f32 %v1607_v44, %v1535_v39  ;;  %v1537_v49 = vpop.f32.mrf.mxu1  ;;  %v1465_v56 = vadd.f32 %v1464_v40, %v3240_v11 }
 0x1c1   :  { %v1681_v43 = vadd.f32 %v1680_v15, %v1608_v47  ;;  %v1538_v60 = vadd.f32 %v1537_v49, %v1465_v56 }
 0x1c3   :  { %v1731_v52 = vmax.f32 %v1681_v43, 0.0 }
 0x1c5   :  { %v2624_v54 = vpack.c.bf16 %v1731_v52, %v1730_v50 }
 0x1c6   :  { %v1610_v57 = vpop.f32.mrf.mxu2  ;;  %v1466_v1 = vpop.f32.mrf.mxu0 }
 0x1c7   :  { %v1683_v58 = vpop.f32.mrf.mxu3  ;;  %2664 = vst [vmem:[%s3620_s3 + $0x20] sm:$0xff] %v2624_v54   ;;  %v1539_v59 = vpop.f32.mrf.mxu1  ;;  %v1467_v51 = vadd.f32 %v1466_v1, %v3267_v35  ;;  %v1611_v61 = vadd.f32 %v1610_v57, %v1538_v60 }
 0x1c9   :  { %v1540_v7 = vadd.f32 %v1539_v59, %v1467_v51  ;;  %v1684_v0 = vadd.f32 %v1683_v58, %v1611_v61 }
 0x1cb   :  { %v1732_v8 = vmax.f32 %v1684_v0, 0.0 }
 0x1ce   :  { %v1612_v62 = vpop.f32.mrf.mxu2  ;;  %v1469_v3 = vpop.f32.mrf.mxu0 }
 0x1cf   :  { %v1685_v17 = vpop.f32.mrf.mxu3  ;;  %v1613_v2 = vadd.f32 %v1612_v62, %v1540_v7  ;;  %v1542_v6 = vpop.f32.mrf.mxu1  ;;  %v1470_v13 = vadd.f32 %v1469_v3, %v3270_v45 }
 0x1d1   :  { %v1686_v11 = vadd.f32 %v1685_v17, %v1613_v2  ;;  %v1543_v22 = vadd.f32 %v1542_v6, %v1470_v13 }
 0x1d3   :  { %v1733_v10 = vmax.f32 %v1686_v11, 0.0 }
 0x1d5   :  { %v2629_v12 = vpack.c.bf16 %v1733_v10, %v1732_v8 }
 0x1d6   :  { %v1615_v18 = vpop.f32.mrf.mxu2  ;;  %v1471_v35 = vpop.f32.mrf.mxu0 }
 0x1d7   :  { %v1688_v19 = vpop.f32.mrf.mxu3  ;;  %2665 = vst [vmem:[%s3620_s3 + $0x28] sm:$0xff] %v2629_v12   ;;  %v1544_v20 = vpop.f32.mrf.mxu1  ;;  %v1472_v24 = vadd.f32 %v1471_v35, %v3297_v4  ;;  %v1616_v23 = vadd.f32 %v1615_v18, %v1543_v22 }
 0x1d9   :  { %v1545_v48 = vadd.f32 %v1544_v20, %v1472_v24  ;;  %v1689_v27 = vadd.f32 %v1688_v19, %v1616_v23 }
 0x1db   :  { %v1734_v31 = vmax.f32 %v1689_v27, 0.0 }
 0x1de   :  { %v1617_v25 = vpop.f32.mrf.mxu2  ;;  %v1474_v28 = vpop.f32.mrf.mxu0 }
 0x1df   :  { %v1690_v34 = vpop.f32.mrf.mxu3  ;;  %v1618_v5 = vadd.f32 %v1617_v25, %v1545_v48  ;;  %v1547_v29 = vpop.f32.mrf.mxu1  ;;  %v1475_v36 = vadd.f32 %v1474_v28, %v3300_v16 }
 0x1e1   :  { %v1691_v45 = vadd.f32 %v1690_v34, %v1618_v5  ;;  %v1548_v44 = vadd.f32 %v1547_v29, %v1475_v36 }
 0x1e3   :  { %v1735_v32 = vmax.f32 %v1691_v45, 0.0 }
 0x1e5   :  { %v2634_v33 = vpack.c.bf16 %v1735_v32, %v1734_v31 }
 0x1e6   :  { %v1620_v37 = vpop.f32.mrf.mxu2  ;;  %v1476_v4 = vpop.f32.mrf.mxu0 }
 0x1e7   :  { %v1693_v38 = vpop.f32.mrf.mxu3  ;;  %2666 = vst [vmem:[%s3620_s3 + $0x30] sm:$0xff] %v2634_v33   ;;  %v1549_v39 = vpop.f32.mrf.mxu1  ;;  %v1477_v15 = vadd.f32 %v1476_v4, %v3327_v41  ;;  %v1621_v46 = vadd.f32 %v1620_v37, %v1548_v44 }
 0x1e9   :  { %v1550_v47 = vadd.f32 %v1549_v39, %v1477_v15  ;;  %v1694_v43 = vadd.f32 %v1693_v38, %v1621_v46 }
 0x1eb   :  { %v1736_v56 = vmax.f32 %v1694_v43, 0.0 }
 0x1ee   :  { %v1622_v40 = vpop.f32.mrf.mxu2  ;;  %v1479_v52 = vpop.f32.mrf.mxu0 }
 0x1ef   :  { %v1695_v49 = vpop.f32.mrf.mxu3  ;;  %v1623_v50 = vadd.f32 %v1622_v40, %v1550_v47  ;;  %v1552_v54 = vpop.f32.mrf.mxu1  ;;  %v1480_v1 = vadd.f32 %v1479_v52, %v3330_v53 }
 0x1f1   :  { %v1696_v16 = vadd.f32 %v1695_v49, %v1623_v50  ;;  %v1553_v61 = vadd.f32 %v1552_v54, %v1480_v1 }
 0x1f3   :  { %v1737_v57 = vmax.f32 %v1696_v16, 0.0 }
 0x1f5   :  { %v2639_v58 = vpack.c.bf16 %v1737_v57, %v1736_v56 }
 0x1f6   :  { %v1625_v59 = vpop.f32.mrf.mxu2  ;;  %v1481_v41 = vpop.f32.mrf.mxu0 }
 0x1f7   :  { %v1698_v60 = vpop.f32.mrf.mxu3  ;;  %2667 = vst [vmem:[%s3620_s3 + $0x38] sm:$0xff] %v2639_v58   ;;  %v1554_v51 = vpop.f32.mrf.mxu1  ;;  %v1482_v7 = vadd.f32 %v1481_v41, %v3357_v14  ;;  %v1626_v62 = vadd.f32 %v1625_v59, %v1553_v61 }
 0x1f9   :  { %v1555_v17 = vadd.f32 %v1554_v51, %v1482_v7  ;;  %v1699_v3 = vadd.f32 %v1698_v60, %v1626_v62 }
 0x1fb   :  { %v1738_v10 = vmax.f32 %v1699_v3, 0.0 }
 0x1fe   :  { %v1627_v0 = vpop.f32.mrf.mxu2  ;;  %v1484_v11 = vpop.f32.mrf.mxu0 }
 0x1ff   :  { %v1700_v2 = vpop.f32.mrf.mxu3  ;;  %v1628_v6 = vadd.f32 %v1627_v0, %v1555_v17  ;;  %v1557_v8 = vpop.f32.mrf.mxu1  ;;  %v1485_v18 = vadd.f32 %v1484_v11, %v3360_v26 }
 0x201   :  { %v1701_v53 = vadd.f32 %v1700_v2, %v1628_v6  ;;  %v1558_v22 = vadd.f32 %v1557_v8, %v1485_v18 }
 0x203   :  { %v1739_v12 = vmax.f32 %v1701_v53, 0.0 }
 0x205   :  { %v2644_v13 = vpack.c.bf16 %v1739_v12, %v1738_v10 }
 0x206   :  { %v1630_v19 = vpop.f32.mrf.mxu2  ;;  %v1486_v14 = vpop.f32.mrf.mxu0 }
 0x207   :  { %v1703_v35 = vpop.f32.mrf.mxu3  ;;  %2668 = vst [vmem:[%s3620_s3 + $0x40] sm:$0xff] %v2644_v13   ;;  %v1559_v20 = vpop.f32.mrf.mxu1  ;;  %v1487_v24 = vadd.f32 %v1486_v14, %v3387_v55  ;;  %v1631_v23 = vadd.f32 %v1630_v19, %v1558_v22 }
 0x209   :  { %v1560_v48 = vadd.f32 %v1559_v20, %v1487_v24  ;;  %v1704_v27 = vadd.f32 %v1703_v35, %v1631_v23 }
 0x20b   :  { %v1740_v45 = vmax.f32 %v1704_v27, 0.0 }
 0x20e   :  { %v1632_v25 = vpop.f32.mrf.mxu2  ;;  %v1489_v28 = vpop.f32.mrf.mxu0 }
 0x20f   :  { %v1705_v34 = vpop.f32.mrf.mxu3  ;;  %v1633_v5 = vadd.f32 %v1632_v25, %v1560_v48  ;;  %v1562_v29 = vpop.f32.mrf.mxu1  ;;  %v1490_v33 = vadd.f32 %v1489_v28, %v3390_v63 }
 0x211   :  { %v1706_v26 = vadd.f32 %v1705_v34, %v1633_v5  ;;  %v1563_v4 = vadd.f32 %v1562_v29, %v1490_v33 }
 0x213   :  { %v1741_v31 = vmax.f32 %v1706_v26, 0.0 }
 0x215   :  { %v2649_v32 = vpack.c.bf16 %v1741_v31, %v1740_v45 }
 0x216   :  { %v1635_v36 = vpop.f32.mrf.mxu2  ;;  %v1491_v55 = vpop.f32.mrf.mxu0 }
 0x217   :  { %v1708_v37 = vpop.f32.mrf.mxu3  ;;  %2669 = vst [vmem:[%s3620_s3 + $0x48] sm:$0xff] %v2649_v32   ;;  %v1564_v38 = vpop.f32.mrf.mxu1  ;;  %v1492_v39 = vadd.f32 %v1491_v55, %v3417_v30  ;;  %v1636_v44 = vadd.f32 %v1635_v36, %v1563_v4 }
 0x219   :  { %v1565_v15 = vadd.f32 %v1564_v38, %v1492_v39  ;;  %v1709_v40 = vadd.f32 %v1708_v37, %v1636_v44 }
 0x21b   :  { %v1742_v52 = vmax.f32 %v1709_v40, 0.0 }
 0x21e   :  { %v1637_v46 = vpop.f32.mrf.mxu2  ;;  %v1494_v43 = vpop.f32.mrf.mxu0 }
 0x21f   :  { %v1710_v47 = vpop.f32.mrf.mxu3  ;;  %v1638_v49 = vadd.f32 %v1637_v46, %v1565_v15  ;;  %v1567_v50 = vpop.f32.mrf.mxu1  ;;  %v1495_v56 = vadd.f32 %v1494_v43, %v3420_v42 }
 0x221   :  { %v1711_v63 = vadd.f32 %v1710_v47, %v1638_v49  ;;  %v1568_v59 = vadd.f32 %v1567_v50, %v1495_v56 }
 0x223   :  { %v1743_v54 = vmax.f32 %v1711_v63, 0.0 }
 0x225   :  { %v2654_v16 = vpack.c.bf16 %v1743_v54, %v1742_v52 }
 0x226   :  { %v1640_v57 = vpop.f32.mrf.mxu2  ;;  %v1496_v30 = vpop.f32.mrf.mxu0 }
 0x227   :  { %v1713_v58 = vpop.f32.mrf.mxu3  ;;  %2670 = vst [vmem:[%s3620_s3 + $0x50] sm:$0xff] %v2654_v16   ;;  %v1569_v1 = vpop.f32.mrf.mxu1  ;;  %v1497_v60 = vadd.f32 %v1496_v30, %v3447_v9  ;;  %v1641_v41 = vadd.f32 %v1640_v57, %v1568_v59 }
 0x229   :  { %v1570_v51 = vadd.f32 %v1569_v1, %v1497_v60  ;;  %v1714_v62 = vadd.f32 %v1713_v58, %v1641_v41 }
 0x22b   :  { %v1744_v6 = vmax.f32 %v1714_v62, 0.0 }
 0x22e   :  { %v1642_v61 = vpop.f32.mrf.mxu2  ;;  %v1499_v0 = vpop.f32.mrf.mxu0 }
 0x22f   :  { %v1715_v7 = vpop.f32.mrf.mxu3  ;;  %v1643_v17 = vadd.f32 %v1642_v61, %v1570_v51  ;;  %v1572_v2 = vpop.f32.mrf.mxu1  ;;  %v1500_v3 = vadd.f32 %v1499_v0, %v3449_v21 }
 0x231   :  { %v1716_v42 = vadd.f32 %v1715_v7, %v1643_v17  ;;  %v1573_v53 = vadd.f32 %v1572_v2, %v1500_v3 }
 0x233   :  { %v1745_v11 = vmax.f32 %v1716_v42, 0.0 }
 0x235   :  { %v2659_v8 = vpack.c.bf16 %v1745_v11, %v1744_v6 }
 0x236   :  { %v1645_v10 = vpop.f32.mrf.mxu2  ;;  %v1501_v13 = vpop.f32.mrf.mxu0 }
 0x237   :  { %v1718_v12 = vpop.f32.mrf.mxu3  ;;  %2671 = vst [vmem:[%s3620_s3 + $0x58] sm:$0xff] %v2659_v8   ;;  %v1646_v9 = vadd.f32 %v1645_v10, %v1573_v53  ;;  %v1574_v18 = vpop.f32.mrf.mxu1 }
 0x239   :  { %v1719_v19 = vadd.f32 %v1718_v12, %v1646_v9 }
 0x23b   :  { %v1746_v35 = vmax.f32 %v1719_v19, 0.0 }
 0x23d   :  { %v1771_v14 = vpack.c.bf16 %v1746_v35, %v1746_v35 }
 0x23e   :  { %v1647_v20 = vpop.f32.mrf.mxu2 }
 0x23f   :  { %v1720_v22 = vpop.f32.mrf.mxu3  ;;  %1796 = vst [vmem:[%s3620_s3 + $0x60] sm:$0xf] %v1771_v14 }

// kernel: _lambda_.5
= control target key start
LH: loop header
LB: loop body
LE: loop exit
PB: predicated region body
PF: predicated region fallthrough
CT: control target
= control target key end

     0   :  { %vm1138_vm0 = vcmask 1040384   ;;  %vm1139_vm1 = vsmask.f32 256  ;;  %s2232_s1 = inlined_call_operand.vmem [shape: bf16[1024,128], index: 1, kind: input, shape index: {}]   ;;  %s2233_s2 = inlined_call_operand.vmem [shape: f32[1,128], index: 2, kind: input, shape index: {}]   ;;  %s2234_s0 = inlined_call_operand.vmem [shape: bf16[81,1024], index: 0, kind: input, shape index: {}]   ;;  %s2235_s3 = inlined_call_operand.vmem [shape: bf16[81,128], index: 3, kind: output, shape index: {}]  }
   0x1   :  { %v1611_v0 = vld [vmem:[%s2232_s1 + $0x38] sm:$0xff]  ;;  %v1610_v4 = vld [vmem:[%s2232_s1 + $0x30] sm:$0xff]  ;;  %v1609_v8 = vld [vmem:[%s2232_s1 + $0x28] sm:$0xff] }
   0x2   :  { %v1619_v1 = vld [vmem:[%s2232_s1 + $0x78] sm:$0xff]  ;;  %802 = vmatpush.bf16.msra.mxu0 %v1611_v0  ;;  %v1618_v5 = vld [vmem:[%s2232_s1 + $0x70] sm:$0xff]  ;;  %v1617_v9 = vld [vmem:[%s2232_s1 + $0x68] sm:$0xff] }
   0x3   :  { %v1627_v2 = vld [vmem:[%s2232_s1 + $0xb8] sm:$0xff]  ;;  %840 = vmatpush.bf16.msra.mxu1 %v1619_v1  ;;  %v1626_v6 = vld [vmem:[%s2232_s1 + $0xb0] sm:$0xff]  ;;  %v1625_v10 = vld [vmem:[%s2232_s1 + $0xa8] sm:$0xff] }
   0x4   :  { %v1635_v3 = vld [vmem:[%s2232_s1 + $0xf8] sm:$0xff]  ;;  %878 = vmatpush.bf16.msra.mxu2 %v1627_v2  ;;  %v1634_v7 = vld [vmem:[%s2232_s1 + $0xf0] sm:$0xff]  ;;  %v1633_v11 = vld [vmem:[%s2232_s1 + $0xe8] sm:$0xff] }
   0x5   :  { %916 = vmatpush.bf16.msra.mxu3 %v1635_v3  ;;  %v1608_v12 = vld [vmem:[%s2232_s1 + $0x20] sm:$0xff]  ;;  %v1607_v16 = vld [vmem:[%s2232_s1 + $0x18] sm:$0xff]  ;;  %v1606_v20 = vld [vmem:[%s2232_s1 + $0x10] sm:$0xff] }
   0x6   :  { %803 = vmatpush.bf16.msra.mxu0 %v1610_v4  ;;  %v1616_v13 = vld [vmem:[%s2232_s1 + $0x60] sm:$0xff]  ;;  %v1615_v17 = vld [vmem:[%s2232_s1 + $0x58] sm:$0xff]  ;;  %v1614_v21 = vld [vmem:[%s2232_s1 + $0x50] sm:$0xff] }
   0x7   :  { %841 = vmatpush.bf16.msra.mxu1 %v1618_v5  ;;  %v1624_v14 = vld [vmem:[%s2232_s1 + $0xa0] sm:$0xff]  ;;  %v1623_v18 = vld [vmem:[%s2232_s1 + $0x98] sm:$0xff]  ;;  %v1622_v22 = vld [vmem:[%s2232_s1 + $0x90] sm:$0xff] }
   0x8   :  { %879 = vmatpush.bf16.msra.mxu2 %v1626_v6  ;;  %v1632_v15 = vld [vmem:[%s2232_s1 + $0xe0] sm:$0xff]  ;;  %v1631_v19 = vld [vmem:[%s2232_s1 + $0xd8] sm:$0xff]  ;;  %v1630_v23 = vld [vmem:[%s2232_s1 + $0xd0] sm:$0xff] }
   0x9   :  { %917 = vmatpush.bf16.msra.mxu3 %v1634_v7  ;;  %v1605_v24 = vld [vmem:[%s2232_s1 + $0x8] sm:$0xff]  ;;  %v1604_v28 = vld [vmem:[%s2232_s1] sm:$0xff]  ;;  %v1659_v40 = vld [vmem:[%s2232_s1 + $0x1b8] sm:$0xff] }
   0xa   :  { %804 = vmatpush.bf16.msra.mxu0 %v1609_v8  ;;  %v1613_v25 = vld [vmem:[%s2232_s1 + $0x48] sm:$0xff]  ;;  %v1612_v29 = vld [vmem:[%s2232_s1 + $0x40] sm:$0xff]  ;;  %v1643_v41 = vld [vmem:[%s2232_s1 + $0x138] sm:$0xff] }
   0xb   :  { %842 = vmatpush.bf16.msra.mxu1 %v1617_v9  ;;  %v1621_v26 = vld [vmem:[%s2232_s1 + $0x88] sm:$0xff]  ;;  %v1620_v30 = vld [vmem:[%s2232_s1 + $0x80] sm:$0xff]  ;;  %v1667_v46 = vld [vmem:[%s2232_s1 + $0x1f8] sm:$0xff] }
   0xc   :  { %880 = vmatpush.bf16.msra.mxu2 %v1625_v10  ;;  %v1629_v27 = vld [vmem:[%s2232_s1 + $0xc8] sm:$0xff]  ;;  %v1628_v31 = vld [vmem:[%s2232_s1 + $0xc0] sm:$0xff]  ;;  %v1651_v47 = vld [vmem:[%s2232_s1 + $0x178] sm:$0xff] }
   0xd   :  { %918 = vmatpush.bf16.msra.mxu3 %v1633_v11  ;;  %v1150_v32 = vld [vmem:[%s2234_s0] sm:$0xf]  ;;  %v1564_v34 = vld [vmem:[%s2234_s0 + $0x4] sm:$0xf]  ;;  %v1158_v36 = vld [vmem:[%s2234_s0 + $0x8] sm:$0xf] }
   0xe   :  { %805 = vmatpush.bf16.msra.mxu0 %v1608_v12  ;;  %v1568_v33 = vld [vmem:[%s2234_s0 + $0x1c] sm:$0xf0]  ;;  %v1152_v35 = vld [vmem:[%s2234_s0 + $0x20] sm:$0xf0]  ;;  %v1569_v37 = vld [vmem:[%s2234_s0 + $0x24] sm:$0xf0] }
   0xf   :  { %843 = vmatpush.bf16.msra.mxu1 %v1616_v13  ;;  %v1565_v38 = vld [vmem:[%s2234_s0 + $0xc] sm:$0xf]  ;;  %v1151_v42 = vor.u32 %v1568_v33, %v1150_v32  ;;  %v1155_v43 = vor.u32 %v1564_v34, %v1152_v35  ;;  %v1159_v44 = vor.u32 %v1569_v37, %v1158_v36  ;;  %v1658_v48 = vld [vmem:[%s2232_s1 + $0x1b0] sm:$0xff]  ;;  %v1182_v56 = vld [vmem:[%s2234_s0 + $0x40] sm:$0xf] }
  0x10   :  { %881 = vmatpush.bf16.msra.mxu2 %v1624_v14  ;;  %v1160_v39 = vld [vmem:[%s2234_s0 + $0x28] sm:$0xf0]  ;;  %v1642_v49 = vld [vmem:[%s2232_s1 + $0x130] sm:$0xff]  ;;  %v1656_v57 = vld [vmem:[%s2232_s1 + $0x1a0] sm:$0xff] }
  0x11   :  { %919 = vmatpush.bf16.msra.mxu3 %v1632_v15  ;;  %v1163_v45 = vor.u32 %v1565_v38, %v1160_v39  ;;  %v1666_v50 = vld [vmem:[%s2232_s1 + $0x1f0] sm:$0xff]  ;;  %v1657_v52 = vld [vmem:[%s2232_s1 + $0x1a8] sm:$0xff]  ;;  %v1640_v58 = vld [vmem:[%s2232_s1 + $0x120] sm:$0xff] }
  0x12   :  { %806 = vmatpush.bf16.msra.mxu0 %v1607_v16  ;;  %v1650_v51 = vld [vmem:[%s2232_s1 + $0x170] sm:$0xff]  ;;  %v1641_v53 = vld [vmem:[%s2232_s1 + $0x128] sm:$0xff]  ;;  %v1576_v59 = vld [vmem:[%s2234_s0 + $0x5c] sm:$0xf0] }
  0x13   :  { %844 = vmatpush.bf16.msra.mxu1 %v1615_v17  ;;  %v1665_v54 = vld [vmem:[%s2232_s1 + $0x1e8] sm:$0xff]  ;;  %v1572_v60 = vld [vmem:[%s2234_s0 + $0x44] sm:$0xf]  ;;  %v1183_v4 = vor.u32 %v1576_v59, %v1182_v56  ;;  %v1655_v8 = vld [vmem:[%s2232_s1 + $0x198] sm:$0xff] }
  0x14   :  { %882 = vmatpush.bf16.msra.mxu2 %v1623_v18  ;;  %v1649_v55 = vld [vmem:[%s2232_s1 + $0x168] sm:$0xff]  ;;  %v1184_v61 = vld [vmem:[%s2234_s0 + $0x60] sm:$0xf0]  ;;  %v1639_v9 = vld [vmem:[%s2232_s1 + $0x118] sm:$0xff] }
  0x15   :  { %920 = vmatpush.bf16.msra.mxu3 %v1631_v19  ;;  %v1190_v62 = vld [vmem:[%s2234_s0 + $0x48] sm:$0xf]  ;;  %v1573_v0 = vld [vmem:[%s2234_s0 + $0x4c] sm:$0xf]  ;;  %v1664_v2 = vld [vmem:[%s2232_s1 + $0x1e0] sm:$0xff]  ;;  %v1187_v5 = vor.u32 %v1572_v60, %v1184_v61 }
  0x16   :  { %807 = vmatpush.bf16.msra.mxu0 %v1606_v20  ;;  %v1577_v63 = vld [vmem:[%s2234_s0 + $0x64] sm:$0xf0]  ;;  %v1192_v1 = vld [vmem:[%s2234_s0 + $0x68] sm:$0xf0]  ;;  %v1648_v3 = vld [vmem:[%s2232_s1 + $0x160] sm:$0xff] }
  0x17   :  { %845 = vmatpush.bf16.msra.mxu1 %v1614_v21  ;;  %v1191_v6 = vor.u32 %v1577_v63, %v1190_v62  ;;  %v1195_v7 = vor.u32 %v1573_v0, %v1192_v1  ;;  %v1663_v10 = vld [vmem:[%s2232_s1 + $0x1d8] sm:$0xff]  ;;  %v1654_v12 = vld [vmem:[%s2232_s1 + $0x190] sm:$0xff]  ;;  %v1214_v15 = vld [vmem:[%s2234_s0 + $0x80] sm:$0xf] }
  0x18   :  { %883 = vmatpush.bf16.msra.mxu2 %v1622_v22  ;;  %v1647_v11 = vld [vmem:[%s2232_s1 + $0x158] sm:$0xff]  ;;  %v1638_v13 = vld [vmem:[%s2232_s1 + $0x110] sm:$0xff]  ;;  %v1584_v16 = vld [vmem:[%s2234_s0 + $0x9c] sm:$0xf0] }
  0x19   :  { %921 = vmatpush.bf16.msra.mxu3 %v1630_v23  ;;  %v1662_v14 = vld [vmem:[%s2232_s1 + $0x1d0] sm:$0xff]  ;;  %v1580_v17 = vld [vmem:[%s2234_s0 + $0x84] sm:$0xf]  ;;  %v1222_v19 = vld [vmem:[%s2234_s0 + $0x88] sm:$0xf]  ;;  %v1215_v23 = vor.u32 %v1584_v16, %v1214_v15 }
  0x1a   :  { %808 = vmatpush.bf16.msra.mxu0 %v1605_v24  ;;  %v1216_v18 = vld [vmem:[%s2234_s0 + $0xa0] sm:$0xf0]  ;;  %v1585_v20 = vld [vmem:[%s2234_s0 + $0xa4] sm:$0xf0]  ;;  %v1581_v21 = vld [vmem:[%s2234_s0 + $0x8c] sm:$0xf] }
  0x1b   :  { %846 = vmatpush.bf16.msra.mxu1 %v1613_v25  ;;  %v1224_v22 = vld [vmem:[%s2234_s0 + $0xa8] sm:$0xf0]  ;;  %v1219_v24 = vor.u32 %v1580_v17, %v1216_v18  ;;  %v1223_v25 = vor.u32 %v1585_v20, %v1222_v19  ;;  %v1246_v32 = vld [vmem:[%s2234_s0 + $0xc0] sm:$0xf]  ;;  %v1588_v34 = vld [vmem:[%s2234_s0 + $0xc4] sm:$0xf] }
  0x1c   :  { %884 = vmatpush.bf16.msra.mxu2 %v1621_v26  ;;  %v1227_v26 = vor.u32 %v1581_v21, %v1224_v22  ;;  %v1592_v33 = vld [vmem:[%s2234_s0 + $0xdc] sm:$0xf0]  ;;  %v1248_v35 = vld [vmem:[%s2234_s0 + $0xe0] sm:$0xf0]  ;;  %v1254_v36 = vld [vmem:[%s2234_s0 + $0xc8] sm:$0xf] }
  0x1d   :  { %922 = vmatpush.bf16.msra.mxu3 %v1629_v27  ;;  %v1646_v27 = vld [vmem:[%s2232_s1 + $0x150] sm:$0xff]  ;;  %v1593_v37 = vld [vmem:[%s2234_s0 + $0xe4] sm:$0xf0]  ;;  %v1589_v38 = vld [vmem:[%s2234_s0 + $0xcc] sm:$0xf] }
  0x1e   :  { %809 = vmatpush.bf16.msra.mxu0 %v1604_v28  ;;  %v1653_v28 = vld [vmem:[%s2232_s1 + $0x188] sm:$0xff]  ;;  %v54_v60 = vld [vmem:[%s2234_s0 + $0x140] sm:$0x11]  ;;  %v1198_v18 = vld [vmem:[%s2234_s0 + $0x50] sm:$0xf] }
  0x1f   :  { %847 = vmatpush.bf16.msra.mxu1 %v1612_v29  ;;  %v1637_v29 = vld [vmem:[%s2232_s1 + $0x108] sm:$0xff]  ;;  %v314_v62 = vunpack.c.l.b16 %v54_v60  ;;  %v315_v63 = vunpack.c.h.b16 %v54_v60  ;;  %v1578_v19 = vld [vmem:[%s2234_s0 + $0x6c] sm:$0xf0]  ;;  %v1574_v20 = vld [vmem:[%s2234_s0 + $0x54] sm:$0xf] }
  0x20   :  { %885 = vmatpush.bf16.msra.mxu2 %v1620_v30  ;;  %v1661_v30 = vld [vmem:[%s2232_s1 + $0x1c8] sm:$0xff]  ;;  %v1200_v21 = vld [vmem:[%s2234_s0 + $0x70] sm:$0xf0]  ;;  %v1206_v22 = vld [vmem:[%s2234_s0 + $0x58] sm:$0xf] }
  0x21   :  { %923 = vmatpush.bf16.msra.mxu3 %v1628_v31  ;;  %810 = vmatmul.bf16.vlgmr.msra.gmra.mxu0 %v1151_v42  ;;  %v1645_v31 = vld [vmem:[%s2232_s1 + $0x148] sm:$0xff]  ;;  %v1255_v42 = vor.u32 %v1593_v37, %v1254_v36  ;;  %v1587_v36 = vld [vmem:[%s2234_s0 + $0xb4] sm:$0xf0]  ;;  %v1583_v37 = vld [vmem:[%s2234_s0 + $0x9c] sm:$0xf] }
  0x22   :  { %954 = vmatpush.bf16.msrb.mxu0 %v1643_v41  ;;  %848 = vmatmul.bf16.vlgmr.msra.gmra.mxu1 %v1155_v43  ;;  %v1256_v39 = vld [vmem:[%s2234_s0 + $0xe8] sm:$0xf0]  ;;  %v1251_v41 = vor.u32 %v1588_v34, %v1248_v35  ;;  %v1232_v34 = vld [vmem:[%s2234_s0 + $0xb0] sm:$0xf0]  ;;  %v1238_v35 = vld [vmem:[%s2234_s0 + $0x98] sm:$0xf] }
  0x23   :  { %886 = vmatmul.bf16.vlgmr.msra.gmra.mxu2 %v1159_v44  ;;  %992 = vmatpush.bf16.msrb.mxu1 %v1651_v47  ;;  %v1259_v43 = vor.u32 %v1589_v38, %v1256_v39  ;;  %v1652_v44 = vld [vmem:[%s2232_s1 + $0x180] sm:$0xff]  ;;  %v55_v61 = vld [vmem:[%s2234_s0 + $0x148] sm:$0x11]  ;;  %v1240_v38 = vld [vmem:[%s2234_s0 + $0xb8] sm:$0xf0] }
  0x24   :  { %1030 = vmatpush.bf16.msrb.mxu2 %v1659_v40  ;;  %924 = vmatmul.bf16.vlgmr.msra.gmra.mxu3 %v1163_v45  ;;  %v1247_v40 = vor.u32 %v1592_v33, %v1246_v32  ;;  %v1636_v45 = vld [vmem:[%s2232_s1 + $0x100] sm:$0xff]  ;;  %v316_v0 = vunpack.c.l.b16 %v55_v61  ;;  %v317_v1 = vunpack.c.h.b16 %v55_v61  ;;  %v1586_v32 = vld [vmem:[%s2234_s0 + $0xac] sm:$0xf0]  ;;  %v1582_v33 = vld [vmem:[%s2234_s0 + $0x94] sm:$0xf] }
  0x25   :  { %1068 = vmatpush.bf16.msrb.mxu3 %v1667_v46  ;;  %v1660_v46 = vld [vmem:[%s2232_s1 + $0x1c0] sm:$0xff]  ;;  %v1595_v60 = vld [vmem:[%s2234_s0 + $0xf4] sm:$0xf0]  ;;  %v1591_v61 = vld [vmem:[%s2234_s0 + $0xdc] sm:$0xf] }
  0x26   :  { %955 = vmatpush.bf16.msrb.mxu0 %v1642_v49  ;;  %v1644_v47 = vld [vmem:[%s2232_s1 + $0x140] sm:$0xff]  ;;  %vm1140_vm2 = vmand %vm1138_vm0, %vm1139_vm1 }
  0x27   :  { %993 = vmatpush.bf16.msrb.mxu1 %v1650_v51  ;;  %v1600_v49 = vld [vmem:[%s2234_s0 + $0x11c] sm:$0xf0]  ;;  %v1280_v51 = vld [vmem:[%s2234_s0 + $0x120] sm:$0xf0] }
  0x28   :  { %1031 = vmatpush.bf16.msrb.mxu2 %v1658_v48  ;;  %v1278_v48 = vld [vmem:[%s2234_s0 + $0x100] sm:$0xf] }
  0x29   :  { %1069 = vmatpush.bf16.msrb.mxu3 %v1666_v50  ;;  %v1596_v50 = vld [vmem:[%s2234_s0 + $0x104] sm:$0xf]  ;;  %v1279_v56 = vor.u32 %v1600_v49, %v1278_v48 }
  0x2a   :  { %956 = vmatpush.bf16.msrb.mxu0 %v1641_v53  ;;  %v1601_v53 = vld [vmem:[%s2234_s0 + $0x124] sm:$0xf0] }
  0x2b   :  { %994 = vmatpush.bf16.msrb.mxu1 %v1649_v55  ;;  %v1288_v55 = vld [vmem:[%s2234_s0 + $0x128] sm:$0xf0] }
  0x2c   :  { %1032 = vmatpush.bf16.msrb.mxu2 %v1657_v52  ;;  %v1286_v52 = vld [vmem:[%s2234_s0 + $0x108] sm:$0xf] }
  0x2d   :  { %1070 = vmatpush.bf16.msrb.mxu3 %v1665_v54  ;;  %v1597_v54 = vld [vmem:[%s2234_s0 + $0x10c] sm:$0xf] }
  0x2e   :  { %957 = vmatpush.bf16.msrb.mxu0 %v1640_v58  ;;  %v1287_v58 = vor.u32 %v1601_v53, %v1286_v52  ;;  %v1291_v59 = vor.u32 %v1597_v54, %v1288_v55  ;;  %v1262_v55 = vld [vmem:[%s2234_s0 + $0xd0] sm:$0xf] }
  0x2f   :  { %995 = vmatpush.bf16.msrb.mxu1 %v1648_v3  ;;  %v363_v3 = vpack.c.b16 %v315_v63, %v315_v63 }
  0x30   :  { %1033 = vmatpush.bf16.msrb.mxu2 %v1656_v57  ;;  %v1283_v57 = vor.u32 %v1596_v50, %v1280_v51 }
  0x31   :  { %1071 = vmatpush.bf16.msrb.mxu3 %v1664_v2  ;;  %815 = vmatmul.bf16.gmra.mxu0 %v1183_v4  ;;  %v362_v2 = vpack.c.b16 %v314_v62, %v314_v62  ;;  %v364_v4 = vpack.c.b16 %v316_v0, %v316_v0  ;;  %v1272_v62 = vld [vmem:[%s2234_s0 + $0xf8] sm:$0xf0] }
  0x32   :  { %853 = vmatmul.bf16.gmra.mxu1 %v1187_v5  ;;  %958 = vmatpush.bf16.msrb.mxu0 %v1639_v9  ;;  %v365_v5 = vpack.c.b16 %v317_v1, %v317_v1  ;;  %v1168_v9 = vld [vmem:[%s2234_s0 + $0x30] sm:$0xf0] }
  0x33   :  { %891 = vmatmul.bf16.gmra.mxu2 %v1191_v6  ;;  %996 = vmatpush.bf16.msrb.mxu1 %v1647_v11  ;;  %v1166_v6 = vld [vmem:[%s2234_s0 + $0x10] sm:$0xf]  ;;  %v1571_v11 = vld [vmem:[%s2234_s0 + $0x34] sm:$0xf0] }
  0x34   :  { %929 = vmatmul.bf16.gmra.mxu3 %v1195_v7  ;;  %1034 = vmatpush.bf16.msrb.mxu2 %v1655_v8  ;;  %v1570_v7 = vld [vmem:[%s2234_s0 + $0x2c] sm:$0xf0]  ;;  %v1566_v8 = vld [vmem:[%s2234_s0 + $0x14] sm:$0xf] }
  0x35   :  { %1072 = vmatpush.bf16.msrb.mxu3 %v1663_v10  ;;  %v1174_v10 = vld [vmem:[%s2234_s0 + $0x18] sm:$0xf]  ;;  %v1171_v15 = vor.u32 %v1566_v8, %v1168_v9 }
  0x36   :  { %959 = vmatpush.bf16.msrb.mxu0 %v1638_v13  ;;  %v1176_v13 = vld [vmem:[%s2234_s0 + $0x38] sm:$0xf0]  ;;  %v1175_v16 = vor.u32 %v1571_v11, %v1174_v10 }
  0x37   :  { %997 = vmatpush.bf16.msrb.mxu1 %v1646_v27  ;;  %v1203_v27 = vor.u32 %v1574_v20, %v1200_v21  ;;  %v1602_v20 = vld [vmem:[%s2234_s0 + $0x12c] sm:$0xf0]  ;;  %v1598_v21 = vld [vmem:[%s2234_s0 + $0x114] sm:$0xf] }
  0x38   :  { %1035 = vmatpush.bf16.msrb.mxu2 %v1654_v12  ;;  %v1567_v12 = vld [vmem:[%s2234_s0 + $0x1c] sm:$0xf] }
  0x39   :  { %1073 = vmatpush.bf16.msrb.mxu3 %v1662_v14  ;;  %v1167_v14 = vor.u32 %v1570_v7, %v1166_v6  ;;  %v1179_v17 = vor.u32 %v1567_v12, %v1176_v13  ;;  %v1275_v7 = vor.u32 %v1591_v61, %v1272_v62 }
  0x3a   :  { %960 = vmatpush.bf16.msrb.mxu0 %v1637_v29 }
  0x3b   :  { %998 = vmatpush.bf16.msrb.mxu1 %v1645_v31  ;;  %v1230_v31 = vld [vmem:[%s2234_s0 + $0x90] sm:$0xf] }
  0x3c   :  { %1036 = vmatpush.bf16.msrb.mxu2 %v1653_v28  ;;  %v1231_v39 = vor.u32 %v1586_v32, %v1230_v31 }
  0x3d   :  { %1074 = vmatpush.bf16.msrb.mxu3 %v1661_v30  ;;  %v2087_v30 = vld [vmem:[%s2233_s2] ss:$0 sm:$0xff] }
  0x3e   :  { %961 = vmatpush.bf16.msrb.mxu0 %v1636_v45 }
  0x3f   :  { %999 = vmatpush.bf16.msrb.mxu1 %v1644_v47 }
  0x40   :  { %1037 = vmatpush.bf16.msrb.mxu2 %v1652_v44  ;;  %v1243_v44 = vor.u32 %v1583_v37, %v1240_v38 }
  0x41   :  { %820 = vmatmul.bf16.gmra.mxu0 %v1215_v23  ;;  %1075 = vmatpush.bf16.msrb.mxu3 %v1660_v46  ;;  %v1579_v23 = vld [vmem:[%s2234_s0 + $0x74] sm:$0xf0] }
  0x42   :  { %858 = vmatmul.bf16.gmra.mxu1 %v1219_v24  ;;  %v1575_v24 = vld [vmem:[%s2234_s0 + $0x5c] sm:$0xf]  ;;  %v1207_v28 = vor.u32 %v1579_v23, %v1206_v22  ;;  %v1296_v22 = vld [vmem:[%s2234_s0 + $0x130] sm:$0xf0]  ;;  %v1302_v23 = vld [vmem:[%s2234_s0 + $0x118] sm:$0xf] }
  0x43   :  { %896 = vmatmul.bf16.gmra.mxu2 %v1223_v25  ;;  %v1208_v25 = vld [vmem:[%s2234_s0 + $0x78] sm:$0xf0]  ;;  %v1299_v31 = vor.u32 %v1598_v21, %v1296_v22 }
  0x44   :  { %934 = vmatmul.bf16.gmra.mxu3 %v1227_v26  ;;  %v1199_v26 = vor.u32 %v1578_v19, %v1198_v18  ;;  %v1211_v29 = vor.u32 %v1575_v24, %v1208_v25  ;;  %v1294_v19 = vld [vmem:[%s2234_s0 + $0x110] sm:$0xf]  ;;  %v1603_v24 = vld [vmem:[%s2234_s0 + $0x134] sm:$0xf0]  ;;  %v1599_v25 = vld [vmem:[%s2234_s0 + $0x11c] sm:$0xf] }
  0x51   :  { %825 = vmatmul.bf16.gmra.mxu0 %v1247_v40  ;;  %v1235_v40 = vor.u32 %v1582_v33, %v1232_v34 }
  0x52   :  { %863 = vmatmul.bf16.gmra.mxu1 %v1251_v41 }
  0x53   :  { %901 = vmatmul.bf16.gmra.mxu2 %v1255_v42 }
  0x54   :  { %939 = vmatmul.bf16.gmra.mxu3 %v1259_v43  ;;  %v1239_v43 = vor.u32 %v1587_v36, %v1238_v35  ;;  %v1303_v35 = vor.u32 %v1603_v24, %v1302_v23 }
  0x61   :  { %830 = vmatmul.bf16.gmra.mxu0 %v1279_v56  ;;  %v1594_v56 = vld [vmem:[%s2234_s0 + $0xec] sm:$0xf0] }
  0x62   :  { %868 = vmatmul.bf16.gmra.mxu1 %v1283_v57  ;;  %v1590_v57 = vld [vmem:[%s2234_s0 + $0xd4] sm:$0xf]  ;;  %v1263_v1 = vor.u32 %v1594_v56, %v1262_v55 }
  0x63   :  { %906 = vmatmul.bf16.gmra.mxu2 %v1287_v58  ;;  %v1264_v58 = vld [vmem:[%s2234_s0 + $0xf0] sm:$0xf0] }
  0x64   :  { %944 = vmatmul.bf16.gmra.mxu3 %v1291_v59  ;;  %v1270_v59 = vld [vmem:[%s2234_s0 + $0xd8] sm:$0xf] }
  0x65   :  { %v1271_v6 = vor.u32 %v1595_v60, %v1270_v59 }
  0x71   :  { %835 = vmatmul.bf16.gmra.mxu0 %v362_v2  ;;  %v1267_v2 = vor.u32 %v1590_v57, %v1264_v58 }
  0x72   :  { %873 = vmatmul.bf16.gmra.mxu1 %v363_v3 }
  0x73   :  { %911 = vmatmul.bf16.gmra.mxu2 %v364_v4 }
  0x74   :  { %949 = vmatmul.bf16.gmra.mxu3 %v365_v5 }
  0x81   :  { %962 = vmatmul.bf16.vlgmr.msrb.gmra.mxu0 %v1167_v14 }
  0x82   :  { %1000 = vmatmul.bf16.vlgmr.msrb.gmra.mxu1 %v1171_v15 }
  0x83   :  { %1038 = vmatmul.bf16.vlgmr.msrb.gmra.mxu2 %v1175_v16 }
  0x84   :  { %1076 = vmatmul.bf16.vlgmr.msrb.gmra.mxu3 %v1179_v17 }
  0x91   :  { %967 = vmatmul.bf16.gmra.mxu0 %v1199_v26  ;;  %v1304_v26 = vld [vmem:[%s2234_s0 + $0x138] sm:$0xf0] }
  0x92   :  { %1005 = vmatmul.bf16.gmra.mxu1 %v1203_v27  ;;  %v1307_v36 = vor.u32 %v1599_v25, %v1304_v26 }
  0x93   :  { %1043 = vmatmul.bf16.gmra.mxu2 %v1207_v28 }
  0x94   :  { %1081 = vmatmul.bf16.gmra.mxu3 %v1211_v29  ;;  %v1295_v29 = vor.u32 %v1602_v20, %v1294_v19 }
  0x9e   :  { %v811_v41 = vpop.f32.mrf.mxu0 }
  0x9f   :  { %v849_v42 = vpop.f32.mrf.mxu1  ;;  %v812_v45 = vadd.f32 %v2087_v30, %v811_v41 }
  0xa1   :  { %v850_v46 = vadd.f32 %v849_v42, %v812_v45  ;;  %972 = vmatmul.bf16.gmra.mxu0 %v1231_v39  ;;  %v56_v45 = vld [vmem:[%s2234_s0 + $0x150] sm:$0x11] }
  0xa2   :  { %1010 = vmatmul.bf16.gmra.mxu1 %v1235_v40 }
  0xa3   :  { %1048 = vmatmul.bf16.gmra.mxu2 %v1239_v43 }
  0xa4   :  { %1086 = vmatmul.bf16.gmra.mxu3 %v1243_v44 }
  0xa6   :  { %v887_v47 = vpop.f32.mrf.mxu2  ;;  %v813_v50 = vpop.f32.mrf.mxu0 }
  0xa7   :  { %v925_v48 = vpop.f32.mrf.mxu3  ;;  %v888_v49 = vadd.f32 %v887_v47, %v850_v46  ;;  %v851_v51 = vpop.f32.mrf.mxu1  ;;  %v814_v52 = vadd.f32 %v2087_v30, %v813_v50  ;;  %v57_v47 = vld [vmem:[%s2234_s0 + $0x158] sm:$0x11]  ;;  %v318_v50 = vunpack.c.l.b16 %v56_v45 }
  0xa9   :  { %v2115_v53 = vadd.f32 %v925_v48, %v888_v49  ;;  %v852_v54 = vadd.f32 %v851_v51, %v814_v52  ;;  %v319_v51 = vunpack.c.h.b16 %v56_v45  ;;  %v320_v52 = vunpack.c.l.b16 %v57_v47 }
  0xaa   :  { %v366_v57 = vpack.c.b16 %v318_v50, %v318_v50 }
  0xab   :  { %v367_v58 = vpack.c.b16 %v319_v51, %v319_v51  ;;  %v368_v62 = vpack.c.b16 %v320_v52, %v320_v52 }
  0xae   :  { %v889_v63 = vpop.f32.mrf.mxu2  ;;  %v816_v4 = vpop.f32.mrf.mxu0 }
  0xaf   :  { %v927_v0 = vpop.f32.mrf.mxu3  ;;  %v890_v3 = vadd.f32 %v889_v63, %v852_v54  ;;  %v854_v5 = vpop.f32.mrf.mxu1  ;;  %v817_v8 = vadd.f32 %v2087_v30, %v816_v4  ;;  %v321_v54 = vunpack.c.h.b16 %v57_v47 }
  0xb1   :  { %v2142_v9 = vadd.f32 %v927_v0, %v890_v3  ;;  %v855_v10 = vadd.f32 %v854_v5, %v817_v8  ;;  %977 = vmatmul.bf16.gmra.mxu0 %v1263_v1  ;;  %v369_v63 = vpack.c.b16 %v321_v54, %v321_v54 }
  0xb2   :  { %1015 = vmatmul.bf16.gmra.mxu1 %v1267_v2 }
  0xb3   :  { %1053 = vmatmul.bf16.gmra.mxu2 %v1271_v6 }
  0xb4   :  { %1091 = vmatmul.bf16.gmra.mxu3 %v1275_v7 }
  0xb6   :  { %v892_v11 = vpop.f32.mrf.mxu2  ;;  %v818_v14 = vpop.f32.mrf.mxu0 }
  0xb7   :  { %v930_v12 = vpop.f32.mrf.mxu3  ;;  %v893_v13 = vadd.f32 %v892_v11, %v855_v10  ;;  %v856_v15 = vpop.f32.mrf.mxu1  ;;  %v819_v16 = vadd.f32 %v2087_v30, %v818_v14 }
  0xb9   :  { %v2145_v17 = vadd.f32 %v930_v12, %v893_v13  ;;  %v857_v18 = vadd.f32 %v856_v15, %v819_v16 }
  0xbe   :  { %v894_v27 = vpop.f32.mrf.mxu2  ;;  %v821_v33 = vpop.f32.mrf.mxu0 }
  0xbf   :  { %v932_v28 = vpop.f32.mrf.mxu3  ;;  %v895_v32 = vadd.f32 %v894_v27, %v857_v18  ;;  %v859_v34 = vpop.f32.mrf.mxu1  ;;  %v822_v37 = vadd.f32 %v2087_v30, %v821_v33 }
  0xc1   :  { %v2172_v38 = vadd.f32 %v932_v28, %v895_v32  ;;  %v860_v39 = vadd.f32 %v859_v34, %v822_v37  ;;  %982 = vmatmul.bf16.gmra.mxu0 %v1295_v29 }
  0xc2   :  { %1020 = vmatmul.bf16.gmra.mxu1 %v1299_v31 }
  0xc3   :  { %1058 = vmatmul.bf16.gmra.mxu2 %v1303_v35 }
  0xc4   :  { %1096 = vmatmul.bf16.gmra.mxu3 %v1307_v36 }
  0xc6   :  { %v897_v40 = vpop.f32.mrf.mxu2  ;;  %v823_v43 = vpop.f32.mrf.mxu0 }
  0xc7   :  { %v935_v41 = vpop.f32.mrf.mxu3  ;;  %v898_v42 = vadd.f32 %v897_v40, %v860_v39  ;;  %v861_v44 = vpop.f32.mrf.mxu1  ;;  %v824_v46 = vadd.f32 %v2087_v30, %v823_v43 }
  0xc9   :  { %v2181_v48 = vadd.f32 %v935_v41, %v898_v42  ;;  %v862_v49 = vadd.f32 %v861_v44, %v824_v46 }
  0xce   :  { %v899_v55 = vpop.f32.mrf.mxu2  ;;  %v826_v60 = vpop.f32.mrf.mxu0 }
  0xcf   :  { %v937_v56 = vpop.f32.mrf.mxu3  ;;  %v900_v59 = vadd.f32 %v899_v55, %v862_v49  ;;  %v864_v61 = vpop.f32.mrf.mxu1  ;;  %v827_v0 = vadd.f32 %v2087_v30, %v826_v60 }
  0xd1   :  { %v2184_v1 = vadd.f32 %v937_v56, %v900_v59  ;;  %v865_v2 = vadd.f32 %v864_v61, %v827_v0  ;;  %987 = vmatmul.bf16.gmra.mxu0 %v366_v57 }
  0xd2   :  { %1025 = vmatmul.bf16.gmra.mxu1 %v367_v58 }
  0xd3   :  { %1063 = vmatmul.bf16.gmra.mxu2 %v368_v62 }
  0xd4   :  { %1101 = vmatmul.bf16.gmra.mxu3 %v369_v63 }
  0xd6   :  { %v902_v3 = vpop.f32.mrf.mxu2  ;;  %v828_v6 = vpop.f32.mrf.mxu0 }
  0xd7   :  { %v940_v4 = vpop.f32.mrf.mxu3  ;;  %v903_v5 = vadd.f32 %v902_v3, %v865_v2  ;;  %v866_v7 = vpop.f32.mrf.mxu1  ;;  %v829_v8 = vadd.f32 %v2087_v30, %v828_v6 }
  0xd9   :  { %v2187_v10 = vadd.f32 %v940_v4, %v903_v5  ;;  %v867_v11 = vadd.f32 %v866_v7, %v829_v8 }
  0xde   :  { %v904_v12 = vpop.f32.mrf.mxu2  ;;  %v831_v15 = vpop.f32.mrf.mxu0 }
  0xdf   :  { %v942_v13 = vpop.f32.mrf.mxu3  ;;  %v905_v14 = vadd.f32 %v904_v12, %v867_v11  ;;  %v869_v16 = vpop.f32.mrf.mxu1  ;;  %v832_v18 = vadd.f32 %v2087_v30, %v831_v15 }
  0xe1   :  { %v2190_v19 = vadd.f32 %v942_v13, %v905_v14  ;;  %v870_v20 = vadd.f32 %v869_v16, %v832_v18 }
  0xe6   :  { %v907_v21 = vpop.f32.mrf.mxu2  ;;  %v833_v24 = vpop.f32.mrf.mxu0 }
  0xe7   :  { %v945_v22 = vpop.f32.mrf.mxu3  ;;  %v908_v23 = vadd.f32 %v907_v21, %v870_v20  ;;  %v871_v25 = vpop.f32.mrf.mxu1  ;;  %v834_v26 = vadd.f32 %v2087_v30, %v833_v24 }
  0xe9   :  { %v2193_v27 = vadd.f32 %v945_v22, %v908_v23  ;;  %v872_v28 = vadd.f32 %v871_v25, %v834_v26 }
  0xee   :  { %v909_v29 = vpop.f32.mrf.mxu2  ;;  %v836_v33 = vpop.f32.mrf.mxu0 }
  0xef   :  { %v947_v31 = vpop.f32.mrf.mxu3  ;;  %v910_v32 = vadd.f32 %v909_v29, %v872_v28  ;;  %v874_v34 = vpop.f32.mrf.mxu1  ;;  %v837_v35 = vadd.f32 %v2087_v30, %v836_v33 }
  0xf1   :  { %v2196_v36 = vadd.f32 %v947_v31, %v910_v32  ;;  %v875_v37 = vadd.f32 %v874_v34, %v837_v35 }
  0xf6   :  { %v912_v39 = vpop.f32.mrf.mxu2  ;;  %v838_v42 = vpop.f32.mrf.mxu0 }
  0xf7   :  { %v950_v40 = vpop.f32.mrf.mxu3  ;;  %v913_v41 = vadd.f32 %v912_v39, %v875_v37  ;;  %v876_v43 = vpop.f32.mrf.mxu1 }
  0xf9   :  { %v2198_v44 = vadd.f32 %v950_v40, %v913_v41 }
  0xfe   :  { %v914_v45 = vpop.f32.mrf.mxu2  ;;  %v963_v47 = vpop.f32.mrf.mxu0 }
  0xff   :  { %v952_v46 = vpop.f32.mrf.mxu3  ;;  %v1001_v49 = vpop.f32.mrf.mxu1  ;;  %v964_v50 = vadd.f32 %v963_v47, %v2115_v53 }
 0x101   :  { %v1002_v55 = vadd.f32 %v1001_v49, %v964_v50 }
 0x106   :  { %v1039_v51 = vpop.f32.mrf.mxu2  ;;  %v965_v54 = vpop.f32.mrf.mxu0 }
 0x107   :  { %v1077_v52 = vpop.f32.mrf.mxu3  ;;  %v1003_v30 = vpop.f32.mrf.mxu1  ;;  %v966_v56 = vadd.f32 %v965_v54, %v2142_v9  ;;  %v1040_v57 = vadd.f32 %v1039_v51, %v1002_v55 }
 0x109   :  { %v1004_v58 = vadd.f32 %v1003_v30, %v966_v56  ;;  %v1078_v61 = vadd.f32 %v1077_v52, %v1040_v57 }
 0x10b   :  { %v1106_v3 = vmax.f32 %v1078_v61, 0.0 }
 0x10e   :  { %v1041_v59 = vpop.f32.mrf.mxu2  ;;  %v968_v63 = vpop.f32.mrf.mxu0 }
 0x10f   :  { %v1079_v60 = vpop.f32.mrf.mxu3  ;;  %v1042_v62 = vadd.f32 %v1041_v59, %v1004_v58  ;;  %v1006_v0 = vpop.f32.mrf.mxu1  ;;  %v969_v53 = vadd.f32 %v968_v63, %v2145_v17 }
 0x111   :  { %v1080_v2 = vadd.f32 %v1079_v60, %v1042_v62  ;;  %v1007_v11 = vadd.f32 %v1006_v0, %v969_v53 }
 0x113   :  { %v1107_v4 = vmax.f32 %v1080_v2, 0.0 }
 0x115   :  { %v1671_v5 = vpack.c.bf16 %v1107_v4, %v1106_v3 }
 0x116   :  { %v1044_v6 = vpop.f32.mrf.mxu2  ;;  %v970_v9 = vpop.f32.mrf.mxu0 }
 0x117   :  { %v1082_v7 = vpop.f32.mrf.mxu3  ;;  %1672 = vst [vmem:[%s2235_s3] sm:$0xff] %v1671_v5   ;;  %v1008_v8 = vpop.f32.mrf.mxu1  ;;  %v971_v12 = vadd.f32 %v970_v9, %v2172_v38  ;;  %v1045_v13 = vadd.f32 %v1044_v6, %v1007_v11 }
 0x119   :  { %v1009_v14 = vadd.f32 %v1008_v8, %v971_v12  ;;  %v1083_v18 = vadd.f32 %v1082_v7, %v1045_v13 }
 0x11b   :  { %v1108_v23 = vmax.f32 %v1083_v18, 0.0 }
 0x11e   :  { %v1046_v15 = vpop.f32.mrf.mxu2  ;;  %v973_v21 = vpop.f32.mrf.mxu0 }
 0x11f   :  { %v1084_v16 = vpop.f32.mrf.mxu3  ;;  %v1047_v20 = vadd.f32 %v1046_v15, %v1009_v14  ;;  %v1011_v22 = vpop.f32.mrf.mxu1  ;;  %v974_v26 = vadd.f32 %v973_v21, %v2181_v48 }
 0x121   :  { %v1085_v17 = vadd.f32 %v1084_v16, %v1047_v20  ;;  %v1012_v32 = vadd.f32 %v1011_v22, %v974_v26 }
 0x123   :  { %v1109_v24 = vmax.f32 %v1085_v17, 0.0 }
 0x125   :  { %v1676_v25 = vpack.c.bf16 %v1109_v24, %v1108_v23 }
 0x126   :  { %v1049_v28 = vpop.f32.mrf.mxu2  ;;  %v975_v38 = vpop.f32.mrf.mxu0 }
 0x127   :  { %v1087_v29 = vpop.f32.mrf.mxu3  ;;  %1693 = vst [vmem:[%s2235_s3 + $0x8] sm:$0xff] %v1676_v25   ;;  %v1013_v31 = vpop.f32.mrf.mxu1  ;;  %v976_v33 = vadd.f32 %v975_v38, %v2184_v1  ;;  %v1050_v34 = vadd.f32 %v1049_v28, %v1012_v32 }
 0x129   :  { %v1014_v35 = vadd.f32 %v1013_v31, %v976_v33  ;;  %v1088_v40 = vadd.f32 %v1087_v29, %v1050_v34 }
 0x12b   :  { %v1110_v45 = vmax.f32 %v1088_v40, 0.0 }
 0x12e   :  { %v1051_v37 = vpop.f32.mrf.mxu2  ;;  %v978_v42 = vpop.f32.mrf.mxu0 }
 0x12f   :  { %v1089_v39 = vpop.f32.mrf.mxu3  ;;  %v1052_v41 = vadd.f32 %v1051_v37, %v1014_v35  ;;  %v1016_v43 = vpop.f32.mrf.mxu1  ;;  %v979_v49 = vadd.f32 %v978_v42, %v2187_v10 }
 0x131   :  { %v1090_v48 = vadd.f32 %v1089_v39, %v1052_v41  ;;  %v1017_v54 = vadd.f32 %v1016_v43, %v979_v49 }
 0x133   :  { %v1111_v46 = vmax.f32 %v1090_v48, 0.0 }
 0x135   :  { %v1681_v47 = vpack.c.bf16 %v1111_v46, %v1110_v45 }
 0x136   :  { %v1054_v50 = vpop.f32.mrf.mxu2  ;;  %v980_v1 = vpop.f32.mrf.mxu0 }
 0x137   :  { %v1092_v51 = vpop.f32.mrf.mxu3  ;;  %1694 = vst [vmem:[%s2235_s3 + $0x10] sm:$0xff] %v1681_v47   ;;  %v1018_v52 = vpop.f32.mrf.mxu1  ;;  %v981_v30 = vadd.f32 %v980_v1, %v2190_v19  ;;  %v1055_v55 = vadd.f32 %v1054_v50, %v1017_v54 }
 0x139   :  { %v1019_v56 = vadd.f32 %v1018_v52, %v981_v30  ;;  %v1093_v59 = vadd.f32 %v1092_v51, %v1055_v55 }
 0x13b   :  { %v1112_v63 = vmax.f32 %v1093_v59, 0.0 }
 0x13e   :  { %v1056_v57 = vpop.f32.mrf.mxu2  ;;  %v983_v61 = vpop.f32.mrf.mxu0 }
 0x13f   :  { %v1094_v58 = vpop.f32.mrf.mxu3  ;;  %v1057_v60 = vadd.f32 %v1056_v57, %v1019_v56  ;;  %v1021_v62 = vpop.f32.mrf.mxu1  ;;  %v984_v3 = vadd.f32 %v983_v61, %v2193_v27 }
 0x141   :  { %v1095_v10 = vadd.f32 %v1094_v58, %v1057_v60  ;;  %v1022_v6 = vadd.f32 %v1021_v62, %v984_v3 }
 0x143   :  { %v1113_v0 = vmax.f32 %v1095_v10, 0.0 }
 0x145   :  { %v1686_v2 = vpack.c.bf16 %v1113_v0, %v1112_v63 }
 0x146   :  { %v1059_v4 = vpop.f32.mrf.mxu2  ;;  %v985_v19 = vpop.f32.mrf.mxu0 }
 0x147   :  { %v1097_v5 = vpop.f32.mrf.mxu3  ;;  %1695 = vst [vmem:[%s2235_s3 + $0x18] sm:$0xff] %v1686_v2   ;;  %v1023_v53 = vpop.f32.mrf.mxu1  ;;  %v986_v7 = vadd.f32 %v985_v19, %v2196_v36  ;;  %v1060_v9 = vadd.f32 %v1059_v4, %v1022_v6 }
 0x149   :  { %v1024_v8 = vadd.f32 %v1023_v53, %v986_v7  ;;  %v1098_v13 = vadd.f32 %v1097_v5, %v1060_v9 }
 0x14b   :  { %v1114_v20 = vmax.f32 %v1098_v13, 0.0 }
 0x14e   :  { %v1061_v11 = vpop.f32.mrf.mxu2  ;;  %v988_v15 = vpop.f32.mrf.mxu0 }
 0x14f   :  { %v1099_v12 = vpop.f32.mrf.mxu3  ;;  %v1062_v14 = vadd.f32 %v1061_v11, %v1024_v8  ;;  %v1026_v16 = vpop.f32.mrf.mxu1  ;;  %v989_v18 = vadd.f32 %v988_v15, %v2198_v44  ;;  %v1141_v44 = vld [vmem:[%s2235_s3 + $0x28] sm:$0x1] }
 0x151   :  { %v1100_v27 = vadd.f32 %v1099_v12, %v1062_v14  ;;  %v1027_v17 = vadd.f32 %v1026_v16, %v989_v18 }
 0x153   :  { %v1115_v21 = vmax.f32 %v1100_v27, 0.0 }
 0x155   :  { %v1691_v22 = vpack.c.bf16 %v1115_v21, %v1114_v20 }
 0x156   :  { %v1064_v23 = vpop.f32.mrf.mxu2  ;;  %v990_v25 = vpop.f32.mrf.mxu0 }
 0x157   :  { %v1102_v24 = vpop.f32.mrf.mxu3  ;;  %1696 = vst [vmem:[%s2235_s3 + $0x20] sm:$0xff] %v1691_v22   ;;  %v1065_v36 = vadd.f32 %v1064_v23, %v1027_v17  ;;  %v1028_v26 = vpop.f32.mrf.mxu1 }
 0x159   :  { %v1103_v28 = vadd.f32 %v1102_v24, %v1065_v36 }
 0x15b   :  { %v1116_v29 = vmax.f32 %v1103_v28, 0.0 }
 0x15d   :  { %v1127_v38 = vpack.c.bf16 %v1116_v29, %v1116_v29 }
 0x15e   :  { %v1066_v31 = vpop.f32.mrf.mxu2 }
 0x15f   :  { %v1104_v32 = vpop.f32.mrf.mxu3  ;;  %v1142_v33 = vsel %vm1140_vm2, %v1127_v38, %v1141_v44 }
 0x160   :  { %1143 = vst [vmem:[%s2235_s3 + $0x28] sm:$0x1] %v1142_v33 }

// kernel: _lambda_.6
= control target key start
LH: loop header
LB: loop body
LE: loop exit
PB: predicated region body
PF: predicated region fallthrough
CT: control target
= control target key end

     0   :  { %vm1071_vm0 = vcmask 1040384   ;;  %vm1072_vm1 = vsmask.f32 256  ;;  %s2061_s1 = inlined_call_operand.vmem [shape: bf16[1152,128], index: 1, kind: input, shape index: {}]   ;;  %s2062_s2 = inlined_call_operand.vmem [shape: f32[1,128], index: 2, kind: input, shape index: {}]   ;;  %s2063_s0 = inlined_call_operand.vmem [shape: bf16[49,1152], index: 0, kind: input, shape index: {}]   ;;  %s2064_s3 = inlined_call_operand.vmem [shape: bf16[49,128], index: 3, kind: output, shape index: {}]  }
   0x1   :  { %v1511_v0 = vld [vmem:[%s2061_s1 + $0x38] sm:$0xff]  ;;  %v1510_v2 = vld [vmem:[%s2061_s1 + $0x30] sm:$0xff]  ;;  %v1509_v6 = vld [vmem:[%s2061_s1 + $0x28] sm:$0xff] }
   0x2   :  { %v1527_v1 = vld [vmem:[%s2061_s1 + $0xb8] sm:$0xff]  ;;  %1593 = vmatpush.bf16.msra.mxu1 %v1511_v0  ;;  %799 = vmatpush.bf16.msra.mxu0 %v1511_v0  ;;  %v1526_v3 = vld [vmem:[%s2061_s1 + $0xb0] sm:$0xff]  ;;  %v1525_v7 = vld [vmem:[%s2061_s1 + $0xa8] sm:$0xff] }
   0x3   :  { %855 = vmatpush.bf16.msra.mxu2 %v1527_v1  ;;  %v1535_v4 = vld [vmem:[%s2061_s1 + $0xf8] sm:$0xff]  ;;  %v1534_v5 = vld [vmem:[%s2061_s1 + $0xf0] sm:$0xff]  ;;  %v1533_v8 = vld [vmem:[%s2061_s1 + $0xe8] sm:$0xff] }
   0x4   :  { %883 = vmatpush.bf16.msra.mxu3 %v1535_v4  ;;  %v1508_v9 = vld [vmem:[%s2061_s1 + $0x20] sm:$0xff]  ;;  %v1507_v12 = vld [vmem:[%s2061_s1 + $0x18] sm:$0xff]  ;;  %v1506_v15 = vld [vmem:[%s2061_s1 + $0x10] sm:$0xff] }
   0x5   :  { %v1524_v10 = vld [vmem:[%s2061_s1 + $0xa0] sm:$0xff]  ;;  %v1523_v13 = vld [vmem:[%s2061_s1 + $0x98] sm:$0xff]  ;;  %v1522_v16 = vld [vmem:[%s2061_s1 + $0x90] sm:$0xff] }
   0x6   :  { %1594 = vmatpush.bf16.msra.mxu1 %v1510_v2  ;;  %800 = vmatpush.bf16.msra.mxu0 %v1510_v2  ;;  %v1532_v11 = vld [vmem:[%s2061_s1 + $0xe0] sm:$0xff]  ;;  %v1531_v14 = vld [vmem:[%s2061_s1 + $0xd8] sm:$0xff]  ;;  %v1530_v17 = vld [vmem:[%s2061_s1 + $0xd0] sm:$0xff] }
   0x7   :  { %856 = vmatpush.bf16.msra.mxu2 %v1526_v3  ;;  %v1505_v18 = vld [vmem:[%s2061_s1 + $0x8] sm:$0xff]  ;;  %v1504_v20 = vld [vmem:[%s2061_s1] sm:$0xff]  ;;  %v1155_v21 = vld [vmem:[%s2063_s0 + $0x90] sm:$0xf] }
   0x8   :  { %884 = vmatpush.bf16.msra.mxu3 %v1534_v5  ;;  %v1521_v19 = vld [vmem:[%s2061_s1 + $0x88] sm:$0xff]  ;;  %v1499_v22 = vld [vmem:[%s2063_s0 + $0xb0] sm:$0xf0]  ;;  %v1519_v24 = vld [vmem:[%s2061_s1 + $0x78] sm:$0xff] }
   0x9   :  { %v1529_v23 = vld [vmem:[%s2061_s1 + $0xc8] sm:$0xff]  ;;  %v1083_v25 = vld [vmem:[%s2063_s0] sm:$0xf]  ;;  %v1481_v26 = vld [vmem:[%s2063_s0 + $0x20] sm:$0xf0]  ;;  %v1156_v32 = vor.u32 %v1499_v22, %v1155_v21 }
   0xa   :  { %1595 = vmatpush.bf16.msra.mxu1 %v1509_v6  ;;  %801 = vmatpush.bf16.msra.mxu0 %v1509_v6  ;;  %v1520_v27 = vld [vmem:[%s2061_s1 + $0x80] sm:$0xff]  ;;  %v1091_v28 = vld [vmem:[%s2063_s0 + $0x8] sm:$0xf]  ;;  %v1482_v29 = vld [vmem:[%s2063_s0 + $0x28] sm:$0xf0]  ;;  %v1084_v33 = vor.u32 %v1481_v26, %v1083_v25 }
   0xb   :  { %857 = vmatpush.bf16.msra.mxu2 %v1525_v7  ;;  %v1543_v30 = vld [vmem:[%s2061_s1 + $0x138] sm:$0xff]  ;;  %v1092_v34 = vor.u32 %v1482_v29, %v1091_v28  ;;  %v1528_v35 = vld [vmem:[%s2061_s1 + $0xc0] sm:$0xff]  ;;  %v1478_v36 = vld [vmem:[%s2063_s0 + $0xc] sm:$0xf] }
   0xc   :  { %885 = vmatpush.bf16.msra.mxu3 %v1533_v8  ;;  %v1559_v31 = vld [vmem:[%s2061_s1 + $0x1b8] sm:$0xff]  ;;  %v1093_v37 = vld [vmem:[%s2063_s0 + $0x2c] sm:$0xf0]  ;;  %v1517_v43 = vld [vmem:[%s2061_s1 + $0x68] sm:$0xff] }
   0xd   :  { %v1518_v38 = vld [vmem:[%s2061_s1 + $0x70] sm:$0xff]  ;;  %v1567_v39 = vld [vmem:[%s2061_s1 + $0x1f8] sm:$0xff]  ;;  %v1096_v42 = vor.u32 %v1478_v36, %v1093_v37  ;;  %v1541_v45 = vld [vmem:[%s2061_s1 + $0x128] sm:$0xff] }
   0xe   :  { %1596 = vmatpush.bf16.msra.mxu1 %v1508_v9  ;;  %802 = vmatpush.bf16.msra.mxu0 %v1508_v9  ;;  %v1542_v40 = vld [vmem:[%s2061_s1 + $0x130] sm:$0xff]  ;;  %v1557_v46 = vld [vmem:[%s2061_s1 + $0x1a8] sm:$0xff]  ;;  %v1762_v47 = vld [vmem:[%s2063_s0 + $0xd8] sm:$0x11] }
   0xf   :  { %858 = vmatpush.bf16.msra.mxu2 %v1524_v10  ;;  %v1558_v41 = vld [vmem:[%s2061_s1 + $0x1b0] sm:$0xff]  ;;  %v1516_v48 = vld [vmem:[%s2061_s1 + $0x60] sm:$0xff]  ;;  %v1565_v49 = vld [vmem:[%s2061_s1 + $0x1e8] sm:$0xff]  ;;  %v286_v52 = vunpack.c.l.b16 %v1762_v47 }
  0x10   :  { %886 = vmatpush.bf16.msra.mxu3 %v1532_v11  ;;  %v1566_v44 = vld [vmem:[%s2061_s1 + $0x1f0] sm:$0xff]  ;;  %v1540_v50 = vld [vmem:[%s2061_s1 + $0x120] sm:$0xff]  ;;  %v1119_v53 = vld [vmem:[%s2063_s0 + $0x48] sm:$0xf] }
  0x11   :  { %v1556_v51 = vld [vmem:[%s2061_s1 + $0x1a0] sm:$0xff]  ;;  %v1490_v54 = vld [vmem:[%s2063_s0 + $0x68] sm:$0xf0]  ;;  %v1515_v55 = vld [vmem:[%s2061_s1 + $0x58] sm:$0xff]  ;;  %v322_v59 = vpack.c.b16 %v286_v52, %v286_v52 }
  0x12   :  { %1597 = vmatpush.bf16.msra.mxu1 %v1507_v12  ;;  %803 = vmatpush.bf16.msra.mxu0 %v1507_v12  ;;  %v1127_v56 = vld [vmem:[%s2063_s0 + $0x50] sm:$0xf]  ;;  %v1491_v57 = vld [vmem:[%s2063_s0 + $0x70] sm:$0xf0]  ;;  %v1539_v58 = vld [vmem:[%s2061_s1 + $0x118] sm:$0xff]  ;;  %v1120_v60 = vor.u32 %v1490_v54, %v1119_v53 }
  0x13   :  { %859 = vmatpush.bf16.msra.mxu2 %v1523_v13  ;;  %v1128_v61 = vor.u32 %v1491_v57, %v1127_v56  ;;  %v1487_v62 = vld [vmem:[%s2063_s0 + $0x54] sm:$0xf]  ;;  %v1129_v63 = vld [vmem:[%s2063_s0 + $0x74] sm:$0xf0]  ;;  %v1513_v4 = vld [vmem:[%s2061_s1 + $0x48] sm:$0xff] }
  0x14   :  { %887 = vmatpush.bf16.msra.mxu3 %v1531_v14  ;;  %v1514_v0 = vld [vmem:[%s2061_s1 + $0x50] sm:$0xff]  ;;  %v1132_v2 = vor.u32 %v1487_v62, %v1129_v63  ;;  %v1555_v3 = vld [vmem:[%s2061_s1 + $0x198] sm:$0xff]  ;;  %v1564_v5 = vld [vmem:[%s2061_s1 + $0x1e0] sm:$0xff] }
  0x15   :  { %v1538_v1 = vld [vmem:[%s2061_s1 + $0x110] sm:$0xff]  ;;  %v1537_v6 = vld [vmem:[%s2061_s1 + $0x108] sm:$0xff]  ;;  %v1563_v8 = vld [vmem:[%s2061_s1 + $0x1d8] sm:$0xff] }
  0x16   :  { %1598 = vmatpush.bf16.msra.mxu1 %v1506_v15  ;;  %804 = vmatpush.bf16.msra.mxu0 %v1506_v15  ;;  %v1554_v7 = vld [vmem:[%s2061_s1 + $0x190] sm:$0xff]  ;;  %v1512_v9 = vld [vmem:[%s2061_s1 + $0x40] sm:$0xff]  ;;  %v1551_v10 = vld [vmem:[%s2061_s1 + $0x178] sm:$0xff] }
  0x17   :  { %860 = vmatpush.bf16.msra.mxu2 %v1522_v16  ;;  %v1536_v11 = vld [vmem:[%s2061_s1 + $0x100] sm:$0xff]  ;;  %v1575_v13 = vld [vmem:[%s2061_s1 + $0x238] sm:$0xff]  ;;  %v1085_v14 = vld [vmem:[%s2063_s0 + $0x24] sm:$0xf0] }
  0x18   :  { %888 = vmatpush.bf16.msra.mxu3 %v1530_v17  ;;  %v1477_v12 = vld [vmem:[%s2063_s0 + $0x4] sm:$0xf]  ;;  %v1099_v15 = vld [vmem:[%s2063_s0 + $0x10] sm:$0xf]  ;;  %v1483_v16 = vld [vmem:[%s2063_s0 + $0x30] sm:$0xf0] }
  0x19   :  { %v1163_v17 = vld [vmem:[%s2063_s0 + $0x98] sm:$0xf]  ;;  %v1100_v21 = vor.u32 %v1483_v16, %v1099_v15  ;;  %v1574_v25 = vld [vmem:[%s2061_s1 + $0x230] sm:$0xff]  ;;  %v1549_v26 = vld [vmem:[%s2061_s1 + $0x168] sm:$0xff] }
  0x1a   :  { %1599 = vmatpush.bf16.msra.mxu1 %v1505_v18  ;;  %805 = vmatpush.bf16.msra.mxu0 %v1505_v18  ;;  %v1500_v18 = vld [vmem:[%s2063_s0 + $0xb8] sm:$0xf0]  ;;  %v1573_v29 = vld [vmem:[%s2061_s1 + $0x228] sm:$0xff]  ;;  %v1570_v52 = vld [vmem:[%s2061_s1 + $0x210] sm:$0xff] }
  0x1b   :  { %861 = vmatpush.bf16.msra.mxu2 %v1521_v19  ;;  %v1550_v19 = vld [vmem:[%s2061_s1 + $0x170] sm:$0xff]  ;;  %v1164_v22 = vor.u32 %v1500_v18, %v1163_v17  ;;  %v1547_v36 = vld [vmem:[%s2061_s1 + $0x158] sm:$0xff]  ;;  %v1486_v37 = vld [vmem:[%s2063_s0 + $0x4c] sm:$0xf] }
  0x1c   :  { %889 = vmatpush.bf16.msra.mxu3 %v1529_v23  ;;  %v1496_v23 = vld [vmem:[%s2063_s0 + $0x9c] sm:$0xf]  ;;  %v1544_v53 = vld [vmem:[%s2061_s1 + $0x140] sm:$0xff]  ;;  %v1569_v54 = vld [vmem:[%s2061_s1 + $0x208] sm:$0xff] }
  0x1d   :  { %v1157_v56 = vld [vmem:[%s2063_s0 + $0xb4] sm:$0xf0]  ;;  %v1171_v57 = vld [vmem:[%s2063_s0 + $0xa0] sm:$0xf]  ;;  %v1485_v17 = vld [vmem:[%s2063_s0 + $0x40] sm:$0xf0] }
  0x1e   :  { %1600 = vmatpush.bf16.msra.mxu1 %v1504_v20  ;;  %806 = vmatpush.bf16.msra.mxu0 %v1504_v20  ;;  %v1088_v20 = vor.u32 %v1477_v12, %v1085_v14  ;;  %v1489_v12 = vld [vmem:[%s2063_s0 + $0x64] sm:$0xf]  ;;  %v1479_v14 = vld [vmem:[%s2063_s0 + $0x14] sm:$0xf]  ;;  %v1101_v15 = vld [vmem:[%s2063_s0 + $0x34] sm:$0xf0] }
  0x1f   :  { %862 = vmatpush.bf16.msra.mxu2 %v1520_v27  ;;  %v1553_v27 = vld [vmem:[%s2061_s1 + $0x188] sm:$0xff]  ;;  %v1115_v16 = vld [vmem:[%s2063_s0 + $0x20] sm:$0xf]  ;;  %vm1073_vm2 = vmand %vm1071_vm0, %vm1072_vm1 }
  0x20   :  { %890 = vmatpush.bf16.msra.mxu3 %v1528_v35  ;;  %v45_v35 = vld [vmem:[%s2063_s0 + $0xe0] sm:$0x11]  ;;  %v1179_v18 = vld [vmem:[%s2063_s0 + $0xa8] sm:$0xf] }
  0x21   :  { %817 = vmatmul.bf16.vlgmr.msra.gmra.mxu1 %v1156_v32  ;;  %807 = vmatmul.bf16.vlgmr.msra.gmra.mxu0 %v1084_v33  ;;  %v1548_v32 = vld [vmem:[%s2061_s1 + $0x160] sm:$0xff]  ;;  %v1561_v33 = vld [vmem:[%s2061_s1 + $0x1c8] sm:$0xff] }
  0x22   :  { %827 = vmatpush.bf16.msrb.mxu1 %v1519_v24  ;;  %911 = vmatpush.bf16.msrb.mxu0 %v1543_v30  ;;  %v1165_v24 = vld [vmem:[%s2063_s0 + $0xbc] sm:$0xf0]  ;;  %v1562_v30 = vld [vmem:[%s2061_s1 + $0x1d0] sm:$0xff] }
  0x23   :  { %967 = vmatpush.bf16.msrb.mxu2 %v1559_v31  ;;  %891 = vmatmul.bf16.vlgmr.msra.gmra.mxu3 %v1096_v42  ;;  %v1168_v28 = vor.u32 %v1496_v23, %v1165_v24  ;;  %v1552_v31 = vld [vmem:[%s2061_s1 + $0x180] sm:$0xff]  ;;  %v1571_v42 = vld [vmem:[%s2061_s1 + $0x218] sm:$0xff]  ;;  %v1498_v23 = vld [vmem:[%s2063_s0 + $0xac] sm:$0xf] }
  0x24   :  { %863 = vmatmul.bf16.vlgmr.msra.gmra.mxu2 %v1092_v34  ;;  %995 = vmatpush.bf16.msrb.mxu3 %v1567_v39  ;;  %v1572_v34 = vld [vmem:[%s2061_s1 + $0x220] sm:$0xff]  ;;  %v1135_v39 = vld [vmem:[%s2063_s0 + $0x58] sm:$0xf]  ;;  %v1181_v24 = vld [vmem:[%s2063_s0 + $0xcc] sm:$0xf0] }
  0x26   :  { %828 = vmatpush.bf16.msrb.mxu1 %v1518_v38  ;;  %912 = vmatpush.bf16.msrb.mxu0 %v1542_v40  ;;  %v1121_v38 = vld [vmem:[%s2063_s0 + $0x6c] sm:$0xf0]  ;;  %v1492_v40 = vld [vmem:[%s2063_s0 + $0x78] sm:$0xf0] }
  0x27   :  { %968 = vmatpush.bf16.msrb.mxu2 %v1558_v41  ;;  %v288_v41 = vunpack.c.l.b16 %v45_v35 }
  0x28   :  { %996 = vmatpush.bf16.msrb.mxu3 %v1566_v44  ;;  %v1124_v44 = vor.u32 %v1486_v37, %v1121_v38  ;;  %v48_v37 = vld [vmem:[%s2063_s0 + $0xf8] sm:$0x1]  ;;  %v1497_v38 = vld [vmem:[%s2063_s0 + $0xa4] sm:$0xf] }
  0x2a   :  { %829 = vmatpush.bf16.msrb.mxu1 %v1517_v43  ;;  %913 = vmatpush.bf16.msrb.mxu0 %v1541_v45  ;;  %v1546_v43 = vld [vmem:[%s2061_s1 + $0x150] sm:$0xff]  ;;  %v1136_v45 = vor.u32 %v1492_v40, %v1135_v39  ;;  %v1173_v39 = vld [vmem:[%s2063_s0 + $0xc4] sm:$0xf0] }
  0x2b   :  { %969 = vmatpush.bf16.msrb.mxu2 %v1557_v46  ;;  %v289_v46 = vunpack.c.h.b16 %v45_v35  ;;  %v1187_v40 = vld [vmem:[%s2063_s0 + $0xb0] sm:$0xf] }
  0x2c   :  { %997 = vmatpush.bf16.msrb.mxu3 %v1565_v49 }
  0x2d   :  { %v325_v49 = vpack.c.b16 %v289_v46, %v289_v46 }
  0x2e   :  { %830 = vmatpush.bf16.msrb.mxu1 %v1516_v48  ;;  %914 = vmatpush.bf16.msrb.mxu0 %v1540_v50  ;;  %v324_v48 = vpack.c.b16 %v288_v41, %v288_v41  ;;  %v1545_v50 = vld [vmem:[%s2061_s1 + $0x148] sm:$0xff]  ;;  %v1503_v41 = vld [vmem:[%s2063_s0 + $0xd0] sm:$0xf0] }
  0x2f   :  { %970 = vmatpush.bf16.msrb.mxu2 %v1556_v51  ;;  %v1560_v51 = vld [vmem:[%s2061_s1 + $0x1c0] sm:$0xff] }
  0x30   :  { %998 = vmatpush.bf16.msrb.mxu3 %v1564_v5  ;;  %v287_v5 = vunpack.c.h.b16 %v1762_v47  ;;  %v1145_v47 = vld [vmem:[%s2063_s0 + $0x84] sm:$0xf0] }
  0x31   :  { %822 = vmatmul.bf16.gmra.mxu1 %v322_v59  ;;  %812 = vmatmul.bf16.gmra.mxu0 %v1120_v60  ;;  %v1107_v59 = vld [vmem:[%s2063_s0 + $0x18] sm:$0xf]  ;;  %v1484_v60 = vld [vmem:[%s2063_s0 + $0x38] sm:$0xf0] }
  0x32   :  { %831 = vmatpush.bf16.msrb.mxu1 %v1515_v55  ;;  %915 = vmatpush.bf16.msrb.mxu0 %v1539_v58  ;;  %v1495_v55 = vld [vmem:[%s2063_s0 + $0x94] sm:$0xf]  ;;  %v1501_v58 = vld [vmem:[%s2063_s0 + $0xc0] sm:$0xf0]  ;;  %v1108_v63 = vor.u32 %v1484_v60, %v1107_v59 }
  0x33   :  { %971 = vmatpush.bf16.msrb.mxu2 %v1555_v3  ;;  %896 = vmatmul.bf16.gmra.mxu3 %v1132_v2  ;;  %v1172_v62 = vor.u32 %v1501_v58, %v1171_v57  ;;  %v1568_v3 = vld [vmem:[%s2061_s1 + $0x200] sm:$0xff] }
  0x34   :  { %868 = vmatmul.bf16.gmra.mxu2 %v1128_v61  ;;  %999 = vmatpush.bf16.msrb.mxu3 %v1563_v8  ;;  %v1160_v61 = vor.u32 %v1495_v55, %v1157_v56  ;;  %v1493_v8 = vld [vmem:[%s2063_s0 + $0x80] sm:$0xf0] }
  0x36   :  { %832 = vmatpush.bf16.msrb.mxu1 %v1514_v0  ;;  %916 = vmatpush.bf16.msrb.mxu0 %v1538_v1  ;;  %v1480_v0 = vld [vmem:[%s2063_s0 + $0x1c] sm:$0xf]  ;;  %v1109_v1 = vld [vmem:[%s2063_s0 + $0x3c] sm:$0xf0] }
  0x37   :  { %972 = vmatpush.bf16.msrb.mxu2 %v1554_v7  ;;  %v1112_v2 = vor.u32 %v1480_v0, %v1109_v1  ;;  %v1143_v7 = vld [vmem:[%s2063_s0 + $0x60] sm:$0xf] }
  0x38   :  { %1000 = vmatpush.bf16.msrb.mxu3 %v1562_v30  ;;  %v1494_v30 = vld [vmem:[%s2063_s0 + $0x88] sm:$0xf0] }
  0x3a   :  { %833 = vmatpush.bf16.msrb.mxu1 %v1513_v4  ;;  %917 = vmatpush.bf16.msrb.mxu0 %v1537_v6  ;;  %v1960_v4 = vld [vmem:[%s2063_s0 + $0xe8] sm:$0x11] }
  0x3b   :  { %973 = vmatpush.bf16.msrb.mxu2 %v1553_v27  ;;  %v290_v6 = vunpack.c.l.b16 %v1960_v4  ;;  %v1488_v27 = vld [vmem:[%s2063_s0 + $0x5c] sm:$0xf] }
  0x3c   :  { %1001 = vmatpush.bf16.msrb.mxu3 %v1561_v33 }
  0x3e   :  { %834 = vmatpush.bf16.msrb.mxu1 %v1512_v9  ;;  %918 = vmatpush.bf16.msrb.mxu0 %v1536_v11  ;;  %v323_v9 = vpack.c.b16 %v287_v5, %v287_v5  ;;  %v1144_v11 = vor.u32 %v1493_v8, %v1143_v7 }
  0x3f   :  { %974 = vmatpush.bf16.msrb.mxu2 %v1552_v31 }
  0x40   :  { %1002 = vmatpush.bf16.msrb.mxu3 %v1560_v51 }
  0x41   :  { %835 = vmatmul.bf16.vlgmr.msrb.gmra.mxu1 %v1088_v20  ;;  %919 = vmatmul.bf16.vlgmr.msrb.gmra.mxu0 %v1100_v21  ;;  %v1104_v20 = vor.u32 %v1479_v14, %v1101_v15  ;;  %v1116_v21 = vor.u32 %v1485_v17, %v1115_v16 }
  0x42   :  { %939 = vmatpush.bf16.msra.mxu1 %v1551_v10  ;;  %1023 = vmatpush.bf16.msra.mxu0 %v1575_v13  ;;  %v326_v10 = vpack.c.b16 %v290_v6, %v290_v6 }
  0x43   :  { %901 = vmatmul.bf16.gmra.mxu3 %v1168_v28  ;;  %1601 = vmatpush.bf16.msra.mxu2 %v1575_v13  ;;  %v1148_v13 = vor.u32 %v1489_v12, %v1145_v47  ;;  %v1137_v28 = vld [vmem:[%s2063_s0 + $0x7c] sm:$0xf0] }
  0x44   :  { %873 = vmatmul.bf16.gmra.mxu2 %v1164_v22 }
  0x46   :  { %940 = vmatpush.bf16.msra.mxu1 %v1550_v19  ;;  %1024 = vmatpush.bf16.msra.mxu0 %v1574_v25  ;;  %v1502_v19 = vld [vmem:[%s2063_s0 + $0xc8] sm:$0xf0] }
  0x47   :  { %1602 = vmatpush.bf16.msra.mxu2 %v1574_v25  ;;  %v1180_v22 = vor.u32 %v1502_v19, %v1179_v18  ;;  %v1184_v25 = vor.u32 %v1498_v23, %v1181_v24 }
  0x4a   :  { %941 = vmatpush.bf16.msra.mxu1 %v1549_v26  ;;  %1025 = vmatpush.bf16.msra.mxu0 %v1573_v29  ;;  %v47_v26 = vld [vmem:[%s2063_s0 + $0xf0] sm:$0x11] }
  0x4b   :  { %1603 = vmatpush.bf16.msra.mxu2 %v1573_v29  ;;  %v1151_v29 = vld [vmem:[%s2063_s0 + $0x68] sm:$0xf]  ;;  %v292_v31 = vunpack.c.l.b16 %v47_v26 }
  0x4c   :  { %v1152_v33 = vor.u32 %v1494_v30, %v1151_v29 }
  0x4d   :  { %v328_v35 = vpack.c.b16 %v292_v31, %v292_v31 }
  0x4e   :  { %942 = vmatpush.bf16.msra.mxu1 %v1548_v32  ;;  %1026 = vmatpush.bf16.msra.mxu0 %v1572_v34  ;;  %v1140_v32 = vor.u32 %v1488_v27, %v1137_v28 }
  0x4f   :  { %1604 = vmatpush.bf16.msra.mxu2 %v1572_v34  ;;  %v293_v34 = vunpack.c.h.b16 %v47_v26 }
  0x51   :  { %840 = vmatmul.bf16.gmra.mxu1 %v1124_v44  ;;  %924 = vmatmul.bf16.gmra.mxu0 %v1136_v45  ;;  %v1188_v44 = vor.u32 %v1503_v41, %v1187_v40 }
  0x52   :  { %943 = vmatpush.bf16.msra.mxu1 %v1547_v36  ;;  %1027 = vmatpush.bf16.msra.mxu0 %v1571_v42  ;;  %v329_v36 = vpack.c.b16 %v293_v34, %v293_v34 }
  0x53   :  { %906 = vmatmul.bf16.gmra.mxu3 %v325_v49  ;;  %1605 = vmatpush.bf16.msra.mxu2 %v1571_v42  ;;  %v294_v42 = vunpack.c.l.b16 %v48_v37 }
  0x54   :  { %878 = vmatmul.bf16.gmra.mxu2 %v324_v48 }
  0x55   :  { %v330_v48 = vpack.c.b16 %v294_v42, %v294_v42 }
  0x56   :  { %944 = vmatpush.bf16.msra.mxu1 %v1546_v43  ;;  %1028 = vmatpush.bf16.msra.mxu0 %v1570_v52  ;;  %v1176_v43 = vor.u32 %v1497_v38, %v1173_v39 }
  0x57   :  { %1606 = vmatpush.bf16.msra.mxu2 %v1570_v52 }
  0x5a   :  { %945 = vmatpush.bf16.msra.mxu1 %v1545_v50  ;;  %1029 = vmatpush.bf16.msra.mxu0 %v1569_v54 }
  0x5b   :  { %1607 = vmatpush.bf16.msra.mxu2 %v1569_v54 }
  0x5e   :  { %946 = vmatpush.bf16.msra.mxu1 %v1544_v53  ;;  %1030 = vmatpush.bf16.msra.mxu0 %v1568_v3  ;;  %v291_v53 = vunpack.c.h.b16 %v1960_v4 }
  0x5f   :  { %1608 = vmatpush.bf16.msra.mxu2 %v1568_v3 }
  0x60   :  { %v327_v54 = vpack.c.b16 %v291_v53, %v291_v53 }
  0x61   :  { %845 = vmatmul.bf16.gmra.mxu1 %v1160_v61  ;;  %929 = vmatmul.bf16.gmra.mxu0 %v1172_v62 }
  0x63   :  { %1003 = vmatmul.bf16.vlgmr.msrb.gmra.mxu3 %v1112_v2 }
  0x64   :  { %975 = vmatmul.bf16.vlgmr.msrb.gmra.mxu2 %v1108_v63  ;;  %v1609_v63 = vld [vmem:[%s2062_s2] ss:$0 sm:$0xff] }
  0x71   :  { %850 = vmatmul.bf16.gmra.mxu1 %v323_v9  ;;  %934 = vmatmul.bf16.gmra.mxu0 %v326_v10 }
  0x73   :  { %1008 = vmatmul.bf16.gmra.mxu3 %v1148_v13 }
  0x74   :  { %980 = vmatmul.bf16.gmra.mxu2 %v1144_v11 }
  0x81   :  { %947 = vmatmul.bf16.vlgmr.msra.gmra.mxu1 %v1104_v20  ;;  %1031 = vmatmul.bf16.vlgmr.msra.gmra.mxu0 %v1116_v21 }
  0x83   :  { %1013 = vmatmul.bf16.gmra.mxu3 %v1184_v25 }
  0x84   :  { %985 = vmatmul.bf16.gmra.mxu2 %v1180_v22 }
  0x91   :  { %952 = vmatmul.bf16.gmra.mxu1 %v1140_v32  ;;  %1036 = vmatmul.bf16.gmra.mxu0 %v1152_v33 }
  0x93   :  { %1018 = vmatmul.bf16.gmra.mxu3 %v329_v36 }
  0x94   :  { %990 = vmatmul.bf16.gmra.mxu2 %v328_v35 }
  0x9e   :  { %v818_v45 = vpop.f32.mrf.mxu1  ;;  %v808_v46 = vpop.f32.mrf.mxu0 }
  0x9f   :  { %v809_v0 = vadd.f32 %v1609_v63, %v808_v46  ;;  %v819_v33 = vadd.f32 %v1609_v63, %v818_v45 }
  0xa1   :  { %957 = vmatmul.bf16.gmra.mxu1 %v1176_v43  ;;  %1041 = vmatmul.bf16.gmra.mxu0 %v1188_v44 }
  0xa4   :  { %1046 = vmatmul.bf16.vlgmr.msra.gmra.mxu2 %v330_v48 }
  0xa6   :  { %v820_v50 = vpop.f32.mrf.mxu1  ;;  %v810_v51 = vpop.f32.mrf.mxu0 }
  0xa7   :  { %v864_v49 = vpop.f32.mrf.mxu2  ;;  %v892_v52 = vpop.f32.mrf.mxu3  ;;  %v811_v8 = vadd.f32 %v1609_v63, %v810_v51  ;;  %v821_v41 = vadd.f32 %v1609_v63, %v820_v50 }
  0xae   :  { %v823_v56 = vpop.f32.mrf.mxu1  ;;  %v813_v57 = vpop.f32.mrf.mxu0 }
  0xaf   :  { %v866_v55 = vpop.f32.mrf.mxu2  ;;  %v894_v58 = vpop.f32.mrf.mxu3  ;;  %v814_v16 = vadd.f32 %v1609_v63, %v813_v57  ;;  %v824_v53 = vadd.f32 %v1609_v63, %v823_v56 }
  0xb1   :  { %962 = vmatmul.bf16.gmra.mxu1 %v327_v54 }
  0xb6   :  { %v825_v60 = vpop.f32.mrf.mxu1  ;;  %v815_v61 = vpop.f32.mrf.mxu0 }
  0xb7   :  { %v869_v59 = vpop.f32.mrf.mxu2  ;;  %v897_v62 = vpop.f32.mrf.mxu3  ;;  %v816_v24 = vadd.f32 %v1609_v63, %v815_v61 }
  0xbe   :  { %v836_v2 = vpop.f32.mrf.mxu1  ;;  %v920_v3 = vpop.f32.mrf.mxu0 }
  0xbf   :  { %v871_v1 = vpop.f32.mrf.mxu2  ;;  %v837_v5 = vadd.f32 %v836_v2, %v809_v0  ;;  %v899_v4 = vpop.f32.mrf.mxu3 }
  0xc1   :  { %v865_v6 = vadd.f32 %v864_v49, %v837_v5 }
  0xc3   :  { %v893_v7 = vadd.f32 %v892_v52, %v865_v6 }
  0xc5   :  { %v921_v9 = vadd.f32 %v920_v3, %v893_v7 }
  0xc6   :  { %v838_v11 = vpop.f32.mrf.mxu1  ;;  %v922_v12 = vpop.f32.mrf.mxu0 }
  0xc7   :  { %v874_v10 = vpop.f32.mrf.mxu2  ;;  %v839_v47 = vadd.f32 %v838_v11, %v811_v8  ;;  %v902_v13 = vpop.f32.mrf.mxu3 }
  0xc9   :  { %v867_v14 = vadd.f32 %v866_v55, %v839_v47 }
  0xcb   :  { %v895_v15 = vadd.f32 %v894_v58, %v867_v14 }
  0xcd   :  { %v923_v56 = vadd.f32 %v922_v12, %v895_v15 }
  0xce   :  { %v841_v18 = vpop.f32.mrf.mxu1  ;;  %v925_v19 = vpop.f32.mrf.mxu0 }
  0xcf   :  { %v876_v17 = vpop.f32.mrf.mxu2  ;;  %v842_v20 = vadd.f32 %v841_v18, %v814_v16  ;;  %v904_v21 = vpop.f32.mrf.mxu3 }
  0xd1   :  { %v870_v22 = vadd.f32 %v869_v59, %v842_v20 }
  0xd3   :  { %v898_v23 = vadd.f32 %v897_v62, %v870_v22 }
  0xd5   :  { %v926_v25 = vadd.f32 %v925_v19, %v898_v23 }
  0xd6   :  { %v843_v27 = vpop.f32.mrf.mxu1  ;;  %v927_v28 = vpop.f32.mrf.mxu0 }
  0xd7   :  { %v879_v26 = vpop.f32.mrf.mxu2  ;;  %v844_v29 = vadd.f32 %v843_v27, %v816_v24  ;;  %v907_v30 = vpop.f32.mrf.mxu3 }
  0xd9   :  { %v872_v31 = vadd.f32 %v871_v1, %v844_v29 }
  0xdb   :  { %v900_v32 = vadd.f32 %v899_v4, %v872_v31 }
  0xdd   :  { %v928_v15 = vadd.f32 %v927_v28, %v900_v32 }
  0xde   :  { %v846_v35 = vpop.f32.mrf.mxu1  ;;  %v930_v36 = vpop.f32.mrf.mxu0 }
  0xdf   :  { %v881_v34 = vpop.f32.mrf.mxu2  ;;  %v847_v37 = vadd.f32 %v846_v35, %v819_v33  ;;  %v909_v38 = vpop.f32.mrf.mxu3 }
  0xe1   :  { %v875_v39 = vadd.f32 %v874_v10, %v847_v37 }
  0xe3   :  { %v903_v40 = vadd.f32 %v902_v13, %v875_v39 }
  0xe5   :  { %v2034_v42 = vadd.f32 %v930_v36, %v903_v40 }
  0xe6   :  { %v848_v44 = vpop.f32.mrf.mxu1  ;;  %v2036_v46 = vpop.f32.mrf.mxu0 }
  0xe7   :  { %v976_v43 = vpop.f32.mrf.mxu2  ;;  %v849_v48 = vadd.f32 %v848_v44, %v821_v41  ;;  %v1004_v49 = vpop.f32.mrf.mxu3 }
  0xe9   :  { %v877_v51 = vadd.f32 %v876_v17, %v849_v48 }
  0xeb   :  { %v905_v52 = vadd.f32 %v904_v21, %v877_v51 }
  0xed   :  { %v933_v32 = vadd.f32 %v2036_v46, %v905_v52 }
  0xee   :  { %v851_v54 = vpop.f32.mrf.mxu1  ;;  %v2038_v55 = vpop.f32.mrf.mxu0 }
  0xef   :  { %v978_v45 = vpop.f32.mrf.mxu2  ;;  %v852_v57 = vadd.f32 %v851_v54, %v824_v53  ;;  %v1006_v58 = vpop.f32.mrf.mxu3 }
  0xf1   :  { %v880_v59 = vadd.f32 %v879_v26, %v852_v57 }
  0xf3   :  { %v2040_v60 = vadd.f32 %v907_v30, %v880_v59 }
  0xf6   :  { %v853_v61 = vpop.f32.mrf.mxu1  ;;  %v937_v62 = vpop.f32.mrf.mxu0 }
  0xf7   :  { %v981_v50 = vpop.f32.mrf.mxu2  ;;  %v1009_v0 = vpop.f32.mrf.mxu3 }
  0xfe   :  { %v948_v2 = vpop.f32.mrf.mxu1  ;;  %v1032_v3 = vpop.f32.mrf.mxu0 }
  0xff   :  { %v983_v1 = vpop.f32.mrf.mxu2  ;;  %v949_v5 = vadd.f32 %v948_v2, %v921_v9  ;;  %v1011_v4 = vpop.f32.mrf.mxu3 }
 0x101   :  { %v977_v6 = vadd.f32 %v976_v43, %v949_v5 }
 0x103   :  { %v1005_v10 = vadd.f32 %v1004_v49, %v977_v6 }
 0x105   :  { %v1033_v14 = vadd.f32 %v1032_v3, %v1005_v10 }
 0x106   :  { %v950_v7 = vpop.f32.mrf.mxu1  ;;  %v1034_v8 = vpop.f32.mrf.mxu0 }
 0x107   :  { %v986_v63 = vpop.f32.mrf.mxu2  ;;  %v951_v11 = vadd.f32 %v950_v7, %v923_v56  ;;  %v1014_v47 = vpop.f32.mrf.mxu3  ;;  %v1051_v21 = vmax.f32 %v1033_v14, 0.0 }
 0x109   :  { %v979_v13 = vadd.f32 %v978_v45, %v951_v11 }
 0x10b   :  { %v1007_v16 = vadd.f32 %v1006_v58, %v979_v13 }
 0x10d   :  { %v1035_v17 = vadd.f32 %v1034_v8, %v1007_v16 }
 0x10e   :  { %v953_v19 = vpop.f32.mrf.mxu1  ;;  %v1037_v20 = vpop.f32.mrf.mxu0 }
 0x10f   :  { %v988_v18 = vpop.f32.mrf.mxu2  ;;  %v1052_v22 = vmax.f32 %v1035_v17, 0.0  ;;  %v954_v23 = vadd.f32 %v953_v19, %v926_v25  ;;  %v1016_v9 = vpop.f32.mrf.mxu3 }
 0x111   :  { %v1579_v24 = vpack.c.bf16 %v1052_v22, %v1051_v21  ;;  %v982_v12 = vadd.f32 %v981_v50, %v954_v23 }
 0x113   :  { %1580 = vst [vmem:[%s2064_s3] sm:$0xff] %v1579_v24   ;;  %v1010_v30 = vadd.f32 %v1009_v0, %v982_v12 }
 0x115   :  { %v1038_v35 = vadd.f32 %v1037_v20, %v1010_v30 }
 0x116   :  { %v955_v27 = vpop.f32.mrf.mxu1  ;;  %v1039_v29 = vpop.f32.mrf.mxu0 }
 0x117   :  { %v991_v26 = vpop.f32.mrf.mxu2  ;;  %v956_v31 = vadd.f32 %v955_v27, %v928_v15  ;;  %v1019_v33 = vpop.f32.mrf.mxu3  ;;  %v1053_v39 = vmax.f32 %v1038_v35, 0.0 }
 0x119   :  { %v984_v34 = vadd.f32 %v983_v1, %v956_v31 }
 0x11b   :  { %v1012_v36 = vadd.f32 %v1011_v4, %v984_v34 }
 0x11d   :  { %v1040_v37 = vadd.f32 %v1039_v29, %v1012_v36 }
 0x11e   :  { %v958_v25 = vpop.f32.mrf.mxu1  ;;  %v1042_v43 = vpop.f32.mrf.mxu0 }
 0x11f   :  { %v993_v38 = vpop.f32.mrf.mxu2  ;;  %v1054_v40 = vmax.f32 %v1040_v37, 0.0  ;;  %v959_v41 = vadd.f32 %v958_v25, %v2034_v42  ;;  %v1021_v44 = vpop.f32.mrf.mxu3  ;;  %v936_v42 = vadd.f32 %v2038_v55, %v2040_v60  ;;  %v1074_v55 = vld [vmem:[%s2064_s3 + $0x18] sm:$0x1] }
 0x121   :  { %v1584_v48 = vpack.c.bf16 %v1054_v40, %v1053_v39  ;;  %v987_v28 = vadd.f32 %v986_v63, %v959_v41 }
 0x123   :  { %1591 = vst [vmem:[%s2064_s3 + $0x8] sm:$0xff] %v1584_v48   ;;  %v1015_v53 = vadd.f32 %v1014_v47, %v987_v28 }
 0x125   :  { %v1043_v58 = vadd.f32 %v1042_v43, %v1015_v53 }
 0x126   :  { %v960_v51 = vpop.f32.mrf.mxu1  ;;  %v1044_v57 = vpop.f32.mrf.mxu0 }
 0x127   :  { %v1047_v49 = vpop.f32.mrf.mxu2  ;;  %v961_v45 = vadd.f32 %v960_v51, %v933_v32  ;;  %v1055_v0 = vmax.f32 %v1043_v58, 0.0 }
 0x129   :  { %v989_v54 = vadd.f32 %v988_v18, %v961_v45 }
 0x12b   :  { %v1017_v59 = vadd.f32 %v1016_v9, %v989_v54 }
 0x12d   :  { %v1045_v50 = vadd.f32 %v1044_v57, %v1017_v59 }
 0x12e   :  { %v963_v62 = vpop.f32.mrf.mxu1 }
 0x12f   :  { %v1049_v61 = vpop.f32.mrf.mxu2  ;;  %v1056_v1 = vmax.f32 %v1045_v50, 0.0  ;;  %v964_v2 = vadd.f32 %v963_v62, %v936_v42 }
 0x131   :  { %v1589_v3 = vpack.c.bf16 %v1056_v1, %v1055_v0  ;;  %v992_v5 = vadd.f32 %v991_v26, %v964_v2 }
 0x133   :  { %1592 = vst [vmem:[%s2064_s3 + $0x10] sm:$0xff] %v1589_v3   ;;  %v1020_v46 = vadd.f32 %v1019_v33, %v992_v5 }
 0x135   :  { %v1048_v52 = vadd.f32 %v1047_v49, %v1020_v46 }
 0x136   :  { %v965_v4 = vpop.f32.mrf.mxu1 }
 0x137   :  { %v1057_v6 = vmax.f32 %v1048_v52, 0.0 }
 0x139   :  { %v1064_v60 = vpack.c.bf16 %v1057_v6, %v1057_v6 }
 0x13b   :  { %v1075_v56 = vsel %vm1073_vm2, %v1064_v60, %v1074_v55 }
 0x13c   :  { %1076 = vst [vmem:[%s2064_s3 + $0x18] sm:$0x1] %v1075_v56 }

// kernel: _lambda_.7
= control target key start
LH: loop header
LB: loop body
LE: loop exit
PB: predicated region body
PF: predicated region fallthrough
CT: control target
= control target key end

     0   :  { %vm4796_vm0 = vcmask 523264   ;;  %vm6423_vm2 = vcmask 1041408   ;;  %s15625_s1 = inlined_call_operand.vmem [shape: bf16[3136,512], index: 1, kind: input, shape index: {}]   ;;  %s15626_s0 = inlined_call_operand.vmem [shape: bf16[2,3136], index: 0, kind: input, shape index: {}]   ;;  %s15627_s2 = inlined_call_operand.vmem [shape: f32[1,512], index: 2, kind: input, shape index: {}]   ;;  %s15628_s3 = inlined_call_operand.vmem [shape: bf16[512,128], index: 3, kind: input, shape index: {}]   ;;  %s15629_s4 = inlined_call_operand.vmem [shape: f32[1,128], index: 4, kind: input, shape index: {}]   ;;  %s15630_s5 = inlined_call_operand.vmem [shape: f32[2,128], index: 5, kind: output, shape index: {}]  }
   0x1   :  { %v6570_v0 = vld [vmem:[%s15625_s1 + $0xe0] sm:$0xf]  ;;  %v9754_v1 = vld [vmem:[%s15625_s1 + $0xec] sm:$0xf0] }
   0x2   :  { %v6698_v2 = vld [vmem:[%s15625_s1 + $0x1e0] sm:$0xf]  ;;  %v6571_v3 = vor.u32 %v9754_v1, %v6570_v0  ;;  %v9786_v4 = vld [vmem:[%s15625_s1 + $0x1ec] sm:$0xf0] }
   0x3   :  { %v6826_v5 = vld [vmem:[%s15625_s1 + $0x2e0] sm:$0xf]  ;;  %v9818_v6 = vld [vmem:[%s15625_s1 + $0x2ec] sm:$0xf0]  ;;  %v6699_v7 = vor.u32 %v9786_v4, %v6698_v2 }
   0x4   :  { %v6827_v8 = vor.u32 %v9818_v6, %v6826_v5  ;;  %v6954_v9 = vld [vmem:[%s15625_s1 + $0x3e0] sm:$0xf]  ;;  %v9850_v10 = vld [vmem:[%s15625_s1 + $0x3ec] sm:$0xf0]  ;;  %4799 = vmatpush.bf16.msra.mxu0 %v6571_v3 }
   0x5   :  { %v6554_v11 = vld [vmem:[%s15625_s1 + $0xc0] sm:$0xf]  ;;  %v6955_v12 = vor.u32 %v9850_v10, %v6954_v9  ;;  %v9750_v13 = vld [vmem:[%s15625_s1 + $0xcc] sm:$0xf0]  ;;  %4812 = vmatpush.bf16.msra.mxu1 %v6699_v7 }
   0x6   :  { %v6682_v14 = vld [vmem:[%s15625_s1 + $0x1c0] sm:$0xf]  ;;  %v9782_v15 = vld [vmem:[%s15625_s1 + $0x1cc] sm:$0xf0]  ;;  %4825 = vmatpush.bf16.msra.mxu2 %v6827_v8  ;;  %v6555_v16 = vor.u32 %v9750_v13, %v6554_v11 }
   0x7   :  { %v6683_v17 = vor.u32 %v9782_v15, %v6682_v14  ;;  %v6810_v18 = vld [vmem:[%s15625_s1 + $0x2c0] sm:$0xf]  ;;  %v9814_v19 = vld [vmem:[%s15625_s1 + $0x2cc] sm:$0xf0]  ;;  %4838 = vmatpush.bf16.msra.mxu3 %v6955_v12 }
   0x8   :  { %v6938_v20 = vld [vmem:[%s15625_s1 + $0x3c0] sm:$0xf]  ;;  %v6811_v21 = vor.u32 %v9814_v19, %v6810_v18  ;;  %v9846_v22 = vld [vmem:[%s15625_s1 + $0x3cc] sm:$0xf0]  ;;  %4800 = vmatpush.bf16.msra.mxu0 %v6555_v16 }
   0x9   :  { %v6538_v23 = vld [vmem:[%s15625_s1 + $0xa0] sm:$0xf]  ;;  %v9746_v24 = vld [vmem:[%s15625_s1 + $0xac] sm:$0xf0]  ;;  %v6939_v25 = vor.u32 %v9846_v22, %v6938_v20  ;;  %4813 = vmatpush.bf16.msra.mxu1 %v6683_v17 }
   0xa   :  { %v6666_v26 = vld [vmem:[%s15625_s1 + $0x1a0] sm:$0xf]  ;;  %v9778_v27 = vld [vmem:[%s15625_s1 + $0x1ac] sm:$0xf0]  ;;  %v6539_v29 = vor.u32 %v9746_v24, %v6538_v23  ;;  %4826 = vmatpush.bf16.msra.mxu2 %v6811_v21 }
   0xb   :  { %v6794_v28 = vld [vmem:[%s15625_s1 + $0x2a0] sm:$0xf]  ;;  %v9810_v30 = vld [vmem:[%s15625_s1 + $0x2ac] sm:$0xf0]  ;;  %v6667_v33 = vor.u32 %v9778_v27, %v6666_v26  ;;  %4839 = vmatpush.bf16.msra.mxu3 %v6939_v25 }
   0xc   :  { %v6922_v31 = vld [vmem:[%s15625_s1 + $0x3a0] sm:$0xf]  ;;  %v9842_v32 = vld [vmem:[%s15625_s1 + $0x3ac] sm:$0xf0]  ;;  %v6795_v34 = vor.u32 %v9810_v30, %v6794_v28  ;;  %4801 = vmatpush.bf16.msra.mxu0 %v6539_v29 }
   0xd   :  { %v6522_v35 = vld [vmem:[%s15625_s1 + $0x80] sm:$0xf]  ;;  %v9742_v36 = vld [vmem:[%s15625_s1 + $0x8c] sm:$0xf0]  ;;  %v6923_v38 = vor.u32 %v9842_v32, %v6922_v31  ;;  %4814 = vmatpush.bf16.msra.mxu1 %v6667_v33 }
   0xe   :  { %v6650_v37 = vld [vmem:[%s15625_s1 + $0x180] sm:$0xf]  ;;  %v9774_v39 = vld [vmem:[%s15625_s1 + $0x18c] sm:$0xf0]  ;;  %v6523_v44 = vor.u32 %v9742_v36, %v6522_v35  ;;  %4827 = vmatpush.bf16.msra.mxu2 %v6795_v34 }
   0xf   :  { %v6778_v40 = vld [vmem:[%s15625_s1 + $0x280] sm:$0xf]  ;;  %v9806_v41 = vld [vmem:[%s15625_s1 + $0x28c] sm:$0xf0]  ;;  %v6651_v45 = vor.u32 %v9774_v39, %v6650_v37  ;;  %4840 = vmatpush.bf16.msra.mxu3 %v6923_v38 }
  0x10   :  { %v6906_v42 = vld [vmem:[%s15625_s1 + $0x380] sm:$0xf]  ;;  %v9838_v43 = vld [vmem:[%s15625_s1 + $0x38c] sm:$0xf0]  ;;  %v6779_v46 = vor.u32 %v9806_v41, %v6778_v40  ;;  %4802 = vmatpush.bf16.msra.mxu0 %v6523_v44 }
  0x11   :  { %v6506_v47 = vld [vmem:[%s15625_s1 + $0x60] sm:$0xf]  ;;  %v9738_v48 = vld [vmem:[%s15625_s1 + $0x6c] sm:$0xf0]  ;;  %v6907_v50 = vor.u32 %v9838_v43, %v6906_v42  ;;  %4815 = vmatpush.bf16.msra.mxu1 %v6651_v45 }
  0x12   :  { %v6634_v49 = vld [vmem:[%s15625_s1 + $0x160] sm:$0xf]  ;;  %v9770_v51 = vld [vmem:[%s15625_s1 + $0x16c] sm:$0xf0]  ;;  %v6507_v56 = vor.u32 %v9738_v48, %v6506_v47  ;;  %4828 = vmatpush.bf16.msra.mxu2 %v6779_v46 }
  0x13   :  { %v6762_v52 = vld [vmem:[%s15625_s1 + $0x260] sm:$0xf]  ;;  %v9802_v53 = vld [vmem:[%s15625_s1 + $0x26c] sm:$0xf0]  ;;  %v6635_v57 = vor.u32 %v9770_v51, %v6634_v49  ;;  %4841 = vmatpush.bf16.msra.mxu3 %v6907_v50 }
  0x14   :  { %v6890_v54 = vld [vmem:[%s15625_s1 + $0x360] sm:$0xf]  ;;  %v9834_v55 = vld [vmem:[%s15625_s1 + $0x36c] sm:$0xf0]  ;;  %v6763_v58 = vor.u32 %v9802_v53, %v6762_v52  ;;  %4803 = vmatpush.bf16.msra.mxu0 %v6507_v56 }
  0x15   :  { %v6490_v59 = vld [vmem:[%s15625_s1 + $0x40] sm:$0xf]  ;;  %v9734_v60 = vld [vmem:[%s15625_s1 + $0x4c] sm:$0xf0]  ;;  %v6891_v62 = vor.u32 %v9834_v55, %v6890_v54  ;;  %4816 = vmatpush.bf16.msra.mxu1 %v6635_v57 }
  0x16   :  { %v6618_v61 = vld [vmem:[%s15625_s1 + $0x140] sm:$0xf]  ;;  %v9766_v63 = vld [vmem:[%s15625_s1 + $0x14c] sm:$0xf0]  ;;  %v6491_v4 = vor.u32 %v9734_v60, %v6490_v59  ;;  %4829 = vmatpush.bf16.msra.mxu2 %v6763_v58 }
  0x17   :  { %v6746_v0 = vld [vmem:[%s15625_s1 + $0x240] sm:$0xf]  ;;  %v9798_v1 = vld [vmem:[%s15625_s1 + $0x24c] sm:$0xf0]  ;;  %v6619_v5 = vor.u32 %v9766_v63, %v6618_v61  ;;  %4842 = vmatpush.bf16.msra.mxu3 %v6891_v62 }
  0x18   :  { %v6874_v2 = vld [vmem:[%s15625_s1 + $0x340] sm:$0xf]  ;;  %v9830_v3 = vld [vmem:[%s15625_s1 + $0x34c] sm:$0xf0]  ;;  %v6747_v6 = vor.u32 %v9798_v1, %v6746_v0  ;;  %4804 = vmatpush.bf16.msra.mxu0 %v6491_v4 }
  0x19   :  { %v6474_v7 = vld [vmem:[%s15625_s1 + $0x20] sm:$0xf]  ;;  %v9730_v8 = vld [vmem:[%s15625_s1 + $0x2c] sm:$0xf0]  ;;  %v6875_v10 = vor.u32 %v9830_v3, %v6874_v2  ;;  %4817 = vmatpush.bf16.msra.mxu1 %v6619_v5 }
  0x1a   :  { %v6602_v9 = vld [vmem:[%s15625_s1 + $0x120] sm:$0xf]  ;;  %v9762_v11 = vld [vmem:[%s15625_s1 + $0x12c] sm:$0xf0]  ;;  %v6475_v16 = vor.u32 %v9730_v8, %v6474_v7  ;;  %4830 = vmatpush.bf16.msra.mxu2 %v6747_v6 }
  0x1b   :  { %v6730_v12 = vld [vmem:[%s15625_s1 + $0x220] sm:$0xf]  ;;  %v9794_v13 = vld [vmem:[%s15625_s1 + $0x22c] sm:$0xf0]  ;;  %v6603_v19 = vor.u32 %v9762_v11, %v6602_v9  ;;  %4843 = vmatpush.bf16.msra.mxu3 %v6875_v10 }
  0x1c   :  { %v6858_v14 = vld [vmem:[%s15625_s1 + $0x320] sm:$0xf]  ;;  %v9826_v15 = vld [vmem:[%s15625_s1 + $0x32c] sm:$0xf0]  ;;  %v6731_v20 = vor.u32 %v9794_v13, %v6730_v12  ;;  %4805 = vmatpush.bf16.msra.mxu0 %v6475_v16 }
  0x1d   :  { %v6458_v17 = vld [vmem:[%s15625_s1] sm:$0xf]  ;;  %v9726_v18 = vld [vmem:[%s15625_s1 + $0xc] sm:$0xf0]  ;;  %v6859_v24 = vor.u32 %v9826_v15, %v6858_v14  ;;  %4818 = vmatpush.bf16.msra.mxu1 %v6603_v19 }
  0x1e   :  { %v6586_v21 = vld [vmem:[%s15625_s1 + $0x100] sm:$0xf]  ;;  %v9758_v22 = vld [vmem:[%s15625_s1 + $0x10c] sm:$0xf0]  ;;  %v6459_v31 = vor.u32 %v9726_v18, %v6458_v17  ;;  %4831 = vmatpush.bf16.msra.mxu2 %v6731_v20 }
  0x1f   :  { %v6714_v23 = vld [vmem:[%s15625_s1 + $0x200] sm:$0xf]  ;;  %v9790_v25 = vld [vmem:[%s15625_s1 + $0x20c] sm:$0xf0]  ;;  %v6587_v35 = vor.u32 %v9758_v22, %v6586_v21  ;;  %4844 = vmatpush.bf16.msra.mxu3 %v6859_v24 }
  0x20   :  { %v6842_v26 = vld [vmem:[%s15625_s1 + $0x300] sm:$0xf]  ;;  %v9822_v27 = vld [vmem:[%s15625_s1 + $0x30c] sm:$0xf0]  ;;  %v6715_v36 = vor.u32 %v9790_v25, %v6714_v23  ;;  %4806 = vmatpush.bf16.msra.mxu0 %v6459_v31 }
  0x21   :  { %v7082_v28 = vld [vmem:[%s15625_s1 + $0x4e0] sm:$0xf]  ;;  %v9882_v29 = vld [vmem:[%s15625_s1 + $0x4ec] sm:$0xf0]  ;;  %v6843_v39 = vor.u32 %v9822_v27, %v6842_v26  ;;  %4819 = vmatpush.bf16.msra.mxu1 %v6587_v35 }
  0x22   :  { %v7210_v30 = vld [vmem:[%s15625_s1 + $0x5e0] sm:$0xf]  ;;  %v9914_v32 = vld [vmem:[%s15625_s1 + $0x5ec] sm:$0xf0]  ;;  %v7083_v40 = vor.u32 %v9882_v29, %v7082_v28  ;;  %4832 = vmatpush.bf16.msra.mxu2 %v6715_v36 }
  0x23   :  { %v7338_v33 = vld [vmem:[%s15625_s1 + $0x6e0] sm:$0xf]  ;;  %v9946_v34 = vld [vmem:[%s15625_s1 + $0x6ec] sm:$0xf0]  ;;  %v7211_v41 = vor.u32 %v9914_v32, %v7210_v30  ;;  %4845 = vmatpush.bf16.msra.mxu3 %v6843_v39 }
  0x24   :  { %v7466_v37 = vld [vmem:[%s15625_s1 + $0x7e0] sm:$0xf]  ;;  %v9978_v38 = vld [vmem:[%s15625_s1 + $0x7ec] sm:$0xf0]  ;;  %v7339_v42 = vor.u32 %v9946_v34, %v7338_v33  ;;  %4851 = vmatpush.bf16.msrb.mxu0 %v7083_v40 }
  0x25   :  { %v7066_v43 = vld [vmem:[%s15625_s1 + $0x4c0] sm:$0xf]  ;;  %v9878_v44 = vld [vmem:[%s15625_s1 + $0x4cc] sm:$0xf0]  ;;  %v7467_v46 = vor.u32 %v9978_v38, %v7466_v37  ;;  %4864 = vmatpush.bf16.msrb.mxu1 %v7211_v41 }
  0x26   :  { %v7194_v45 = vld [vmem:[%s15625_s1 + $0x5c0] sm:$0xf]  ;;  %v9910_v47 = vld [vmem:[%s15625_s1 + $0x5cc] sm:$0xf0]  ;;  %v7067_v52 = vor.u32 %v9878_v44, %v7066_v43  ;;  %4877 = vmatpush.bf16.msrb.mxu2 %v7339_v42  ;;  %v22_v43 = vld [vmem:[%s15626_s0 + $0x8] sm:$0xff] }
  0x27   :  { %v7322_v48 = vld [vmem:[%s15625_s1 + $0x6c0] sm:$0xf]  ;;  %v9942_v49 = vld [vmem:[%s15625_s1 + $0x6cc] sm:$0xf0]  ;;  %v7195_v55 = vor.u32 %v9910_v47, %v7194_v45  ;;  %4890 = vmatpush.bf16.msrb.mxu3 %v7467_v46 }
  0x28   :  { %v7450_v50 = vld [vmem:[%s15625_s1 + $0x7c0] sm:$0xf]  ;;  %v9974_v51 = vld [vmem:[%s15625_s1 + $0x7cc] sm:$0xf0]  ;;  %v7323_v56 = vor.u32 %v9942_v49, %v7322_v48  ;;  %4852 = vmatpush.bf16.msrb.mxu0 %v7067_v52 }
  0x29   :  { %v7050_v53 = vld [vmem:[%s15625_s1 + $0x4a0] sm:$0xf]  ;;  %v9874_v54 = vld [vmem:[%s15625_s1 + $0x4ac] sm:$0xf0]  ;;  %v7451_v60 = vor.u32 %v9974_v51, %v7450_v50  ;;  %4865 = vmatpush.bf16.msrb.mxu1 %v7195_v55 }
  0x2a   :  { %v7178_v57 = vld [vmem:[%s15625_s1 + $0x5a0] sm:$0xf]  ;;  %v9906_v58 = vld [vmem:[%s15625_s1 + $0x5ac] sm:$0xf0]  ;;  %v7051_v1 = vor.u32 %v9874_v54, %v7050_v53  ;;  %4878 = vmatpush.bf16.msrb.mxu2 %v7323_v56 }
  0x2b   :  { %v21_v59 = vld [vmem:[%s15626_s0] sm:$0xff]  ;;  %v9938_v62 = vld [vmem:[%s15625_s1 + $0x6ac] sm:$0xf0]  ;;  %v7179_v2 = vor.u32 %v9906_v58, %v7178_v57  ;;  %4891 = vmatpush.bf16.msrb.mxu3 %v7451_v60 }
  0x2c   :  { %v7306_v61 = vld [vmem:[%s15625_s1 + $0x6a0] sm:$0xf]  ;;  %820 = vst [vmem:[#allocation1] ss:$9 sm:$0xff] %v21_v59  ;;  %v9970_v0 = vld [vmem:[%s15625_s1 + $0x7ac] sm:$0xf0]  ;;  %4853 = vmatpush.bf16.msrb.mxu0 %v7051_v1 }
  0x2d   :  { %v7434_v63 = vld [vmem:[%s15625_s1 + $0x7a0] sm:$0xf]  ;;  %v7307_v3 = vor.u32 %v9938_v62, %v7306_v61  ;;  %v9870_v5 = vld [vmem:[%s15625_s1 + $0x48c] sm:$0xf0]  ;;  %4866 = vmatpush.bf16.msrb.mxu1 %v7179_v2 }
  0x2e   :  { %v7034_v4 = vld [vmem:[%s15625_s1 + $0x480] sm:$0xf]  ;;  %v7435_v7 = vor.u32 %v9970_v0, %v7434_v63  ;;  %v9902_v8 = vld [vmem:[%s15625_s1 + $0x58c] sm:$0xf0] }
  0x2f   :  { %v7162_v6 = vld [vmem:[%s15625_s1 + $0x580] sm:$0xf]  ;;  %v9934_v10 = vld [vmem:[%s15625_s1 + $0x68c] sm:$0xf0]  ;;  %v7035_v14 = vor.u32 %v9870_v5, %v7034_v4  ;;  %4879 = vmatpush.bf16.msrb.mxu2 %v7307_v3 }
  0x30   :  { %v7290_v9 = vld [vmem:[%s15625_s1 + $0x680] sm:$0xf]  ;;  %v9966_v12 = vld [vmem:[%s15625_s1 + $0x78c] sm:$0xf0]  ;;  %v7163_v18 = vor.u32 %v9902_v8, %v7162_v6  ;;  %4892 = vmatpush.bf16.msrb.mxu3 %v7435_v7 }
  0x31   :  { %v7418_v11 = vld [vmem:[%s15625_s1 + $0x780] sm:$0xf]  ;;  %v9866_v15 = vld [vmem:[%s15625_s1 + $0x46c] sm:$0xf0]  ;;  %v7291_v19 = vor.u32 %v9934_v10, %v7290_v9  ;;  %4854 = vmatpush.bf16.msrb.mxu0 %v7035_v14 }
  0x32   :  { %v7018_v13 = vld [vmem:[%s15625_s1 + $0x460] sm:$0xf]  ;;  %v9898_v17 = vld [vmem:[%s15625_s1 + $0x56c] sm:$0xf0]  ;;  %v7419_v23 = vor.u32 %v9966_v12, %v7418_v11  ;;  %4867 = vmatpush.bf16.msrb.mxu1 %v7163_v18 }
  0x33   :  { %v7146_v16 = vld [vmem:[%s15625_s1 + $0x560] sm:$0xf]  ;;  %v10886_v20 = vld [vmem:[#allocation1 + $0x12] sm:$0xff]  ;;  %v10899_v26 = vld [vmem:[#allocation1 + $0x9] sm:$0xff]  ;;  %v7019_v29 = vor.u32 %v9866_v15, %v7018_v13  ;;  %4880 = vmatpush.bf16.msrb.mxu2 %v7291_v19 }
  0x34   :  { %v10888_v21 = vld [vmem:[#allocation1] sm:$0xff]  ;;  %v9930_v25 = vld [vmem:[%s15625_s1 + $0x66c] sm:$0xf0]  ;;  %4833 = vmatmul.bf16.vlgmr.msra.gmra.mxu2 %v10886_v20  ;;  %4820 = vmatmul.bf16.vlgmr.msra.gmra.mxu1 %v10899_v26  ;;  %v7147_v30 = vor.u32 %v9898_v17, %v7146_v16  ;;  %v10979_v61 = vld [vmem:[#allocation1 + $0x36] sm:$0xff] }
  0x35   :  { %v10890_v22 = vld [vmem:[#allocation1 + $0x1b] sm:$0xff]  ;;  %v9962_v28 = vld [vmem:[%s15625_s1 + $0x76c] sm:$0xf0]  ;;  %4807 = vmatmul.bf16.vlgmr.msra.gmra.mxu0 %v10888_v21  ;;  %4893 = vmatpush.bf16.msrb.mxu3 %v7419_v23  ;;  %v10981_v0 = vld [vmem:[#allocation1 + $0x24] sm:$0xff] }
  0x36   :  { %v7274_v24 = vld [vmem:[%s15625_s1 + $0x660] sm:$0xf]  ;;  %4846 = vmatmul.bf16.vlgmr.msra.gmra.mxu3 %v10890_v22  ;;  %v9862_v33 = vld [vmem:[%s15625_s1 + $0x44c] sm:$0xf0]  ;;  %4855 = vmatpush.bf16.msrb.mxu0 %v7019_v29 }
  0x37   :  { %v7402_v27 = vld [vmem:[%s15625_s1 + $0x760] sm:$0xf]  ;;  %v7275_v31 = vor.u32 %v9930_v25, %v7274_v24  ;;  %v9894_v36 = vld [vmem:[%s15625_s1 + $0x54c] sm:$0xf0]  ;;  %4868 = vmatpush.bf16.msrb.mxu1 %v7147_v30 }
  0x38   :  { %v7002_v32 = vld [vmem:[%s15625_s1 + $0x440] sm:$0xf]  ;;  %v7403_v35 = vor.u32 %v9962_v28, %v7402_v27  ;;  %v9926_v38 = vld [vmem:[%s15625_s1 + $0x64c] sm:$0xf0] }
  0x39   :  { %v7130_v34 = vld [vmem:[%s15625_s1 + $0x540] sm:$0xf]  ;;  %v9958_v40 = vld [vmem:[%s15625_s1 + $0x74c] sm:$0xf0]  ;;  %v7003_v41 = vor.u32 %v9862_v33, %v7002_v32  ;;  %4881 = vmatpush.bf16.msrb.mxu2 %v7275_v31 }
  0x3a   :  { %v7258_v37 = vld [vmem:[%s15625_s1 + $0x640] sm:$0xf]  ;;  %v7131_v44 = vor.u32 %v9894_v36, %v7130_v34  ;;  %v9858_v46 = vld [vmem:[%s15625_s1 + $0x42c] sm:$0xf0]  ;;  %4894 = vmatpush.bf16.msrb.mxu3 %v7403_v35 }
  0x3b   :  { %v7386_v39 = vld [vmem:[%s15625_s1 + $0x740] sm:$0xf]  ;;  %v7259_v45 = vor.u32 %v9926_v38, %v7258_v37  ;;  %v9890_v48 = vld [vmem:[%s15625_s1 + $0x52c] sm:$0xf0]  ;;  %4856 = vmatpush.bf16.msrb.mxu0 %v7003_v41 }
  0x3c   :  { %v6986_v42 = vld [vmem:[%s15625_s1 + $0x420] sm:$0xf]  ;;  %v7387_v49 = vor.u32 %v9958_v40, %v7386_v39  ;;  %v9922_v51 = vld [vmem:[%s15625_s1 + $0x62c] sm:$0xf0]  ;;  %4869 = vmatpush.bf16.msrb.mxu1 %v7131_v44 }
  0x3d   :  { %v7114_v47 = vld [vmem:[%s15625_s1 + $0x520] sm:$0xf]  ;;  %v9954_v53 = vld [vmem:[%s15625_s1 + $0x72c] sm:$0xf0]  ;;  %v6987_v56 = vor.u32 %v9858_v46, %v6986_v42  ;;  %4882 = vmatpush.bf16.msrb.mxu2 %v7259_v45 }
  0x3e   :  { %v7242_v50 = vld [vmem:[%s15625_s1 + $0x620] sm:$0xf]  ;;  %v9854_v55 = vld [vmem:[%s15625_s1 + $0x40c] sm:$0xf0]  ;;  %v7115_v62 = vor.u32 %v9890_v48, %v7114_v47  ;;  %4895 = vmatpush.bf16.msrb.mxu3 %v7387_v49 }
  0x3f   :  { %v7370_v52 = vld [vmem:[%s15625_s1 + $0x720] sm:$0xf]  ;;  %v9886_v58 = vld [vmem:[%s15625_s1 + $0x50c] sm:$0xf0]  ;;  %v7243_v63 = vor.u32 %v9922_v51, %v7242_v50  ;;  %4857 = vmatpush.bf16.msrb.mxu0 %v6987_v56 }
  0x40   :  { %v6970_v54 = vld [vmem:[%s15625_s1 + $0x400] sm:$0xf]  ;;  %v9918_v60 = vld [vmem:[%s15625_s1 + $0x60c] sm:$0xf0]  ;;  %v7371_v3 = vor.u32 %v9954_v53, %v7370_v52  ;;  %4870 = vmatpush.bf16.msrb.mxu1 %v7115_v62 }
  0x41   :  { %v7098_v57 = vld [vmem:[%s15625_s1 + $0x500] sm:$0xf]  ;;  %v10985_v2 = vld [vmem:[#allocation1 + $0x2d] sm:$0xff]  ;;  %v6971_v9 = vor.u32 %v9854_v55, %v6970_v54  ;;  %4883 = vmatpush.bf16.msrb.mxu2 %v7243_v63 }
  0x42   :  { %v7226_v59 = vld [vmem:[%s15625_s1 + $0x600] sm:$0xf]  ;;  %v9950_v5 = vld [vmem:[%s15625_s1 + $0x70c] sm:$0xf0]  ;;  %v7099_v13 = vor.u32 %v9886_v58, %v7098_v57  ;;  %4896 = vmatpush.bf16.msrb.mxu3 %v7371_v3 }
  0x43   :  { %v10983_v1 = vld [vmem:[#allocation1 + $0x3f] sm:$0xff]  ;;  %v10010_v7 = vld [vmem:[%s15625_s1 + $0x8ec] sm:$0xf0]  ;;  %v7227_v14 = vor.u32 %v9918_v60, %v7226_v59  ;;  %4858 = vmatpush.bf16.msrb.mxu0 %v6971_v9 }
  0x44   :  { %v7354_v4 = vld [vmem:[%s15625_s1 + $0x700] sm:$0xf]  ;;  %830 = vst [vmem:[#allocation1] ss:$9 sm:$0xff] %v22_v43  ;;  %v10042_v10 = vld [vmem:[%s15625_s1 + $0x9ec] sm:$0xf0]  ;;  %4871 = vmatpush.bf16.msrb.mxu1 %v7099_v13 }
  0x45   :  { %v7594_v6 = vld [vmem:[%s15625_s1 + $0x8e0] sm:$0xf]  ;;  %v10074_v12 = vld [vmem:[%s15625_s1 + $0xaec] sm:$0xf0]  ;;  %v7355_v17 = vor.u32 %v9950_v5, %v7354_v4  ;;  %4884 = vmatpush.bf16.msrb.mxu2 %v7227_v14 }
  0x46   :  { %v7722_v8 = vld [vmem:[%s15625_s1 + $0x9e0] sm:$0xf]  ;;  %v10106_v16 = vld [vmem:[%s15625_s1 + $0xbec] sm:$0xf0]  ;;  %v7595_v18 = vor.u32 %v10010_v7, %v7594_v6  ;;  %4859 = vmatmul.bf16.vlgmr.msrb.gmra.mxu0 %v10981_v0 }
  0x47   :  { %v7850_v11 = vld [vmem:[%s15625_s1 + $0xae0] sm:$0xf]  ;;  %v7723_v19 = vor.u32 %v10042_v10, %v7722_v8  ;;  %v10006_v25 = vld [vmem:[%s15625_s1 + $0x8cc] sm:$0xf0]  ;;  %4897 = vmatpush.bf16.msrb.mxu3 %v7355_v17  ;;  %4872 = vmatmul.bf16.vlgmr.msrb.gmra.mxu1 %v10985_v2 }
  0x48   :  { %v7978_v15 = vld [vmem:[%s15625_s1 + $0xbe0] sm:$0xf]  ;;  %v7851_v23 = vor.u32 %v10074_v12, %v7850_v11  ;;  %v10038_v29 = vld [vmem:[%s15625_s1 + $0x9cc] sm:$0xf0]  ;;  %4903 = vmatpush.bf16.msra.mxu0 %v7595_v18  ;;  %4885 = vmatmul.bf16.vlgmr.msrb.gmra.mxu2 %v10979_v61 }
  0x49   :  { %v7578_v24 = vld [vmem:[%s15625_s1 + $0x8c0] sm:$0xf]  ;;  %v7979_v28 = vor.u32 %v10106_v16, %v7978_v15  ;;  %v10070_v31 = vld [vmem:[%s15625_s1 + $0xacc] sm:$0xf0]  ;;  %4916 = vmatpush.bf16.msra.mxu1 %v7723_v19 }
  0x4a   :  { %v7706_v27 = vld [vmem:[%s15625_s1 + $0x9c0] sm:$0xf]  ;;  %v10102_v33 = vld [vmem:[%s15625_s1 + $0xbcc] sm:$0xf0]  ;;  %v7579_v34 = vor.u32 %v10006_v25, %v7578_v24  ;;  %4929 = vmatpush.bf16.msra.mxu2 %v7851_v23  ;;  %4898 = vmatmul.bf16.vlgmr.msrb.gmra.mxu3 %v10983_v1 }
  0x4b   :  { %v7834_v30 = vld [vmem:[%s15625_s1 + $0xac0] sm:$0xf]  ;;  %v7707_v35 = vor.u32 %v10038_v29, %v7706_v27  ;;  %v10002_v38 = vld [vmem:[%s15625_s1 + $0x8ac] sm:$0xf0]  ;;  %4942 = vmatpush.bf16.msra.mxu3 %v7979_v28 }
  0x4c   :  { %v7962_v32 = vld [vmem:[%s15625_s1 + $0xbc0] sm:$0xf]  ;;  %v7835_v36 = vor.u32 %v10070_v31, %v7834_v30  ;;  %v10034_v41 = vld [vmem:[%s15625_s1 + $0x9ac] sm:$0xf0]  ;;  %4904 = vmatpush.bf16.msra.mxu0 %v7579_v34 }
  0x4d   :  { %v7562_v37 = vld [vmem:[%s15625_s1 + $0x8a0] sm:$0xf]  ;;  %v7963_v40 = vor.u32 %v10102_v33, %v7962_v32  ;;  %v10066_v43 = vld [vmem:[%s15625_s1 + $0xaac] sm:$0xf0]  ;;  %4917 = vmatpush.bf16.msra.mxu1 %v7707_v35 }
  0x4e   :  { %v7690_v39 = vld [vmem:[%s15625_s1 + $0x9a0] sm:$0xf]  ;;  %v10098_v45 = vld [vmem:[%s15625_s1 + $0xbac] sm:$0xf0]  ;;  %v7563_v46 = vor.u32 %v10002_v38, %v7562_v37  ;;  %4930 = vmatpush.bf16.msra.mxu2 %v7835_v36 }
  0x4f   :  { %v7818_v42 = vld [vmem:[%s15625_s1 + $0xaa0] sm:$0xf]  ;;  %v7691_v47 = vor.u32 %v10034_v41, %v7690_v39  ;;  %v9998_v50 = vld [vmem:[%s15625_s1 + $0x88c] sm:$0xf0]  ;;  %4943 = vmatpush.bf16.msra.mxu3 %v7963_v40 }
  0x50   :  { %v7946_v44 = vld [vmem:[%s15625_s1 + $0xba0] sm:$0xf]  ;;  %v7819_v48 = vor.u32 %v10066_v43, %v7818_v42  ;;  %v10030_v53 = vld [vmem:[%s15625_s1 + $0x98c] sm:$0xf0]  ;;  %4905 = vmatpush.bf16.msra.mxu0 %v7563_v46 }
  0x51   :  { %v7546_v49 = vld [vmem:[%s15625_s1 + $0x880] sm:$0xf]  ;;  %v7947_v52 = vor.u32 %v10098_v45, %v7946_v44  ;;  %v10062_v55 = vld [vmem:[%s15625_s1 + $0xa8c] sm:$0xf0]  ;;  %4918 = vmatpush.bf16.msra.mxu1 %v7691_v47 }
  0x52   :  { %v7674_v51 = vld [vmem:[%s15625_s1 + $0x980] sm:$0xf]  ;;  %v10094_v57 = vld [vmem:[%s15625_s1 + $0xb8c] sm:$0xf0]  ;;  %v7547_v58 = vor.u32 %v9998_v50, %v7546_v49  ;;  %4931 = vmatpush.bf16.msra.mxu2 %v7819_v48 }
  0x53   :  { %v7802_v54 = vld [vmem:[%s15625_s1 + $0xa80] sm:$0xf]  ;;  %v7675_v59 = vor.u32 %v10030_v53, %v7674_v51  ;;  %v9994_v63 = vld [vmem:[%s15625_s1 + $0x86c] sm:$0xf0]  ;;  %4944 = vmatpush.bf16.msra.mxu3 %v7947_v52 }
  0x54   :  { %v7930_v56 = vld [vmem:[%s15625_s1 + $0xb80] sm:$0xf]  ;;  %v7803_v60 = vor.u32 %v10062_v55, %v7802_v54  ;;  %v10026_v5 = vld [vmem:[%s15625_s1 + $0x96c] sm:$0xf0]  ;;  %4906 = vmatpush.bf16.msra.mxu0 %v7547_v58 }
  0x55   :  { %v7530_v62 = vld [vmem:[%s15625_s1 + $0x860] sm:$0xf]  ;;  %v7931_v4 = vor.u32 %v10094_v57, %v7930_v56  ;;  %v10058_v7 = vld [vmem:[%s15625_s1 + $0xa6c] sm:$0xf0]  ;;  %4919 = vmatpush.bf16.msra.mxu1 %v7675_v59 }
  0x56   :  { %v7658_v3 = vld [vmem:[%s15625_s1 + $0x960] sm:$0xf]  ;;  %v10090_v9 = vld [vmem:[%s15625_s1 + $0xb6c] sm:$0xf0]  ;;  %v7531_v10 = vor.u32 %v9994_v63, %v7530_v62  ;;  %4932 = vmatpush.bf16.msra.mxu2 %v7803_v60 }
  0x57   :  { %v7786_v6 = vld [vmem:[%s15625_s1 + $0xa60] sm:$0xf]  ;;  %v7659_v11 = vor.u32 %v10026_v5, %v7658_v3  ;;  %v9990_v14 = vld [vmem:[%s15625_s1 + $0x84c] sm:$0xf0]  ;;  %4945 = vmatpush.bf16.msra.mxu3 %v7931_v4 }
  0x58   :  { %v7914_v8 = vld [vmem:[%s15625_s1 + $0xb60] sm:$0xf]  ;;  %v7787_v12 = vor.u32 %v10058_v7, %v7786_v6  ;;  %v10022_v17 = vld [vmem:[%s15625_s1 + $0x94c] sm:$0xf0]  ;;  %4907 = vmatpush.bf16.msra.mxu0 %v7531_v10 }
  0x59   :  { %v7514_v13 = vld [vmem:[%s15625_s1 + $0x840] sm:$0xf]  ;;  %v7915_v16 = vor.u32 %v10090_v9, %v7914_v8  ;;  %v10054_v19 = vld [vmem:[%s15625_s1 + $0xa4c] sm:$0xf0]  ;;  %4920 = vmatpush.bf16.msra.mxu1 %v7659_v11 }
  0x5a   :  { %v7642_v15 = vld [vmem:[%s15625_s1 + $0x940] sm:$0xf]  ;;  %v10086_v24 = vld [vmem:[%s15625_s1 + $0xb4c] sm:$0xf0]  ;;  %v7515_v25 = vor.u32 %v9990_v14, %v7514_v13  ;;  %4933 = vmatpush.bf16.msra.mxu2 %v7787_v12 }
  0x5b   :  { %v7770_v18 = vld [vmem:[%s15625_s1 + $0xa40] sm:$0xf]  ;;  %v7643_v27 = vor.u32 %v10022_v17, %v7642_v15  ;;  %v9986_v30 = vld [vmem:[%s15625_s1 + $0x82c] sm:$0xf0]  ;;  %4946 = vmatpush.bf16.msra.mxu3 %v7915_v16 }
  0x5c   :  { %v7898_v23 = vld [vmem:[%s15625_s1 + $0xb40] sm:$0xf]  ;;  %v7771_v28 = vor.u32 %v10054_v19, %v7770_v18  ;;  %v10018_v33 = vld [vmem:[%s15625_s1 + $0x92c] sm:$0xf0]  ;;  %4908 = vmatpush.bf16.msra.mxu0 %v7515_v25 }
  0x5d   :  { %v7498_v29 = vld [vmem:[%s15625_s1 + $0x820] sm:$0xf]  ;;  %v7899_v32 = vor.u32 %v10086_v24, %v7898_v23  ;;  %v10050_v35 = vld [vmem:[%s15625_s1 + $0xa2c] sm:$0xf0]  ;;  %4921 = vmatpush.bf16.msra.mxu1 %v7643_v27 }
  0x5e   :  { %v7626_v31 = vld [vmem:[%s15625_s1 + $0x920] sm:$0xf]  ;;  %v10082_v37 = vld [vmem:[%s15625_s1 + $0xb2c] sm:$0xf0]  ;;  %v7499_v38 = vor.u32 %v9986_v30, %v7498_v29  ;;  %4934 = vmatpush.bf16.msra.mxu2 %v7771_v28  ;;  %v11260_v28 = vld [vmem:[#allocation1 + $0x24] sm:$0xff] }
  0x5f   :  { %v7754_v34 = vld [vmem:[%s15625_s1 + $0xa20] sm:$0xf]  ;;  %v9982_v40 = vld [vmem:[%s15625_s1 + $0x80c] sm:$0xf0]  ;;  %v7627_v41 = vor.u32 %v10018_v33, %v7626_v31  ;;  %4947 = vmatpush.bf16.msra.mxu3 %v7899_v32  ;;  %v11262_v31 = vld [vmem:[#allocation1 + $0x36] sm:$0xff] }
  0x60   :  { %v7882_v36 = vld [vmem:[%s15625_s1 + $0xb20] sm:$0xf]  ;;  %v7755_v42 = vor.u32 %v10050_v35, %v7754_v34  ;;  %v10014_v44 = vld [vmem:[%s15625_s1 + $0x90c] sm:$0xf0]  ;;  %4909 = vmatpush.bf16.msra.mxu0 %v7499_v38 }
  0x61   :  { %v7482_v39 = vld [vmem:[%s15625_s1 + $0x800] sm:$0xf]  ;;  %v7883_v46 = vor.u32 %v10082_v37, %v7882_v36  ;;  %v10046_v47 = vld [vmem:[%s15625_s1 + $0xa0c] sm:$0xf0]  ;;  %4922 = vmatpush.bf16.msra.mxu1 %v7627_v41 }
  0x62   :  { %v7610_v43 = vld [vmem:[%s15625_s1 + $0x900] sm:$0xf]  ;;  %v10078_v49 = vld [vmem:[%s15625_s1 + $0xb0c] sm:$0xf0]  ;;  %v7483_v53 = vor.u32 %v9982_v40, %v7482_v39  ;;  %4935 = vmatpush.bf16.msra.mxu2 %v7755_v42 }
  0x63   :  { %v7738_v45 = vld [vmem:[%s15625_s1 + $0xa00] sm:$0xf]  ;;  %v10138_v51 = vld [vmem:[%s15625_s1 + $0xcec] sm:$0xf0]  ;;  %v7611_v57 = vor.u32 %v10014_v44, %v7610_v43  ;;  %4948 = vmatpush.bf16.msra.mxu3 %v7883_v46 }
  0x64   :  { %v7866_v48 = vld [vmem:[%s15625_s1 + $0xb00] sm:$0xf]  ;;  %v10170_v54 = vld [vmem:[%s15625_s1 + $0xdec] sm:$0xf0]  ;;  %v7739_v58 = vor.u32 %v10046_v47, %v7738_v45  ;;  %4910 = vmatpush.bf16.msra.mxu0 %v7483_v53 }
  0x65   :  { %v8106_v50 = vld [vmem:[%s15625_s1 + $0xce0] sm:$0xf]  ;;  %v10202_v56 = vld [vmem:[%s15625_s1 + $0xeec] sm:$0xf0]  ;;  %v7867_v62 = vor.u32 %v10078_v49, %v7866_v48  ;;  %4923 = vmatpush.bf16.msra.mxu1 %v7611_v57 }
  0x66   :  { %v8234_v52 = vld [vmem:[%s15625_s1 + $0xde0] sm:$0xf]  ;;  %v10234_v60 = vld [vmem:[%s15625_s1 + $0xfec] sm:$0xf0]  ;;  %v8107_v63 = vor.u32 %v10138_v51, %v8106_v50  ;;  %4936 = vmatpush.bf16.msra.mxu2 %v7739_v58 }
  0x67   :  { %v8362_v55 = vld [vmem:[%s15625_s1 + $0xee0] sm:$0xf]  ;;  %v23_v4 = vld [vmem:[%s15626_s0 + $0x10] sm:$0xff]  ;;  %v8235_v5 = vor.u32 %v10170_v54, %v8234_v52  ;;  %4949 = vmatpush.bf16.msra.mxu3 %v7867_v62 }
  0x68   :  { %v8490_v59 = vld [vmem:[%s15625_s1 + $0xfe0] sm:$0xf]  ;;  %v8363_v6 = vor.u32 %v10202_v56, %v8362_v55  ;;  %v10134_v8 = vld [vmem:[%s15625_s1 + $0xccc] sm:$0xf0]  ;;  %4955 = vmatpush.bf16.msrb.mxu0 %v8107_v63 }
  0x69   :  { %v8090_v3 = vld [vmem:[%s15625_s1 + $0xcc0] sm:$0xf]  ;;  %v10166_v10 = vld [vmem:[%s15625_s1 + $0xdcc] sm:$0xf0]  ;;  %v8491_v11 = vor.u32 %v10234_v60, %v8490_v59  ;;  %4968 = vmatpush.bf16.msrb.mxu1 %v8235_v5 }
  0x6a   :  { %v11219_v7 = vld [vmem:[#allocation1] sm:$0xff]  ;;  %v11230_v12 = vld [vmem:[#allocation1 + $0x12] sm:$0xff]  ;;  %v11232_v13 = vld [vmem:[#allocation1 + $0x9] sm:$0xff]  ;;  %v8091_v24 = vor.u32 %v10134_v8, %v8090_v3  ;;  %4981 = vmatpush.bf16.msrb.mxu2 %v8363_v6 }
  0x6b   :  { %v8218_v9 = vld [vmem:[%s15625_s1 + $0xdc0] sm:$0xf]  ;;  %v10198_v15 = vld [vmem:[%s15625_s1 + $0xecc] sm:$0xf0]  ;;  %4994 = vmatpush.bf16.msrb.mxu3 %v8491_v11  ;;  %4911 = vmatmul.bf16.vlgmr.msra.gmra.mxu0 %v11219_v7 }
  0x6c   :  { %v8346_v14 = vld [vmem:[%s15625_s1 + $0xec0] sm:$0xf]  ;;  %v10230_v18 = vld [vmem:[%s15625_s1 + $0xfcc] sm:$0xf0]  ;;  %v8219_v29 = vor.u32 %v10166_v10, %v8218_v9  ;;  %4937 = vmatmul.bf16.vlgmr.msra.gmra.mxu2 %v11230_v12  ;;  %4924 = vmatmul.bf16.vlgmr.msra.gmra.mxu1 %v11232_v13 }
  0x6d   :  { %v8474_v16 = vld [vmem:[%s15625_s1 + $0xfc0] sm:$0xf]  ;;  %v10130_v23 = vld [vmem:[%s15625_s1 + $0xcac] sm:$0xf0]  ;;  %v8347_v30 = vor.u32 %v10198_v15, %v8346_v14  ;;  %4956 = vmatpush.bf16.msrb.mxu0 %v8091_v24 }
  0x6e   :  { %v11243_v17 = vld [vmem:[#allocation1 + $0x1b] sm:$0xff]  ;;  %v10162_v27 = vld [vmem:[%s15625_s1 + $0xdac] sm:$0xf0]  ;;  %v8475_v34 = vor.u32 %v10230_v18, %v8474_v16  ;;  %4969 = vmatpush.bf16.msrb.mxu1 %v8219_v29 }
  0x6f   :  { %v8074_v19 = vld [vmem:[%s15625_s1 + $0xca0] sm:$0xf]  ;;  %v11264_v32 = vld [vmem:[#allocation1 + $0x2d] sm:$0xff]  ;;  %4950 = vmatmul.bf16.vlgmr.msra.gmra.mxu3 %v11243_v17  ;;  %4982 = vmatpush.bf16.msrb.mxu2 %v8347_v30 }
  0x70   :  { %v8202_v25 = vld [vmem:[%s15625_s1 + $0xda0] sm:$0xf]  ;;  %v10194_v36 = vld [vmem:[%s15625_s1 + $0xeac] sm:$0xf0]  ;;  %v8075_v39 = vor.u32 %v10130_v23, %v8074_v19  ;;  %4995 = vmatpush.bf16.msrb.mxu3 %v8475_v34 }
  0x71   :  { %v11266_v33 = vld [vmem:[#allocation1 + $0x3f] sm:$0xff]  ;;  %v10226_v38 = vld [vmem:[%s15625_s1 + $0xfac] sm:$0xf0]  ;;  %v8203_v40 = vor.u32 %v10162_v27, %v8202_v25 }
  0x72   :  { %v8330_v35 = vld [vmem:[%s15625_s1 + $0xea0] sm:$0xf]  ;;  %840 = vst [vmem:[#allocation1] ss:$9 sm:$0xff] %v23_v4  ;;  %v10126_v43 = vld [vmem:[%s15625_s1 + $0xc8c] sm:$0xf0]  ;;  %4957 = vmatpush.bf16.msrb.mxu0 %v8075_v39 }
  0x73   :  { %v8458_v37 = vld [vmem:[%s15625_s1 + $0xfa0] sm:$0xf]  ;;  %v8331_v41 = vor.u32 %v10194_v36, %v8330_v35  ;;  %v10158_v46 = vld [vmem:[%s15625_s1 + $0xd8c] sm:$0xf0]  ;;  %4970 = vmatpush.bf16.msrb.mxu1 %v8203_v40 }
  0x74   :  { %v8058_v42 = vld [vmem:[%s15625_s1 + $0xc80] sm:$0xf]  ;;  %v8459_v45 = vor.u32 %v10226_v38, %v8458_v37  ;;  %v10190_v48 = vld [vmem:[%s15625_s1 + $0xe8c] sm:$0xf0] }
  0x75   :  { %v8186_v44 = vld [vmem:[%s15625_s1 + $0xd80] sm:$0xf]  ;;  %v10222_v50 = vld [vmem:[%s15625_s1 + $0xf8c] sm:$0xf0]  ;;  %v8059_v51 = vor.u32 %v10126_v43, %v8058_v42  ;;  %4983 = vmatpush.bf16.msrb.mxu2 %v8331_v41 }
  0x76   :  { %v8314_v47 = vld [vmem:[%s15625_s1 + $0xe80] sm:$0xf]  ;;  %v8187_v52 = vor.u32 %v10158_v46, %v8186_v44  ;;  %v10122_v55 = vld [vmem:[%s15625_s1 + $0xc6c] sm:$0xf0]  ;;  %4996 = vmatpush.bf16.msrb.mxu3 %v8459_v45 }
  0x77   :  { %v8442_v49 = vld [vmem:[%s15625_s1 + $0xf80] sm:$0xf]  ;;  %v8315_v53 = vor.u32 %v10190_v48, %v8314_v47  ;;  %v10154_v58 = vld [vmem:[%s15625_s1 + $0xd6c] sm:$0xf0]  ;;  %4958 = vmatpush.bf16.msrb.mxu0 %v8059_v51 }
  0x78   :  { %v8042_v54 = vld [vmem:[%s15625_s1 + $0xc60] sm:$0xf]  ;;  %v8443_v57 = vor.u32 %v10222_v50, %v8442_v49  ;;  %v10186_v60 = vld [vmem:[%s15625_s1 + $0xe6c] sm:$0xf0]  ;;  %4971 = vmatpush.bf16.msrb.mxu1 %v8187_v52 }
  0x79   :  { %v8170_v56 = vld [vmem:[%s15625_s1 + $0xd60] sm:$0xf]  ;;  %v10218_v63 = vld [vmem:[%s15625_s1 + $0xf6c] sm:$0xf0]  ;;  %v8043_v3 = vor.u32 %v10122_v55, %v8042_v54  ;;  %4984 = vmatpush.bf16.msrb.mxu2 %v8315_v53 }
  0x7a   :  { %v8298_v59 = vld [vmem:[%s15625_s1 + $0xe60] sm:$0xf]  ;;  %v8171_v4 = vor.u32 %v10154_v58, %v8170_v56  ;;  %v10118_v8 = vld [vmem:[%s15625_s1 + $0xc4c] sm:$0xf0]  ;;  %4997 = vmatpush.bf16.msrb.mxu3 %v8443_v57 }
  0x7b   :  { %v8426_v62 = vld [vmem:[%s15625_s1 + $0xf60] sm:$0xf]  ;;  %v8299_v5 = vor.u32 %v10186_v60, %v8298_v59  ;;  %v10150_v11 = vld [vmem:[%s15625_s1 + $0xd4c] sm:$0xf0]  ;;  %4959 = vmatpush.bf16.msrb.mxu0 %v8043_v3 }
  0x7c   :  { %v8026_v6 = vld [vmem:[%s15625_s1 + $0xc40] sm:$0xf]  ;;  %v8427_v10 = vor.u32 %v10218_v63, %v8426_v62  ;;  %v10182_v15 = vld [vmem:[%s15625_s1 + $0xe4c] sm:$0xf0]  ;;  %4972 = vmatpush.bf16.msrb.mxu1 %v8171_v4 }
  0x7d   :  { %v8154_v9 = vld [vmem:[%s15625_s1 + $0xd40] sm:$0xf]  ;;  %v10214_v18 = vld [vmem:[%s15625_s1 + $0xf4c] sm:$0xf0]  ;;  %v8027_v19 = vor.u32 %v10118_v8, %v8026_v6  ;;  %4985 = vmatpush.bf16.msrb.mxu2 %v8299_v5 }
  0x7e   :  { %v8282_v14 = vld [vmem:[%s15625_s1 + $0xe40] sm:$0xf]  ;;  %v8155_v23 = vor.u32 %v10150_v11, %v8154_v9  ;;  %v10114_v27 = vld [vmem:[%s15625_s1 + $0xc2c] sm:$0xf0]  ;;  %4998 = vmatpush.bf16.msrb.mxu3 %v8427_v10 }
  0x7f   :  { %v8410_v16 = vld [vmem:[%s15625_s1 + $0xf40] sm:$0xf]  ;;  %v8283_v24 = vor.u32 %v10182_v15, %v8282_v14  ;;  %v10146_v34 = vld [vmem:[%s15625_s1 + $0xd2c] sm:$0xf0]  ;;  %4960 = vmatpush.bf16.msrb.mxu0 %v8027_v19 }
  0x80   :  { %v8010_v25 = vld [vmem:[%s15625_s1 + $0xc20] sm:$0xf]  ;;  %v8411_v30 = vor.u32 %v10214_v18, %v8410_v16  ;;  %v10178_v36 = vld [vmem:[%s15625_s1 + $0xe2c] sm:$0xf0]  ;;  %4973 = vmatpush.bf16.msrb.mxu1 %v8155_v23 }
  0x81   :  { %v8138_v29 = vld [vmem:[%s15625_s1 + $0xd20] sm:$0xf]  ;;  %v10210_v38 = vld [vmem:[%s15625_s1 + $0xf2c] sm:$0xf0]  ;;  %v8011_v39 = vor.u32 %v10114_v27, %v8010_v25  ;;  %4986 = vmatpush.bf16.msrb.mxu2 %v8283_v24 }
  0x82   :  { %v8266_v35 = vld [vmem:[%s15625_s1 + $0xe20] sm:$0xf]  ;;  %v10110_v41 = vld [vmem:[%s15625_s1 + $0xc0c] sm:$0xf0]  ;;  %v8139_v42 = vor.u32 %v10146_v34, %v8138_v29  ;;  %4999 = vmatpush.bf16.msrb.mxu3 %v8411_v30 }
  0x83   :  { %v8394_v37 = vld [vmem:[%s15625_s1 + $0xf20] sm:$0xf]  ;;  %v8267_v43 = vor.u32 %v10178_v36, %v8266_v35  ;;  %v10142_v45 = vld [vmem:[%s15625_s1 + $0xd0c] sm:$0xf0]  ;;  %4961 = vmatpush.bf16.msrb.mxu0 %v8011_v39 }
  0x84   :  { %v7994_v40 = vld [vmem:[%s15625_s1 + $0xc00] sm:$0xf]  ;;  %v8395_v47 = vor.u32 %v10210_v38, %v8394_v37  ;;  %v10174_v48 = vld [vmem:[%s15625_s1 + $0xe0c] sm:$0xf0]  ;;  %4974 = vmatpush.bf16.msrb.mxu1 %v8139_v42 }
  0x85   :  { %v8122_v44 = vld [vmem:[%s15625_s1 + $0xd00] sm:$0xf]  ;;  %v10206_v50 = vld [vmem:[%s15625_s1 + $0xf0c] sm:$0xf0]  ;;  %v7995_v54 = vor.u32 %v10110_v41, %v7994_v40  ;;  %4987 = vmatpush.bf16.msrb.mxu2 %v8267_v43 }
  0x86   :  { %v8250_v46 = vld [vmem:[%s15625_s1 + $0xe00] sm:$0xf]  ;;  %v10266_v52 = vld [vmem:[%s15625_s1 + $0x10ec] sm:$0xf0]  ;;  %v8123_v58 = vor.u32 %v10142_v45, %v8122_v44  ;;  %5000 = vmatpush.bf16.msrb.mxu3 %v8395_v47 }
  0x87   :  { %v8378_v49 = vld [vmem:[%s15625_s1 + $0xf00] sm:$0xf]  ;;  %v10298_v55 = vld [vmem:[%s15625_s1 + $0x11ec] sm:$0xf0]  ;;  %v8251_v59 = vor.u32 %v10174_v48, %v8250_v46  ;;  %4962 = vmatpush.bf16.msrb.mxu0 %v7995_v54 }
  0x88   :  { %v8618_v51 = vld [vmem:[%s15625_s1 + $0x10e0] sm:$0xf]  ;;  %v10330_v57 = vld [vmem:[%s15625_s1 + $0x12ec] sm:$0xf0]  ;;  %v8379_v63 = vor.u32 %v10206_v50, %v8378_v49  ;;  %4975 = vmatpush.bf16.msrb.mxu1 %v8123_v58 }
  0x89   :  { %v8746_v53 = vld [vmem:[%s15625_s1 + $0x11e0] sm:$0xf]  ;;  %v10362_v62 = vld [vmem:[%s15625_s1 + $0x13ec] sm:$0xf0]  ;;  %v8619_v3 = vor.u32 %v10266_v52, %v8618_v51  ;;  %4988 = vmatpush.bf16.msrb.mxu2 %v8251_v59 }
  0x8a   :  { %v8874_v56 = vld [vmem:[%s15625_s1 + $0x12e0] sm:$0xf]  ;;  %v8747_v4 = vor.u32 %v10298_v55, %v8746_v53  ;;  %v10262_v8 = vld [vmem:[%s15625_s1 + $0x10cc] sm:$0xf0]  ;;  %5001 = vmatpush.bf16.msrb.mxu3 %v8379_v63  ;;  %4963 = vmatmul.bf16.vlgmr.msrb.gmra.mxu0 %v11260_v28 }
  0x8b   :  { %v9002_v60 = vld [vmem:[%s15625_s1 + $0x13e0] sm:$0xf]  ;;  %v8875_v5 = vor.u32 %v10330_v57, %v8874_v56  ;;  %v10294_v11 = vld [vmem:[%s15625_s1 + $0x11cc] sm:$0xf0]  ;;  %5007 = vmatpush.bf16.msra.mxu0 %v8619_v3  ;;  %4976 = vmatmul.bf16.vlgmr.msrb.gmra.mxu1 %v11264_v32 }
  0x8c   :  { %v8602_v6 = vld [vmem:[%s15625_s1 + $0x10c0] sm:$0xf]  ;;  %v9003_v10 = vor.u32 %v10362_v62, %v9002_v60  ;;  %v10326_v15 = vld [vmem:[%s15625_s1 + $0x12cc] sm:$0xf0]  ;;  %5020 = vmatpush.bf16.msra.mxu1 %v8747_v4  ;;  %4989 = vmatmul.bf16.vlgmr.msrb.gmra.mxu2 %v11262_v31 }
  0x8d   :  { %v8730_v9 = vld [vmem:[%s15625_s1 + $0x11c0] sm:$0xf]  ;;  %v10358_v18 = vld [vmem:[%s15625_s1 + $0x13cc] sm:$0xf0]  ;;  %v8603_v19 = vor.u32 %v10262_v8, %v8602_v6  ;;  %5033 = vmatpush.bf16.msra.mxu2 %v8875_v5  ;;  %5002 = vmatmul.bf16.vlgmr.msrb.gmra.mxu3 %v11266_v33 }
  0x8e   :  { %v8858_v14 = vld [vmem:[%s15625_s1 + $0x12c0] sm:$0xf]  ;;  %v8731_v23 = vor.u32 %v10294_v11, %v8730_v9  ;;  %v10258_v27 = vld [vmem:[%s15625_s1 + $0x10ac] sm:$0xf0]  ;;  %5046 = vmatpush.bf16.msra.mxu3 %v9003_v10 }
  0x8f   :  { %v8986_v16 = vld [vmem:[%s15625_s1 + $0x13c0] sm:$0xf]  ;;  %v8859_v24 = vor.u32 %v10326_v15, %v8858_v14  ;;  %v10290_v34 = vld [vmem:[%s15625_s1 + $0x11ac] sm:$0xf0]  ;;  %5008 = vmatpush.bf16.msra.mxu0 %v8603_v19 }
  0x90   :  { %v8586_v25 = vld [vmem:[%s15625_s1 + $0x10a0] sm:$0xf]  ;;  %v8987_v30 = vor.u32 %v10358_v18, %v8986_v16  ;;  %v10322_v36 = vld [vmem:[%s15625_s1 + $0x12ac] sm:$0xf0]  ;;  %5021 = vmatpush.bf16.msra.mxu1 %v8731_v23 }
  0x91   :  { %v8714_v29 = vld [vmem:[%s15625_s1 + $0x11a0] sm:$0xf]  ;;  %v10354_v38 = vld [vmem:[%s15625_s1 + $0x13ac] sm:$0xf0]  ;;  %v8587_v39 = vor.u32 %v10258_v27, %v8586_v25  ;;  %5034 = vmatpush.bf16.msra.mxu2 %v8859_v24 }
  0x92   :  { %v8842_v35 = vld [vmem:[%s15625_s1 + $0x12a0] sm:$0xf]  ;;  %v8715_v40 = vor.u32 %v10290_v34, %v8714_v29  ;;  %v10254_v43 = vld [vmem:[%s15625_s1 + $0x108c] sm:$0xf0]  ;;  %5047 = vmatpush.bf16.msra.mxu3 %v8987_v30 }
  0x93   :  { %v8970_v37 = vld [vmem:[%s15625_s1 + $0x13a0] sm:$0xf]  ;;  %v8843_v41 = vor.u32 %v10322_v36, %v8842_v35  ;;  %v10286_v46 = vld [vmem:[%s15625_s1 + $0x118c] sm:$0xf0]  ;;  %5009 = vmatpush.bf16.msra.mxu0 %v8587_v39 }
  0x94   :  { %v8570_v42 = vld [vmem:[%s15625_s1 + $0x1080] sm:$0xf]  ;;  %v8971_v45 = vor.u32 %v10354_v38, %v8970_v37  ;;  %v10318_v48 = vld [vmem:[%s15625_s1 + $0x128c] sm:$0xf0]  ;;  %5022 = vmatpush.bf16.msra.mxu1 %v8715_v40 }
  0x95   :  { %v8698_v44 = vld [vmem:[%s15625_s1 + $0x1180] sm:$0xf]  ;;  %v10350_v50 = vld [vmem:[%s15625_s1 + $0x138c] sm:$0xf0]  ;;  %v8571_v51 = vor.u32 %v10254_v43, %v8570_v42  ;;  %5035 = vmatpush.bf16.msra.mxu2 %v8843_v41 }
  0x96   :  { %v8826_v47 = vld [vmem:[%s15625_s1 + $0x1280] sm:$0xf]  ;;  %v8699_v52 = vor.u32 %v10286_v46, %v8698_v44  ;;  %v10250_v55 = vld [vmem:[%s15625_s1 + $0x106c] sm:$0xf0]  ;;  %5048 = vmatpush.bf16.msra.mxu3 %v8971_v45 }
  0x97   :  { %v8954_v49 = vld [vmem:[%s15625_s1 + $0x1380] sm:$0xf]  ;;  %v8827_v53 = vor.u32 %v10318_v48, %v8826_v47  ;;  %v10282_v58 = vld [vmem:[%s15625_s1 + $0x116c] sm:$0xf0]  ;;  %5010 = vmatpush.bf16.msra.mxu0 %v8571_v51 }
  0x98   :  { %v8554_v54 = vld [vmem:[%s15625_s1 + $0x1060] sm:$0xf]  ;;  %v8955_v57 = vor.u32 %v10350_v50, %v8954_v49  ;;  %v10314_v60 = vld [vmem:[%s15625_s1 + $0x126c] sm:$0xf0]  ;;  %5023 = vmatpush.bf16.msra.mxu1 %v8699_v52 }
  0x99   :  { %v8682_v56 = vld [vmem:[%s15625_s1 + $0x1160] sm:$0xf]  ;;  %v10346_v63 = vld [vmem:[%s15625_s1 + $0x136c] sm:$0xf0]  ;;  %v8555_v3 = vor.u32 %v10250_v55, %v8554_v54  ;;  %5036 = vmatpush.bf16.msra.mxu2 %v8827_v53 }
  0x9a   :  { %v8810_v59 = vld [vmem:[%s15625_s1 + $0x1260] sm:$0xf]  ;;  %v8683_v4 = vor.u32 %v10282_v58, %v8682_v56  ;;  %v10246_v8 = vld [vmem:[%s15625_s1 + $0x104c] sm:$0xf0]  ;;  %5049 = vmatpush.bf16.msra.mxu3 %v8955_v57 }
  0x9b   :  { %v8938_v62 = vld [vmem:[%s15625_s1 + $0x1360] sm:$0xf]  ;;  %v8811_v5 = vor.u32 %v10314_v60, %v8810_v59  ;;  %v10278_v11 = vld [vmem:[%s15625_s1 + $0x114c] sm:$0xf0]  ;;  %5011 = vmatpush.bf16.msra.mxu0 %v8555_v3 }
  0x9c   :  { %v8538_v6 = vld [vmem:[%s15625_s1 + $0x1040] sm:$0xf]  ;;  %v8939_v10 = vor.u32 %v10346_v63, %v8938_v62  ;;  %v10310_v15 = vld [vmem:[%s15625_s1 + $0x124c] sm:$0xf0]  ;;  %5024 = vmatpush.bf16.msra.mxu1 %v8683_v4 }
  0x9d   :  { %v8666_v9 = vld [vmem:[%s15625_s1 + $0x1140] sm:$0xf]  ;;  %v10342_v18 = vld [vmem:[%s15625_s1 + $0x134c] sm:$0xf0]  ;;  %v8539_v19 = vor.u32 %v10246_v8, %v8538_v6  ;;  %5037 = vmatpush.bf16.msra.mxu2 %v8811_v5  ;;  %v24_v5 = vld [vmem:[%s15626_s0 + $0x18] sm:$0x1] }
  0x9e   :  { %v8794_v14 = vld [vmem:[%s15625_s1 + $0x1240] sm:$0xf]  ;;  %v8667_v23 = vor.u32 %v10278_v11, %v8666_v9  ;;  %v10242_v27 = vld [vmem:[%s15625_s1 + $0x102c] sm:$0xf0]  ;;  %5050 = vmatpush.bf16.msra.mxu3 %v8939_v10 }
  0x9f   :  { %v8922_v16 = vld [vmem:[%s15625_s1 + $0x1340] sm:$0xf]  ;;  %v8795_v24 = vor.u32 %v10310_v15, %v8794_v14  ;;  %v10274_v34 = vld [vmem:[%s15625_s1 + $0x112c] sm:$0xf0]  ;;  %5012 = vmatpush.bf16.msra.mxu0 %v8539_v19 }
  0xa0   :  { %v8522_v25 = vld [vmem:[%s15625_s1 + $0x1020] sm:$0xf]  ;;  %v8923_v30 = vor.u32 %v10342_v18, %v8922_v16  ;;  %v10306_v36 = vld [vmem:[%s15625_s1 + $0x122c] sm:$0xf0]  ;;  %5025 = vmatpush.bf16.msra.mxu1 %v8667_v23 }
  0xa1   :  { %v8650_v29 = vld [vmem:[%s15625_s1 + $0x1120] sm:$0xf]  ;;  %v10338_v38 = vld [vmem:[%s15625_s1 + $0x132c] sm:$0xf0]  ;;  %v8523_v39 = vor.u32 %v10242_v27, %v8522_v25  ;;  %5038 = vmatpush.bf16.msra.mxu2 %v8795_v24 }
  0xa2   :  { %v8778_v35 = vld [vmem:[%s15625_s1 + $0x1220] sm:$0xf]  ;;  %v10238_v41 = vld [vmem:[%s15625_s1 + $0x100c] sm:$0xf0]  ;;  %v8651_v42 = vor.u32 %v10274_v34, %v8650_v29  ;;  %5051 = vmatpush.bf16.msra.mxu3 %v8923_v30 }
  0xa3   :  { %v8906_v37 = vld [vmem:[%s15625_s1 + $0x1320] sm:$0xf]  ;;  %v8779_v43 = vor.u32 %v10306_v36, %v8778_v35  ;;  %v10270_v45 = vld [vmem:[%s15625_s1 + $0x110c] sm:$0xf0]  ;;  %5013 = vmatpush.bf16.msra.mxu0 %v8523_v39 }
  0xa4   :  { %v8506_v40 = vld [vmem:[%s15625_s1 + $0x1000] sm:$0xf]  ;;  %v8907_v47 = vor.u32 %v10338_v38, %v8906_v37  ;;  %v10302_v48 = vld [vmem:[%s15625_s1 + $0x120c] sm:$0xf0]  ;;  %5026 = vmatpush.bf16.msra.mxu1 %v8651_v42  ;;  %v11671_v37 = vld [vmem:[#allocation1 + $0x24] sm:$0xff] }
  0xa5   :  { %v8634_v44 = vld [vmem:[%s15625_s1 + $0x1100] sm:$0xf]  ;;  %v10334_v50 = vld [vmem:[%s15625_s1 + $0x130c] sm:$0xf0]  ;;  %v8507_v54 = vor.u32 %v10238_v41, %v8506_v40  ;;  %5039 = vmatpush.bf16.msra.mxu2 %v8779_v43  ;;  %v11673_v40 = vld [vmem:[#allocation1 + $0x36] sm:$0xff] }
  0xa6   :  { %v8762_v46 = vld [vmem:[%s15625_s1 + $0x1200] sm:$0xf]  ;;  %v10394_v52 = vld [vmem:[%s15625_s1 + $0x14ec] sm:$0xf0]  ;;  %v8635_v58 = vor.u32 %v10270_v45, %v8634_v44  ;;  %5052 = vmatpush.bf16.msra.mxu3 %v8907_v47 }
  0xa7   :  { %v8890_v49 = vld [vmem:[%s15625_s1 + $0x1300] sm:$0xf]  ;;  %v10426_v55 = vld [vmem:[%s15625_s1 + $0x15ec] sm:$0xf0]  ;;  %v8763_v59 = vor.u32 %v10302_v48, %v8762_v46  ;;  %5014 = vmatpush.bf16.msra.mxu0 %v8507_v54 }
  0xa8   :  { %v9130_v51 = vld [vmem:[%s15625_s1 + $0x14e0] sm:$0xf]  ;;  %v10458_v57 = vld [vmem:[%s15625_s1 + $0x16ec] sm:$0xf0]  ;;  %v8891_v63 = vor.u32 %v10334_v50, %v8890_v49  ;;  %5027 = vmatpush.bf16.msra.mxu1 %v8635_v58 }
  0xa9   :  { %v9258_v53 = vld [vmem:[%s15625_s1 + $0x15e0] sm:$0xf]  ;;  %v10490_v62 = vld [vmem:[%s15625_s1 + $0x17ec] sm:$0xf0]  ;;  %v9131_v3 = vor.u32 %v10394_v52, %v9130_v51  ;;  %5040 = vmatpush.bf16.msra.mxu2 %v8763_v59 }
  0xaa   :  { %v9386_v56 = vld [vmem:[%s15625_s1 + $0x16e0] sm:$0xf]  ;;  %v9259_v6 = vor.u32 %v10426_v55, %v9258_v53  ;;  %v10390_v10 = vld [vmem:[%s15625_s1 + $0x14cc] sm:$0xf0]  ;;  %5053 = vmatpush.bf16.msra.mxu3 %v8891_v63 }
  0xab   :  { %v9514_v60 = vld [vmem:[%s15625_s1 + $0x17e0] sm:$0xf]  ;;  %v9387_v8 = vor.u32 %v10458_v57, %v9386_v56  ;;  %v10422_v14 = vld [vmem:[%s15625_s1 + $0x15cc] sm:$0xf0]  ;;  %5059 = vmatpush.bf16.msrb.mxu0 %v9131_v3 }
  0xac   :  { %v9114_v4 = vld [vmem:[%s15625_s1 + $0x14c0] sm:$0xf]  ;;  %v9515_v15 = vor.u32 %v10490_v62, %v9514_v60  ;;  %v11641_v16 = vld [vmem:[#allocation1 + $0x12] sm:$0xff]  ;;  %v11643_v18 = vld [vmem:[#allocation1 + $0x9] sm:$0xff]  ;;  %5072 = vmatpush.bf16.msrb.mxu1 %v9259_v6 }
  0xad   :  { %v11630_v9 = vld [vmem:[#allocation1] sm:$0xff]  ;;  %v10454_v23 = vld [vmem:[%s15625_s1 + $0x16cc] sm:$0xf0]  ;;  %v9115_v34 = vor.u32 %v10390_v10, %v9114_v4  ;;  %5085 = vmatpush.bf16.msrb.mxu2 %v9387_v8  ;;  %5028 = vmatmul.bf16.vlgmr.msra.gmra.mxu1 %v11643_v18 }
  0xae   :  { %v9242_v11 = vld [vmem:[%s15625_s1 + $0x15c0] sm:$0xf]  ;;  %v10486_v27 = vld [vmem:[%s15625_s1 + $0x17cc] sm:$0xf0]  ;;  %5098 = vmatpush.bf16.msrb.mxu3 %v9515_v15  ;;  %5015 = vmatmul.bf16.vlgmr.msra.gmra.mxu0 %v11630_v9 }
  0xaf   :  { %v9370_v19 = vld [vmem:[%s15625_s1 + $0x16c0] sm:$0xf]  ;;  %v10386_v30 = vld [vmem:[%s15625_s1 + $0x14ac] sm:$0xf0]  ;;  %v9243_v38 = vor.u32 %v10422_v14, %v9242_v11  ;;  %5041 = vmatmul.bf16.vlgmr.msra.gmra.mxu2 %v11641_v16  ;;  %5060 = vmatpush.bf16.msrb.mxu0 %v9115_v34 }
  0xb0   :  { %v9498_v24 = vld [vmem:[%s15625_s1 + $0x17c0] sm:$0xf]  ;;  %v10418_v36 = vld [vmem:[%s15625_s1 + $0x15ac] sm:$0xf0]  ;;  %v9371_v39 = vor.u32 %v10454_v23, %v9370_v19 }
  0xb1   :  { %v11654_v25 = vld [vmem:[#allocation1 + $0x1b] sm:$0xff]  ;;  %v11675_v41 = vld [vmem:[#allocation1 + $0x2d] sm:$0xff]  ;;  %v9499_v43 = vor.u32 %v10486_v27, %v9498_v24  ;;  %5073 = vmatpush.bf16.msrb.mxu1 %v9243_v38 }
  0xb2   :  { %v9098_v29 = vld [vmem:[%s15625_s1 + $0x14a0] sm:$0xf]  ;;  %v10450_v45 = vld [vmem:[%s15625_s1 + $0x16ac] sm:$0xf0]  ;;  %5054 = vmatmul.bf16.vlgmr.msra.gmra.mxu3 %v11654_v25  ;;  %5086 = vmatpush.bf16.msrb.mxu2 %v9371_v39 }
  0xb3   :  { %v9226_v35 = vld [vmem:[%s15625_s1 + $0x15a0] sm:$0xf]  ;;  %v10482_v47 = vld [vmem:[%s15625_s1 + $0x17ac] sm:$0xf0]  ;;  %v9099_v48 = vor.u32 %v10386_v30, %v9098_v29  ;;  %5099 = vmatpush.bf16.msrb.mxu3 %v9499_v43 }
  0xb4   :  { %v11677_v42 = vld [vmem:[#allocation1 + $0x3f] sm:$0xff]  ;;  %v9227_v49 = vor.u32 %v10418_v36, %v9226_v35  ;;  %v10382_v52 = vld [vmem:[%s15625_s1 + $0x148c] sm:$0xf0] }
  0xb5   :  { %v9354_v44 = vld [vmem:[%s15625_s1 + $0x16a0] sm:$0xf]  ;;  %850 = vst [vmem:[#allocation1] ss:$9 sm:$0xff] %v24_v5  ;;  %v10414_v55 = vld [vmem:[%s15625_s1 + $0x158c] sm:$0xf0]  ;;  %5061 = vmatpush.bf16.msrb.mxu0 %v9099_v48 }
  0xb6   :  { %v9482_v46 = vld [vmem:[%s15625_s1 + $0x17a0] sm:$0xf]  ;;  %v9355_v50 = vor.u32 %v10450_v45, %v9354_v44  ;;  %v10446_v57 = vld [vmem:[%s15625_s1 + $0x168c] sm:$0xf0]  ;;  %5074 = vmatpush.bf16.msrb.mxu1 %v9227_v49 }
  0xb7   :  { %v9082_v51 = vld [vmem:[%s15625_s1 + $0x1480] sm:$0xf]  ;;  %v9483_v54 = vor.u32 %v10482_v47, %v9482_v46  ;;  %v10478_v59 = vld [vmem:[%s15625_s1 + $0x178c] sm:$0xf0]  ;;  %v4808_v47 = vpop.f32.mrf.mxu0 }
  0xb8   :  { %v9210_v53 = vld [vmem:[%s15625_s1 + $0x1580] sm:$0xf]  ;;  %v9083_v60 = vor.u32 %v10382_v52, %v9082_v51  ;;  %5087 = vmatpush.bf16.msrb.mxu2 %v9355_v50  ;;  %v10378_v4 = vld [vmem:[%s15625_s1 + $0x146c] sm:$0xf0] }
  0xb9   :  { %v9338_v56 = vld [vmem:[%s15625_s1 + $0x1680] sm:$0xf]  ;;  %v9211_v63 = vor.u32 %v10414_v55, %v9210_v53  ;;  %v10410_v6 = vld [vmem:[%s15625_s1 + $0x156c] sm:$0xf0]  ;;  %5100 = vmatpush.bf16.msrb.mxu3 %v9483_v54  ;;  %v4821_v54 = vpop.f32.mrf.mxu1 }
  0xba   :  { %v9466_v58 = vld [vmem:[%s15625_s1 + $0x1780] sm:$0xf]  ;;  %v9339_v3 = vor.u32 %v10446_v57, %v9338_v56  ;;  %v10442_v11 = vld [vmem:[%s15625_s1 + $0x166c] sm:$0xf0]  ;;  %5062 = vmatpush.bf16.msrb.mxu0 %v9083_v60 }
  0xbb   :  { %v9066_v62 = vld [vmem:[%s15625_s1 + $0x1460] sm:$0xf]  ;;  %v9467_v8 = vor.u32 %v10478_v59, %v9466_v58  ;;  %v10474_v19 = vld [vmem:[%s15625_s1 + $0x176c] sm:$0xf0]  ;;  %5075 = vmatpush.bf16.msrb.mxu1 %v9211_v63 }
  0xbc   :  { %v9194_v5 = vld [vmem:[%s15625_s1 + $0x1560] sm:$0xf]  ;;  %v9067_v23 = vor.u32 %v10378_v4, %v9066_v62  ;;  %5088 = vmatpush.bf16.msrb.mxu2 %v9339_v3  ;;  %v10374_v30 = vld [vmem:[%s15625_s1 + $0x144c] sm:$0xf0] }
  0xbd   :  { %v9322_v10 = vld [vmem:[%s15625_s1 + $0x1660] sm:$0xf]  ;;  %v9195_v27 = vor.u32 %v10410_v6, %v9194_v5  ;;  %5101 = vmatpush.bf16.msrb.mxu3 %v9467_v8  ;;  %v10406_v38 = vld [vmem:[%s15625_s1 + $0x154c] sm:$0xf0] }
  0xbe   :  { %v809_v14 = vld [vmem:[%s15627_s2] sm:$0xf]  ;;  %v9323_v29 = vor.u32 %v10442_v11, %v9322_v10  ;;  %v10438_v43 = vld [vmem:[%s15625_s1 + $0x164c] sm:$0xf0]  ;;  %5063 = vmatpush.bf16.msrb.mxu0 %v9067_v23 }
  0xbf   :  { %v9450_v15 = vld [vmem:[%s15625_s1 + $0x1760] sm:$0xf]  ;;  %v811_v35 = vperm.slane %v809_v14, 0  ;;  %v10470_v45 = vld [vmem:[%s15625_s1 + $0x174c] sm:$0xf0]  ;;  %5076 = vmatpush.bf16.msrb.mxu1 %v9195_v27  ;;  %v4834_v14 = vpop.f32.mrf.mxu2 }
  0xc0   :  { %v9050_v24 = vld [vmem:[%s15625_s1 + $0x1440] sm:$0xf]  ;;  %v9451_v36 = vor.u32 %v10474_v19, %v9450_v15  ;;  %5089 = vmatpush.bf16.msrb.mxu2 %v9323_v29  ;;  %v10370_v51 = vld [vmem:[%s15625_s1 + $0x142c] sm:$0xf0]  ;;  %v4847_v29 = vpop.f32.mrf.mxu3 }
  0xc1   :  { %v9178_v34 = vld [vmem:[%s15625_s1 + $0x1540] sm:$0xf]  ;;  %v9051_v46 = vor.u32 %v10374_v30, %v9050_v24  ;;  %v4809_v53 = vadd.f32 %v4808_v47, %v811_v35  ;;  %v10402_v56 = vld [vmem:[%s15625_s1 + $0x152c] sm:$0xf0]  ;;  %v9752_v35 = vld [vmem:[%s15625_s1 + $0xe4] sm:$0xf] }
  0xc2   :  { %v9306_v39 = vld [vmem:[%s15625_s1 + $0x1640] sm:$0xf]  ;;  %v9179_v48 = vor.u32 %v10406_v38, %v9178_v34  ;;  %5102 = vmatpush.bf16.msrb.mxu3 %v9451_v36  ;;  %v10434_v58 = vld [vmem:[%s15625_s1 + $0x162c] sm:$0xf0]  ;;  %v6572_v38 = vld [vmem:[%s15625_s1 + $0xf0] sm:$0xf0] }
  0xc3   :  { %v9434_v44 = vld [vmem:[%s15625_s1 + $0x1740] sm:$0xf]  ;;  %v9307_v49 = vor.u32 %v10438_v43, %v9306_v39  ;;  %v10466_v60 = vld [vmem:[%s15625_s1 + $0x172c] sm:$0xf0]  ;;  %v4822_v62 = vadd.f32 %v4821_v54, %v4809_v53  ;;  %5064 = vmatpush.bf16.msrb.mxu0 %v9051_v46  ;;  %v9784_v39 = vld [vmem:[%s15625_s1 + $0x1e4] sm:$0xf]  ;;  %v6575_v53 = vor.u32 %v9752_v35, %v6572_v38 }
  0xc4   :  { %v9034_v50 = vld [vmem:[%s15625_s1 + $0x1420] sm:$0xf]  ;;  %v9435_v55 = vor.u32 %v10470_v45, %v9434_v44  ;;  %v10366_v4 = vld [vmem:[%s15625_s1 + $0x140c] sm:$0xf0]  ;;  %5077 = vmatpush.bf16.msrb.mxu1 %v9179_v48  ;;  %v6700_v43 = vld [vmem:[%s15625_s1 + $0x1f0] sm:$0xf0]  ;;  %v4810_v45 = vpop.f32.mrf.mxu0 }
  0xc5   :  { %v9162_v52 = vld [vmem:[%s15625_s1 + $0x1520] sm:$0xf]  ;;  %v9035_v63 = vor.u32 %v10370_v51, %v9034_v50  ;;  %5090 = vmatpush.bf16.msrb.mxu2 %v9307_v49  ;;  %v10398_v10 = vld [vmem:[%s15625_s1 + $0x150c] sm:$0xf0]  ;;  %v4835_v27 = vadd.f32 %v4834_v14, %v4822_v62  ;;  %v9816_v48 = vld [vmem:[%s15625_s1 + $0x2e4] sm:$0xf]  ;;  %v4823_v50 = vpop.f32.mrf.mxu1  ;;  %v6703_v54 = vor.u32 %v9784_v39, %v6700_v43 }
  0xc6   :  { %v9290_v57 = vld [vmem:[%s15625_s1 + $0x1620] sm:$0xf]  ;;  %v9163_v5 = vor.u32 %v10402_v56, %v9162_v52  ;;  %5103 = vmatpush.bf16.msrb.mxu3 %v9435_v55  ;;  %v10430_v19 = vld [vmem:[%s15625_s1 + $0x160c] sm:$0xf0]  ;;  %v6828_v49 = vld [vmem:[%s15625_s1 + $0x2f0] sm:$0xf0] }
  0xc7   :  { %v9418_v59 = vld [vmem:[%s15625_s1 + $0x1720] sm:$0xf]  ;;  %v9291_v6 = vor.u32 %v10434_v58, %v9290_v57  ;;  %v10462_v24 = vld [vmem:[%s15625_s1 + $0x170c] sm:$0xf0]  ;;  %5065 = vmatpush.bf16.msrb.mxu0 %v9035_v63  ;;  %v11836_v44 = vadd.f32 %v4847_v29, %v4835_v27  ;;  %v9748_v57 = vld [vmem:[%s15625_s1 + $0xc4] sm:$0xf]  ;;  %v6831_v58 = vor.u32 %v9816_v48, %v6828_v49 }
  0xc8   :  { %v9018_v3 = vld [vmem:[%s15625_s1 + $0x1400] sm:$0xf]  ;;  %v9419_v15 = vor.u32 %v10466_v60, %v9418_v59  ;;  %v10506_v34 = vld [vmem:[%s15625_s1 + $0x186c] sm:$0xf0]  ;;  %5078 = vmatpush.bf16.msrb.mxu1 %v9163_v5  ;;  %v6556_v59 = vld [vmem:[%s15625_s1 + $0xd0] sm:$0xf0] }
  0xc9   :  { %v9146_v8 = vld [vmem:[%s15625_s1 + $0x1500] sm:$0xf]  ;;  %v9019_v36 = vor.u32 %v10366_v4, %v9018_v3  ;;  %5091 = vmatpush.bf16.msrb.mxu2 %v9291_v6  ;;  %v10502_v56 = vld [vmem:[%s15625_s1 + $0x184c] sm:$0xf0]  ;;  %v9780_v60 = vld [vmem:[%s15625_s1 + $0x1c4] sm:$0xf]  ;;  %v4836_v4 = vpop.f32.mrf.mxu2  ;;  %v4849_v6 = vpop.f32.mrf.mxu3 }
  0xca   :  { %v9274_v11 = vld [vmem:[%s15625_s1 + $0x1600] sm:$0xf]  ;;  %v9147_v46 = vor.u32 %v10398_v10, %v9146_v8  ;;  %5104 = vmatpush.bf16.msrb.mxu3 %v9419_v15  ;;  %v6684_v62 = vld [vmem:[%s15625_s1 + $0x1d0] sm:$0xf0]  ;;  %v9812_v63 = vld [vmem:[%s15625_s1 + $0x2c4] sm:$0xf]  ;;  %v6559_v8 = vor.u32 %v9748_v57, %v6556_v59 }
  0xcb   :  { %v9402_v23 = vld [vmem:[%s15625_s1 + $0x1700] sm:$0xf]  ;;  %v9275_v47 = vor.u32 %v10430_v19, %v9274_v11  ;;  %5066 = vmatpush.bf16.msrb.mxu0 %v9019_v36  ;;  %v6812_v3 = vld [vmem:[%s15625_s1 + $0x2d0] sm:$0xf0]  ;;  %v6687_v10 = vor.u32 %v9780_v60, %v6684_v62  ;;  %v10498_v14 = vld [vmem:[%s15625_s1 + $0x182c] sm:$0xf0] }
  0xcc   :  { %v9578_v30 = vld [vmem:[%s15625_s1 + $0x1860] sm:$0xf]  ;;  %v9403_v51 = vor.u32 %v10462_v24, %v9402_v23  ;;  %5079 = vmatpush.bf16.msrb.mxu1 %v9147_v46  ;;  %v9744_v15 = vld [vmem:[%s15625_s1 + $0xa4] sm:$0xf]  ;;  %v6815_v19 = vor.u32 %v9812_v63, %v6812_v3  ;;  %v6540_v23 = vld [vmem:[%s15625_s1 + $0xb0] sm:$0xf0] }
  0xcd   :  { %v9579_v52 = vor.u32 %v10506_v34, %v9578_v30  ;;  %v9562_v55 = vld [vmem:[%s15625_s1 + $0x1840] sm:$0xf]  ;;  %5092 = vmatpush.bf16.msrb.mxu2 %v9275_v47  ;;  %v9776_v24 = vld [vmem:[%s15625_s1 + $0x1a4] sm:$0xf]  ;;  %v6668_v27 = vld [vmem:[%s15625_s1 + $0x1b0] sm:$0xf0]  ;;  %v6543_v36 = vor.u32 %v9744_v15, %v6540_v23  ;;  %v4873_v60 = vpop.f32.mrf.mxu1 }
  0xce   :  { %5105 = vmatpush.bf16.msrb.mxu3 %v9403_v51  ;;  %v9563_v5 = vor.u32 %v10502_v56, %v9562_v55  ;;  %v9546_v11 = vld [vmem:[%s15625_s1 + $0x1820] sm:$0xf]  ;;  %5067 = vmatmul.bf16.vlgmr.msrb.gmra.mxu0 %v11671_v37  ;;  %v9808_v29 = vld [vmem:[%s15625_s1 + $0x2a4] sm:$0xf]  ;;  %v6796_v30 = vld [vmem:[%s15625_s1 + $0x2b0] sm:$0xf0]  ;;  %v6671_v38 = vor.u32 %v9776_v24, %v6668_v27 }
  0xcf   :  { %5115 = vmatpush.bf16.msra.mxu0 %v9579_v52  ;;  %5080 = vmatmul.bf16.vlgmr.msrb.gmra.mxu1 %v11675_v41  ;;  %v9547_v34 = vor.u32 %v10498_v14, %v9546_v11  ;;  %v9530_v35 = vld [vmem:[%s15625_s1 + $0x1800] sm:$0xf]  ;;  %v10494_v39 = vld [vmem:[%s15625_s1 + $0x180c] sm:$0xf0]  ;;  %v9740_v43 = vld [vmem:[%s15625_s1 + $0x84] sm:$0xf]  ;;  %v6799_v46 = vor.u32 %v9808_v29, %v6796_v30 }
  0xd0   :  { %5124 = vmatpush.bf16.msra.mxu1 %v6575_v53  ;;  %5093 = vmatmul.bf16.vlgmr.msrb.gmra.mxu2 %v11673_v40  ;;  %v6524_v45 = vld [vmem:[%s15625_s1 + $0x90] sm:$0xf0]  ;;  %v9772_v47 = vld [vmem:[%s15625_s1 + $0x184] sm:$0xf]  ;;  %v9531_v53 = vor.u32 %v10494_v39, %v9530_v35 }
  0xd1   :  { %5137 = vmatpush.bf16.msra.mxu2 %v6703_v54  ;;  %5106 = vmatmul.bf16.vlgmr.msrb.gmra.mxu3 %v11677_v42  ;;  %v6652_v48 = vld [vmem:[%s15625_s1 + $0x190] sm:$0xf0]  ;;  %v9804_v49 = vld [vmem:[%s15625_s1 + $0x284] sm:$0xf]  ;;  %v4860_v54 = vpop.f32.mrf.mxu0  ;;  %v6527_v55 = vor.u32 %v9740_v43, %v6524_v45  ;;  %v4886_v23 = vpop.f32.mrf.mxu2 }
  0xd2   :  { %5150 = vmatpush.bf16.msra.mxu3 %v6831_v58  ;;  %v6780_v50 = vld [vmem:[%s15625_s1 + $0x290] sm:$0xf0]  ;;  %v9848_v51 = vld [vmem:[%s15625_s1 + $0x3e4] sm:$0xf]  ;;  %v6655_v56 = vor.u32 %v9772_v47, %v6652_v48  ;;  %v4861_v59 = vadd.f32 %v4860_v54, %v11836_v44 }
  0xd3   :  { %5116 = vmatpush.bf16.msra.mxu0 %v9563_v5  ;;  %v6956_v52 = vld [vmem:[%s15625_s1 + $0x3f0] sm:$0xf0]  ;;  %v9736_v57 = vld [vmem:[%s15625_s1 + $0x64] sm:$0xf]  ;;  %v6783_v62 = vor.u32 %v9804_v49, %v6780_v50 }
  0xd4   :  { %5125 = vmatpush.bf16.msra.mxu1 %v6559_v8  ;;  %v6508_v58 = vld [vmem:[%s15625_s1 + $0x70] sm:$0xf0]  ;;  %v6959_v63 = vor.u32 %v9848_v51, %v6956_v52  ;;  %v9768_v3 = vld [vmem:[%s15625_s1 + $0x164] sm:$0xf] }
  0xd5   :  { %5138 = vmatpush.bf16.msra.mxu2 %v6687_v10  ;;  %v6636_v4 = vld [vmem:[%s15625_s1 + $0x170] sm:$0xf0]  ;;  %v9800_v5 = vld [vmem:[%s15625_s1 + $0x264] sm:$0xf]  ;;  %v4874_v10 = vadd.f32 %v4873_v60, %v4861_v59  ;;  %v6511_v11 = vor.u32 %v9736_v57, %v6508_v58  ;;  %v4875_v52 = vpop.f32.mrf.mxu1 }
  0xd6   :  { %5151 = vmatpush.bf16.msra.mxu3 %v6815_v19  ;;  %v6764_v44 = vld [vmem:[%s15625_s1 + $0x270] sm:$0xf0]  ;;  %v9844_v6 = vld [vmem:[%s15625_s1 + $0x3c4] sm:$0xf]  ;;  %v6639_v14 = vor.u32 %v9768_v3, %v6636_v4 }
  0xd7   :  { %5117 = vmatpush.bf16.msra.mxu0 %v9547_v34  ;;  %v6940_v8 = vld [vmem:[%s15625_s1 + $0x3d0] sm:$0xf0]  ;;  %v9732_v15 = vld [vmem:[%s15625_s1 + $0x44] sm:$0xf]  ;;  %v6767_v24 = vor.u32 %v9800_v5, %v6764_v44  ;;  %v4887_v35 = vadd.f32 %v4886_v23, %v4874_v10 }
  0xd8   :  { %5126 = vmatpush.bf16.msra.mxu1 %v6543_v36  ;;  %v6492_v19 = vld [vmem:[%s15625_s1 + $0x50] sm:$0xf0]  ;;  %v6943_v27 = vor.u32 %v9844_v6, %v6940_v8  ;;  %v9764_v29 = vld [vmem:[%s15625_s1 + $0x144] sm:$0xf]  ;;  %v4899_v36 = vpop.f32.mrf.mxu3 }
  0xd9   :  { %5139 = vmatpush.bf16.msra.mxu2 %v6671_v38  ;;  %v6620_v30 = vld [vmem:[%s15625_s1 + $0x150] sm:$0xf0]  ;;  %v9796_v34 = vld [vmem:[%s15625_s1 + $0x244] sm:$0xf]  ;;  %v4862_v47 = vpop.f32.mrf.mxu0  ;;  %v6495_v48 = vor.u32 %v9732_v15, %v6492_v19  ;;  %v4888_v44 = vpop.f32.mrf.mxu2 }
  0xda   :  { %5152 = vmatpush.bf16.msra.mxu3 %v6799_v46  ;;  %v6748_v38 = vld [vmem:[%s15625_s1 + $0x250] sm:$0xf0]  ;;  %v9840_v39 = vld [vmem:[%s15625_s1 + $0x3a4] sm:$0xf]  ;;  %v11975_v46 = vadd.f32 %v4899_v36, %v4887_v35  ;;  %v6623_v49 = vor.u32 %v9764_v29, %v6620_v30 }
  0xdb   :  { %5118 = vmatpush.bf16.msra.mxu0 %v9531_v53  ;;  %v6924_v43 = vld [vmem:[%s15625_s1 + $0x3b0] sm:$0xf0]  ;;  %v851_v45 = vld [vmem:[#allocation1] sm:$0xff]  ;;  %v6751_v53 = vor.u32 %v9796_v34, %v6748_v38 }
  0xdc   :  { %5127 = vmatpush.bf16.msra.mxu1 %v6527_v55  ;;  %v9728_v50 = vld [vmem:[%s15625_s1 + $0x24] sm:$0xf]  ;;  %v6476_v51 = vld [vmem:[%s15625_s1 + $0x30] sm:$0xf0]  ;;  %v6927_v54 = vor.u32 %v9840_v39, %v6924_v43 }
  0xdd   :  { %5140 = vmatpush.bf16.msra.mxu2 %v6655_v56  ;;  %v9760_v55 = vld [vmem:[%s15625_s1 + $0x124] sm:$0xf]  ;;  %v6604_v56 = vld [vmem:[%s15625_s1 + $0x130] sm:$0xf0] }
  0xde   :  { %5153 = vmatpush.bf16.msra.mxu3 %v6783_v62  ;;  %v9792_v57 = vld [vmem:[%s15625_s1 + $0x224] sm:$0xf]  ;;  %9592 = vmatmul.msk.bf16.vlgmr.msra.gmra.mxu0 %vm4796_vm0, %v851_v45  ;;  %v6732_v58 = vld [vmem:[%s15625_s1 + $0x230] sm:$0xf0]  ;;  %v6479_v62 = vor.u32 %v9728_v50, %v6476_v51 }
  0xdf   :  { %5163 = vmatpush.bf16.msrb.mxu0 %v6959_v63  ;;  %v9836_v59 = vld [vmem:[%s15625_s1 + $0x384] sm:$0xf]  ;;  %v6908_v60 = vld [vmem:[%s15625_s1 + $0x390] sm:$0xf0]  ;;  %v6607_v63 = vor.u32 %v9760_v55, %v6604_v56  ;;  %v6735_v6 = vor.u32 %v9792_v57, %v6732_v58 }
  0xe0   :  { %5128 = vmatpush.bf16.msra.mxu1 %v6511_v11  ;;  %v9724_v3 = vld [vmem:[%s15625_s1 + $0x4] sm:$0xf]  ;;  %v6460_v4 = vld [vmem:[%s15625_s1 + $0x10] sm:$0xf0]  ;;  %v6911_v8 = vor.u32 %v9836_v59, %v6908_v60  ;;  %v4901_v15 = vpop.f32.mrf.mxu3 }
  0xe1   :  { %5141 = vmatpush.bf16.msra.mxu2 %v6639_v14  ;;  %v9756_v5 = vld [vmem:[%s15625_s1 + $0x104] sm:$0xf]  ;;  %v6588_v10 = vld [vmem:[%s15625_s1 + $0x110] sm:$0xf0]  ;;  %v6463_v34 = vor.u32 %v9724_v3, %v6460_v4 }
  0xe2   :  { %5154 = vmatpush.bf16.msra.mxu3 %v6767_v24  ;;  %v9788_v11 = vld [vmem:[%s15625_s1 + $0x204] sm:$0xf]  ;;  %v6716_v14 = vld [vmem:[%s15625_s1 + $0x210] sm:$0xf0]  ;;  %v6591_v35 = vor.u32 %v9756_v5, %v6588_v10 }
  0xe3   :  { %5164 = vmatpush.bf16.msrb.mxu0 %v6943_v27  ;;  %v9832_v19 = vld [vmem:[%s15625_s1 + $0x364] sm:$0xf]  ;;  %v6892_v23 = vld [vmem:[%s15625_s1 + $0x370] sm:$0xf0]  ;;  %v6719_v39 = vor.u32 %v9788_v11, %v6716_v14 }
  0xe4   :  { %5129 = vmatpush.bf16.msra.mxu1 %v6495_v48  ;;  %v9880_v24 = vld [vmem:[%s15625_s1 + $0x4e4] sm:$0xf]  ;;  %v7084_v27 = vld [vmem:[%s15625_s1 + $0x4f0] sm:$0xf0]  ;;  %v6895_v43 = vor.u32 %v9832_v19, %v6892_v23 }
  0xe5   :  { %5142 = vmatpush.bf16.msra.mxu2 %v6623_v49  ;;  %v9912_v29 = vld [vmem:[%s15625_s1 + $0x5e4] sm:$0xf]  ;;  %v7212_v30 = vld [vmem:[%s15625_s1 + $0x5f0] sm:$0xf0]  ;;  %v7087_v45 = vor.u32 %v9880_v24, %v7084_v27 }
  0xe6   :  { %5155 = vmatpush.bf16.msra.mxu3 %v6751_v53  ;;  %v9944_v36 = vld [vmem:[%s15625_s1 + $0x6e4] sm:$0xf]  ;;  %v7340_v38 = vld [vmem:[%s15625_s1 + $0x6f0] sm:$0xf0]  ;;  %v7215_v47 = vor.u32 %v9912_v29, %v7212_v30 }
  0xe7   :  { %5165 = vmatpush.bf16.msrb.mxu0 %v6927_v54  ;;  %v9828_v48 = vld [vmem:[%s15625_s1 + $0x344] sm:$0xf]  ;;  %v6876_v49 = vld [vmem:[%s15625_s1 + $0x350] sm:$0xf0]  ;;  %v7343_v51 = vor.u32 %v9944_v36, %v7340_v38 }
  0xe8   :  { %5130 = vmatpush.bf16.msra.mxu1 %v6479_v62  ;;  %v9876_v50 = vld [vmem:[%s15625_s1 + $0x4c4] sm:$0xf]  ;;  %v7068_v52 = vld [vmem:[%s15625_s1 + $0x4d0] sm:$0xf0]  ;;  %v6879_v57 = vor.u32 %v9828_v48, %v6876_v49 }
  0xe9   :  { %5143 = vmatpush.bf16.msra.mxu2 %v6607_v63  ;;  %v9908_v53 = vld [vmem:[%s15625_s1 + $0x5c4] sm:$0xf]  ;;  %v7196_v54 = vld [vmem:[%s15625_s1 + $0x5d0] sm:$0xf0]  ;;  %v7071_v58 = vor.u32 %v9876_v50, %v7068_v52 }
  0xea   :  { %5156 = vmatpush.bf16.msra.mxu3 %v6735_v6  ;;  %v9940_v55 = vld [vmem:[%s15625_s1 + $0x6c4] sm:$0xf]  ;;  %v7324_v56 = vld [vmem:[%s15625_s1 + $0x6d0] sm:$0xf0]  ;;  %v7199_v59 = vor.u32 %v9908_v53, %v7196_v54 }
  0xeb   :  { %5166 = vmatpush.bf16.msrb.mxu0 %v6911_v8  ;;  %v9824_v60 = vld [vmem:[%s15625_s1 + $0x324] sm:$0xf]  ;;  %v6860_v62 = vld [vmem:[%s15625_s1 + $0x330] sm:$0xf0]  ;;  %v7327_v3 = vor.u32 %v9940_v55, %v7324_v56 }
  0xec   :  { %5131 = vmatpush.bf16.msra.mxu1 %v6463_v34  ;;  %v9872_v63 = vld [vmem:[%s15625_s1 + $0x4a4] sm:$0xf]  ;;  %v7052_v4 = vld [vmem:[%s15625_s1 + $0x4b0] sm:$0xf0]  ;;  %v6863_v10 = vor.u32 %v9824_v60, %v6860_v62 }
  0xed   :  { %5144 = vmatpush.bf16.msra.mxu2 %v6591_v35  ;;  %v9904_v5 = vld [vmem:[%s15625_s1 + $0x5a4] sm:$0xf]  ;;  %v7180_v44 = vld [vmem:[%s15625_s1 + $0x5b0] sm:$0xf0]  ;;  %v7055_v14 = vor.u32 %v9872_v63, %v7052_v4  ;;  %v4912_v35 = vpop.f32.mrf.mxu0 }
  0xee   :  { %5157 = vmatpush.bf16.msra.mxu3 %v6719_v39  ;;  %v9936_v6 = vld [vmem:[%s15625_s1 + $0x6a4] sm:$0xf]  ;;  %v7308_v8 = vld [vmem:[%s15625_s1 + $0x6b0] sm:$0xf0]  ;;  %v7183_v15 = vor.u32 %v9904_v5, %v7180_v44 }
  0xef   :  { %5167 = vmatpush.bf16.msrb.mxu0 %v6895_v43  ;;  %5132 = vmatmul.bf16.vlgmr.msra.gmra.mxu1 %v10888_v21  ;;  %v9820_v11 = vld [vmem:[%s15625_s1 + $0x304] sm:$0xf]  ;;  %v6844_v19 = vld [vmem:[%s15625_s1 + $0x310] sm:$0xf0]  ;;  %v7311_v27 = vor.u32 %v9936_v6, %v7308_v8  ;;  %v4913_v43 = vadd.f32 %v4912_v35, %v11975_v46  ;;  %v4938_v5 = vpop.f32.mrf.mxu2 }
  0xf0   :  { %5176 = vmatpush.bf16.msrb.mxu1 %v7087_v45  ;;  %5145 = vmatmul.bf16.vlgmr.msra.gmra.mxu2 %v10899_v26  ;;  %v9868_v23 = vld [vmem:[%s15625_s1 + $0x484] sm:$0xf]  ;;  %v7036_v24 = vld [vmem:[%s15625_s1 + $0x490] sm:$0xf0]  ;;  %v6847_v45 = vor.u32 %v9820_v11, %v6844_v19 }
  0xf1   :  { %5189 = vmatpush.bf16.msrb.mxu2 %v7215_v47  ;;  %5158 = vmatmul.bf16.vlgmr.msra.gmra.mxu3 %v10886_v20  ;;  %v9900_v29 = vld [vmem:[%s15625_s1 + $0x584] sm:$0xf]  ;;  %v7164_v30 = vld [vmem:[%s15625_s1 + $0x590] sm:$0xf0]  ;;  %v4925_v47 = vpop.f32.mrf.mxu1  ;;  %v7039_v48 = vor.u32 %v9868_v23, %v7036_v24 }
  0xf2   :  { %5202 = vmatpush.bf16.msrb.mxu3 %v7343_v51  ;;  %v9932_v34 = vld [vmem:[%s15625_s1 + $0x684] sm:$0xf]  ;;  %v7292_v36 = vld [vmem:[%s15625_s1 + $0x690] sm:$0xf0]  ;;  %v7167_v49 = vor.u32 %v9900_v29, %v7164_v30  ;;  %v4926_v53 = vadd.f32 %v4925_v47, %v4913_v43 }
  0xf3   :  { %5168 = vmatpush.bf16.msrb.mxu0 %v6879_v57  ;;  %v9976_v38 = vld [vmem:[%s15625_s1 + $0x7e4] sm:$0xf]  ;;  %v7468_v39 = vld [vmem:[%s15625_s1 + $0x7f0] sm:$0xf0]  ;;  %v7295_v52 = vor.u32 %v9932_v34, %v7292_v36 }
  0xf4   :  { %5177 = vmatpush.bf16.msrb.mxu1 %v7071_v58  ;;  %v9864_v50 = vld [vmem:[%s15625_s1 + $0x464] sm:$0xf]  ;;  %v7020_v51 = vld [vmem:[%s15625_s1 + $0x470] sm:$0xf0]  ;;  %v7471_v54 = vor.u32 %v9976_v38, %v7468_v39  ;;  %v4939_v11 = vadd.f32 %v4938_v5, %v4926_v53 }
  0xf5   :  { %5190 = vmatpush.bf16.msrb.mxu2 %v7199_v59  ;;  %v9896_v46 = vld [vmem:[%s15625_s1 + $0x564] sm:$0xf]  ;;  %v7148_v55 = vld [vmem:[%s15625_s1 + $0x570] sm:$0xf0]  ;;  %v7023_v60 = vor.u32 %v9864_v50, %v7020_v51  ;;  %v4914_v24 = vpop.f32.mrf.mxu0 }
  0xf6   :  { %5203 = vmatpush.bf16.msrb.mxu3 %v7327_v3  ;;  %v9928_v56 = vld [vmem:[%s15625_s1 + $0x664] sm:$0xf]  ;;  %v7276_v57 = vld [vmem:[%s15625_s1 + $0x670] sm:$0xf0]  ;;  %v7151_v62 = vor.u32 %v9896_v46, %v7148_v55 }
  0xf7   :  { %5169 = vmatpush.bf16.msrb.mxu0 %v6863_v10  ;;  %v9972_v58 = vld [vmem:[%s15625_s1 + $0x7c4] sm:$0xf]  ;;  %v7452_v59 = vld [vmem:[%s15625_s1 + $0x7d0] sm:$0xf0]  ;;  %v7279_v4 = vor.u32 %v9928_v56, %v7276_v57 }
  0xf8   :  { %5178 = vmatpush.bf16.msrb.mxu1 %v7055_v14  ;;  %v9860_v63 = vld [vmem:[%s15625_s1 + $0x444] sm:$0xf]  ;;  %v7004_v3 = vld [vmem:[%s15625_s1 + $0x450] sm:$0xf0]  ;;  %v7455_v44 = vor.u32 %v9972_v58, %v7452_v59  ;;  %v4951_v14 = vpop.f32.mrf.mxu3 }
  0xf9   :  { %5191 = vmatpush.bf16.msrb.mxu2 %v7183_v15  ;;  %v9892_v6 = vld [vmem:[%s15625_s1 + $0x544] sm:$0xf]  ;;  %v7132_v8 = vld [vmem:[%s15625_s1 + $0x550] sm:$0xf0]  ;;  %v12175_v29 = vadd.f32 %v4951_v14, %v4939_v11  ;;  %v7007_v30 = vor.u32 %v9860_v63, %v7004_v3 }
  0xfa   :  { %5204 = vmatpush.bf16.msrb.mxu3 %v7311_v27  ;;  %v9924_v10 = vld [vmem:[%s15625_s1 + $0x644] sm:$0xf]  ;;  %v7260_v15 = vld [vmem:[%s15625_s1 + $0x650] sm:$0xf0]  ;;  %v4927_v27 = vpop.f32.mrf.mxu1  ;;  %v7135_v34 = vor.u32 %v9892_v6, %v7132_v8 }
  0xfb   :  { %5170 = vmatpush.bf16.msrb.mxu0 %v6847_v45  ;;  %v9968_v19 = vld [vmem:[%s15625_s1 + $0x7a4] sm:$0xf]  ;;  %v7436_v23 = vld [vmem:[%s15625_s1 + $0x7b0] sm:$0xf0]  ;;  %v7263_v38 = vor.u32 %v9924_v10, %v7260_v15 }
  0xfc   :  { %5179 = vmatpush.bf16.msrb.mxu1 %v7039_v48  ;;  %v9856_v35 = vld [vmem:[%s15625_s1 + $0x424] sm:$0xf]  ;;  %v6988_v36 = vld [vmem:[%s15625_s1 + $0x430] sm:$0xf0]  ;;  %v7439_v39 = vor.u32 %v9968_v19, %v7436_v23 }
  0xfd   :  { %5192 = vmatpush.bf16.msrb.mxu2 %v7167_v49  ;;  %v9888_v43 = vld [vmem:[%s15625_s1 + $0x524] sm:$0xf]  ;;  %v7116_v45 = vld [vmem:[%s15625_s1 + $0x530] sm:$0xf0]  ;;  %v6991_v51 = vor.u32 %v9856_v35, %v6988_v36 }
  0xfe   :  { %5205 = vmatpush.bf16.msrb.mxu3 %v7295_v52  ;;  %5171 = vmatmul.bf16.vlgmr.msrb.gmra.mxu0 %v10890_v22  ;;  %v9920_v47 = vld [vmem:[%s15625_s1 + $0x624] sm:$0xf]  ;;  %v7244_v48 = vld [vmem:[%s15625_s1 + $0x630] sm:$0xf0]  ;;  %v7119_v52 = vor.u32 %v9888_v43, %v7116_v45 }
  0xff   :  { %5215 = vmatpush.bf16.msra.mxu0 %v7471_v54  ;;  %v9964_v49 = vld [vmem:[%s15625_s1 + $0x784] sm:$0xf]  ;;  %v7420_v50 = vld [vmem:[%s15625_s1 + $0x790] sm:$0xf0]  ;;  %v7247_v55 = vor.u32 %v9920_v47, %v7244_v48 }
 0x100   :  { %5180 = vmatpush.bf16.msrb.mxu1 %v7023_v60  ;;  %v9852_v53 = vld [vmem:[%s15625_s1 + $0x404] sm:$0xf]  ;;  %v6972_v54 = vld [vmem:[%s15625_s1 + $0x410] sm:$0xf0]  ;;  %v7423_v56 = vor.u32 %v9964_v49, %v7420_v50  ;;  %v4940_v60 = vpop.f32.mrf.mxu2 }
 0x101   :  { %5193 = vmatpush.bf16.msrb.mxu2 %v7151_v62  ;;  %v9884_v46 = vld [vmem:[%s15625_s1 + $0x504] sm:$0xf]  ;;  %v7100_v57 = vld [vmem:[%s15625_s1 + $0x510] sm:$0xf0]  ;;  %v6975_v8 = vor.u32 %v9852_v53, %v6972_v54 }
 0x102   :  { %5206 = vmatpush.bf16.msrb.mxu3 %v7279_v4  ;;  %v9916_v58 = vld [vmem:[%s15625_s1 + $0x604] sm:$0xf]  ;;  %v7228_v59 = vld [vmem:[%s15625_s1 + $0x610] sm:$0xf0]  ;;  %v4953_v4 = vpop.f32.mrf.mxu3  ;;  %v7103_v10 = vor.u32 %v9884_v46, %v7100_v57 }
 0x103   :  { %5216 = vmatpush.bf16.msra.mxu0 %v7455_v44  ;;  %v9960_v62 = vld [vmem:[%s15625_s1 + $0x764] sm:$0xf]  ;;  %v7404_v63 = vld [vmem:[%s15625_s1 + $0x770] sm:$0xf0]  ;;  %v7231_v15 = vor.u32 %v9916_v58, %v7228_v59 }
 0x104   :  { %5181 = vmatpush.bf16.msrb.mxu1 %v7007_v30  ;;  %v10008_v3 = vld [vmem:[%s15625_s1 + $0x8e4] sm:$0xf]  ;;  %v7596_v5 = vld [vmem:[%s15625_s1 + $0x8f0] sm:$0xf0]  ;;  %v7407_v19 = vor.u32 %v9960_v62, %v7404_v63 }
 0x105   :  { %5194 = vmatpush.bf16.msrb.mxu2 %v7135_v34  ;;  %v10040_v44 = vld [vmem:[%s15625_s1 + $0x9e4] sm:$0xf]  ;;  %v7724_v6 = vld [vmem:[%s15625_s1 + $0x9f0] sm:$0xf0]  ;;  %v7599_v23 = vor.u32 %v10008_v3, %v7596_v5 }
 0x106   :  { %5207 = vmatpush.bf16.msrb.mxu3 %v7263_v38  ;;  %v10072_v11 = vld [vmem:[%s15625_s1 + $0xae4] sm:$0xf]  ;;  %v7852_v14 = vld [vmem:[%s15625_s1 + $0xaf0] sm:$0xf0]  ;;  %v7727_v24 = vor.u32 %v10040_v44, %v7724_v6 }
 0x107   :  { %5217 = vmatpush.bf16.msra.mxu0 %v7439_v39  ;;  %v9956_v27 = vld [vmem:[%s15625_s1 + $0x744] sm:$0xf]  ;;  %v7388_v30 = vld [vmem:[%s15625_s1 + $0x750] sm:$0xf0]  ;;  %v7855_v35 = vor.u32 %v10072_v11, %v7852_v14 }
 0x108   :  { %5182 = vmatpush.bf16.msrb.mxu1 %v6991_v51  ;;  %v10004_v34 = vld [vmem:[%s15625_s1 + $0x8c4] sm:$0xf]  ;;  %v7580_v36 = vld [vmem:[%s15625_s1 + $0x8d0] sm:$0xf0]  ;;  %v7391_v47 = vor.u32 %v9956_v27, %v7388_v30 }
 0x109   :  { %5195 = vmatpush.bf16.msrb.mxu2 %v7119_v52  ;;  %v10036_v38 = vld [vmem:[%s15625_s1 + $0x9c4] sm:$0xf]  ;;  %v7708_v39 = vld [vmem:[%s15625_s1 + $0x9d0] sm:$0xf0]  ;;  %v7583_v48 = vor.u32 %v10004_v34, %v7580_v36 }
 0x10a   :  { %5208 = vmatpush.bf16.msrb.mxu3 %v7247_v55  ;;  %v10068_v43 = vld [vmem:[%s15625_s1 + $0xac4] sm:$0xf]  ;;  %v7836_v45 = vld [vmem:[%s15625_s1 + $0xad0] sm:$0xf0]  ;;  %v7711_v49 = vor.u32 %v10036_v38, %v7708_v39 }
 0x10b   :  { %5218 = vmatpush.bf16.msra.mxu0 %v7423_v56  ;;  %v9952_v50 = vld [vmem:[%s15625_s1 + $0x724] sm:$0xf]  ;;  %v7372_v51 = vld [vmem:[%s15625_s1 + $0x730] sm:$0xf0]  ;;  %v7839_v53 = vor.u32 %v10068_v43, %v7836_v45 }
 0x10c   :  { %5183 = vmatpush.bf16.msrb.mxu1 %v6975_v8  ;;  %v10000_v52 = vld [vmem:[%s15625_s1 + $0x8a4] sm:$0xf]  ;;  %v7564_v54 = vld [vmem:[%s15625_s1 + $0x8b0] sm:$0xf0]  ;;  %v7375_v58 = vor.u32 %v9952_v50, %v7372_v51 }
 0x10d   :  { %5196 = vmatpush.bf16.msrb.mxu2 %v7103_v10  ;;  %v10032_v46 = vld [vmem:[%s15625_s1 + $0x9a4] sm:$0xf]  ;;  %v7692_v55 = vld [vmem:[%s15625_s1 + $0x9b0] sm:$0xf0]  ;;  %v7567_v60 = vor.u32 %v10000_v52, %v7564_v54  ;;  %v4964_v10 = vpop.f32.mrf.mxu0 }
 0x10e   :  { %5209 = vmatpush.bf16.msrb.mxu3 %v7231_v15  ;;  %v10064_v56 = vld [vmem:[%s15625_s1 + $0xaa4] sm:$0xf]  ;;  %v7820_v57 = vld [vmem:[%s15625_s1 + $0xab0] sm:$0xf0]  ;;  %v7695_v62 = vor.u32 %v10032_v46, %v7692_v55 }
 0x10f   :  { %5219 = vmatpush.bf16.msra.mxu0 %v7407_v19  ;;  %5184 = vmatmul.bf16.vlgmr.msrb.gmra.mxu1 %v10981_v0  ;;  %v9948_v59 = vld [vmem:[%s15625_s1 + $0x704] sm:$0xf]  ;;  %v7356_v63 = vld [vmem:[%s15625_s1 + $0x710] sm:$0xf0]  ;;  %v7823_v5 = vor.u32 %v10064_v56, %v7820_v57  ;;  %v4965_v19 = vadd.f32 %v4964_v10, %v12175_v29  ;;  %v4990_v46 = vpop.f32.mrf.mxu2 }
 0x110   :  { %5228 = vmatpush.bf16.msra.mxu1 %v7599_v23  ;;  %5197 = vmatmul.bf16.vlgmr.msrb.gmra.mxu2 %v10985_v2  ;;  %v9996_v3 = vld [vmem:[%s15625_s1 + $0x884] sm:$0xf]  ;;  %v7548_v4 = vld [vmem:[%s15625_s1 + $0x890] sm:$0xf0]  ;;  %v7359_v23 = vor.u32 %v9948_v59, %v7356_v63 }
 0x111   :  { %5241 = vmatpush.bf16.msra.mxu2 %v7727_v24  ;;  %5210 = vmatmul.bf16.vlgmr.msrb.gmra.mxu3 %v10979_v61  ;;  %v10028_v44 = vld [vmem:[%s15625_s1 + $0x984] sm:$0xf]  ;;  %v7676_v6 = vld [vmem:[%s15625_s1 + $0x990] sm:$0xf0]  ;;  %v4977_v24 = vpop.f32.mrf.mxu1  ;;  %v7551_v27 = vor.u32 %v9996_v3, %v7548_v4 }
 0x112   :  { %5254 = vmatpush.bf16.msra.mxu3 %v7855_v35  ;;  %v10060_v8 = vld [vmem:[%s15625_s1 + $0xa84] sm:$0xf]  ;;  %v7804_v11 = vld [vmem:[%s15625_s1 + $0xa90] sm:$0xf0]  ;;  %v7679_v30 = vor.u32 %v10028_v44, %v7676_v6  ;;  %v4978_v38 = vadd.f32 %v4977_v24, %v4965_v19 }
 0x113   :  { %5220 = vmatpush.bf16.msra.mxu0 %v7391_v47  ;;  %v10104_v14 = vld [vmem:[%s15625_s1 + $0xbe4] sm:$0xf]  ;;  %v7980_v15 = vld [vmem:[%s15625_s1 + $0xbf0] sm:$0xf0]  ;;  %v7807_v36 = vor.u32 %v10060_v8, %v7804_v11 }
 0x114   :  { %5229 = vmatpush.bf16.msra.mxu1 %v7583_v48  ;;  %v9992_v34 = vld [vmem:[%s15625_s1 + $0x864] sm:$0xf]  ;;  %v7532_v35 = vld [vmem:[%s15625_s1 + $0x870] sm:$0xf0]  ;;  %v7983_v39 = vor.u32 %v10104_v14, %v7980_v15  ;;  %v4991_v59 = vadd.f32 %v4990_v46, %v4978_v38 }
 0x115   :  { %5242 = vmatpush.bf16.msra.mxu2 %v7711_v49  ;;  %v10024_v29 = vld [vmem:[%s15625_s1 + $0x964] sm:$0xf]  ;;  %v7660_v43 = vld [vmem:[%s15625_s1 + $0x970] sm:$0xf0]  ;;  %v7535_v50 = vor.u32 %v9992_v34, %v7532_v35  ;;  %v4966_v4 = vpop.f32.mrf.mxu0 }
 0x116   :  { %5255 = vmatpush.bf16.msra.mxu3 %v7839_v53  ;;  %v10056_v45 = vld [vmem:[%s15625_s1 + $0xa64] sm:$0xf]  ;;  %v7788_v47 = vld [vmem:[%s15625_s1 + $0xa70] sm:$0xf0]  ;;  %v7663_v51 = vor.u32 %v10024_v29, %v7660_v43 }
 0x117   :  { %5221 = vmatpush.bf16.msra.mxu0 %v7375_v58  ;;  %v10100_v48 = vld [vmem:[%s15625_s1 + $0xbc4] sm:$0xf]  ;;  %v7964_v49 = vld [vmem:[%s15625_s1 + $0xbd0] sm:$0xf0]  ;;  %v7791_v54 = vor.u32 %v10056_v45, %v7788_v47 }
 0x118   :  { %5230 = vmatpush.bf16.msra.mxu1 %v7567_v60  ;;  %v9988_v52 = vld [vmem:[%s15625_s1 + $0x844] sm:$0xf]  ;;  %v7516_v53 = vld [vmem:[%s15625_s1 + $0x850] sm:$0xf0]  ;;  %v7967_v55 = vor.u32 %v10100_v48, %v7964_v49  ;;  %v5003_v60 = vpop.f32.mrf.mxu3 }
 0x119   :  { %5243 = vmatpush.bf16.msra.mxu2 %v7695_v62  ;;  %v10020_v56 = vld [vmem:[%s15625_s1 + $0x944] sm:$0xf]  ;;  %v7644_v57 = vld [vmem:[%s15625_s1 + $0x950] sm:$0xf0]  ;;  %v12374_v44 = vadd.f32 %v5003_v60, %v4991_v59  ;;  %v7519_v6 = vor.u32 %v9988_v52, %v7516_v53 }
 0x11a   :  { %5256 = vmatpush.bf16.msra.mxu3 %v7823_v5  ;;  %v10052_v58 = vld [vmem:[%s15625_s1 + $0xa44] sm:$0xf]  ;;  %v7772_v62 = vld [vmem:[%s15625_s1 + $0xa50] sm:$0xf0]  ;;  %v4979_v5 = vpop.f32.mrf.mxu1  ;;  %v7647_v8 = vor.u32 %v10020_v56, %v7644_v57 }
 0x11b   :  { %5222 = vmatpush.bf16.msra.mxu0 %v7359_v23  ;;  %v10096_v63 = vld [vmem:[%s15625_s1 + $0xba4] sm:$0xf]  ;;  %v7948_v3 = vld [vmem:[%s15625_s1 + $0xbb0] sm:$0xf0]  ;;  %v7775_v14 = vor.u32 %v10052_v58, %v7772_v62 }
 0x11c   :  { %5231 = vmatpush.bf16.msra.mxu1 %v7551_v27  ;;  %v9984_v10 = vld [vmem:[%s15625_s1 + $0x824] sm:$0xf]  ;;  %v7500_v11 = vld [vmem:[%s15625_s1 + $0x830] sm:$0xf0]  ;;  %v7951_v15 = vor.u32 %v10096_v63, %v7948_v3 }
 0x11d   :  { %5244 = vmatpush.bf16.msra.mxu2 %v7679_v30  ;;  %v10016_v19 = vld [vmem:[%s15625_s1 + $0x924] sm:$0xf]  ;;  %v7628_v23 = vld [vmem:[%s15625_s1 + $0x930] sm:$0xf0]  ;;  %v7503_v35 = vor.u32 %v9984_v10, %v7500_v11 }
 0x11e   :  { %5257 = vmatpush.bf16.msra.mxu3 %v7807_v36  ;;  %5223 = vmatmul.bf16.vlgmr.msra.gmra.mxu0 %v10983_v1  ;;  %v10048_v24 = vld [vmem:[%s15625_s1 + $0xa24] sm:$0xf]  ;;  %v7756_v27 = vld [vmem:[%s15625_s1 + $0xa30] sm:$0xf0]  ;;  %v7631_v36 = vor.u32 %v10016_v19, %v7628_v23 }
 0x11f   :  { %5267 = vmatpush.bf16.msrb.mxu0 %v7983_v39  ;;  %v10092_v30 = vld [vmem:[%s15625_s1 + $0xb84] sm:$0xf]  ;;  %v7932_v34 = vld [vmem:[%s15625_s1 + $0xb90] sm:$0xf0]  ;;  %v7759_v43 = vor.u32 %v10048_v24, %v7756_v27 }
 0x120   :  { %5232 = vmatpush.bf16.msra.mxu1 %v7535_v50  ;;  %v9980_v38 = vld [vmem:[%s15625_s1 + $0x804] sm:$0xf]  ;;  %v7484_v39 = vld [vmem:[%s15625_s1 + $0x810] sm:$0xf0]  ;;  %v7935_v45 = vor.u32 %v10092_v30, %v7932_v34  ;;  %v4992_v50 = vpop.f32.mrf.mxu2 }
 0x121   :  { %5245 = vmatpush.bf16.msra.mxu2 %v7663_v51  ;;  %v10012_v29 = vld [vmem:[%s15625_s1 + $0x904] sm:$0xf]  ;;  %v7612_v47 = vld [vmem:[%s15625_s1 + $0x910] sm:$0xf0]  ;;  %v7487_v57 = vor.u32 %v9980_v38, %v7484_v39 }
 0x122   :  { %5258 = vmatpush.bf16.msra.mxu3 %v7791_v54  ;;  %v10044_v48 = vld [vmem:[%s15625_s1 + $0xa04] sm:$0xf]  ;;  %v7740_v49 = vld [vmem:[%s15625_s1 + $0xa10] sm:$0xf0]  ;;  %v5005_v54 = vpop.f32.mrf.mxu3  ;;  %v7615_v58 = vor.u32 %v10012_v29, %v7612_v47 }
 0x123   :  { %5268 = vmatpush.bf16.msrb.mxu0 %v7967_v55  ;;  %v10088_v51 = vld [vmem:[%s15625_s1 + $0xb64] sm:$0xf]  ;;  %v7916_v52 = vld [vmem:[%s15625_s1 + $0xb70] sm:$0xf0]  ;;  %v7743_v62 = vor.u32 %v10044_v48, %v7740_v49 }
 0x124   :  { %5233 = vmatpush.bf16.msra.mxu1 %v7519_v6  ;;  %v10136_v53 = vld [vmem:[%s15625_s1 + $0xce4] sm:$0xf]  ;;  %v8108_v46 = vld [vmem:[%s15625_s1 + $0xcf0] sm:$0xf0]  ;;  %v7919_v63 = vor.u32 %v10088_v51, %v7916_v52 }
 0x125   :  { %5246 = vmatpush.bf16.msra.mxu2 %v7647_v8  ;;  %v10168_v55 = vld [vmem:[%s15625_s1 + $0xde4] sm:$0xf]  ;;  %v8236_v56 = vld [vmem:[%s15625_s1 + $0xdf0] sm:$0xf0]  ;;  %v8111_v3 = vor.u32 %v10136_v53, %v8108_v46 }
 0x126   :  { %5259 = vmatpush.bf16.msra.mxu3 %v7775_v14  ;;  %v10200_v59 = vld [vmem:[%s15625_s1 + $0xee4] sm:$0xf]  ;;  %v8364_v60 = vld [vmem:[%s15625_s1 + $0xef0] sm:$0xf0]  ;;  %v8239_v4 = vor.u32 %v10168_v55, %v8236_v56 }
 0x127   :  { %5269 = vmatpush.bf16.msrb.mxu0 %v7951_v15  ;;  %v10084_v5 = vld [vmem:[%s15625_s1 + $0xb44] sm:$0xf]  ;;  %v7900_v6 = vld [vmem:[%s15625_s1 + $0xb50] sm:$0xf0]  ;;  %v8367_v10 = vor.u32 %v10200_v59, %v8364_v60 }
 0x128   :  { %5234 = vmatpush.bf16.msra.mxu1 %v7503_v35  ;;  %v10132_v8 = vld [vmem:[%s15625_s1 + $0xcc4] sm:$0xf]  ;;  %v8092_v11 = vld [vmem:[%s15625_s1 + $0xcd0] sm:$0xf0]  ;;  %v7903_v24 = vor.u32 %v10084_v5, %v7900_v6 }
 0x129   :  { %5247 = vmatpush.bf16.msra.mxu2 %v7631_v36  ;;  %v10164_v14 = vld [vmem:[%s15625_s1 + $0xdc4] sm:$0xf]  ;;  %v8220_v15 = vld [vmem:[%s15625_s1 + $0xdd0] sm:$0xf0]  ;;  %v8095_v27 = vor.u32 %v10132_v8, %v8092_v11 }
 0x12a   :  { %5260 = vmatpush.bf16.msra.mxu3 %v7759_v43  ;;  %v10196_v19 = vld [vmem:[%s15625_s1 + $0xec4] sm:$0xf]  ;;  %v8348_v23 = vld [vmem:[%s15625_s1 + $0xed0] sm:$0xf0]  ;;  %v8223_v30 = vor.u32 %v10164_v14, %v8220_v15 }
 0x12b   :  { %5270 = vmatpush.bf16.msrb.mxu0 %v7935_v45  ;;  %v10080_v34 = vld [vmem:[%s15625_s1 + $0xb24] sm:$0xf]  ;;  %v7884_v35 = vld [vmem:[%s15625_s1 + $0xb30] sm:$0xf0]  ;;  %v8351_v38 = vor.u32 %v10196_v19, %v8348_v23 }
 0x12c   :  { %5235 = vmatpush.bf16.msra.mxu1 %v7487_v57  ;;  %v10128_v36 = vld [vmem:[%s15625_s1 + $0xca4] sm:$0xf]  ;;  %v8076_v39 = vld [vmem:[%s15625_s1 + $0xcb0] sm:$0xf0]  ;;  %v7887_v48 = vor.u32 %v10080_v34, %v7884_v35 }
 0x12d   :  { %5248 = vmatpush.bf16.msra.mxu2 %v7615_v58  ;;  %v10160_v29 = vld [vmem:[%s15625_s1 + $0xda4] sm:$0xf]  ;;  %v8204_v43 = vld [vmem:[%s15625_s1 + $0xdb0] sm:$0xf0]  ;;  %v8079_v50 = vor.u32 %v10128_v36, %v8076_v39  ;;  %v5016_v58 = vpop.f32.mrf.mxu0 }
 0x12e   :  { %5261 = vmatpush.bf16.msra.mxu3 %v7743_v62  ;;  %v10192_v45 = vld [vmem:[%s15625_s1 + $0xea4] sm:$0xf]  ;;  %v8332_v47 = vld [vmem:[%s15625_s1 + $0xeb0] sm:$0xf0]  ;;  %v8207_v51 = vor.u32 %v10160_v29, %v8204_v43 }
 0x12f   :  { %5271 = vmatpush.bf16.msrb.mxu0 %v7919_v63  ;;  %5236 = vmatmul.bf16.vlgmr.msra.gmra.mxu1 %v11219_v7  ;;  %v10076_v49 = vld [vmem:[%s15625_s1 + $0xb04] sm:$0xf]  ;;  %v7868_v52 = vld [vmem:[%s15625_s1 + $0xb10] sm:$0xf0]  ;;  %v8335_v46 = vor.u32 %v10192_v45, %v8332_v47  ;;  %v5017_v63 = vadd.f32 %v5016_v58, %v12374_v44 }
 0x130   :  { %5280 = vmatpush.bf16.msrb.mxu1 %v8111_v3  ;;  %5249 = vmatmul.bf16.vlgmr.msra.gmra.mxu2 %v11232_v13  ;;  %v10124_v53 = vld [vmem:[%s15625_s1 + $0xc84] sm:$0xf]  ;;  %v8060_v54 = vld [vmem:[%s15625_s1 + $0xc90] sm:$0xf0]  ;;  %v7871_v3 = vor.u32 %v10076_v49, %v7868_v52 }
 0x131   :  { %5293 = vmatpush.bf16.msrb.mxu2 %v8239_v4  ;;  %5262 = vmatmul.bf16.vlgmr.msra.gmra.mxu3 %v11230_v12  ;;  %v10156_v55 = vld [vmem:[%s15625_s1 + $0xd84] sm:$0xf]  ;;  %v8188_v56 = vld [vmem:[%s15625_s1 + $0xd90] sm:$0xf0]  ;;  %v5029_v4 = vpop.f32.mrf.mxu1  ;;  %v8063_v5 = vor.u32 %v10124_v53, %v8060_v54 }
 0x132   :  { %5306 = vmatpush.bf16.msrb.mxu3 %v8367_v10  ;;  %v10188_v57 = vld [vmem:[%s15625_s1 + $0xe84] sm:$0xf]  ;;  %v8316_v59 = vld [vmem:[%s15625_s1 + $0xe90] sm:$0xf0]  ;;  %v8191_v6 = vor.u32 %v10156_v55, %v8188_v56  ;;  %v5030_v14 = vadd.f32 %v5029_v4, %v5017_v63  ;;  %v5042_v29 = vpop.f32.mrf.mxu2 }
 0x133   :  { %5272 = vmatpush.bf16.msrb.mxu0 %v7903_v24  ;;  %v10232_v60 = vld [vmem:[%s15625_s1 + $0xfe4] sm:$0xf]  ;;  %v8492_v62 = vld [vmem:[%s15625_s1 + $0xff0] sm:$0xf0]  ;;  %v8319_v11 = vor.u32 %v10188_v57, %v8316_v59 }
 0x134   :  { %5281 = vmatpush.bf16.msrb.mxu1 %v8095_v27  ;;  %v10120_v8 = vld [vmem:[%s15625_s1 + $0xc64] sm:$0xf]  ;;  %v8044_v10 = vld [vmem:[%s15625_s1 + $0xc70] sm:$0xf0]  ;;  %v8495_v15 = vor.u32 %v10232_v60, %v8492_v62  ;;  %v5043_v49 = vadd.f32 %v5042_v29, %v5030_v14 }
 0x135   :  { %5294 = vmatpush.bf16.msrb.mxu2 %v8223_v30  ;;  %v10152_v44 = vld [vmem:[%s15625_s1 + $0xd64] sm:$0xf]  ;;  %v8172_v19 = vld [vmem:[%s15625_s1 + $0xd70] sm:$0xf0]  ;;  %v8047_v34 = vor.u32 %v10120_v8, %v8044_v10  ;;  %v5018_v54 = vpop.f32.mrf.mxu0 }
 0x136   :  { %5307 = vmatpush.bf16.msrb.mxu3 %v8351_v38  ;;  %v10184_v23 = vld [vmem:[%s15625_s1 + $0xe64] sm:$0xf]  ;;  %v8300_v24 = vld [vmem:[%s15625_s1 + $0xe70] sm:$0xf0]  ;;  %v8175_v35 = vor.u32 %v10152_v44, %v8172_v19 }
 0x137   :  { %5273 = vmatpush.bf16.msrb.mxu0 %v7887_v48  ;;  %v10228_v27 = vld [vmem:[%s15625_s1 + $0xfc4] sm:$0xf]  ;;  %v8476_v30 = vld [vmem:[%s15625_s1 + $0xfd0] sm:$0xf0]  ;;  %v8303_v39 = vor.u32 %v10184_v23, %v8300_v24 }
 0x138   :  { %5282 = vmatpush.bf16.msrb.mxu1 %v8079_v50  ;;  %v10116_v36 = vld [vmem:[%s15625_s1 + $0xc44] sm:$0xf]  ;;  %v8028_v38 = vld [vmem:[%s15625_s1 + $0xc50] sm:$0xf0]  ;;  %v8479_v43 = vor.u32 %v10228_v27, %v8476_v30  ;;  %v5055_v50 = vpop.f32.mrf.mxu3 }
 0x139   :  { %5295 = vmatpush.bf16.msrb.mxu2 %v8207_v51  ;;  %v10148_v45 = vld [vmem:[%s15625_s1 + $0xd44] sm:$0xf]  ;;  %v8156_v47 = vld [vmem:[%s15625_s1 + $0xd50] sm:$0xf0]  ;;  %v12573_v55 = vadd.f32 %v5055_v50, %v5043_v49  ;;  %v8031_v56 = vor.u32 %v10116_v36, %v8028_v38 }
 0x13a   :  { %5308 = vmatpush.bf16.msrb.mxu3 %v8335_v46  ;;  %v10180_v48 = vld [vmem:[%s15625_s1 + $0xe44] sm:$0xf]  ;;  %v8284_v51 = vld [vmem:[%s15625_s1 + $0xe50] sm:$0xf0]  ;;  %v5031_v46 = vpop.f32.mrf.mxu1  ;;  %v8159_v57 = vor.u32 %v10148_v45, %v8156_v47 }
 0x13b   :  { %5274 = vmatpush.bf16.msrb.mxu0 %v7871_v3  ;;  %v10224_v52 = vld [vmem:[%s15625_s1 + $0xfa4] sm:$0xf]  ;;  %v8460_v53 = vld [vmem:[%s15625_s1 + $0xfb0] sm:$0xf0]  ;;  %v8287_v60 = vor.u32 %v10180_v48, %v8284_v51 }
 0x13c   :  { %5283 = vmatpush.bf16.msrb.mxu1 %v8063_v5  ;;  %v10112_v58 = vld [vmem:[%s15625_s1 + $0xc24] sm:$0xf]  ;;  %v8012_v59 = vld [vmem:[%s15625_s1 + $0xc30] sm:$0xf0]  ;;  %v8463_v62 = vor.u32 %v10224_v52, %v8460_v53 }
 0x13d   :  { %5296 = vmatpush.bf16.msrb.mxu2 %v8191_v6  ;;  %v10144_v63 = vld [vmem:[%s15625_s1 + $0xd24] sm:$0xf]  ;;  %v8140_v3 = vld [vmem:[%s15625_s1 + $0xd30] sm:$0xf0]  ;;  %v8015_v10 = vor.u32 %v10112_v58, %v8012_v59 }
 0x13e   :  { %5309 = vmatpush.bf16.msrb.mxu3 %v8319_v11  ;;  %5275 = vmatmul.bf16.vlgmr.msrb.gmra.mxu0 %v11243_v17  ;;  %v10176_v4 = vld [vmem:[%s15625_s1 + $0xe24] sm:$0xf]  ;;  %v8268_v5 = vld [vmem:[%s15625_s1 + $0xe30] sm:$0xf0]  ;;  %v8143_v11 = vor.u32 %v10144_v63, %v8140_v3 }
 0x13f   :  { %5319 = vmatpush.bf16.msra.mxu0 %v8495_v15  ;;  %v10220_v6 = vld [vmem:[%s15625_s1 + $0xf84] sm:$0xf]  ;;  %v8444_v8 = vld [vmem:[%s15625_s1 + $0xf90] sm:$0xf0]  ;;  %v8271_v19 = vor.u32 %v10176_v4, %v8268_v5 }
 0x140   :  { %5284 = vmatpush.bf16.msrb.mxu1 %v8047_v34  ;;  %v10108_v14 = vld [vmem:[%s15625_s1 + $0xc04] sm:$0xf]  ;;  %v7996_v15 = vld [vmem:[%s15625_s1 + $0xc10] sm:$0xf0]  ;;  %v8447_v23 = vor.u32 %v10220_v6, %v8444_v8  ;;  %v5044_v34 = vpop.f32.mrf.mxu2 }
 0x141   :  { %5297 = vmatpush.bf16.msrb.mxu2 %v8175_v35  ;;  %v10140_v44 = vld [vmem:[%s15625_s1 + $0xd04] sm:$0xf]  ;;  %v8124_v24 = vld [vmem:[%s15625_s1 + $0xd10] sm:$0xf0]  ;;  %v7999_v47 = vor.u32 %v10108_v14, %v7996_v15 }
 0x142   :  { %5310 = vmatpush.bf16.msrb.mxu3 %v8303_v39  ;;  %v10172_v27 = vld [vmem:[%s15625_s1 + $0xe04] sm:$0xf]  ;;  %v8252_v30 = vld [vmem:[%s15625_s1 + $0xe10] sm:$0xf0]  ;;  %v5057_v39 = vpop.f32.mrf.mxu3  ;;  %v8127_v48 = vor.u32 %v10140_v44, %v8124_v24 }
 0x143   :  { %5320 = vmatpush.bf16.msra.mxu0 %v8479_v43  ;;  %v10216_v35 = vld [vmem:[%s15625_s1 + $0xf64] sm:$0xf]  ;;  %v8428_v36 = vld [vmem:[%s15625_s1 + $0xf70] sm:$0xf0]  ;;  %v8255_v51 = vor.u32 %v10172_v27, %v8252_v30 }
 0x144   :  { %5285 = vmatpush.bf16.msrb.mxu1 %v8031_v56  ;;  %v10264_v38 = vld [vmem:[%s15625_s1 + $0x10e4] sm:$0xf]  ;;  %v8620_v29 = vld [vmem:[%s15625_s1 + $0x10f0] sm:$0xf0]  ;;  %v8431_v52 = vor.u32 %v10216_v35, %v8428_v36 }
 0x145   :  { %5298 = vmatpush.bf16.msrb.mxu2 %v8159_v57  ;;  %v10296_v43 = vld [vmem:[%s15625_s1 + $0x11e4] sm:$0xf]  ;;  %v8748_v45 = vld [vmem:[%s15625_s1 + $0x11f0] sm:$0xf0]  ;;  %v8623_v53 = vor.u32 %v10264_v38, %v8620_v29 }
 0x146   :  { %5311 = vmatpush.bf16.msrb.mxu3 %v8287_v60  ;;  %v10328_v49 = vld [vmem:[%s15625_s1 + $0x12e4] sm:$0xf]  ;;  %v8876_v50 = vld [vmem:[%s15625_s1 + $0x12f0] sm:$0xf0]  ;;  %v8751_v54 = vor.u32 %v10296_v43, %v8748_v45 }
 0x147   :  { %5321 = vmatpush.bf16.msra.mxu0 %v8463_v62  ;;  %v10212_v46 = vld [vmem:[%s15625_s1 + $0xf44] sm:$0xf]  ;;  %v8412_v56 = vld [vmem:[%s15625_s1 + $0xf50] sm:$0xf0]  ;;  %v8879_v58 = vor.u32 %v10328_v49, %v8876_v50 }
 0x148   :  { %5286 = vmatpush.bf16.msrb.mxu1 %v8015_v10  ;;  %v10260_v57 = vld [vmem:[%s15625_s1 + $0x10c4] sm:$0xf]  ;;  %v8604_v59 = vld [vmem:[%s15625_s1 + $0x10d0] sm:$0xf0]  ;;  %v8415_v4 = vor.u32 %v10212_v46, %v8412_v56 }
 0x149   :  { %5299 = vmatpush.bf16.msrb.mxu2 %v8143_v11  ;;  %v10292_v60 = vld [vmem:[%s15625_s1 + $0x11c4] sm:$0xf]  ;;  %v8732_v62 = vld [vmem:[%s15625_s1 + $0x11d0] sm:$0xf0]  ;;  %v8607_v5 = vor.u32 %v10260_v57, %v8604_v59 }
 0x14a   :  { %5312 = vmatpush.bf16.msrb.mxu3 %v8271_v19  ;;  %v10324_v63 = vld [vmem:[%s15625_s1 + $0x12c4] sm:$0xf]  ;;  %v8860_v3 = vld [vmem:[%s15625_s1 + $0x12d0] sm:$0xf0]  ;;  %v8735_v6 = vor.u32 %v10292_v60, %v8732_v62 }
 0x14b   :  { %5322 = vmatpush.bf16.msra.mxu0 %v8447_v23  ;;  %v10208_v8 = vld [vmem:[%s15625_s1 + $0xf24] sm:$0xf]  ;;  %v8396_v10 = vld [vmem:[%s15625_s1 + $0xf30] sm:$0xf0]  ;;  %v8863_v14 = vor.u32 %v10324_v63, %v8860_v3 }
 0x14c   :  { %5287 = vmatpush.bf16.msrb.mxu1 %v7999_v47  ;;  %v10256_v11 = vld [vmem:[%s15625_s1 + $0x10a4] sm:$0xf]  ;;  %v8588_v15 = vld [vmem:[%s15625_s1 + $0x10b0] sm:$0xf0]  ;;  %v8399_v27 = vor.u32 %v10208_v8, %v8396_v10 }
 0x14d   :  { %5300 = vmatpush.bf16.msrb.mxu2 %v8127_v48  ;;  %v10288_v44 = vld [vmem:[%s15625_s1 + $0x11a4] sm:$0xf]  ;;  %v8716_v19 = vld [vmem:[%s15625_s1 + $0x11b0] sm:$0xf0]  ;;  %v8591_v34 = vor.u32 %v10256_v11, %v8588_v15  ;;  %v5068_v48 = vpop.f32.mrf.mxu0 }
 0x14e   :  { %5313 = vmatpush.bf16.msrb.mxu3 %v8255_v51  ;;  %v10320_v23 = vld [vmem:[%s15625_s1 + $0x12a4] sm:$0xf]  ;;  %v8844_v24 = vld [vmem:[%s15625_s1 + $0x12b0] sm:$0xf0]  ;;  %v8719_v35 = vor.u32 %v10288_v44, %v8716_v19 }
 0x14f   :  { %5323 = vmatpush.bf16.msra.mxu0 %v8431_v52  ;;  %5288 = vmatmul.bf16.vlgmr.msrb.gmra.mxu1 %v11260_v28  ;;  %v10204_v30 = vld [vmem:[%s15625_s1 + $0xf04] sm:$0xf]  ;;  %v8380_v36 = vld [vmem:[%s15625_s1 + $0xf10] sm:$0xf0]  ;;  %v8847_v29 = vor.u32 %v10320_v23, %v8844_v24  ;;  %v5069_v52 = vadd.f32 %v5068_v48, %v12573_v55 }
 0x150   :  { %5332 = vmatpush.bf16.msra.mxu1 %v8623_v53  ;;  %5301 = vmatmul.bf16.vlgmr.msrb.gmra.mxu2 %v11264_v32  ;;  %v10252_v38 = vld [vmem:[%s15625_s1 + $0x1084] sm:$0xf]  ;;  %v8572_v39 = vld [vmem:[%s15625_s1 + $0x1090] sm:$0xf0]  ;;  %v8383_v53 = vor.u32 %v10204_v30, %v8380_v36 }
 0x151   :  { %5345 = vmatpush.bf16.msra.mxu2 %v8751_v54  ;;  %5314 = vmatmul.bf16.vlgmr.msrb.gmra.mxu3 %v11262_v31  ;;  %v10284_v43 = vld [vmem:[%s15625_s1 + $0x1184] sm:$0xf]  ;;  %v8700_v45 = vld [vmem:[%s15625_s1 + $0x1190] sm:$0xf0]  ;;  %v5081_v54 = vpop.f32.mrf.mxu1  ;;  %v8575_v46 = vor.u32 %v10252_v38, %v8572_v39 }
 0x152   :  { %5358 = vmatpush.bf16.msra.mxu3 %v8879_v58  ;;  %v10316_v47 = vld [vmem:[%s15625_s1 + $0x1284] sm:$0xf]  ;;  %v8828_v49 = vld [vmem:[%s15625_s1 + $0x1290] sm:$0xf0]  ;;  %v8703_v56 = vor.u32 %v10284_v43, %v8700_v45  ;;  %v5082_v60 = vadd.f32 %v5081_v54, %v5069_v52 }
 0x153   :  { %5324 = vmatpush.bf16.msra.mxu0 %v8415_v4  ;;  %v10360_v50 = vld [vmem:[%s15625_s1 + $0x13e4] sm:$0xf]  ;;  %v9004_v51 = vld [vmem:[%s15625_s1 + $0x13f0] sm:$0xf0]  ;;  %v8831_v59 = vor.u32 %v10316_v47, %v8828_v49  ;;  %v5094_v44 = vpop.f32.mrf.mxu2 }
 0x154   :  { %5333 = vmatpush.bf16.msra.mxu1 %v8607_v5  ;;  %v10248_v57 = vld [vmem:[%s15625_s1 + $0x1064] sm:$0xf]  ;;  %v8556_v58 = vld [vmem:[%s15625_s1 + $0x1070] sm:$0xf0]  ;;  %v9007_v62 = vor.u32 %v10360_v50, %v9004_v51  ;;  %v5095_v30 = vadd.f32 %v5094_v44, %v5082_v60 }
 0x155   :  { %5346 = vmatpush.bf16.msra.mxu2 %v8735_v6  ;;  %v10280_v55 = vld [vmem:[%s15625_s1 + $0x1164] sm:$0xf]  ;;  %v8684_v63 = vld [vmem:[%s15625_s1 + $0x1170] sm:$0xf0]  ;;  %v8559_v8 = vor.u32 %v10248_v57, %v8556_v58 }
 0x156   :  { %5359 = vmatpush.bf16.msra.mxu3 %v8863_v14  ;;  %v10312_v3 = vld [vmem:[%s15625_s1 + $0x1264] sm:$0xf]  ;;  %v8812_v4 = vld [vmem:[%s15625_s1 + $0x1270] sm:$0xf0]  ;;  %v8687_v10 = vor.u32 %v10280_v55, %v8684_v63 }
 0x157   :  { %5325 = vmatpush.bf16.msra.mxu0 %v8399_v27  ;;  %v10356_v5 = vld [vmem:[%s15625_s1 + $0x13c4] sm:$0xf]  ;;  %v8988_v6 = vld [vmem:[%s15625_s1 + $0x13d0] sm:$0xf0]  ;;  %v8815_v15 = vor.u32 %v10312_v3, %v8812_v4 }
 0x158   :  { %5334 = vmatpush.bf16.msra.mxu1 %v8591_v34  ;;  %v10244_v11 = vld [vmem:[%s15625_s1 + $0x1044] sm:$0xf]  ;;  %v8540_v14 = vld [vmem:[%s15625_s1 + $0x1050] sm:$0xf0]  ;;  %v8991_v19 = vor.u32 %v10356_v5, %v8988_v6  ;;  %v5070_v34 = vpop.f32.mrf.mxu0 }
 0x159   :  { %5347 = vmatpush.bf16.msra.mxu2 %v8719_v35  ;;  %v10276_v23 = vld [vmem:[%s15625_s1 + $0x1144] sm:$0xf]  ;;  %v8668_v24 = vld [vmem:[%s15625_s1 + $0x1150] sm:$0xf0]  ;;  %v5107_v35 = vpop.f32.mrf.mxu3  ;;  %v8543_v45 = vor.u32 %v10244_v11, %v8540_v14 }
 0x15a   :  { %5360 = vmatpush.bf16.msra.mxu3 %v8847_v29  ;;  %v10308_v27 = vld [vmem:[%s15625_s1 + $0x1244] sm:$0xf]  ;;  %v8796_v36 = vld [vmem:[%s15625_s1 + $0x1250] sm:$0xf0]  ;;  %v5083_v29 = vpop.f32.mrf.mxu1  ;;  %v5108_v43 = vadd.f32 %v5107_v35, %v5095_v30  ;;  %v8671_v47 = vor.u32 %v10276_v23, %v8668_v24 }
 0x15b   :  { %5326 = vmatpush.bf16.msra.mxu0 %v8383_v53  ;;  %v10352_v38 = vld [vmem:[%s15625_s1 + $0x13a4] sm:$0xf]  ;;  %v8972_v39 = vld [vmem:[%s15625_s1 + $0x13b0] sm:$0xf0]  ;;  %v8799_v50 = vor.u32 %v10308_v27, %v8796_v36 }
 0x15c   :  { %5335 = vmatpush.bf16.msra.mxu1 %v8575_v46  ;;  %v10240_v48 = vld [vmem:[%s15625_s1 + $0x1024] sm:$0xf]  ;;  %v8524_v49 = vld [vmem:[%s15625_s1 + $0x1030] sm:$0xf0]  ;;  %v8975_v51 = vor.u32 %v10352_v38, %v8972_v39 }
 0x15d   :  { %5348 = vmatpush.bf16.msra.mxu2 %v8703_v56  ;;  %v10272_v52 = vld [vmem:[%s15625_s1 + $0x1124] sm:$0xf]  ;;  %v8652_v53 = vld [vmem:[%s15625_s1 + $0x1130] sm:$0xf0]  ;;  %v8527_v58 = vor.u32 %v10240_v48, %v8524_v49 }
 0x15e   :  { %5361 = vmatpush.bf16.msra.mxu3 %v8831_v59  ;;  %5327 = vmatmul.bf16.vlgmr.msra.gmra.mxu0 %v11266_v33  ;;  %v10304_v54 = vld [vmem:[%s15625_s1 + $0x1224] sm:$0xf]  ;;  %v8780_v46 = vld [vmem:[%s15625_s1 + $0x1230] sm:$0xf0]  ;;  %v8655_v59 = vor.u32 %v10272_v52, %v8652_v53 }
 0x15f   :  { %5371 = vmatpush.bf16.msrb.mxu0 %v9007_v62  ;;  %v10348_v56 = vld [vmem:[%s15625_s1 + $0x1384] sm:$0xf]  ;;  %v8956_v57 = vld [vmem:[%s15625_s1 + $0x1390] sm:$0xf0]  ;;  %v8783_v63 = vor.u32 %v10304_v54, %v8780_v46 }
 0x160   :  { %5336 = vmatpush.bf16.msra.mxu1 %v8559_v8  ;;  %v10236_v60 = vld [vmem:[%s15625_s1 + $0x1004] sm:$0xf]  ;;  %v8508_v62 = vld [vmem:[%s15625_s1 + $0x1010] sm:$0xf0]  ;;  %v8959_v3 = vor.u32 %v10348_v56, %v8956_v57  ;;  %v5096_v8 = vpop.f32.mrf.mxu2  ;;  %v5120_v44 = vpop.f32.mrf.mxu0 }
 0x161   :  { %5349 = vmatpush.bf16.msra.mxu2 %v8687_v10  ;;  %v10268_v55 = vld [vmem:[%s15625_s1 + $0x1104] sm:$0xf]  ;;  %v8636_v4 = vld [vmem:[%s15625_s1 + $0x1110] sm:$0xf0]  ;;  %v12832_v27 = vadd.f32 %v5120_v44, %v5108_v43  ;;  %v8511_v30 = vor.u32 %v10236_v60, %v8508_v62 }
 0x162   :  { %5362 = vmatpush.bf16.msra.mxu3 %v8815_v15  ;;  %v10300_v5 = vld [vmem:[%s15625_s1 + $0x1204] sm:$0xf]  ;;  %v8764_v6 = vld [vmem:[%s15625_s1 + $0x1210] sm:$0xf0]  ;;  %v5109_v15 = vpop.f32.mrf.mxu3  ;;  %v8639_v34 = vor.u32 %v10268_v55, %v8636_v4 }
 0x163   :  { %5372 = vmatpush.bf16.msrb.mxu0 %v8991_v19  ;;  %v10344_v10 = vld [vmem:[%s15625_s1 + $0x1364] sm:$0xf]  ;;  %v8940_v11 = vld [vmem:[%s15625_s1 + $0x1370] sm:$0xf0]  ;;  %v8767_v38 = vor.u32 %v10300_v5, %v8764_v6 }
 0x164   :  { %5337 = vmatpush.bf16.msra.mxu1 %v8543_v45  ;;  %v10392_v14 = vld [vmem:[%s15625_s1 + $0x14e4] sm:$0xf]  ;;  %v9132_v19 = vld [vmem:[%s15625_s1 + $0x14f0] sm:$0xf0]  ;;  %v8943_v39 = vor.u32 %v10344_v10, %v8940_v11 }
 0x165   :  { %5350 = vmatpush.bf16.msra.mxu2 %v8671_v47  ;;  %v10424_v23 = vld [vmem:[%s15625_s1 + $0x15e4] sm:$0xf]  ;;  %v9260_v24 = vld [vmem:[%s15625_s1 + $0x15f0] sm:$0xf0]  ;;  %v9135_v29 = vor.u32 %v10392_v14, %v9132_v19 }
 0x166   :  { %5363 = vmatpush.bf16.msra.mxu3 %v8799_v50  ;;  %v10456_v35 = vld [vmem:[%s15625_s1 + $0x16e4] sm:$0xf]  ;;  %v9388_v36 = vld [vmem:[%s15625_s1 + $0x16f0] sm:$0xf0]  ;;  %v9263_v45 = vor.u32 %v10424_v23, %v9260_v24 }
 0x167   :  { %5373 = vmatpush.bf16.msrb.mxu0 %v8975_v51  ;;  %v10340_v43 = vld [vmem:[%s15625_s1 + $0x1344] sm:$0xf]  ;;  %v8924_v47 = vld [vmem:[%s15625_s1 + $0x1350] sm:$0xf0]  ;;  %v9391_v49 = vor.u32 %v10456_v35, %v9388_v36  ;;  %v10547_v35 = vld [vmem:[%s15627_s2] sm:$0xf] }
 0x168   :  { %5338 = vmatpush.bf16.msra.mxu1 %v8527_v58  ;;  %v10388_v48 = vld [vmem:[%s15625_s1 + $0x14c4] sm:$0xf]  ;;  %v9116_v50 = vld [vmem:[%s15625_s1 + $0x14d0] sm:$0xf0]  ;;  %v8927_v46 = vor.u32 %v10340_v43, %v8924_v47  ;;  %v5122_v4 = vpop.f32.mrf.mxu0  ;;  %v812_v36 = vperm.slane %v10547_v35, 1 }
 0x169   :  { %5351 = vmatpush.bf16.msra.mxu2 %v8655_v59  ;;  %v10420_v51 = vld [vmem:[%s15625_s1 + $0x15c4] sm:$0xf]  ;;  %v9244_v52 = vld [vmem:[%s15625_s1 + $0x15d0] sm:$0xf0]  ;;  %v9119_v56 = vor.u32 %v10388_v48, %v9116_v50 }
 0x16a   :  { %5364 = vmatpush.bf16.msra.mxu3 %v8783_v63  ;;  %v10452_v53 = vld [vmem:[%s15625_s1 + $0x16c4] sm:$0xf]  ;;  %v9372_v54 = vld [vmem:[%s15625_s1 + $0x16d0] sm:$0xf0]  ;;  %v9247_v57 = vor.u32 %v10420_v51, %v9244_v52 }
 0x16b   :  { %5374 = vmatpush.bf16.msrb.mxu0 %v8959_v3  ;;  %v10336_v58 = vld [vmem:[%s15625_s1 + $0x1324] sm:$0xf]  ;;  %v8908_v59 = vld [vmem:[%s15625_s1 + $0x1330] sm:$0xf0]  ;;  %v9375_v62 = vor.u32 %v10452_v53, %v9372_v54 }
 0x16c   :  { %5339 = vmatpush.bf16.msra.mxu1 %v8511_v30  ;;  %v10384_v60 = vld [vmem:[%s15625_s1 + $0x14a4] sm:$0xf]  ;;  %v9100_v55 = vld [vmem:[%s15625_s1 + $0x14b0] sm:$0xf0]  ;;  %v8911_v8 = vor.u32 %v10336_v58, %v8908_v59  ;;  %v5133_v43 = vpop.f32.mrf.mxu1 }
 0x16d   :  { %5352 = vmatpush.bf16.msra.mxu2 %v8639_v34  ;;  %v10416_v63 = vld [vmem:[%s15625_s1 + $0x15a4] sm:$0xf]  ;;  %v9228_v3 = vld [vmem:[%s15625_s1 + $0x15b0] sm:$0xf0]  ;;  %v9103_v14 = vor.u32 %v10384_v60, %v9100_v55 }
 0x16e   :  { %5365 = vmatpush.bf16.msra.mxu3 %v8767_v38  ;;  %v10448_v5 = vld [vmem:[%s15625_s1 + $0x16a4] sm:$0xf]  ;;  %v9356_v6 = vld [vmem:[%s15625_s1 + $0x16b0] sm:$0xf0]  ;;  %v9231_v15 = vor.u32 %v10416_v63, %v9228_v3 }
 0x16f   :  { %5375 = vmatpush.bf16.msrb.mxu0 %v8943_v39  ;;  %5340 = vmatmul.bf16.vlgmr.msra.gmra.mxu1 %v11630_v9  ;;  %v10332_v10 = vld [vmem:[%s15625_s1 + $0x1304] sm:$0xf]  ;;  %v8892_v11 = vld [vmem:[%s15625_s1 + $0x1310] sm:$0xf0]  ;;  %v9359_v24 = vor.u32 %v10448_v5, %v9356_v6 }
 0x170   :  { %5384 = vmatpush.bf16.msrb.mxu1 %v9135_v29  ;;  %5353 = vmatmul.bf16.vlgmr.msra.gmra.mxu2 %v11643_v18  ;;  %v10380_v44 = vld [vmem:[%s15625_s1 + $0x1484] sm:$0xf]  ;;  %v9084_v19 = vld [vmem:[%s15625_s1 + $0x1490] sm:$0xf0] }
 0x171   :  { %5397 = vmatpush.bf16.msrb.mxu2 %v9263_v45  ;;  %5366 = vmatmul.bf16.vlgmr.msra.gmra.mxu3 %v11641_v16  ;;  %v10412_v23 = vld [vmem:[%s15625_s1 + $0x1584] sm:$0xf]  ;;  %v9212_v30 = vld [vmem:[%s15625_s1 + $0x1590] sm:$0xf0]  ;;  %v8895_v45 = vor.u32 %v10332_v10, %v8892_v11  ;;  %v9087_v47 = vor.u32 %v10380_v44, %v9084_v19 }
 0x172   :  { %5410 = vmatpush.bf16.msrb.mxu3 %v9391_v49  ;;  %v10444_v34 = vld [vmem:[%s15625_s1 + $0x1684] sm:$0xf]  ;;  %v9340_v38 = vld [vmem:[%s15625_s1 + $0x1690] sm:$0xf0]  ;;  %v9215_v48 = vor.u32 %v10412_v23, %v9212_v30 }
 0x173   :  { %5376 = vmatpush.bf16.msrb.mxu0 %v8927_v46  ;;  %v10488_v39 = vld [vmem:[%s15625_s1 + $0x17e4] sm:$0xf]  ;;  %v9516_v29 = vld [vmem:[%s15625_s1 + $0x17f0] sm:$0xf0]  ;;  %v9343_v51 = vor.u32 %v10444_v34, %v9340_v38  ;;  %v5146_v3 = vpop.f32.mrf.mxu2 }
 0x174   :  { %5385 = vmatpush.bf16.msrb.mxu1 %v9119_v56  ;;  %v10376_v49 = vld [vmem:[%s15625_s1 + $0x1464] sm:$0xf]  ;;  %v9068_v50 = vld [vmem:[%s15625_s1 + $0x1470] sm:$0xf0]  ;;  %v9519_v52 = vor.u32 %v10488_v39, %v9516_v29  ;;  %v5134_v56 = vadd.f32 %v5133_v43, %v812_v36 }
 0x175   :  { %5398 = vmatpush.bf16.msrb.mxu2 %v9247_v57  ;;  %v10408_v53 = vld [vmem:[%s15625_s1 + $0x1564] sm:$0xf]  ;;  %v9196_v54 = vld [vmem:[%s15625_s1 + $0x1570] sm:$0xf0]  ;;  %v9071_v60 = vor.u32 %v10376_v49, %v9068_v50 }
 0x176   :  { %5411 = vmatpush.bf16.msrb.mxu3 %v9375_v62  ;;  %v10440_v46 = vld [vmem:[%s15625_s1 + $0x1664] sm:$0xf]  ;;  %v9324_v57 = vld [vmem:[%s15625_s1 + $0x1670] sm:$0xf0]  ;;  %v9199_v62 = vor.u32 %v10408_v53, %v9196_v54  ;;  %v5147_v11 = vadd.f32 %v5146_v3, %v5134_v56 }
 0x177   :  { %5377 = vmatpush.bf16.msrb.mxu0 %v8911_v8  ;;  %v10484_v58 = vld [vmem:[%s15625_s1 + $0x17c4] sm:$0xf]  ;;  %v9500_v59 = vld [vmem:[%s15625_s1 + $0x17d0] sm:$0xf0]  ;;  %v9327_v4 = vor.u32 %v10440_v46, %v9324_v57 }
 0x178   :  { %5386 = vmatpush.bf16.msrb.mxu1 %v9103_v14  ;;  %v10372_v55 = vld [vmem:[%s15625_s1 + $0x1444] sm:$0xf]  ;;  %v9052_v63 = vld [vmem:[%s15625_s1 + $0x1450] sm:$0xf0]  ;;  %v9503_v5 = vor.u32 %v10484_v58, %v9500_v59  ;;  %v5159_v14 = vpop.f32.mrf.mxu3 }
 0x179   :  { %5399 = vmatpush.bf16.msrb.mxu2 %v9231_v15  ;;  %v10404_v6 = vld [vmem:[%s15625_s1 + $0x1544] sm:$0xf]  ;;  %v9180_v8 = vld [vmem:[%s15625_s1 + $0x1550] sm:$0xf0]  ;;  %v5160_v23 = vadd.f32 %v5159_v14, %v5147_v11  ;;  %v9055_v30 = vor.u32 %v10372_v55, %v9052_v63 }
 0x17a   :  { %5412 = vmatpush.bf16.msrb.mxu3 %v9359_v24  ;;  %v10436_v10 = vld [vmem:[%s15625_s1 + $0x1644] sm:$0xf]  ;;  %v9308_v15 = vld [vmem:[%s15625_s1 + $0x1650] sm:$0xf0]  ;;  %v5135_v24 = vpop.f32.mrf.mxu1  ;;  %v9183_v34 = vor.u32 %v10404_v6, %v9180_v8  ;;  %v6578_v8 = vld [vmem:[%s15625_s1 + $0xe8] sm:$0xf] }
 0x17b   :  { %5378 = vmatpush.bf16.msrb.mxu0 %v8895_v45  ;;  %v10480_v44 = vld [vmem:[%s15625_s1 + $0x17a4] sm:$0xf]  ;;  %v9484_v19 = vld [vmem:[%s15625_s1 + $0x17b0] sm:$0xf0]  ;;  %v9311_v38 = vor.u32 %v10436_v10, %v9308_v15  ;;  %v5172_v50 = vpop.f32.mrf.mxu0  ;;  %v5148_v57 = vpop.f32.mrf.mxu2  ;;  %v9755_v10 = vld [vmem:[%s15625_s1 + $0xf4] sm:$0xf0] }
 0x17c   :  { %5387 = vmatpush.bf16.msrb.mxu1 %v9087_v47  ;;  %v10368_v35 = vld [vmem:[%s15625_s1 + $0x1424] sm:$0xf]  ;;  %v9036_v36 = vld [vmem:[%s15625_s1 + $0x1430] sm:$0xf0]  ;;  %v9487_v39 = vor.u32 %v10480_v44, %v9484_v19  ;;  %v13006_v56 = vadd.f32 %v5172_v50, %v5160_v23  ;;  %v6706_v15 = vld [vmem:[%s15625_s1 + $0x1e8] sm:$0xf] }
 0x17d   :  { %5400 = vmatpush.bf16.msrb.mxu2 %v9215_v48  ;;  %v10400_v29 = vld [vmem:[%s15625_s1 + $0x1524] sm:$0xf]  ;;  %v9164_v45 = vld [vmem:[%s15625_s1 + $0x1530] sm:$0xf0]  ;;  %v9787_v44 = vld [vmem:[%s15625_s1 + $0x1f4] sm:$0xf0] }
 0x17e   :  { %5413 = vmatpush.bf16.msrb.mxu3 %v9343_v51  ;;  %5379 = vmatmul.bf16.vlgmr.msrb.gmra.mxu0 %v11654_v25  ;;  %v10432_v43 = vld [vmem:[%s15625_s1 + $0x1624] sm:$0xf]  ;;  %v9292_v47 = vld [vmem:[%s15625_s1 + $0x1630] sm:$0xf0]  ;;  %v9039_v51 = vor.u32 %v10368_v35, %v9036_v36 }
 0x17f   :  { %5423 = vmatpush.bf16.msra.mxu0 %v9519_v52  ;;  %v10476_v48 = vld [vmem:[%s15625_s1 + $0x1784] sm:$0xf]  ;;  %v9468_v49 = vld [vmem:[%s15625_s1 + $0x1790] sm:$0xf0]  ;;  %v9167_v52 = vor.u32 %v10400_v29, %v9164_v45  ;;  %v9295_v58 = vor.u32 %v10432_v43, %v9292_v47  ;;  %v6562_v29 = vld [vmem:[%s15625_s1 + $0xc8] sm:$0xf] }
 0x180   :  { %5388 = vmatpush.bf16.msrb.mxu1 %v9071_v60  ;;  %v10364_v53 = vld [vmem:[%s15625_s1 + $0x1404] sm:$0xf]  ;;  %v9020_v54 = vld [vmem:[%s15625_s1 + $0x1410] sm:$0xf0]  ;;  %v9471_v59 = vor.u32 %v10476_v48, %v9468_v49  ;;  %v5161_v63 = vpop.f32.mrf.mxu3  ;;  %v9751_v45 = vld [vmem:[%s15625_s1 + $0xd4] sm:$0xf0] }
 0x181   :  { %5401 = vmatpush.bf16.msrb.mxu2 %v9199_v62  ;;  %v10396_v46 = vld [vmem:[%s15625_s1 + $0x1504] sm:$0xf]  ;;  %v9148_v60 = vld [vmem:[%s15625_s1 + $0x1510] sm:$0xf0]  ;;  %v9023_v11 = vor.u32 %v10364_v53, %v9020_v54  ;;  %v6690_v47 = vld [vmem:[%s15625_s1 + $0x1c8] sm:$0xf] }
 0x182   :  { %5414 = vmatpush.bf16.msrb.mxu3 %v9327_v4  ;;  %v10428_v62 = vld [vmem:[%s15625_s1 + $0x1604] sm:$0xf]  ;;  %v9276_v55 = vld [vmem:[%s15625_s1 + $0x1610] sm:$0xf0]  ;;  %v9151_v14 = vor.u32 %v10396_v46, %v9148_v60  ;;  %v9783_v48 = vld [vmem:[%s15625_s1 + $0x1d4] sm:$0xf0] }
 0x183   :  { %5424 = vmatpush.bf16.msra.mxu0 %v9503_v5  ;;  %v10472_v3 = vld [vmem:[%s15625_s1 + $0x1764] sm:$0xf]  ;;  %v9452_v4 = vld [vmem:[%s15625_s1 + $0x1770] sm:$0xf0]  ;;  %v9279_v19 = vor.u32 %v10428_v62, %v9276_v55  ;;  %v5174_v43 = vpop.f32.mrf.mxu0  ;;  %v6691_v46 = vor.u32 %v9783_v48, %v6690_v47  ;;  %v6674_v60 = vld [vmem:[%s15625_s1 + $0x1a8] sm:$0xf] }
 0x184   :  { %5389 = vmatpush.bf16.msrb.mxu1 %v9055_v30  ;;  %v10504_v5 = vld [vmem:[%s15625_s1 + $0x1864] sm:$0xf]  ;;  %v9580_v6 = vld [vmem:[%s15625_s1 + $0x1870] sm:$0xf0]  ;;  %v9455_v23 = vor.u32 %v10472_v3, %v9452_v4  ;;  %v6579_v30 = vor.u32 %v9755_v10, %v6578_v8  ;;  %v9779_v62 = vld [vmem:[%s15625_s1 + $0x1b4] sm:$0xf0] }
 0x185   :  { %5402 = vmatpush.bf16.msrb.mxu2 %v9183_v34  ;;  %v9583_v24 = vor.u32 %v10504_v5, %v9580_v6  ;;  %v10468_v34 = vld [vmem:[%s15625_s1 + $0x1744] sm:$0xf]  ;;  %v9436_v35 = vld [vmem:[%s15625_s1 + $0x1750] sm:$0xf0]  ;;  %v6675_v10 = vor.u32 %v9779_v62, %v6674_v60  ;;  %v6514_v43 = vld [vmem:[%s15625_s1 + $0x68] sm:$0xf] }
 0x186   :  { %5415 = vmatpush.bf16.msrb.mxu3 %v9311_v38  ;;  %v10500_v36 = vld [vmem:[%s15625_s1 + $0x1844] sm:$0xf]  ;;  %v6707_v38 = vor.u32 %v9787_v44, %v6706_v15  ;;  %v9439_v49 = vor.u32 %v10468_v34, %v9436_v35  ;;  %v9420_v53 = vld [vmem:[%s15625_s1 + $0x1730] sm:$0xf0]  ;;  %v6658_v15 = vld [vmem:[%s15625_s1 + $0x188] sm:$0xf] }
 0x187   :  { %5425 = vmatpush.bf16.msra.mxu0 %v9487_v39  ;;  %v9564_v39 = vld [vmem:[%s15625_s1 + $0x1850] sm:$0xf0]  ;;  %v10496_v54 = vld [vmem:[%s15625_s1 + $0x1824] sm:$0xf]  ;;  %v9775_v44 = vld [vmem:[%s15625_s1 + $0x194] sm:$0xf0] }
 0x188   :  { %5390 = vmatpush.bf16.msrb.mxu1 %v9039_v51  ;;  %v9567_v50 = vor.u32 %v10500_v36, %v9564_v39  ;;  %v6563_v51 = vor.u32 %v9751_v45, %v6562_v29  ;;  %v9548_v57 = vld [vmem:[%s15625_s1 + $0x1830] sm:$0xf0]  ;;  %v10460_v63 = vld [vmem:[%s15625_s1 + $0x1704] sm:$0xf]  ;;  %v9851_v34 = vld [vmem:[%s15625_s1 + $0x3f4] sm:$0xf0]  ;;  %v6659_v29 = vor.u32 %v9775_v44, %v6658_v15 }
 0x189   :  { %5403 = vmatpush.bf16.msrb.mxu2 %v9167_v52  ;;  %v10464_v52 = vld [vmem:[%s15625_s1 + $0x1724] sm:$0xf]  ;;  %v9551_v3 = vor.u32 %v10496_v54, %v9548_v57  ;;  %v9404_v5 = vld [vmem:[%s15625_s1 + $0x1710] sm:$0xf0]  ;;  %v9739_v47 = vld [vmem:[%s15625_s1 + $0x74] sm:$0xf0] }
 0x18a   :  { %5416 = vmatpush.bf16.msrb.mxu3 %v9295_v58  ;;  %v6546_v58 = vld [vmem:[%s15625_s1 + $0xa8] sm:$0xf]  ;;  %v9423_v55 = vor.u32 %v10464_v52, %v9420_v53  ;;  %v10492_v6 = vld [vmem:[%s15625_s1 + $0x1804] sm:$0xf]  ;;  %v9532_v8 = vld [vmem:[%s15625_s1 + $0x1810] sm:$0xf0]  ;;  %v6515_v54 = vor.u32 %v9739_v47, %v6514_v43 }
 0x18b   :  { %5426 = vmatpush.bf16.msra.mxu0 %v9471_v59  ;;  %v9747_v59 = vld [vmem:[%s15625_s1 + $0xb4] sm:$0xf0]  ;;  %v9535_v36 = vor.u32 %v10492_v6, %v9532_v8  ;;  %v6642_v48 = vld [vmem:[%s15625_s1 + $0x168] sm:$0xf] }
 0x18c   :  { %5391 = vmatpush.bf16.msrb.mxu1 %v9023_v11  ;;  %v6547_v4 = vor.u32 %v9747_v59, %v6546_v58  ;;  %v6530_v11 = vld [vmem:[%s15625_s1 + $0x88] sm:$0xf]  ;;  %v5185_v35 = vpop.f32.mrf.mxu1  ;;  %v9847_v53 = vld [vmem:[%s15625_s1 + $0x3d4] sm:$0xf0] }
 0x18d   :  { %5404 = vmatpush.bf16.msrb.mxu2 %v9151_v14  ;;  %v9743_v14 = vld [vmem:[%s15625_s1 + $0x94] sm:$0xf0]  ;;  %v5186_v39 = vadd.f32 %v5185_v35, %v13006_v56  ;;  %v6946_v52 = vld [vmem:[%s15625_s1 + $0x3c8] sm:$0xf] }
 0x18e   :  { %5417 = vmatpush.bf16.msrb.mxu3 %v9279_v19  ;;  %v6834_v19 = vld [vmem:[%s15625_s1 + $0x2e8] sm:$0xf]  ;;  %v9771_v56 = vld [vmem:[%s15625_s1 + $0x174] sm:$0xf0] }
 0x18f   :  { %5427 = vmatpush.bf16.msra.mxu0 %v9455_v23  ;;  %5392 = vmatmul.bf16.vlgmr.msrb.gmra.mxu1 %v11671_v37  ;;  %v9819_v23 = vld [vmem:[%s15625_s1 + $0x2f4] sm:$0xf0]  ;;  %v6643_v57 = vor.u32 %v9771_v56, %v6642_v48  ;;  %v6498_v59 = vld [vmem:[%s15625_s1 + $0x48] sm:$0xf] }
 0x190   :  { %5440 = vmatpush.bf16.msra.mxu1 %v9583_v24  ;;  %5405 = vmatmul.bf16.vlgmr.msrb.gmra.mxu2 %v11675_v41  ;;  %v9407_v24 = vor.u32 %v10460_v63, %v9404_v5  ;;  %v6835_v45 = vor.u32 %v9819_v23, %v6834_v19  ;;  %v9735_v60 = vld [vmem:[%s15625_s1 + $0x54] sm:$0xf0]  ;;  %v6626_v62 = vld [vmem:[%s15625_s1 + $0x148] sm:$0xf] }
 0x191   :  { %5449 = vmatpush.bf16.msra.mxu2 %v6579_v30  ;;  %5418 = vmatmul.bf16.vlgmr.msrb.gmra.mxu3 %v11673_v40  ;;  %v6962_v30 = vld [vmem:[%s15625_s1 + $0x3e8] sm:$0xf]  ;;  %v9811_v6 = vld [vmem:[%s15625_s1 + $0x2b4] sm:$0xf0]  ;;  %v6499_v15 = vor.u32 %v9735_v60, %v6498_v59 }
 0x192   :  { %5462 = vmatpush.bf16.msra.mxu3 %v6707_v38  ;;  %v6531_v38 = vor.u32 %v9743_v14, %v6530_v11  ;;  %v6802_v5 = vld [vmem:[%s15625_s1 + $0x2a8] sm:$0xf]  ;;  %v9763_v35 = vld [vmem:[%s15625_s1 + $0x134] sm:$0xf0] }
 0x193   :  { %5428 = vmatpush.bf16.msra.mxu0 %v9439_v49  ;;  %v6963_v49 = vor.u32 %v9851_v34, %v6962_v30  ;;  %v6930_v8 = vld [vmem:[%s15625_s1 + $0x3a8] sm:$0xf]  ;;  %v6803_v19 = vor.u32 %v9811_v6, %v6802_v5  ;;  %v9839_v43 = vld [vmem:[%s15625_s1 + $0x394] sm:$0xf0] }
 0x194   :  { %5441 = vmatpush.bf16.msra.mxu1 %v9567_v50  ;;  %v6818_v50 = vld [vmem:[%s15625_s1 + $0x2c8] sm:$0xf]  ;;  %v5211_v63 = vpop.f32.mrf.mxu3  ;;  %v5187_v14 = vpop.f32.mrf.mxu1  ;;  %v9803_v59 = vld [vmem:[%s15625_s1 + $0x274] sm:$0xf0] }
 0x195   :  { %5450 = vmatpush.bf16.msra.mxu2 %v6563_v51  ;;  %v9815_v51 = vld [vmem:[%s15625_s1 + $0x2d4] sm:$0xf0]  ;;  %v6482_v23 = vld [vmem:[%s15625_s1 + $0x28] sm:$0xf] }
 0x196   :  { %5463 = vmatpush.bf16.msra.mxu3 %v6691_v46  ;;  %v5198_v46 = vpop.f32.mrf.mxu2  ;;  %v6819_v58 = vor.u32 %v9815_v51, %v6818_v50  ;;  %v6610_v30 = vld [vmem:[%s15625_s1 + $0x128] sm:$0xf]  ;;  %v9915_v5 = vld [vmem:[%s15625_s1 + $0x5f4] sm:$0xf0] }
 0x197   :  { %5429 = vmatpush.bf16.msra.mxu0 %v9423_v55  ;;  %v5199_v55 = vadd.f32 %v5198_v46, %v5186_v39  ;;  %v10548_v39 = vld [vmem:[#allocation1] sm:$0xff]  ;;  %v6611_v50 = vor.u32 %v9763_v35, %v6610_v30  ;;  %v6898_v60 = vld [vmem:[%s15625_s1 + $0x368] sm:$0xf]  ;;  %v9879_v30 = vld [vmem:[%s15625_s1 + $0x4d4] sm:$0xf0] }
 0x198   :  { %5442 = vmatpush.bf16.msra.mxu1 %v9551_v3  ;;  %v6947_v3 = vor.u32 %v9847_v53, %v6946_v52  ;;  %v9727_v52 = vld [vmem:[%s15625_s1 + $0x14] sm:$0xf0]  ;;  %v6594_v53 = vld [vmem:[%s15625_s1 + $0x108] sm:$0xf] }
 0x199   :  { %5451 = vmatpush.bf16.msra.mxu2 %v6547_v4  ;;  %v9767_v4 = vld [vmem:[%s15625_s1 + $0x154] sm:$0xf0]  ;;  %v5212_v11 = vadd.f32 %v5211_v63, %v5199_v55  ;;  %v7090_v55 = vld [vmem:[%s15625_s1 + $0x4e8] sm:$0xf] }
 0x19a   :  { %5464 = vmatpush.bf16.msra.mxu3 %v6675_v10  ;;  %v9843_v10 = vld [vmem:[%s15625_s1 + $0x3b4] sm:$0xf0]  ;;  %v6627_v44 = vor.u32 %v9767_v4, %v6626_v62  ;;  %v7218_v4 = vld [vmem:[%s15625_s1 + $0x5e8] sm:$0xf] }
 0x19b   :  { %5430 = vmatpush.bf16.msra.mxu0 %v9407_v24  ;;  %v9731_v24 = vld [vmem:[%s15625_s1 + $0x34] sm:$0xf0]  ;;  %v6931_v34 = vor.u32 %v9843_v10, %v6930_v8  ;;  %v6754_v14 = vld [vmem:[%s15625_s1 + $0x248] sm:$0xf] }
 0x19c   :  { %5443 = vmatpush.bf16.msra.mxu1 %v9535_v36  ;;  %v6786_v36 = vld [vmem:[%s15625_s1 + $0x288] sm:$0xf]  ;;  %v6483_v47 = vor.u32 %v9731_v24, %v6482_v23  ;;  %v5213_v46 = vpop.f32.mrf.mxu3  ;;  %v9835_v62 = vld [vmem:[%s15625_s1 + $0x374] sm:$0xf0] }
 0x19d   :  { %5452 = vmatpush.bf16.msra.mxu2 %v6531_v38  ;;  %v9807_v38 = vld [vmem:[%s15625_s1 + $0x294] sm:$0xf0]  ;;  %v6899_v10 = vor.u32 %v9835_v62, %v6898_v60  ;;  %v7074_v24 = vld [vmem:[%s15625_s1 + $0x4c8] sm:$0xf] }
 0x19e   :  { %5465 = vmatpush.bf16.msra.mxu3 %v6659_v29  ;;  %5431 = vmatmul.bf16.vlgmr.msra.gmra.mxu0 %v11677_v42  ;;  %v5224_v29 = vpop.f32.mrf.mxu0  ;;  %v5200_v56 = vpop.f32.mrf.mxu2  ;;  %v6787_v51 = vor.u32 %v9807_v38, %v6786_v36  ;;  %v9883_v63 = vld [vmem:[%s15625_s1 + $0x4f4] sm:$0xf0]  ;;  %v7202_v35 = vld [vmem:[%s15625_s1 + $0x5c8] sm:$0xf] }
 0x19f   :  { %5475 = vmatpush.bf16.msrb.mxu0 %v6835_v45  ;;  %9593 = vmatmul.msk.bf16.vlgmr.msra.gmra.mxu1 %vm4796_vm0, %v10548_v39  ;;  %v6914_v45 = vld [vmem:[%s15625_s1 + $0x388] sm:$0xf]  ;;  %v13203_v48 = vadd.f32 %v5224_v29, %v5212_v11  ;;  %v7091_v11 = vor.u32 %v9883_v63, %v7090_v55  ;;  %v9831_v23 = vld [vmem:[%s15625_s1 + $0x354] sm:$0xf0]  ;;  %v7075_v29 = vor.u32 %v9879_v30, %v7074_v24 }
 0x1a0   :  { %5488 = vmatpush.bf16.msrb.mxu1 %v6963_v49  ;;  %v6466_v49 = vld [vmem:[%s15625_s1 + $0x8] sm:$0xf]  ;;  %v9911_v36 = vld [vmem:[%s15625_s1 + $0x5d4] sm:$0xf0] }
 0x1a1   :  { %5453 = vmatpush.bf16.msra.mxu2 %v6515_v54  ;;  %v9759_v54 = vld [vmem:[%s15625_s1 + $0x114] sm:$0xf0]  ;;  %v6722_v46 = vld [vmem:[%s15625_s1 + $0x208] sm:$0xf] }
 0x1a2   :  { %5466 = vmatpush.bf16.msra.mxu3 %v6643_v57  ;;  %v6915_v57 = vor.u32 %v9839_v43, %v6914_v45  ;;  %v6595_v6 = vor.u32 %v9759_v54, %v6594_v53  ;;  %v6738_v45 = vld [vmem:[%s15625_s1 + $0x228] sm:$0xf]  ;;  %v9795_v43 = vld [vmem:[%s15625_s1 + $0x234] sm:$0xf0] }
 0x1a3   :  { %5476 = vmatpush.bf16.msrb.mxu0 %v6819_v58  ;;  %v6770_v58 = vld [vmem:[%s15625_s1 + $0x268] sm:$0xf]  ;;  %v9827_v56 = vld [vmem:[%s15625_s1 + $0x334] sm:$0xf0]  ;;  %v6739_v54 = vor.u32 %v9795_v43, %v6738_v45 }
 0x1a4   :  { %5489 = vmatpush.bf16.msrb.mxu1 %v6947_v3  ;;  %v6467_v3 = vor.u32 %v9727_v52, %v6466_v49  ;;  %v6771_v8 = vor.u32 %v9803_v59, %v6770_v58  ;;  %v7203_v49 = vor.u32 %v9911_v36, %v7202_v35  ;;  %v7186_v52 = vld [vmem:[%s15625_s1 + $0x5a8] sm:$0xf]  ;;  %v9907_v53 = vld [vmem:[%s15625_s1 + $0x5b4] sm:$0xf0] }
 0x1a5   :  { %5454 = vmatpush.bf16.msra.mxu2 %v6499_v15  ;;  %v9799_v15 = vld [vmem:[%s15625_s1 + $0x254] sm:$0xf0]  ;;  %v6850_v60 = vld [vmem:[%s15625_s1 + $0x308] sm:$0xf]  ;;  %v7187_v55 = vor.u32 %v9907_v53, %v7186_v52 }
 0x1a6   :  { %5467 = vmatpush.bf16.msra.mxu3 %v6627_v44  ;;  %v6882_v44 = vld [vmem:[%s15625_s1 + $0x348] sm:$0xf]  ;;  %v6755_v38 = vor.u32 %v9799_v15, %v6754_v14  ;;  %v9791_v59 = vld [vmem:[%s15625_s1 + $0x214] sm:$0xf0] }
 0x1a7   :  { %5477 = vmatpush.bf16.msrb.mxu0 %v6803_v19  ;;  %v7219_v19 = vor.u32 %v9915_v5, %v7218_v4  ;;  %v6883_v39 = vor.u32 %v9831_v23, %v6882_v44  ;;  %v9823_v62 = vld [vmem:[%s15625_s1 + $0x314] sm:$0xf0]  ;;  %v7042_v63 = vld [vmem:[%s15625_s1 + $0x488] sm:$0xf]  ;;  %v6723_v14 = vor.u32 %v9791_v59, %v6722_v46 }
 0x1a8   :  { %5490 = vmatpush.bf16.msrb.mxu1 %v6931_v34  ;;  %v5226_v34 = vpop.f32.mrf.mxu0  ;;  %v7170_v4 = vld [vmem:[%s15625_s1 + $0x588] sm:$0xf]  ;;  %v9979_v44 = vld [vmem:[%s15625_s1 + $0x7f4] sm:$0xf0] }
 0x1a9   :  { %5455 = vmatpush.bf16.msra.mxu2 %v6483_v47  ;;  %v6866_v47 = vld [vmem:[%s15625_s1 + $0x328] sm:$0xf]  ;;  %v9867_v34 = vld [vmem:[%s15625_s1 + $0x474] sm:$0xf0] }
 0x1aa   :  { %5468 = vmatpush.bf16.msra.mxu3 %v6611_v50  ;;  %v7058_v50 = vld [vmem:[%s15625_s1 + $0x4a8] sm:$0xf]  ;;  %v9975_v43 = vld [vmem:[%s15625_s1 + $0x7d4] sm:$0xf0] }
 0x1ab   :  { %5478 = vmatpush.bf16.msrb.mxu0 %v6787_v51  ;;  %v9875_v51 = vld [vmem:[%s15625_s1 + $0x4b4] sm:$0xf0]  ;;  %v7474_v15 = vld [vmem:[%s15625_s1 + $0x7e8] sm:$0xf] }
 0x1ac   :  { %5491 = vmatpush.bf16.msrb.mxu1 %v6915_v57  ;;  %v6867_v57 = vor.u32 %v9827_v56, %v6866_v47  ;;  %v7059_v58 = vor.u32 %v9875_v51, %v7058_v50  ;;  %v5237_v5 = vpop.f32.mrf.mxu1  ;;  %v7154_v35 = vld [vmem:[%s15625_s1 + $0x568] sm:$0xf]  ;;  %v7475_v36 = vor.u32 %v9979_v44, %v7474_v15  ;;  %v9863_v53 = vld [vmem:[%s15625_s1 + $0x454] sm:$0xf0] }
 0x1ad   :  { %5456 = vmatpush.bf16.msra.mxu2 %v6467_v3  ;;  %v9871_v3 = vld [vmem:[%s15625_s1 + $0x494] sm:$0xf0]  ;;  %v7458_v45 = vld [vmem:[%s15625_s1 + $0x7c8] sm:$0xf] }
 0x1ae   :  { %5469 = vmatpush.bf16.msra.mxu3 %v6595_v6  ;;  %v9903_v6 = vld [vmem:[%s15625_s1 + $0x594] sm:$0xf0]  ;;  %v7043_v23 = vor.u32 %v9871_v3, %v7042_v63  ;;  %v7010_v52 = vld [vmem:[%s15625_s1 + $0x448] sm:$0xf] }
 0x1af   :  { %5479 = vmatpush.bf16.msrb.mxu0 %v6771_v8  ;;  %v7346_v8 = vld [vmem:[%s15625_s1 + $0x6e8] sm:$0xf]  ;;  %v7171_v24 = vor.u32 %v9903_v6, %v7170_v4  ;;  %v9971_v63 = vld [vmem:[%s15625_s1 + $0x7b4] sm:$0xf0]  ;;  %v7011_v4 = vor.u32 %v9863_v53, %v7010_v52 }
 0x1b0   :  { %5492 = vmatpush.bf16.msrb.mxu1 %v6899_v10  ;;  %5457 = vmatmul.bf16.vlgmr.msra.gmra.mxu2 %v10888_v21  ;;  %v9947_v10 = vld [vmem:[%s15625_s1 + $0x6f4] sm:$0xf0]  ;;  %v7314_v59 = vld [vmem:[%s15625_s1 + $0x6a8] sm:$0xf] }
 0x1b1   :  { %5501 = vmatpush.bf16.msrb.mxu2 %v7091_v11  ;;  %5470 = vmatmul.bf16.vlgmr.msra.gmra.mxu3 %v10899_v26  ;;  %v5238_v11 = vadd.f32 %v5237_v5, %v13203_v48  ;;  %v7347_v30 = vor.u32 %v9947_v10, %v7346_v8  ;;  %v7026_v48 = vld [vmem:[%s15625_s1 + $0x468] sm:$0xf]  ;;  %v9859_v10 = vld [vmem:[%s15625_s1 + $0x434] sm:$0xf0] }
 0x1b2   :  { %5514 = vmatpush.bf16.msrb.mxu3 %v7219_v19  ;;  %v6851_v19 = vor.u32 %v9823_v62, %v6850_v60  ;;  %v7027_v47 = vor.u32 %v9867_v34, %v7026_v48  ;;  %v9939_v60 = vld [vmem:[%s15625_s1 + $0x6b4] sm:$0xf0]  ;;  %v6994_v8 = vld [vmem:[%s15625_s1 + $0x428] sm:$0xf] }
 0x1b3   :  { %5480 = vmatpush.bf16.msrb.mxu0 %v6755_v38  ;;  %v9899_v38 = vld [vmem:[%s15625_s1 + $0x574] sm:$0xf0]  ;;  %v5250_v56 = vpop.f32.mrf.mxu2  ;;  %v7315_v6 = vor.u32 %v9939_v60, %v7314_v59  ;;  %v7298_v44 = vld [vmem:[%s15625_s1 + $0x688] sm:$0xf]  ;;  %v6995_v34 = vor.u32 %v9859_v10, %v6994_v8 }
 0x1b4   :  { %5493 = vmatpush.bf16.msrb.mxu1 %v6883_v39  ;;  %v7330_v39 = vld [vmem:[%s15625_s1 + $0x6c8] sm:$0xf]  ;;  %v5263_v51 = vpop.f32.mrf.mxu3  ;;  %v5251_v46 = vadd.f32 %v5250_v56, %v5238_v11  ;;  %v5239_v62 = vpop.f32.mrf.mxu1  ;;  %v9891_v15 = vld [vmem:[%s15625_s1 + $0x534] sm:$0xf0] }
 0x1b5   :  { %5502 = vmatpush.bf16.msrb.mxu2 %v7075_v29  ;;  %v9943_v29 = vld [vmem:[%s15625_s1 + $0x6d4] sm:$0xf0]  ;;  %v7122_v11 = vld [vmem:[%s15625_s1 + $0x528] sm:$0xf] }
 0x1b6   :  { %5515 = vmatpush.bf16.msrb.mxu3 %v7203_v49  ;;  %v7155_v49 = vor.u32 %v9899_v38, %v7154_v35  ;;  %v7331_v50 = vor.u32 %v9943_v29, %v7330_v39  ;;  %v5264_v3 = vadd.f32 %v5263_v51, %v5251_v46  ;;  %v6978_v35 = vld [vmem:[%s15625_s1 + $0x408] sm:$0xf]  ;;  %v9855_v39 = vld [vmem:[%s15625_s1 + $0x414] sm:$0xf0] }
 0x1b7   :  { %5481 = vmatpush.bf16.msrb.mxu0 %v6739_v54  ;;  %v7138_v54 = vld [vmem:[%s15625_s1 + $0x548] sm:$0xf]  ;;  %v9963_v52 = vld [vmem:[%s15625_s1 + $0x774] sm:$0xf0]  ;;  %v6979_v46 = vor.u32 %v9855_v39, %v6978_v35 }
 0x1b8   :  { %5494 = vmatpush.bf16.msrb.mxu1 %v6867_v57  ;;  %v7459_v57 = vor.u32 %v9975_v43, %v7458_v45  ;;  %v7106_v29 = vld [vmem:[%s15625_s1 + $0x508] sm:$0xf]  ;;  %v9887_v45 = vld [vmem:[%s15625_s1 + $0x514] sm:$0xf0] }
 0x1b9   :  { %5503 = vmatpush.bf16.msrb.mxu2 %v7059_v58  ;;  %v9895_v58 = vld [vmem:[%s15625_s1 + $0x554] sm:$0xf0]  ;;  %v7282_v56 = vld [vmem:[%s15625_s1 + $0x668] sm:$0xf]  ;;  %v7107_v59 = vor.u32 %v9887_v45, %v7106_v29 }
 0x1ba   :  { %5516 = vmatpush.bf16.msrb.mxu3 %v7187_v55  ;;  %v7442_v55 = vld [vmem:[%s15625_s1 + $0x7a8] sm:$0xf]  ;;  %v7139_v5 = vor.u32 %v9895_v58, %v7138_v54  ;;  %v10011_v54 = vld [vmem:[%s15625_s1 + $0x8f4] sm:$0xf0] }
 0x1bb   :  { %5482 = vmatpush.bf16.msrb.mxu0 %v6723_v14  ;;  %v7443_v14 = vor.u32 %v9971_v63, %v7442_v55  ;;  %v5252_v43 = vpop.f32.mrf.mxu2  ;;  %v7410_v51 = vld [vmem:[%s15625_s1 + $0x768] sm:$0xf]  ;;  %v10043_v58 = vld [vmem:[%s15625_s1 + $0x9f4] sm:$0xf0] }
 0x1bc   :  { %5495 = vmatpush.bf16.msrb.mxu1 %v6851_v19  ;;  %v9935_v19 = vld [vmem:[%s15625_s1 + $0x694] sm:$0xf0]  ;;  %v7602_v53 = vld [vmem:[%s15625_s1 + $0x8e8] sm:$0xf]  ;;  %v7411_v62 = vor.u32 %v9963_v52, %v7410_v51 }
 0x1bd   :  { %5504 = vmatpush.bf16.msrb.mxu2 %v7043_v23  ;;  %v5276_v23 = vpop.f32.mrf.mxu0  ;;  %v7299_v38 = vor.u32 %v9935_v19, %v7298_v44  ;;  %v7603_v55 = vor.u32 %v10011_v54, %v7602_v53  ;;  %v7266_v63 = vld [vmem:[%s15625_s1 + $0x648] sm:$0xf]  ;;  %v10007_v10 = vld [vmem:[%s15625_s1 + $0x8d4] sm:$0xf0] }
 0x1be   :  { %5517 = vmatpush.bf16.msrb.mxu3 %v7171_v24  ;;  %5483 = vmatmul.bf16.vlgmr.msrb.gmra.mxu0 %v10886_v20  ;;  %v7426_v24 = vld [vmem:[%s15625_s1 + $0x788] sm:$0xf]  ;;  %v13402_v48 = vadd.f32 %v5276_v23, %v5264_v3  ;;  %v9927_v3 = vld [vmem:[%s15625_s1 + $0x654] sm:$0xf0] }
 0x1bf   :  { %5527 = vmatpush.bf16.msra.mxu0 %v7347_v30  ;;  %5496 = vmatmul.bf16.vlgmr.msrb.gmra.mxu1 %v10890_v22  ;;  %v9967_v30 = vld [vmem:[%s15625_s1 + $0x794] sm:$0xf0]  ;;  %v7586_v8 = vld [vmem:[%s15625_s1 + $0x8c8] sm:$0xf]  ;;  %v7267_v44 = vor.u32 %v9927_v3, %v7266_v63 }
 0x1c0   :  { %5540 = vmatpush.bf16.msra.mxu1 %v7475_v36  ;;  %v7123_v36 = vor.u32 %v9891_v15, %v7122_v11  ;;  %v10039_v15 = vld [vmem:[%s15625_s1 + $0x9d4] sm:$0xf0]  ;;  %v7587_v23 = vor.u32 %v10007_v10, %v7586_v8  ;;  %v7698_v29 = vld [vmem:[%s15625_s1 + $0x9a8] sm:$0xf] }
 0x1c1   :  { %5505 = vmatpush.bf16.msrb.mxu2 %v7027_v47  ;;  %v5265_v47 = vpop.f32.mrf.mxu3  ;;  %v10003_v39 = vld [vmem:[%s15625_s1 + $0x8b4] sm:$0xf0]  ;;  %v7362_v51 = vld [vmem:[%s15625_s1 + $0x708] sm:$0xf] }
 0x1c2   :  { %5518 = vmatpush.bf16.msrb.mxu3 %v7155_v49  ;;  %v7427_v49 = vor.u32 %v9967_v30, %v7426_v24  ;;  %v7250_v24 = vld [vmem:[%s15625_s1 + $0x628] sm:$0xf]  ;;  %v9923_v30 = vld [vmem:[%s15625_s1 + $0x634] sm:$0xf0] }
 0x1c3   :  { %5528 = vmatpush.bf16.msra.mxu0 %v7331_v50  ;;  %v9931_v50 = vld [vmem:[%s15625_s1 + $0x674] sm:$0xf0]  ;;  %v7251_v43 = vor.u32 %v9923_v30, %v7250_v24  ;;  %v7234_v47 = vld [vmem:[%s15625_s1 + $0x608] sm:$0xf] }
 0x1c4   :  { %5541 = vmatpush.bf16.msra.mxu1 %v7459_v57  ;;  %v7730_v57 = vld [vmem:[%s15625_s1 + $0x9e8] sm:$0xf]  ;;  %v7283_v60 = vor.u32 %v9931_v50, %v7282_v56  ;;  %v10035_v45 = vld [vmem:[%s15625_s1 + $0x9b4] sm:$0xf0] }
 0x1c5   :  { %5506 = vmatpush.bf16.msrb.mxu2 %v7011_v4  ;;  %v7394_v4 = vld [vmem:[%s15625_s1 + $0x748] sm:$0xf]  ;;  %v5278_v11 = vpop.f32.mrf.mxu0  ;;  %v9919_v50 = vld [vmem:[%s15625_s1 + $0x614] sm:$0xf0]  ;;  %v7699_v53 = vor.u32 %v10035_v45, %v7698_v29 }
 0x1c6   :  { %5519 = vmatpush.bf16.msrb.mxu3 %v7139_v5  ;;  %v7731_v5 = vor.u32 %v10043_v58, %v7730_v57  ;;  %v9951_v52 = vld [vmem:[%s15625_s1 + $0x714] sm:$0xf0]  ;;  %v7554_v54 = vld [vmem:[%s15625_s1 + $0x888] sm:$0xf]  ;;  %v7235_v63 = vor.u32 %v9919_v50, %v7234_v47 }
 0x1c7   :  { %5529 = vmatpush.bf16.msra.mxu0 %v7315_v6  ;;  %v9959_v6 = vld [vmem:[%s15625_s1 + $0x754] sm:$0xf0]  ;;  %v7682_v57 = vld [vmem:[%s15625_s1 + $0x988] sm:$0xf] }
 0x1c8   :  { %5542 = vmatpush.bf16.msra.mxu1 %v7443_v14  ;;  %v7714_v14 = vld [vmem:[%s15625_s1 + $0x9c8] sm:$0xf]  ;;  %v7395_v19 = vor.u32 %v9959_v6, %v7394_v4  ;;  %v10107_v4 = vld [vmem:[%s15625_s1 + $0xbf4] sm:$0xf0] }
 0x1c9   :  { %5507 = vmatpush.bf16.msrb.mxu2 %v6995_v34  ;;  %v7378_v34 = vld [vmem:[%s15625_s1 + $0x728] sm:$0xf]  ;;  %v7715_v35 = vor.u32 %v10039_v15, %v7714_v14  ;;  %v9995_v11 = vld [vmem:[%s15625_s1 + $0x874] sm:$0xf0] }
 0x1ca   :  { %5520 = vmatpush.bf16.msrb.mxu3 %v7123_v36  ;;  %v9955_v36 = vld [vmem:[%s15625_s1 + $0x734] sm:$0xf0]  ;;  %v7986_v3 = vld [vmem:[%s15625_s1 + $0xbe8] sm:$0xf] }
 0x1cb   :  { %5530 = vmatpush.bf16.msra.mxu0 %v7299_v38  ;;  %v7570_v38 = vld [vmem:[%s15625_s1 + $0x8a8] sm:$0xf]  ;;  %v7987_v15 = vor.u32 %v10107_v4, %v7986_v3  ;;  %v10103_v30 = vld [vmem:[%s15625_s1 + $0xbd4] sm:$0xf0] }
 0x1cc   :  { %5543 = vmatpush.bf16.msra.mxu1 %v7427_v49  ;;  %v7379_v49 = vor.u32 %v9955_v36, %v7378_v34  ;;  %v7571_v56 = vor.u32 %v10003_v39, %v7570_v38  ;;  %v5289_v58 = vpop.f32.mrf.mxu1  ;;  %v7666_v14 = vld [vmem:[%s15625_s1 + $0x968] sm:$0xf]  ;;  %v9991_v45 = vld [vmem:[%s15625_s1 + $0x854] sm:$0xf0] }
 0x1cd   :  { %5508 = vmatpush.bf16.msrb.mxu2 %v6979_v46  ;;  %v9999_v46 = vld [vmem:[%s15625_s1 + $0x894] sm:$0xf0]  ;;  %v7970_v24 = vld [vmem:[%s15625_s1 + $0xbc8] sm:$0xf] }
 0x1ce   :  { %5521 = vmatpush.bf16.msrb.mxu3 %v7107_v59  ;;  %v10031_v59 = vld [vmem:[%s15625_s1 + $0x994] sm:$0xf0]  ;;  %v7555_v6 = vor.u32 %v9999_v46, %v7554_v54  ;;  %v7522_v29 = vld [vmem:[%s15625_s1 + $0x848] sm:$0xf] }
 0x1cf   :  { %5531 = vmatpush.bf16.msra.mxu0 %v7283_v60  ;;  %v7858_v60 = vld [vmem:[%s15625_s1 + $0xae8] sm:$0xf]  ;;  %v7683_v8 = vor.u32 %v10031_v59, %v7682_v57  ;;  %v10099_v54 = vld [vmem:[%s15625_s1 + $0xbb4] sm:$0xf0]  ;;  %v7523_v57 = vor.u32 %v9991_v45, %v7522_v29 }
 0x1d0   :  { %5544 = vmatpush.bf16.msra.mxu1 %v7411_v62  ;;  %5509 = vmatmul.bf16.vlgmr.msrb.gmra.mxu2 %v10981_v0  ;;  %v10075_v62 = vld [vmem:[%s15625_s1 + $0xaf4] sm:$0xf0]  ;;  %v7826_v50 = vld [vmem:[%s15625_s1 + $0xaa8] sm:$0xf] }
 0x1d1   :  { %5553 = vmatpush.bf16.msra.mxu2 %v7603_v55  ;;  %5522 = vmatmul.bf16.vlgmr.msrb.gmra.mxu3 %v10985_v2  ;;  %v5290_v55 = vadd.f32 %v5289_v58, %v13402_v48  ;;  %v7859_v10 = vor.u32 %v10075_v62, %v7858_v60  ;;  %v7538_v48 = vld [vmem:[%s15625_s1 + $0x868] sm:$0xf]  ;;  %v9987_v62 = vld [vmem:[%s15625_s1 + $0x834] sm:$0xf0] }
 0x1d2   :  { %5566 = vmatpush.bf16.msra.mxu3 %v7731_v5  ;;  %v7363_v5 = vor.u32 %v9951_v52, %v7362_v51  ;;  %v7539_v34 = vor.u32 %v9995_v11, %v7538_v48  ;;  %v10067_v51 = vld [vmem:[%s15625_s1 + $0xab4] sm:$0xf0]  ;;  %v7506_v60 = vld [vmem:[%s15625_s1 + $0x828] sm:$0xf] }
 0x1d3   :  { %5532 = vmatpush.bf16.msra.mxu0 %v7267_v44  ;;  %v10027_v44 = vld [vmem:[%s15625_s1 + $0x974] sm:$0xf0]  ;;  %v5302_v36 = vpop.f32.mrf.mxu2  ;;  %v7827_v59 = vor.u32 %v10067_v51, %v7826_v50  ;;  %v7810_v4 = vld [vmem:[%s15625_s1 + $0xa88] sm:$0xf]  ;;  %v7507_v11 = vor.u32 %v9987_v62, %v7506_v60 }
 0x1d4   :  { %5545 = vmatpush.bf16.msra.mxu1 %v7395_v19  ;;  %v7842_v19 = vld [vmem:[%s15625_s1 + $0xac8] sm:$0xf]  ;;  %v5315_v39 = vpop.f32.mrf.mxu3  ;;  %v5303_v47 = vadd.f32 %v5302_v36, %v5290_v55  ;;  %v5291_v52 = vpop.f32.mrf.mxu1  ;;  %v10019_v3 = vld [vmem:[%s15625_s1 + $0x934] sm:$0xf0] }
 0x1d5   :  { %5554 = vmatpush.bf16.msra.mxu2 %v7587_v23  ;;  %v10071_v23 = vld [vmem:[%s15625_s1 + $0xad4] sm:$0xf0]  ;;  %v7634_v55 = vld [vmem:[%s15625_s1 + $0x928] sm:$0xf] }
 0x1d6   :  { %5567 = vmatpush.bf16.msra.mxu3 %v7715_v35  ;;  %v7667_v35 = vor.u32 %v10027_v44, %v7666_v14  ;;  %v7843_v38 = vor.u32 %v10071_v23, %v7842_v19  ;;  %v5316_v46 = vadd.f32 %v5315_v39, %v5303_v47  ;;  %v7490_v14 = vld [vmem:[%s15625_s1 + $0x808] sm:$0xf]  ;;  %v9983_v19 = vld [vmem:[%s15625_s1 + $0x814] sm:$0xf0] }
 0x1d7   :  { %5533 = vmatpush.bf16.msra.mxu0 %v7251_v43  ;;  %v7650_v43 = vld [vmem:[%s15625_s1 + $0x948] sm:$0xf]  ;;  %v10091_v29 = vld [vmem:[%s15625_s1 + $0xb74] sm:$0xf0]  ;;  %v7491_v47 = vor.u32 %v9983_v19, %v7490_v14 }
 0x1d8   :  { %5546 = vmatpush.bf16.msra.mxu1 %v7379_v49  ;;  %v7971_v49 = vor.u32 %v10103_v30, %v7970_v24  ;;  %v7618_v23 = vld [vmem:[%s15625_s1 + $0x908] sm:$0xf]  ;;  %v10015_v24 = vld [vmem:[%s15625_s1 + $0x914] sm:$0xf0] }
 0x1d9   :  { %5555 = vmatpush.bf16.msra.mxu2 %v7571_v56  ;;  %v10023_v56 = vld [vmem:[%s15625_s1 + $0x954] sm:$0xf0]  ;;  %v7794_v36 = vld [vmem:[%s15625_s1 + $0xa68] sm:$0xf]  ;;  %v7619_v50 = vor.u32 %v10015_v24, %v7618_v23 }
 0x1da   :  { %5568 = vmatpush.bf16.msra.mxu3 %v7699_v53  ;;  %v7954_v53 = vld [vmem:[%s15625_s1 + $0xba8] sm:$0xf]  ;;  %v7651_v58 = vor.u32 %v10023_v56, %v7650_v43  ;;  %v10139_v43 = vld [vmem:[%s15625_s1 + $0xcf4] sm:$0xf0] }
 0x1db   :  { %5534 = vmatpush.bf16.msra.mxu0 %v7235_v63  ;;  %v7955_v63 = vor.u32 %v10099_v54, %v7954_v53  ;;  %v5304_v30 = vpop.f32.mrf.mxu2  ;;  %v7922_v39 = vld [vmem:[%s15625_s1 + $0xb68] sm:$0xf]  ;;  %v10171_v56 = vld [vmem:[%s15625_s1 + $0xdf4] sm:$0xf0] }
 0x1dc   :  { %5547 = vmatpush.bf16.msra.mxu1 %v7363_v5  ;;  %v10063_v5 = vld [vmem:[%s15625_s1 + $0xa94] sm:$0xf0]  ;;  %v8114_v45 = vld [vmem:[%s15625_s1 + $0xce8] sm:$0xf]  ;;  %v7923_v52 = vor.u32 %v10091_v29, %v7922_v39 }
 0x1dd   :  { %5556 = vmatpush.bf16.msra.mxu2 %v7555_v6  ;;  %v5328_v6 = vpop.f32.mrf.mxu0  ;;  %v7811_v44 = vor.u32 %v10063_v5, %v7810_v4  ;;  %v8115_v53 = vor.u32 %v10139_v43, %v8114_v45  ;;  %v7778_v54 = vld [vmem:[%s15625_s1 + $0xa48] sm:$0xf]  ;;  %v10135_v62 = vld [vmem:[%s15625_s1 + $0xcd4] sm:$0xf0] }
 0x1de   :  { %5569 = vmatpush.bf16.msra.mxu3 %v7683_v8  ;;  %5535 = vmatmul.bf16.vlgmr.msra.gmra.mxu0 %v10979_v61  ;;  %v7938_v8 = vld [vmem:[%s15625_s1 + $0xb88] sm:$0xf]  ;;  %v13601_v48 = vadd.f32 %v5328_v6, %v5316_v46  ;;  %v10055_v46 = vld [vmem:[%s15625_s1 + $0xa54] sm:$0xf0] }
 0x1df   :  { %5579 = vmatpush.bf16.msrb.mxu0 %v7859_v10  ;;  %5548 = vmatmul.bf16.vlgmr.msra.gmra.mxu1 %v10983_v1  ;;  %v10095_v10 = vld [vmem:[%s15625_s1 + $0xb94] sm:$0xf0]  ;;  %v8098_v60 = vld [vmem:[%s15625_s1 + $0xcc8] sm:$0xf]  ;;  %v7779_v4 = vor.u32 %v10055_v46, %v7778_v54 }
 0x1e0   :  { %5592 = vmatpush.bf16.msrb.mxu1 %v7987_v15  ;;  %v7635_v15 = vor.u32 %v10019_v3, %v7634_v55  ;;  %v10167_v3 = vld [vmem:[%s15625_s1 + $0xdd4] sm:$0xf0]  ;;  %v8099_v6 = vor.u32 %v10135_v62, %v8098_v60  ;;  %v8210_v23 = vld [vmem:[%s15625_s1 + $0xda8] sm:$0xf] }
 0x1e1   :  { %5557 = vmatpush.bf16.msra.mxu2 %v7539_v34  ;;  %v5317_v34 = vpop.f32.mrf.mxu3  ;;  %v10131_v19 = vld [vmem:[%s15625_s1 + $0xcb4] sm:$0xf0]  ;;  %v7874_v39 = vld [vmem:[%s15625_s1 + $0xb08] sm:$0xf] }
 0x1e2   :  { %5570 = vmatpush.bf16.msra.mxu3 %v7667_v35  ;;  %v7939_v35 = vor.u32 %v10095_v10, %v7938_v8  ;;  %v7762_v8 = vld [vmem:[%s15625_s1 + $0xa28] sm:$0xf]  ;;  %v10051_v10 = vld [vmem:[%s15625_s1 + $0xa34] sm:$0xf0] }
 0x1e3   :  { %5580 = vmatpush.bf16.msrb.mxu0 %v7843_v38  ;;  %v10059_v38 = vld [vmem:[%s15625_s1 + $0xa74] sm:$0xf0]  ;;  %v7763_v30 = vor.u32 %v10051_v10, %v7762_v8  ;;  %v7746_v34 = vld [vmem:[%s15625_s1 + $0xa08] sm:$0xf] }
 0x1e4   :  { %5593 = vmatpush.bf16.msrb.mxu1 %v7971_v49  ;;  %v8242_v49 = vld [vmem:[%s15625_s1 + $0xde8] sm:$0xf]  ;;  %v7795_v51 = vor.u32 %v10059_v38, %v7794_v36  ;;  %v10163_v24 = vld [vmem:[%s15625_s1 + $0xdb4] sm:$0xf0] }
 0x1e5   :  { %5558 = vmatpush.bf16.msra.mxu2 %v7523_v57  ;;  %v7906_v57 = vld [vmem:[%s15625_s1 + $0xb48] sm:$0xf]  ;;  %v5330_v55 = vpop.f32.mrf.mxu0  ;;  %v10047_v38 = vld [vmem:[%s15625_s1 + $0xa14] sm:$0xf0]  ;;  %v8211_v45 = vor.u32 %v10163_v24, %v8210_v23 }
 0x1e6   :  { %5571 = vmatpush.bf16.msra.mxu3 %v7651_v58  ;;  %v8243_v58 = vor.u32 %v10171_v56, %v8242_v49  ;;  %v10079_v29 = vld [vmem:[%s15625_s1 + $0xb14] sm:$0xf0]  ;;  %v8066_v43 = vld [vmem:[%s15625_s1 + $0xc88] sm:$0xf]  ;;  %v7747_v54 = vor.u32 %v10047_v38, %v7746_v34 }
 0x1e7   :  { %5581 = vmatpush.bf16.msrb.mxu0 %v7827_v59  ;;  %v10087_v59 = vld [vmem:[%s15625_s1 + $0xb54] sm:$0xf0]  ;;  %v8194_v49 = vld [vmem:[%s15625_s1 + $0xd88] sm:$0xf] }
 0x1e8   :  { %5594 = vmatpush.bf16.msrb.mxu1 %v7955_v63  ;;  %v8226_v63 = vld [vmem:[%s15625_s1 + $0xdc8] sm:$0xf]  ;;  %v7907_v5 = vor.u32 %v10087_v59, %v7906_v57  ;;  %v10235_v57 = vld [vmem:[%s15625_s1 + $0xff4] sm:$0xf0] }
 0x1e9   :  { %5559 = vmatpush.bf16.msra.mxu2 %v7507_v11  ;;  %v7890_v11 = vld [vmem:[%s15625_s1 + $0xb28] sm:$0xf]  ;;  %v8227_v14 = vor.u32 %v10167_v3, %v8226_v63  ;;  %v10123_v55 = vld [vmem:[%s15625_s1 + $0xc74] sm:$0xf0] }
 0x1ea   :  { %5572 = vmatpush.bf16.msra.mxu3 %v7635_v15  ;;  %v10083_v15 = vld [vmem:[%s15625_s1 + $0xb34] sm:$0xf0]  ;;  %v8498_v46 = vld [vmem:[%s15625_s1 + $0xfe8] sm:$0xf] }
 0x1eb   :  { %5582 = vmatpush.bf16.msrb.mxu0 %v7811_v44  ;;  %v8082_v44 = vld [vmem:[%s15625_s1 + $0xca8] sm:$0xf]  ;;  %v8499_v3 = vor.u32 %v10235_v57, %v8498_v46  ;;  %v10231_v10 = vld [vmem:[%s15625_s1 + $0xfd4] sm:$0xf0] }
 0x1ec   :  { %5595 = vmatpush.bf16.msrb.mxu1 %v7939_v35  ;;  %v7891_v35 = vor.u32 %v10083_v15, %v7890_v11  ;;  %v8083_v36 = vor.u32 %v10131_v19, %v8082_v44  ;;  %v5341_v56 = vpop.f32.mrf.mxu1  ;;  %v8178_v63 = vld [vmem:[%s15625_s1 + $0xd68] sm:$0xf]  ;;  %v10119_v24 = vld [vmem:[%s15625_s1 + $0xc54] sm:$0xf0] }
 0x1ed   :  { %5560 = vmatpush.bf16.msra.mxu2 %v7491_v47  ;;  %v10127_v47 = vld [vmem:[%s15625_s1 + $0xc94] sm:$0xf0]  ;;  %v8482_v8 = vld [vmem:[%s15625_s1 + $0xfc8] sm:$0xf] }
 0x1ee   :  { %5573 = vmatpush.bf16.msra.mxu3 %v7619_v50  ;;  %v10159_v50 = vld [vmem:[%s15625_s1 + $0xd94] sm:$0xf0]  ;;  %v8067_v59 = vor.u32 %v10127_v47, %v8066_v43  ;;  %v8034_v23 = vld [vmem:[%s15625_s1 + $0xc48] sm:$0xf] }
 0x1ef   :  { %5583 = vmatpush.bf16.msrb.mxu0 %v7795_v51  ;;  %v8370_v51 = vld [vmem:[%s15625_s1 + $0xee8] sm:$0xf]  ;;  %v8195_v60 = vor.u32 %v10159_v50, %v8194_v49  ;;  %v10227_v43 = vld [vmem:[%s15625_s1 + $0xfb4] sm:$0xf0]  ;;  %v8035_v49 = vor.u32 %v10119_v24, %v8034_v23 }
 0x1f0   :  { %5596 = vmatpush.bf16.msrb.mxu1 %v7923_v52  ;;  %5561 = vmatmul.bf16.vlgmr.msra.gmra.mxu2 %v11219_v7  ;;  %v10203_v52 = vld [vmem:[%s15625_s1 + $0xef4] sm:$0xf0]  ;;  %v8338_v38 = vld [vmem:[%s15625_s1 + $0xea8] sm:$0xf] }
 0x1f1   :  { %5605 = vmatpush.bf16.msrb.mxu2 %v8115_v53  ;;  %5574 = vmatmul.bf16.vlgmr.msra.gmra.mxu3 %v11232_v13  ;;  %v5342_v53 = vadd.f32 %v5341_v56, %v13601_v48  ;;  %v8371_v62 = vor.u32 %v10203_v52, %v8370_v51  ;;  %v8050_v48 = vld [vmem:[%s15625_s1 + $0xc68] sm:$0xf]  ;;  %v10115_v52 = vld [vmem:[%s15625_s1 + $0xc34] sm:$0xf0] }
 0x1f2   :  { %5618 = vmatpush.bf16.msrb.mxu3 %v8243_v58  ;;  %v7875_v58 = vor.u32 %v10079_v29, %v7874_v39  ;;  %v8051_v11 = vor.u32 %v10123_v55, %v8050_v48  ;;  %v10195_v39 = vld [vmem:[%s15625_s1 + $0xeb4] sm:$0xf0]  ;;  %v8018_v51 = vld [vmem:[%s15625_s1 + $0xc28] sm:$0xf] }
 0x1f3   :  { %5584 = vmatpush.bf16.msrb.mxu0 %v7779_v4  ;;  %v10155_v4 = vld [vmem:[%s15625_s1 + $0xd74] sm:$0xf0]  ;;  %v5354_v15 = vpop.f32.mrf.mxu2  ;;  %v8339_v50 = vor.u32 %v10195_v39, %v8338_v38  ;;  %v8322_v57 = vld [vmem:[%s15625_s1 + $0xe88] sm:$0xf]  ;;  %v8019_v55 = vor.u32 %v10115_v52, %v8018_v51 }
 0x1f4   :  { %5597 = vmatpush.bf16.msrb.mxu1 %v7907_v5  ;;  %v8354_v5 = vld [vmem:[%s15625_s1 + $0xec8] sm:$0xf]  ;;  %v5367_v19 = vpop.f32.mrf.mxu3  ;;  %v5355_v34 = vadd.f32 %v5354_v15, %v5342_v53  ;;  %v5343_v29 = vpop.f32.mrf.mxu1  ;;  %v10147_v46 = vld [vmem:[%s15625_s1 + $0xd34] sm:$0xf0] }
 0x1f5   :  { %5606 = vmatpush.bf16.msrb.mxu2 %v8099_v6  ;;  %v10199_v6 = vld [vmem:[%s15625_s1 + $0xed4] sm:$0xf0]  ;;  %v8146_v53 = vld [vmem:[%s15625_s1 + $0xd28] sm:$0xf] }
 0x1f6   :  { %5619 = vmatpush.bf16.msrb.mxu3 %v8227_v14  ;;  %v8179_v14 = vor.u32 %v10155_v4, %v8178_v63  ;;  %v8355_v44 = vor.u32 %v10199_v6, %v8354_v5  ;;  %v5368_v47 = vadd.f32 %v5367_v19, %v5355_v34  ;;  %v8002_v63 = vld [vmem:[%s15625_s1 + $0xc08] sm:$0xf]  ;;  %v10111_v5 = vld [vmem:[%s15625_s1 + $0xc14] sm:$0xf0] }
 0x1f7   :  { %5585 = vmatpush.bf16.msrb.mxu0 %v7763_v30  ;;  %v8162_v30 = vld [vmem:[%s15625_s1 + $0xd48] sm:$0xf]  ;;  %v10219_v23 = vld [vmem:[%s15625_s1 + $0xf74] sm:$0xf0]  ;;  %v8003_v34 = vor.u32 %v10111_v5, %v8002_v63 }
 0x1f8   :  { %5598 = vmatpush.bf16.msrb.mxu1 %v7891_v35  ;;  %v8483_v35 = vor.u32 %v10231_v10, %v8482_v8  ;;  %v8130_v6 = vld [vmem:[%s15625_s1 + $0xd08] sm:$0xf]  ;;  %v10143_v8 = vld [vmem:[%s15625_s1 + $0xd14] sm:$0xf0] }
 0x1f9   :  { %5607 = vmatpush.bf16.msrb.mxu2 %v8083_v36  ;;  %v10151_v36 = vld [vmem:[%s15625_s1 + $0xd54] sm:$0xf0]  ;;  %v8306_v15 = vld [vmem:[%s15625_s1 + $0xe68] sm:$0xf]  ;;  %v8131_v38 = vor.u32 %v10143_v8, %v8130_v6 }
 0x1fa   :  { %5620 = vmatpush.bf16.msrb.mxu3 %v8211_v45  ;;  %v8466_v45 = vld [vmem:[%s15625_s1 + $0xfa8] sm:$0xf]  ;;  %v8163_v56 = vor.u32 %v10151_v36, %v8162_v30  ;;  %v10267_v30 = vld [vmem:[%s15625_s1 + $0x10f4] sm:$0xf0] }
 0x1fb   :  { %5586 = vmatpush.bf16.msrb.mxu0 %v7747_v54  ;;  %v8467_v54 = vor.u32 %v10227_v43, %v8466_v45  ;;  %v5356_v10 = vpop.f32.mrf.mxu2  ;;  %v8434_v19 = vld [vmem:[%s15625_s1 + $0xf68] sm:$0xf]  ;;  %v10299_v36 = vld [vmem:[%s15625_s1 + $0x11f4] sm:$0xf0] }
 0x1fc   :  { %5599 = vmatpush.bf16.msrb.mxu1 %v7875_v58  ;;  %v10191_v58 = vld [vmem:[%s15625_s1 + $0xe94] sm:$0xf0]  ;;  %v8626_v24 = vld [vmem:[%s15625_s1 + $0x10e8] sm:$0xf]  ;;  %v8435_v29 = vor.u32 %v10219_v23, %v8434_v19 }
 0x1fd   :  { %5608 = vmatpush.bf16.msrb.mxu2 %v8067_v59  ;;  %v5380_v59 = vpop.f32.mrf.mxu0  ;;  %v8323_v4 = vor.u32 %v10191_v58, %v8322_v57  ;;  %v8627_v45 = vor.u32 %v10267_v30, %v8626_v24  ;;  %v8290_v43 = vld [vmem:[%s15625_s1 + $0xe48] sm:$0xf]  ;;  %v10263_v52 = vld [vmem:[%s15625_s1 + $0x10d4] sm:$0xf0] }
 0x1fe   :  { %5621 = vmatpush.bf16.msrb.mxu3 %v8195_v60  ;;  %5587 = vmatmul.bf16.vlgmr.msrb.gmra.mxu0 %v11230_v12  ;;  %v8450_v60 = vld [vmem:[%s15625_s1 + $0xf88] sm:$0xf]  ;;  %v13800_v48 = vadd.f32 %v5380_v59, %v5368_v47  ;;  %v10183_v47 = vld [vmem:[%s15625_s1 + $0xe54] sm:$0xf0] }
 0x1ff   :  { %5631 = vmatpush.bf16.msra.mxu0 %v8371_v62  ;;  %5600 = vmatmul.bf16.vlgmr.msrb.gmra.mxu1 %v11243_v17  ;;  %v10223_v62 = vld [vmem:[%s15625_s1 + $0xf94] sm:$0xf0]  ;;  %v8610_v51 = vld [vmem:[%s15625_s1 + $0x10c8] sm:$0xf]  ;;  %v8291_v57 = vor.u32 %v10183_v47, %v8290_v43 }
 0x200   :  { %5644 = vmatpush.bf16.msra.mxu1 %v8499_v3  ;;  %v8147_v3 = vor.u32 %v10147_v46, %v8146_v53  ;;  %v10295_v46 = vld [vmem:[%s15625_s1 + $0x11d4] sm:$0xf0]  ;;  %v8611_v59 = vor.u32 %v10263_v52, %v8610_v51  ;;  %v8722_v6 = vld [vmem:[%s15625_s1 + $0x11a8] sm:$0xf] }
 0x201   :  { %5609 = vmatpush.bf16.msrb.mxu2 %v8051_v11  ;;  %v5369_v11 = vpop.f32.mrf.mxu3  ;;  %v10259_v5 = vld [vmem:[%s15625_s1 + $0x10b4] sm:$0xf0]  ;;  %v8386_v19 = vld [vmem:[%s15625_s1 + $0xf08] sm:$0xf] }
 0x202   :  { %5622 = vmatpush.bf16.msrb.mxu3 %v8179_v14  ;;  %v8451_v14 = vor.u32 %v10223_v62, %v8450_v60  ;;  %v8274_v60 = vld [vmem:[%s15625_s1 + $0xe28] sm:$0xf]  ;;  %v10179_v62 = vld [vmem:[%s15625_s1 + $0xe34] sm:$0xf0] }
 0x203   :  { %5632 = vmatpush.bf16.msra.mxu0 %v8355_v44  ;;  %v10187_v44 = vld [vmem:[%s15625_s1 + $0xe74] sm:$0xf0]  ;;  %v8275_v10 = vor.u32 %v10179_v62, %v8274_v60  ;;  %v8258_v11 = vld [vmem:[%s15625_s1 + $0xe08] sm:$0xf] }
 0x204   :  { %5645 = vmatpush.bf16.msra.mxu1 %v8483_v35  ;;  %v8754_v35 = vld [vmem:[%s15625_s1 + $0x11e8] sm:$0xf]  ;;  %v8307_v39 = vor.u32 %v10187_v44, %v8306_v15  ;;  %v10291_v8 = vld [vmem:[%s15625_s1 + $0x11b4] sm:$0xf0] }
 0x205   :  { %5610 = vmatpush.bf16.msrb.mxu2 %v8035_v49  ;;  %v8418_v49 = vld [vmem:[%s15625_s1 + $0xf48] sm:$0xf]  ;;  %v5382_v53 = vpop.f32.mrf.mxu0  ;;  %v10175_v44 = vld [vmem:[%s15625_s1 + $0xe14] sm:$0xf0]  ;;  %v8723_v24 = vor.u32 %v10291_v8, %v8722_v6 }
 0x206   :  { %5623 = vmatpush.bf16.msrb.mxu3 %v8163_v56  ;;  %v8755_v56 = vor.u32 %v10299_v36, %v8754_v35  ;;  %v10207_v23 = vld [vmem:[%s15625_s1 + $0xf14] sm:$0xf0]  ;;  %v8578_v30 = vld [vmem:[%s15625_s1 + $0x1088] sm:$0xf]  ;;  %v8259_v43 = vor.u32 %v10175_v44, %v8258_v11 }
 0x207   :  { %5633 = vmatpush.bf16.msra.mxu0 %v8339_v50  ;;  %v10215_v50 = vld [vmem:[%s15625_s1 + $0xf54] sm:$0xf0]  ;;  %v8706_v35 = vld [vmem:[%s15625_s1 + $0x1188] sm:$0xf] }
 0x208   :  { %5646 = vmatpush.bf16.msra.mxu1 %v8467_v54  ;;  %v8738_v54 = vld [vmem:[%s15625_s1 + $0x11c8] sm:$0xf]  ;;  %v8419_v58 = vor.u32 %v10215_v50, %v8418_v49  ;;  %v10363_v49 = vld [vmem:[%s15625_s1 + $0x13f4] sm:$0xf0] }
 0x209   :  { %5611 = vmatpush.bf16.msrb.mxu2 %v8019_v55  ;;  %v8402_v55 = vld [vmem:[%s15625_s1 + $0xf28] sm:$0xf]  ;;  %v8739_v63 = vor.u32 %v10295_v46, %v8738_v54  ;;  %v10251_v53 = vld [vmem:[%s15625_s1 + $0x1074] sm:$0xf0] }
 0x20a   :  { %5624 = vmatpush.bf16.msrb.mxu3 %v8147_v3  ;;  %v10211_v3 = vld [vmem:[%s15625_s1 + $0xf34] sm:$0xf0]  ;;  %v9010_v47 = vld [vmem:[%s15625_s1 + $0x13e8] sm:$0xf] }
 0x20b   :  { %5634 = vmatpush.bf16.msra.mxu0 %v8323_v4  ;;  %v8594_v4 = vld [vmem:[%s15625_s1 + $0x10a8] sm:$0xf]  ;;  %v9011_v46 = vor.u32 %v10363_v49, %v9010_v47  ;;  %v10359_v62 = vld [vmem:[%s15625_s1 + $0x13d4] sm:$0xf0] }
 0x20c   :  { %5647 = vmatpush.bf16.msra.mxu1 %v8451_v14  ;;  %v8403_v14 = vor.u32 %v10211_v3, %v8402_v55  ;;  %v8595_v15 = vor.u32 %v10259_v5, %v8594_v4  ;;  %v5393_v36 = vpop.f32.mrf.mxu1  ;;  %v8690_v54 = vld [vmem:[%s15625_s1 + $0x1168] sm:$0xf]  ;;  %v10247_v8 = vld [vmem:[%s15625_s1 + $0x1054] sm:$0xf0] }
 0x20d   :  { %5612 = vmatpush.bf16.msrb.mxu2 %v8003_v34  ;;  %v10255_v34 = vld [vmem:[%s15625_s1 + $0x1094] sm:$0xf0]  ;;  %v8994_v60 = vld [vmem:[%s15625_s1 + $0x13c8] sm:$0xf] }
 0x20e   :  { %5625 = vmatpush.bf16.msrb.mxu3 %v8131_v38  ;;  %v10287_v38 = vld [vmem:[%s15625_s1 + $0x1194] sm:$0xf0]  ;;  %v8579_v50 = vor.u32 %v10255_v34, %v8578_v30  ;;  %v8546_v6 = vld [vmem:[%s15625_s1 + $0x1048] sm:$0xf] }
 0x20f   :  { %5635 = vmatpush.bf16.msra.mxu0 %v8307_v39  ;;  %v8882_v39 = vld [vmem:[%s15625_s1 + $0x12e8] sm:$0xf]  ;;  %v8707_v51 = vor.u32 %v10287_v38, %v8706_v35  ;;  %v10279_v44 = vld [vmem:[%s15625_s1 + $0x1154] sm:$0xf0]  ;;  %v8547_v35 = vor.u32 %v10247_v8, %v8546_v6 }
 0x210   :  { %5648 = vmatpush.bf16.msra.mxu1 %v8435_v29  ;;  %5613 = vmatmul.bf16.vlgmr.msrb.gmra.mxu2 %v11260_v28  ;;  %v10331_v29 = vld [vmem:[%s15625_s1 + $0x12f4] sm:$0xf0]  ;;  %v8834_v49 = vld [vmem:[%s15625_s1 + $0x1288] sm:$0xf] }
 0x211   :  { %5657 = vmatpush.bf16.msra.mxu2 %v8627_v45  ;;  %5626 = vmatmul.bf16.vlgmr.msrb.gmra.mxu3 %v11264_v32  ;;  %v5394_v45 = vadd.f32 %v5393_v36, %v13800_v48  ;;  %v8883_v52 = vor.u32 %v10331_v29, %v8882_v39  ;;  %v8562_v48 = vld [vmem:[%s15625_s1 + $0x1068] sm:$0xf]  ;;  %v10355_v30 = vld [vmem:[%s15625_s1 + $0x13b4] sm:$0xf0] }
 0x212   :  { %5670 = vmatpush.bf16.msra.mxu3 %v8755_v56  ;;  %v8387_v56 = vor.u32 %v10207_v23, %v8386_v19  ;;  %v8563_v55 = vor.u32 %v10251_v53, %v8562_v48  ;;  %v8850_v19 = vld [vmem:[%s15625_s1 + $0x12a8] sm:$0xf]  ;;  %v10323_v23 = vld [vmem:[%s15625_s1 + $0x12b4] sm:$0xf0] }
 0x213   :  { %5636 = vmatpush.bf16.msra.mxu0 %v8291_v57  ;;  %v10283_v57 = vld [vmem:[%s15625_s1 + $0x1174] sm:$0xf0]  ;;  %v5406_v3 = vpop.f32.mrf.mxu2  ;;  %v8851_v38 = vor.u32 %v10323_v23, %v8850_v19  ;;  %v8530_v39 = vld [vmem:[%s15625_s1 + $0x1028] sm:$0xf] }
 0x214   :  { %5649 = vmatpush.bf16.msra.mxu1 %v8419_v58  ;;  %v8866_v58 = vld [vmem:[%s15625_s1 + $0x12c8] sm:$0xf]  ;;  %v5419_v5 = vpop.f32.mrf.mxu3  ;;  %v5407_v11 = vadd.f32 %v5406_v3, %v5394_v45  ;;  %v10243_v29 = vld [vmem:[%s15625_s1 + $0x1034] sm:$0xf0] }
 0x215   :  { %5658 = vmatpush.bf16.msra.mxu2 %v8611_v59  ;;  %v10327_v59 = vld [vmem:[%s15625_s1 + $0x12d4] sm:$0xf0]  ;;  %v8658_v45 = vld [vmem:[%s15625_s1 + $0x1128] sm:$0xf]  ;;  %v8531_v53 = vor.u32 %v10243_v29, %v8530_v39 }
 0x216   :  { %5671 = vmatpush.bf16.msra.mxu3 %v8739_v63  ;;  %v8691_v63 = vor.u32 %v10283_v57, %v8690_v54  ;;  %v8867_v4 = vor.u32 %v10327_v59, %v8866_v58  ;;  %v5420_v34 = vadd.f32 %v5419_v5, %v5407_v11  ;;  %v10275_v47 = vld [vmem:[%s15625_s1 + $0x1134] sm:$0xf0]  ;;  %v8514_v54 = vld [vmem:[%s15625_s1 + $0x1008] sm:$0xf] }
 0x217   :  { %5637 = vmatpush.bf16.msra.mxu0 %v8275_v10  ;;  %v8674_v10 = vld [vmem:[%s15625_s1 + $0x1148] sm:$0xf]  ;;  %v10239_v58 = vld [vmem:[%s15625_s1 + $0x1014] sm:$0xf0] }
 0x218   :  { %5650 = vmatpush.bf16.msra.mxu1 %v8403_v14  ;;  %v8995_v14 = vor.u32 %v10359_v62, %v8994_v60  ;;  %v8675_v36 = vor.u32 %v10279_v44, %v8674_v10  ;;  %v8642_v59 = vld [vmem:[%s15625_s1 + $0x1108] sm:$0xf]  ;;  %v10271_v60 = vld [vmem:[%s15625_s1 + $0x1114] sm:$0xf0] }
 0x219   :  { %5659 = vmatpush.bf16.msra.mxu2 %v8595_v15  ;;  %v5395_v15 = vpop.f32.mrf.mxu1  ;;  %v8818_v3 = vld [vmem:[%s15625_s1 + $0x1268] sm:$0xf]  ;;  %v10347_v6 = vld [vmem:[%s15625_s1 + $0x1374] sm:$0xf0]  ;;  %v8643_v23 = vor.u32 %v10271_v60, %v8642_v59 }
 0x21a   :  { %5672 = vmatpush.bf16.msra.mxu3 %v8723_v24  ;;  %v8978_v24 = vld [vmem:[%s15625_s1 + $0x13a8] sm:$0xf]  ;;  %v10395_v10 = vld [vmem:[%s15625_s1 + $0x14f4] sm:$0xf0] }
 0x21b   :  { %5638 = vmatpush.bf16.msra.mxu0 %v8259_v43  ;;  %v8979_v43 = vor.u32 %v10355_v30, %v8978_v24  ;;  %v8946_v5 = vld [vmem:[%s15625_s1 + $0x1368] sm:$0xf]  ;;  %v10427_v44 = vld [vmem:[%s15625_s1 + $0x15f4] sm:$0xf0] }
 0x21c   :  { %5651 = vmatpush.bf16.msra.mxu1 %v8387_v56  ;;  %v10319_v56 = vld [vmem:[%s15625_s1 + $0x1294] sm:$0xf0]  ;;  %v5421_v62 = vpop.f32.mrf.mxu3  ;;  %v9138_v8 = vld [vmem:[%s15625_s1 + $0x14e8] sm:$0xf]  ;;  %v8947_v30 = vor.u32 %v10347_v6, %v8946_v5 }
 0x21d   :  { %5660 = vmatpush.bf16.msra.mxu2 %v8579_v50  ;;  %v5432_v50 = vpop.f32.mrf.mxu0  ;;  %v8835_v57 = vor.u32 %v10319_v56, %v8834_v49  ;;  %v9266_v15 = vld [vmem:[%s15625_s1 + $0x15e8] sm:$0xf]  ;;  %v10343_v29 = vld [vmem:[%s15625_s1 + $0x1354] sm:$0xf0] }
 0x21e   :  { %5673 = vmatpush.bf16.msra.mxu3 %v8707_v51  ;;  %5639 = vmatmul.bf16.vlgmr.msra.gmra.mxu0 %v11262_v31  ;;  %v8962_v51 = vld [vmem:[%s15625_s1 + $0x1388] sm:$0xf]  ;;  %v5433_v48 = vadd.f32 %v5432_v50, %v5420_v34  ;;  %v9139_v34 = vor.u32 %v10395_v10, %v9138_v8  ;;  %v9267_v39 = vor.u32 %v10427_v44, %v9266_v15  ;;  %v10423_v56 = vld [vmem:[%s15625_s1 + $0x15d4] sm:$0xf0] }
 0x21f   :  { %5683 = vmatpush.bf16.msrb.mxu0 %v8883_v52  ;;  %5652 = vmatmul.bf16.vlgmr.msra.gmra.mxu1 %v11266_v33  ;;  %v10351_v52 = vld [vmem:[%s15625_s1 + $0x1394] sm:$0xf0]  ;;  %v9250_v49 = vld [vmem:[%s15625_s1 + $0x15c8] sm:$0xf] }
 0x220   :  { %5696 = vmatpush.bf16.msrb.mxu1 %v9011_v46  ;;  %v8659_v46 = vor.u32 %v10275_v47, %v8658_v45  ;;  %v9122_v45 = vld [vmem:[%s15625_s1 + $0x14c8] sm:$0xf]  ;;  %v10387_v59 = vld [vmem:[%s15625_s1 + $0x14b4] sm:$0xf0] }
 0x221   :  { %5661 = vmatpush.bf16.msra.mxu2 %v8563_v55  ;;  %v5408_v55 = vpop.f32.mrf.mxu2  ;;  %v5445_v11 = vpop.f32.mrf.mxu1  ;;  %v9234_v60 = vld [vmem:[%s15625_s1 + $0x15a8] sm:$0xf]  ;;  %v10419_v62 = vld [vmem:[%s15625_s1 + $0x15b4] sm:$0xf0] }
 0x222   :  { %5674 = vmatpush.bf16.msra.mxu3 %v8691_v63  ;;  %v8963_v63 = vor.u32 %v10351_v52, %v8962_v51  ;;  %v14035_v19 = vadd.f32 %v5445_v11, %v5433_v48  ;;  %v8786_v48 = vld [vmem:[%s15625_s1 + $0x1228] sm:$0xf]  ;;  %v10303_v6 = vld [vmem:[%s15625_s1 + $0x1214] sm:$0xf0]  ;;  %v9235_v11 = vor.u32 %v10419_v62, %v9234_v60 }
 0x223   :  { %5684 = vmatpush.bf16.msrb.mxu0 %v8867_v4  ;;  %v10315_v4 = vld [vmem:[%s15625_s1 + $0x1274] sm:$0xf0]  ;;  %v8898_v8 = vld [vmem:[%s15625_s1 + $0x1308] sm:$0xf] }
 0x224   :  { %5697 = vmatpush.bf16.msrb.mxu1 %v8995_v14  ;;  %v8515_v14 = vor.u32 %v10239_v58, %v8514_v54  ;;  %v8819_v24 = vor.u32 %v10315_v4, %v8818_v3  ;;  %v8914_v54 = vld [vmem:[%s15625_s1 + $0x1328] sm:$0xf]  ;;  %v10335_v10 = vld [vmem:[%s15625_s1 + $0x1314] sm:$0xf0] }
 0x225   :  { %5662 = vmatpush.bf16.msra.mxu2 %v8547_v35  ;;  %v8802_v35 = vld [vmem:[%s15625_s1 + $0x1248] sm:$0xf]  ;;  %v5434_v47 = vpop.f32.mrf.mxu0  ;;  %v10383_v15 = vld [vmem:[%s15625_s1 + $0x1494] sm:$0xf0] }
 0x226   :  { %5675 = vmatpush.bf16.msra.mxu3 %v8675_v36  ;;  %v10311_v36 = vld [vmem:[%s15625_s1 + $0x1254] sm:$0xf0]  ;;  %v9106_v58 = vld [vmem:[%s15625_s1 + $0x14a8] sm:$0xf] }
 0x227   :  { %5685 = vmatpush.bf16.msrb.mxu0 %v8851_v38  ;;  %v8930_v38 = vld [vmem:[%s15625_s1 + $0x1348] sm:$0xf]  ;;  %v8803_v50 = vor.u32 %v10311_v36, %v8802_v35  ;;  %v9107_v5 = vor.u32 %v10387_v59, %v9106_v58  ;;  %v10491_v36 = vld [vmem:[%s15625_s1 + $0x17f4] sm:$0xf0] }
 0x228   :  { %5698 = vmatpush.bf16.msrb.mxu1 %v8979_v43  ;;  %v10391_v43 = vld [vmem:[%s15625_s1 + $0x14d4] sm:$0xf0]  ;;  %v8931_v51 = vor.u32 %v10343_v29, %v8930_v38  ;;  %v8770_v3 = vld [vmem:[%s15625_s1 + $0x1208] sm:$0xf]  ;;  %v8899_v38 = vor.u32 %v10335_v10, %v8898_v8 }
 0x229   :  { %5663 = vmatpush.bf16.msra.mxu2 %v8531_v53  ;;  %v9123_v52 = vor.u32 %v10391_v43, %v9122_v45  ;;  %v10307_v53 = vld [vmem:[%s15625_s1 + $0x1234] sm:$0xf0]  ;;  %v5447_v55 = vpop.f32.mrf.mxu1  ;;  %v9218_v44 = vld [vmem:[%s15625_s1 + $0x1588] sm:$0xf] }
 0x22a   :  { %5676 = vmatpush.bf16.msra.mxu3 %v8659_v46  ;;  %v9251_v46 = vor.u32 %v10423_v56, %v9250_v49  ;;  %v9522_v35 = vld [vmem:[%s15625_s1 + $0x17e8] sm:$0xf]  ;;  %v10379_v47 = vld [vmem:[%s15625_s1 + $0x1474] sm:$0xf0]  ;;  %v10549_v56 = vld [vmem:[%s15627_s2] sm:$0xf] }
 0x22b   :  { %5686 = vmatpush.bf16.msrb.mxu0 %v8835_v57  ;;  %v10339_v57 = vld [vmem:[%s15625_s1 + $0x1334] sm:$0xf0]  ;;  %v9074_v29 = vld [vmem:[%s15625_s1 + $0x1468] sm:$0xf] }
 0x22c   :  { %5699 = vmatpush.bf16.msrb.mxu1 %v8963_v63  ;;  %v8787_v63 = vor.u32 %v10307_v53, %v8786_v48  ;;  %v8915_v4 = vor.u32 %v10339_v57, %v8914_v54  ;;  %v9202_v49 = vld [vmem:[%s15625_s1 + $0x1568] sm:$0xf]  ;;  %v10455_v53 = vld [vmem:[%s15625_s1 + $0x16d4] sm:$0xf0]  ;;  %v9075_v57 = vor.u32 %v10379_v47, %v9074_v29 }
 0x22d   :  { %5664 = vmatpush.bf16.msra.mxu2 %v8515_v14  ;;  %v9090_v14 = vld [vmem:[%s15625_s1 + $0x1488] sm:$0xf]  ;;  %v10375_v55 = vld [vmem:[%s15625_s1 + $0x1454] sm:$0xf0] }
 0x22e   :  { %5677 = vmatpush.bf16.msra.mxu3 %v8643_v23  ;;  %v10415_v23 = vld [vmem:[%s15625_s1 + $0x1594] sm:$0xf0]  ;;  %v9378_v48 = vld [vmem:[%s15625_s1 + $0x16c8] sm:$0xf] }
 0x22f   :  { %5687 = vmatpush.bf16.msrb.mxu0 %v8819_v24  ;;  %v9394_v24 = vld [vmem:[%s15625_s1 + $0x16e8] sm:$0xf]  ;;  %v9219_v45 = vor.u32 %v10415_v23, %v9218_v44  ;;  %v9379_v60 = vor.u32 %v10455_v53, %v9378_v48  ;;  %v10451_v10 = vld [vmem:[%s15625_s1 + $0x16b4] sm:$0xf0] }
 0x230   :  { %5700 = vmatpush.bf16.msrb.mxu1 %v8947_v30  ;;  %5665 = vmatmul.bf16.vlgmr.msra.gmra.mxu2 %v11630_v9  ;;  %v10459_v30 = vld [vmem:[%s15625_s1 + $0x16f4] sm:$0xf0]  ;;  %v9506_v54 = vld [vmem:[%s15625_s1 + $0x17c8] sm:$0xf] }
 0x231   :  { %5709 = vmatpush.bf16.msrb.mxu2 %v9139_v34  ;;  %5678 = vmatmul.bf16.vlgmr.msra.gmra.mxu3 %v11643_v18  ;;  %v8771_v34 = vor.u32 %v10303_v6, %v8770_v3  ;;  %v9395_v43 = vor.u32 %v10459_v30, %v9394_v24  ;;  %v9058_v62 = vld [vmem:[%s15625_s1 + $0x1448] sm:$0xf]  ;;  %v10407_v6 = vld [vmem:[%s15625_s1 + $0x1554] sm:$0xf0] }
 0x232   :  { %5722 = vmatpush.bf16.msrb.mxu3 %v9267_v39  ;;  %v9091_v39 = vor.u32 %v10383_v15, %v9090_v14  ;;  %v9362_v8 = vld [vmem:[%s15625_s1 + $0x16a8] sm:$0xf]  ;;  %v10483_v14 = vld [vmem:[%s15625_s1 + $0x17b4] sm:$0xf0]  ;;  %v9059_v44 = vor.u32 %v10375_v55, %v9058_v62 }
 0x233   :  { %5688 = vmatpush.bf16.msrb.mxu0 %v8803_v50  ;;  %v813_v50 = vperm.slane %v10549_v56, 2  ;;  %v5458_v58 = vpop.f32.mrf.mxu2  ;;  %v9363_v24 = vor.u32 %v10451_v10, %v9362_v8  ;;  %v9042_v30 = vld [vmem:[%s15625_s1 + $0x1428] sm:$0xf]  ;;  %v10447_v29 = vld [vmem:[%s15625_s1 + $0x1694] sm:$0xf0] }
 0x234   :  { %5701 = vmatpush.bf16.msrb.mxu1 %v8931_v51  ;;  %v9523_v51 = vor.u32 %v10491_v36, %v9522_v35  ;;  %v9170_v35 = vld [vmem:[%s15625_s1 + $0x1528] sm:$0xf]  ;;  %v10443_v62 = vld [vmem:[%s15625_s1 + $0x1674] sm:$0xf0]  ;;  %v9753_v8 = vld [vmem:[%s15625_s1 + $0xec] sm:$0xf] }
 0x235   :  { %5710 = vmatpush.bf16.msrb.mxu2 %v9123_v52  ;;  %v10411_v52 = vld [vmem:[%s15625_s1 + $0x1574] sm:$0xf0]  ;;  %v5459_v3 = vadd.f32 %v5458_v58, %v813_v50  ;;  %v9026_v56 = vld [vmem:[%s15625_s1 + $0x1408] sm:$0xf]  ;;  %v6580_v10 = vld [vmem:[%s15625_s1 + $0xf8] sm:$0xf0] }
 0x236   :  { %5723 = vmatpush.bf16.msrb.mxu3 %v9251_v46  ;;  %v10487_v46 = vld [vmem:[%s15625_s1 + $0x17d4] sm:$0xf0]  ;;  %v9203_v59 = vor.u32 %v10411_v52, %v9202_v49  ;;  %v9458_v55 = vld [vmem:[%s15625_s1 + $0x1768] sm:$0xf] }
 0x237   :  { %5689 = vmatpush.bf16.msrb.mxu0 %v8787_v63  ;;  %v9186_v63 = vld [vmem:[%s15625_s1 + $0x1548] sm:$0xf] }
 0x238   :  { %5702 = vmatpush.bf16.msrb.mxu1 %v8915_v4  ;;  %v5471_v4 = vpop.f32.mrf.mxu3  ;;  %v9187_v23 = vor.u32 %v10407_v6, %v9186_v63 }
 0x239   :  { %5711 = vmatpush.bf16.msrb.mxu2 %v9107_v5  ;;  %v9507_v5 = vor.u32 %v10487_v46, %v9506_v54  ;;  %v5472_v15 = vadd.f32 %v5471_v4, %v5459_v3  ;;  %v10367_v54 = vld [vmem:[%s15625_s1 + $0x1414] sm:$0xf0]  ;;  %v9154_v46 = vld [vmem:[%s15625_s1 + $0x1508] sm:$0xf] }
 0x23a   :  { %5724 = vmatpush.bf16.msrb.mxu3 %v9235_v11  ;;  %v9490_v11 = vld [vmem:[%s15625_s1 + $0x17a8] sm:$0xf]  ;;  %v10475_v3 = vld [vmem:[%s15625_s1 + $0x1774] sm:$0xf0]  ;;  %v9027_v6 = vor.u32 %v10367_v54, %v9026_v56 }
 0x23b   :  { %5690 = vmatpush.bf16.msrb.mxu0 %v8771_v34  ;;  %v10371_v34 = vld [vmem:[%s15625_s1 + $0x1434] sm:$0xf0]  ;;  %v9491_v36 = vor.u32 %v10483_v14, %v9490_v11  ;;  %v5484_v47 = vpop.f32.mrf.mxu0  ;;  %v5460_v52 = vpop.f32.mrf.mxu2  ;;  %v9586_v4 = vld [vmem:[%s15625_s1 + $0x1868] sm:$0xf] }
 0x23c   :  { %5703 = vmatpush.bf16.msrb.mxu1 %v8899_v38  ;;  %v10403_v38 = vld [vmem:[%s15625_s1 + $0x1534] sm:$0xf0]  ;;  %v9043_v49 = vor.u32 %v10371_v34, %v9042_v30  ;;  %v5485_v50 = vadd.f32 %v5484_v47, %v5472_v15  ;;  %v9459_v15 = vor.u32 %v10475_v3, %v9458_v55  ;;  %v9442_v30 = vld [vmem:[%s15625_s1 + $0x1748] sm:$0xf]  ;;  %v6583_v34 = vor.u32 %v9753_v8, %v6580_v10 }
 0x23d   :  { %5712 = vmatpush.bf16.msrb.mxu2 %v9091_v39  ;;  %v9346_v39 = vld [vmem:[%s15625_s1 + $0x1688] sm:$0xf]  ;;  %v9171_v48 = vor.u32 %v10403_v38, %v9170_v35  ;;  %v10471_v35 = vld [vmem:[%s15625_s1 + $0x1754] sm:$0xf0] }
 0x23e   :  { %5725 = vmatpush.bf16.msrb.mxu3 %v9219_v45  ;;  %5691 = vmatmul.bf16.vlgmr.msrb.gmra.mxu0 %v11641_v16  ;;  %v9474_v45 = vld [vmem:[%s15625_s1 + $0x1788] sm:$0xf]  ;;  %v9347_v53 = vor.u32 %v10447_v29, %v9346_v39  ;;  %v10503_v38 = vld [vmem:[%s15625_s1 + $0x1854] sm:$0xf0]  ;;  %v9749_v29 = vld [vmem:[%s15625_s1 + $0xcc] sm:$0xf] }
 0x23f   :  { %5735 = vmatpush.bf16.msra.mxu0 %v9395_v43  ;;  %5704 = vmatmul.bf16.vlgmr.msrb.gmra.mxu1 %v11654_v25  ;;  %v10479_v43 = vld [vmem:[%s15625_s1 + $0x1794] sm:$0xf0]  ;;  %v9426_v52 = vld [vmem:[%s15625_s1 + $0x1728] sm:$0xf] }
 0x240   :  { %5748 = vmatpush.bf16.msra.mxu1 %v9523_v51  ;;  %v5497_v51 = vpop.f32.mrf.mxu1  ;;  %v5473_v58 = vpop.f32.mrf.mxu3  ;;  %v9554_v54 = vld [vmem:[%s15625_s1 + $0x1828] sm:$0xf]  ;;  %v10495_v10 = vld [vmem:[%s15625_s1 + $0x1814] sm:$0xf0] }
 0x241   :  { %5713 = vmatpush.bf16.msrb.mxu2 %v9075_v57  ;;  %v10399_v57 = vld [vmem:[%s15625_s1 + $0x1514] sm:$0xf0]  ;;  %v14221_v63 = vadd.f32 %v5497_v51, %v5485_v50  ;;  %v9298_v50 = vld [vmem:[%s15625_s1 + $0x1628] sm:$0xf]  ;;  %v6548_v58 = vld [vmem:[%s15625_s1 + $0xb8] sm:$0xf0] }
 0x242   :  { %5726 = vmatpush.bf16.msrb.mxu3 %v9203_v59  ;;  %v9475_v59 = vor.u32 %v10479_v43, %v9474_v45  ;;  %v9155_v11 = vor.u32 %v10399_v57, %v9154_v46  ;;  %v6564_v45 = vld [vmem:[%s15625_s1 + $0xd8] sm:$0xf0]  ;;  %v10435_v51 = vld [vmem:[%s15625_s1 + $0x1634] sm:$0xf0]  ;;  %v9745_v57 = vld [vmem:[%s15625_s1 + $0xac] sm:$0xf] }
 0x243   :  { %5736 = vmatpush.bf16.msra.mxu0 %v9379_v60  ;;  %v9330_v60 = vld [vmem:[%s15625_s1 + $0x1668] sm:$0xf]  ;;  %v5486_v39 = vpop.f32.mrf.mxu0  ;;  %v10499_v46 = vld [vmem:[%s15625_s1 + $0x1834] sm:$0xf0]  ;;  %v6551_v8 = vor.u32 %v9745_v57, %v6548_v58  ;;  %v9733_v58 = vld [vmem:[%s15625_s1 + $0x4c] sm:$0xf] }
 0x244   :  { %5749 = vmatpush.bf16.msra.mxu1 %v9507_v5  ;;  %v10507_v5 = vld [vmem:[%s15625_s1 + $0x1874] sm:$0xf0]  ;;  %v9331_v14 = vor.u32 %v10443_v62, %v9330_v60  ;;  %v9282_v60 = vld [vmem:[%s15625_s1 + $0x1608] sm:$0xf]  ;;  %v9555_v3 = vor.u32 %v10499_v46, %v9554_v54 }
 0x245   :  { %5714 = vmatpush.bf16.msrb.mxu2 %v9059_v44  ;;  %v9587_v44 = vor.u32 %v10507_v5, %v9586_v4  ;;  %v10431_v62 = vld [vmem:[%s15625_s1 + $0x1614] sm:$0xf0]  ;;  %v9410_v4 = vld [vmem:[%s15625_s1 + $0x1708] sm:$0xf] }
 0x246   :  { %5727 = vmatpush.bf16.msrb.mxu3 %v9187_v23  ;;  %v9314_v23 = vld [vmem:[%s15625_s1 + $0x1648] sm:$0xf]  ;;  %v10463_v5 = vld [vmem:[%s15625_s1 + $0x1714] sm:$0xf0] }
 0x247   :  { %5737 = vmatpush.bf16.msra.mxu0 %v9363_v24  ;;  %v10439_v24 = vld [vmem:[%s15625_s1 + $0x1654] sm:$0xf0] }
 0x248   :  { %5750 = vmatpush.bf16.msra.mxu1 %v9491_v36  ;;  %v9570_v36 = vld [vmem:[%s15625_s1 + $0x1848] sm:$0xf]  ;;  %v5499_v43 = vpop.f32.mrf.mxu1  ;;  %v9315_v47 = vor.u32 %v10439_v24, %v9314_v23  ;;  %v9817_v23 = vld [vmem:[%s15625_s1 + $0x2ec] sm:$0xf]  ;;  %v9283_v24 = vor.u32 %v10431_v62, %v9282_v60 }
 0x249   :  { %5715 = vmatpush.bf16.msrb.mxu2 %v9043_v49  ;;  %v9443_v49 = vor.u32 %v10471_v35, %v9442_v30  ;;  %v9571_v56 = vor.u32 %v10503_v38, %v9570_v36  ;;  %v6836_v30 = vld [vmem:[%s15625_s1 + $0x2f8] sm:$0xf0]  ;;  %v9411_v36 = vor.u32 %v10463_v5, %v9410_v4  ;;  %v9777_v4 = vld [vmem:[%s15625_s1 + $0x1ac] sm:$0xf] }
 0x24a   :  { %5728 = vmatpush.bf16.msrb.mxu3 %v9171_v48  ;;  %v6567_v48 = vor.u32 %v9749_v29, %v6564_v45  ;;  %v6964_v35 = vld [vmem:[%s15625_s1 + $0x3f8] sm:$0xf0]  ;;  %v9737_v45 = vld [vmem:[%s15625_s1 + $0x6c] sm:$0xf] }
 0x24b   :  { %5738 = vmatpush.bf16.msra.mxu0 %v9347_v53  ;;  %v10467_v53 = vld [vmem:[%s15625_s1 + $0x1734] sm:$0xf0]  ;;  %v6516_v43 = vld [vmem:[%s15625_s1 + $0x78] sm:$0xf0] }
 0x24c   :  { %5751 = vmatpush.bf16.msra.mxu1 %v9475_v59  ;;  %v9299_v59 = vor.u32 %v10435_v51, %v9298_v50  ;;  %v9427_v55 = vor.u32 %v10467_v53, %v9426_v52  ;;  %v6692_v50 = vld [vmem:[%s15625_s1 + $0x1d8] sm:$0xf0]  ;;  %v9813_v51 = vld [vmem:[%s15625_s1 + $0x2cc] sm:$0xf]  ;;  %v6519_v46 = vor.u32 %v9737_v45, %v6516_v43 }
 0x24d   :  { %5716 = vmatpush.bf16.msrb.mxu2 %v9027_v6  ;;  %v9538_v6 = vld [vmem:[%s15625_s1 + $0x1808] sm:$0xf]  ;;  %v6820_v52 = vld [vmem:[%s15625_s1 + $0x2d8] sm:$0xf0]  ;;  %v9837_v45 = vld [vmem:[%s15625_s1 + $0x38c] sm:$0xf] }
 0x24e   :  { %5729 = vmatpush.bf16.msrb.mxu3 %v9155_v11  ;;  %v9741_v11 = vld [vmem:[%s15625_s1 + $0x8c] sm:$0xf]  ;;  %v9539_v38 = vor.u32 %v10495_v10, %v9538_v6  ;;  %v6948_v53 = vld [vmem:[%s15625_s1 + $0x3d8] sm:$0xf0] }
 0x24f   :  { %5739 = vmatpush.bf16.msra.mxu0 %v9331_v14  ;;  %v6532_v14 = vld [vmem:[%s15625_s1 + $0x98] sm:$0xf0]  ;;  %v9809_v6 = vld [vmem:[%s15625_s1 + $0x2ac] sm:$0xf] }
 0x250   :  { %5752 = vmatpush.bf16.msra.mxu1 %v9459_v15  ;;  %5717 = vmatmul.bf16.vlgmr.msrb.gmra.mxu2 %v11671_v37  ;;  %v9785_v15 = vld [vmem:[%s15625_s1 + $0x1ec] sm:$0xf]  ;;  %v6535_v39 = vor.u32 %v9741_v11, %v6532_v14  ;;  %v6676_v5 = vld [vmem:[%s15625_s1 + $0x1b8] sm:$0xf0] }
 0x251   :  { %5765 = vmatpush.bf16.msra.mxu2 %v9587_v44  ;;  %5730 = vmatmul.bf16.vlgmr.msrb.gmra.mxu3 %v11675_v41  ;;  %v6708_v44 = vld [vmem:[%s15625_s1 + $0x1f8] sm:$0xf0] }
 0x252   :  { %5774 = vmatpush.bf16.msra.mxu3 %v6583_v34  ;;  %v9849_v34 = vld [vmem:[%s15625_s1 + $0x3ec] sm:$0xf]  ;;  %v6711_v29 = vor.u32 %v9785_v15, %v6708_v44  ;;  %v6932_v10 = vld [vmem:[%s15625_s1 + $0x3b8] sm:$0xf0]  ;;  %v6679_v15 = vor.u32 %v9777_v4, %v6676_v5 }
 0x253   :  { %5740 = vmatpush.bf16.msra.mxu0 %v9315_v47  ;;  %v6839_v47 = vor.u32 %v9817_v23, %v6836_v30  ;;  %v5510_v54 = vpop.f32.mrf.mxu2  ;;  %v9729_v44 = vld [vmem:[%s15625_s1 + $0x2c] sm:$0xf]  ;;  %v6484_v23 = vld [vmem:[%s15625_s1 + $0x38] sm:$0xf0] }
 0x254   :  { %5753 = vmatpush.bf16.msra.mxu1 %v9443_v49  ;;  %v6967_v49 = vor.u32 %v9849_v34, %v6964_v35  ;;  %v5511_v60 = vadd.f32 %v5510_v54, %v14221_v63  ;;  %v5523_v62 = vpop.f32.mrf.mxu3  ;;  %v6804_v63 = vld [vmem:[%s15625_s1 + $0x2b8] sm:$0xf0]  ;;  %v9773_v34 = vld [vmem:[%s15625_s1 + $0x18c] sm:$0xf] }
 0x255   :  { %5766 = vmatpush.bf16.msra.mxu2 %v9571_v56  ;;  %v9781_v56 = vld [vmem:[%s15625_s1 + $0x1cc] sm:$0xf]  ;;  %v6660_v35 = vld [vmem:[%s15625_s1 + $0x198] sm:$0xf0] }
 0x256   :  { %5775 = vmatpush.bf16.msra.mxu3 %v6567_v48  ;;  %v9845_v48 = vld [vmem:[%s15625_s1 + $0x3cc] sm:$0xf]  ;;  %v6695_v57 = vor.u32 %v9781_v56, %v6692_v50  ;;  %v5524_v11 = vadd.f32 %v5523_v62, %v5511_v60  ;;  %v6916_v43 = vld [vmem:[%s15625_s1 + $0x398] sm:$0xf0]  ;;  %v6487_v50 = vor.u32 %v9729_v44, %v6484_v23 }
 0x257   :  { %5741 = vmatpush.bf16.msra.mxu0 %v9299_v59  ;;  %v6500_v59 = vld [vmem:[%s15625_s1 + $0x58] sm:$0xf0]  ;;  %v9801_v60 = vld [vmem:[%s15625_s1 + $0x26c] sm:$0xf] }
 0x258   :  { %5754 = vmatpush.bf16.msra.mxu1 %v9427_v55  ;;  %v6823_v55 = vor.u32 %v9813_v51, %v6820_v52  ;;  %v6503_v14 = vor.u32 %v9733_v58, %v6500_v59  ;;  %v6663_v51 = vor.u32 %v9773_v34, %v6660_v35  ;;  %v9725_v52 = vld [vmem:[%s15625_s1 + $0xc] sm:$0xf]  ;;  %v6644_v59 = vld [vmem:[%s15625_s1 + $0x178] sm:$0xf0] }
 0x259   :  { %5767 = vmatpush.bf16.msra.mxu2 %v9555_v3  ;;  %v6951_v3 = vor.u32 %v9845_v48, %v6948_v53  ;;  %v6468_v48 = vld [vmem:[%s15625_s1 + $0x18] sm:$0xf0]  ;;  %v9769_v58 = vld [vmem:[%s15625_s1 + $0x16c] sm:$0xf] }
 0x25a   :  { %5776 = vmatpush.bf16.msra.mxu3 %v6551_v8  ;;  %v9841_v8 = vld [vmem:[%s15625_s1 + $0x3ac] sm:$0xf]  ;;  %v6772_v62 = vld [vmem:[%s15625_s1 + $0x278] sm:$0xf0] }
 0x25b   :  { %5742 = vmatpush.bf16.msra.mxu0 %v9283_v24  ;;  %v6807_v24 = vor.u32 %v9809_v6, %v6804_v63  ;;  %v6935_v30 = vor.u32 %v9841_v8, %v6932_v10  ;;  %v5512_v56 = vpop.f32.mrf.mxu2  ;;  %v9881_v4 = vld [vmem:[%s15625_s1 + $0x4ec] sm:$0xf]  ;;  %v7092_v5 = vld [vmem:[%s15625_s1 + $0x4f8] sm:$0xf0]  ;;  %v6471_v6 = vor.u32 %v9725_v52, %v6468_v48  ;;  %v6647_v63 = vor.u32 %v9769_v58, %v6644_v59 }
 0x25c   :  { %5755 = vmatpush.bf16.msra.mxu1 %v9411_v36  ;;  %v9805_v36 = vld [vmem:[%s15625_s1 + $0x28c] sm:$0xf]  ;;  %v5525_v53 = vpop.f32.mrf.mxu3  ;;  %v6775_v8 = vor.u32 %v9801_v60, %v6772_v62  ;;  %v7095_v44 = vor.u32 %v9881_v4, %v7092_v5  ;;  %v6756_v23 = vld [vmem:[%s15625_s1 + $0x258] sm:$0xf0] }
 0x25d   :  { %5768 = vmatpush.bf16.msra.mxu2 %v9539_v38  ;;  %v10550_v38 = vld [vmem:[#allocation1] sm:$0xff]  ;;  %v9877_v35 = vld [vmem:[%s15625_s1 + $0x4cc] sm:$0xf]  ;;  %v6868_v52 = vld [vmem:[%s15625_s1 + $0x338] sm:$0xf0] }
 0x25e   :  { %5777 = vmatpush.bf16.msra.mxu3 %v6535_v39  ;;  %5743 = vmatmul.bf16.vlgmr.msra.gmra.mxu0 %v11673_v40  ;;  %v5536_v39 = vpop.f32.mrf.mxu0  ;;  %v9873_v48 = vld [vmem:[%s15625_s1 + $0x4ac] sm:$0xf]  ;;  %v7060_v53 = vld [vmem:[%s15625_s1 + $0x4b8] sm:$0xf0] }
 0x25f   :  { %5787 = vmatpush.bf16.msrb.mxu0 %v6711_v29  ;;  %5756 = vmatmul.bf16.vlgmr.msra.gmra.mxu1 %v11677_v42  ;;  %v6788_v29 = vld [vmem:[%s15625_s1 + $0x298] sm:$0xf0]  ;;  %v9789_v62 = vld [vmem:[%s15625_s1 + $0x20c] sm:$0xf] }
 0x260   :  { %5800 = vmatpush.bf16.msrb.mxu1 %v6839_v47  ;;  %9594 = vmatmul.msk.bf16.vlgmr.msra.gmra.mxu2 %vm4796_vm0, %v10550_v38  ;;  %v5537_v47 = vadd.f32 %v5536_v39, %v5524_v11  ;;  %v6791_v54 = vor.u32 %v9805_v36, %v6788_v29  ;;  %v9765_v11 = vld [vmem:[%s15625_s1 + $0x14c] sm:$0xf]  ;;  %v7076_v36 = vld [vmem:[%s15625_s1 + $0x4d8] sm:$0xf0] }
 0x261   :  { %5813 = vmatpush.bf16.msrb.mxu2 %v6967_v49  ;;  %v5549_v49 = vpop.f32.mrf.mxu1  ;;  %v7079_v56 = vor.u32 %v9877_v35, %v7076_v36  ;;  %v6596_v58 = vld [vmem:[%s15625_s1 + $0x118] sm:$0xf0]  ;;  %v9869_v5 = vld [vmem:[%s15625_s1 + $0x48c] sm:$0xf] }
 0x262   :  { %5778 = vmatpush.bf16.msra.mxu3 %v6519_v46  ;;  %v6919_v46 = vor.u32 %v9837_v45, %v6916_v43  ;;  %v9761_v43 = vld [vmem:[%s15625_s1 + $0x12c] sm:$0xf]  ;;  %v6852_v4 = vld [vmem:[%s15625_s1 + $0x318] sm:$0xf0] }
 0x263   :  { %5788 = vmatpush.bf16.msrb.mxu0 %v6695_v57  ;;  %v14412_v57 = vadd.f32 %v5549_v49, %v5537_v47  ;;  %v6612_v47 = vld [vmem:[%s15625_s1 + $0x138] sm:$0xf0]  ;;  %v9793_v49 = vld [vmem:[%s15625_s1 + $0x22c] sm:$0xf] }
 0x264   :  { %5801 = vmatpush.bf16.msrb.mxu1 %v6823_v55  ;;  %v9833_v55 = vld [vmem:[%s15625_s1 + $0x36c] sm:$0xf]  ;;  %v7028_v36 = vld [vmem:[%s15625_s1 + $0x478] sm:$0xf0] }
 0x265   :  { %5814 = vmatpush.bf16.msrb.mxu2 %v6951_v3  ;;  %v6900_v3 = vld [vmem:[%s15625_s1 + $0x378] sm:$0xf0]  ;;  %v9865_v35 = vld [vmem:[%s15625_s1 + $0x46c] sm:$0xf] }
 0x266   :  { %5779 = vmatpush.bf16.msra.mxu3 %v6503_v14  ;;  %v6903_v10 = vor.u32 %v9833_v55, %v6900_v3  ;;  %v6628_v14 = vld [vmem:[%s15625_s1 + $0x158] sm:$0xf0]  ;;  %v5538_v34 = vpop.f32.mrf.mxu0  ;;  %v9821_v55 = vld [vmem:[%s15625_s1 + $0x30c] sm:$0xf]  ;;  %v7063_v3 = vor.u32 %v9873_v48, %v7060_v53 }
 0x267   :  { %5789 = vmatpush.bf16.msrb.mxu0 %v6679_v15  ;;  %v9797_v15 = vld [vmem:[%s15625_s1 + $0x24c] sm:$0xf]  ;;  %v6631_v39 = vor.u32 %v9765_v11, %v6628_v14  ;;  %v7348_v14 = vld [vmem:[%s15625_s1 + $0x6f8] sm:$0xf0] }
 0x268   :  { %5802 = vmatpush.bf16.msrb.mxu1 %v6807_v24  ;;  %v9829_v24 = vld [vmem:[%s15625_s1 + $0x34c] sm:$0xf]  ;;  %v6759_v29 = vor.u32 %v9797_v15, %v6756_v23 }
 0x269   :  { %5815 = vmatpush.bf16.msrb.mxu2 %v6935_v30  ;;  %v6884_v30 = vld [vmem:[%s15625_s1 + $0x358] sm:$0xf0]  ;;  %v5551_v38 = vpop.f32.mrf.mxu1  ;;  %v9977_v15 = vld [vmem:[%s15625_s1 + $0x7ec] sm:$0xf] }
 0x26a   :  { %5780 = vmatpush.bf16.msra.mxu3 %v6487_v50  ;;  %v6887_v45 = vor.u32 %v9829_v24, %v6884_v30  ;;  %v6740_v50 = vld [vmem:[%s15625_s1 + $0x238] sm:$0xf0]  ;;  %v6855_v24 = vor.u32 %v9821_v55, %v6852_v4 }
 0x26b   :  { %5790 = vmatpush.bf16.msrb.mxu0 %v6663_v51  ;;  %v9825_v51 = vld [vmem:[%s15625_s1 + $0x32c] sm:$0xf]  ;;  %v6743_v59 = vor.u32 %v9793_v49, %v6740_v50  ;;  %v7316_v55 = vld [vmem:[%s15625_s1 + $0x6b8] sm:$0xf0] }
 0x26c   :  { %5803 = vmatpush.bf16.msrb.mxu1 %v6791_v54  ;;  %v6615_v54 = vor.u32 %v9761_v43, %v6612_v47  ;;  %v6871_v60 = vor.u32 %v9825_v51, %v6868_v52  ;;  %v9941_v43 = vld [vmem:[%s15625_s1 + $0x6cc] sm:$0xf]  ;;  %v7332_v47 = vld [vmem:[%s15625_s1 + $0x6d8] sm:$0xf0]  ;;  %v7031_v51 = vor.u32 %v9865_v35, %v7028_v36 }
 0x26d   :  { %5816 = vmatpush.bf16.msrb.mxu2 %v6919_v46  ;;  %v9757_v46 = vld [vmem:[%s15625_s1 + $0x10c] sm:$0xf]  ;;  %v7444_v4 = vld [vmem:[%s15625_s1 + $0x7b8] sm:$0xf0] }
 0x26e   :  { %5781 = vmatpush.bf16.msra.mxu3 %v6471_v6  ;;  %v7044_v6 = vld [vmem:[%s15625_s1 + $0x498] sm:$0xf0]  ;;  %v6599_v11 = vor.u32 %v9757_v46, %v6596_v58  ;;  %v9973_v49 = vld [vmem:[%s15625_s1 + $0x7cc] sm:$0xf]  ;;  %v7335_v58 = vor.u32 %v9941_v43, %v7332_v47 }
 0x26f   :  { %5791 = vmatpush.bf16.msrb.mxu0 %v6647_v63  ;;  %v9913_v63 = vld [vmem:[%s15625_s1 + $0x5ec] sm:$0xf]  ;;  %v7047_v30 = vor.u32 %v9869_v5, %v7044_v6  ;;  %v7012_v46 = vld [vmem:[%s15625_s1 + $0x458] sm:$0xf0] }
 0x270   :  { %5804 = vmatpush.bf16.msrb.mxu1 %v6775_v8  ;;  %v7220_v8 = vld [vmem:[%s15625_s1 + $0x5f8] sm:$0xf0] }
 0x271   :  { %5817 = vmatpush.bf16.msrb.mxu2 %v6903_v10  ;;  %5782 = vmatmul.bf16.vlgmr.msra.gmra.mxu3 %v10888_v21  ;;  %v6724_v21 = vld [vmem:[%s15625_s1 + $0x218] sm:$0xf0]  ;;  %v9945_v10 = vld [vmem:[%s15625_s1 + $0x6ec] sm:$0xf]  ;;  %v7223_v34 = vor.u32 %v9913_v63, %v7220_v8 }
 0x272   :  { %5826 = vmatpush.bf16.msrb.mxu3 %v7095_v44  ;;  %v7476_v44 = vld [vmem:[%s15625_s1 + $0x7f8] sm:$0xf0]  ;;  %v6727_v23 = vor.u32 %v9789_v62, %v6724_v21  ;;  %v7351_v38 = vor.u32 %v9945_v10, %v7348_v14  ;;  %v9937_v62 = vld [vmem:[%s15625_s1 + $0x6ac] sm:$0xf] }
 0x273   :  { %5792 = vmatpush.bf16.msrb.mxu0 %v6631_v39  ;;  %v7479_v39 = vor.u32 %v9977_v15, %v7476_v44  ;;  %v5562_v50 = vpop.f32.mrf.mxu2  ;;  %v9857_v63 = vld [vmem:[%s15625_s1 + $0x42c] sm:$0xf]  ;;  %v6996_v8 = vld [vmem:[%s15625_s1 + $0x438] sm:$0xf0]  ;;  %v7319_v10 = vor.u32 %v9937_v62, %v7316_v55 }
 0x274   :  { %5805 = vmatpush.bf16.msrb.mxu1 %v6759_v29  ;;  %v9909_v29 = vld [vmem:[%s15625_s1 + $0x5cc] sm:$0xf]  ;;  %v5563_v52 = vadd.f32 %v5562_v50, %v14412_v57  ;;  %v5575_v53 = vpop.f32.mrf.mxu3  ;;  %v7188_v57 = vld [vmem:[%s15625_s1 + $0x5b8] sm:$0xf0]  ;;  %v6999_v35 = vor.u32 %v9857_v63, %v6996_v8 }
 0x275   :  { %5818 = vmatpush.bf16.msrb.mxu2 %v6887_v45  ;;  %v7204_v45 = vld [vmem:[%s15625_s1 + $0x5d8] sm:$0xf0]  ;;  %v9965_v44 = vld [vmem:[%s15625_s1 + $0x78c] sm:$0xf] }
 0x276   :  { %5827 = vmatpush.bf16.msrb.mxu3 %v7079_v56  ;;  %v7460_v56 = vld [vmem:[%s15625_s1 + $0x7d8] sm:$0xf0]  ;;  %v7207_v48 = vor.u32 %v9909_v29, %v7204_v45  ;;  %v5576_v21 = vadd.f32 %v5575_v53, %v5563_v52  ;;  %v9929_v50 = vld [vmem:[%s15625_s1 + $0x66c] sm:$0xf] }
 0x277   :  { %5793 = vmatpush.bf16.msrb.mxu0 %v6615_v54  ;;  %v9861_v54 = vld [vmem:[%s15625_s1 + $0x44c] sm:$0xf]  ;;  %v7300_v15 = vld [vmem:[%s15625_s1 + $0x698] sm:$0xf0] }
 0x278   :  { %5806 = vmatpush.bf16.msrb.mxu1 %v6743_v59  ;;  %v7463_v59 = vor.u32 %v9973_v49, %v7460_v56  ;;  %v7015_v5 = vor.u32 %v9861_v54, %v7012_v46  ;;  %v9897_v49 = vld [vmem:[%s15625_s1 + $0x56c] sm:$0xf]  ;;  %v7156_v56 = vld [vmem:[%s15625_s1 + $0x578] sm:$0xf0] }
 0x279   :  { %5819 = vmatpush.bf16.msrb.mxu2 %v6871_v60  ;;  %v9905_v60 = vld [vmem:[%s15625_s1 + $0x5ac] sm:$0xf]  ;;  %v7604_v54 = vld [vmem:[%s15625_s1 + $0x8f8] sm:$0xf0] }
 0x27a   :  { %5828 = vmatpush.bf16.msrb.mxu3 %v7063_v3  ;;  %v9969_v3 = vld [vmem:[%s15625_s1 + $0x7ac] sm:$0xf]  ;;  %v7191_v6 = vor.u32 %v9905_v60, %v7188_v57  ;;  %v7140_v62 = vld [vmem:[%s15625_s1 + $0x558] sm:$0xf0] }
 0x27b   :  { %5794 = vmatpush.bf16.msrb.mxu0 %v6599_v11  ;;  %v9933_v11 = vld [vmem:[%s15625_s1 + $0x68c] sm:$0xf]  ;;  %v5588_v14 = vpop.f32.mrf.mxu0  ;;  %v7588_v8 = vld [vmem:[%s15625_s1 + $0x8d8] sm:$0xf0] }
 0x27c   :  { %5807 = vmatpush.bf16.msrb.mxu1 %v6727_v23  ;;  %v7428_v23 = vld [vmem:[%s15625_s1 + $0x798] sm:$0xf0]  ;;  %v5577_v29 = vpop.f32.mrf.mxu3  ;;  %v7303_v45 = vor.u32 %v9933_v11, %v7300_v15  ;;  %v9961_v52 = vld [vmem:[%s15625_s1 + $0x76c] sm:$0xf] }
 0x27d   :  { %5820 = vmatpush.bf16.msrb.mxu2 %v6855_v24  ;;  %v5589_v24 = vadd.f32 %v5588_v14, %v5576_v21  ;;  %v7431_v43 = vor.u32 %v9965_v44, %v7428_v23  ;;  %v10009_v53 = vld [vmem:[%s15625_s1 + $0x8ec] sm:$0xf]  ;;  %v7124_v14 = vld [vmem:[%s15625_s1 + $0x538] sm:$0xf0] }
 0x27e   :  { %5829 = vmatpush.bf16.msrb.mxu3 %v7047_v30  ;;  %5795 = vmatmul.bf16.vlgmr.msrb.gmra.mxu0 %v10899_v26  ;;  %v7172_v26 = vld [vmem:[%s15625_s1 + $0x598] sm:$0xf0]  ;;  %v5601_v30 = vpop.f32.mrf.mxu1  ;;  %v9893_v57 = vld [vmem:[%s15625_s1 + $0x54c] sm:$0xf]  ;;  %v7607_v55 = vor.u32 %v10009_v53, %v7604_v54 }
 0x27f   :  { %5839 = vmatpush.bf16.msra.mxu0 %v7223_v34  ;;  %5808 = vmatmul.bf16.vlgmr.msrb.gmra.mxu1 %v10886_v20  ;;  %v9901_v20 = vld [vmem:[%s15625_s1 + $0x58c] sm:$0xf]  ;;  %v5564_v34 = vpop.f32.mrf.mxu2  ;;  %v14611_v47 = vadd.f32 %v5601_v30, %v5589_v24  ;;  %v7252_v23 = vld [vmem:[%s15625_s1 + $0x638] sm:$0xf0] }
 0x280   :  { %5852 = vmatpush.bf16.msra.mxu1 %v7351_v38  ;;  %5821 = vmatmul.bf16.vlgmr.msrb.gmra.mxu2 %v10890_v22  ;;  %v7447_v22 = vor.u32 %v9969_v3, %v7444_v4  ;;  %v7175_v36 = vor.u32 %v9901_v20, %v7172_v26  ;;  %v9853_v38 = vld [vmem:[%s15625_s1 + $0x40c] sm:$0xf]  ;;  %v7268_v3 = vld [vmem:[%s15625_s1 + $0x658] sm:$0xf0] }
 0x281   :  { %5865 = vmatpush.bf16.msra.mxu2 %v7479_v39  ;;  %v6980_v39 = vld [vmem:[%s15625_s1 + $0x418] sm:$0xf0]  ;;  %v9925_v21 = vld [vmem:[%s15625_s1 + $0x64c] sm:$0xf] }
 0x282   :  { %5830 = vmatpush.bf16.msrb.mxu3 %v7031_v51  ;;  %v7284_v51 = vld [vmem:[%s15625_s1 + $0x678] sm:$0xf0]  ;;  %v6983_v46 = vor.u32 %v9853_v38, %v6980_v39  ;;  %v9957_v4 = vld [vmem:[%s15625_s1 + $0x74c] sm:$0xf]  ;;  %v7271_v20 = vor.u32 %v9925_v21, %v7268_v3 }
 0x283   :  { %5840 = vmatpush.bf16.msra.mxu0 %v7207_v48  ;;  %v7412_v48 = vld [vmem:[%s15625_s1 + $0x778] sm:$0xf0]  ;;  %v10005_v63 = vld [vmem:[%s15625_s1 + $0x8cc] sm:$0xf] }
 0x284   :  { %5853 = vmatpush.bf16.msra.mxu1 %v7335_v58  ;;  %v7159_v58 = vor.u32 %v9897_v49, %v7156_v56  ;;  %v7415_v60 = vor.u32 %v9961_v52, %v7412_v48  ;;  %v9889_v11 = vld [vmem:[%s15625_s1 + $0x52c] sm:$0xf]  ;;  %v7591_v44 = vor.u32 %v10005_v63, %v7588_v8  ;;  %v7380_v30 = vld [vmem:[%s15625_s1 + $0x738] sm:$0xf0] }
 0x285   :  { %5866 = vmatpush.bf16.msra.mxu2 %v7463_v59  ;;  %v7287_v59 = vor.u32 %v9929_v50, %v7284_v51  ;;  %v9921_v15 = vld [vmem:[%s15625_s1 + $0x62c] sm:$0xf]  ;;  %v7108_v39 = vld [vmem:[%s15625_s1 + $0x518] sm:$0xf0] }
 0x286   :  { %5831 = vmatpush.bf16.msrb.mxu3 %v7015_v5  ;;  %v7396_v5 = vld [vmem:[%s15625_s1 + $0x758] sm:$0xf0]  ;;  %v9953_v24 = vld [vmem:[%s15625_s1 + $0x72c] sm:$0xf] }
 0x287   :  { %5841 = vmatpush.bf16.msra.mxu0 %v7191_v6  ;;  %v5590_v6 = vpop.f32.mrf.mxu0  ;;  %v7399_v26 = vor.u32 %v9957_v4, %v7396_v5  ;;  %v10001_v34 = vld [vmem:[%s15625_s1 + $0x8ac] sm:$0xf]  ;;  %v7383_v29 = vor.u32 %v9953_v24, %v7380_v30  ;;  %v7364_v50 = vld [vmem:[%s15625_s1 + $0x718] sm:$0xf0] }
 0x288   :  { %5854 = vmatpush.bf16.msra.mxu1 %v7319_v10  ;;  %v5603_v10 = vpop.f32.mrf.mxu1  ;;  %v9885_v38 = vld [vmem:[%s15625_s1 + $0x50c] sm:$0xf]  ;;  %v7556_v52 = vld [vmem:[%s15625_s1 + $0x898] sm:$0xf0] }
 0x289   :  { %5867 = vmatpush.bf16.msra.mxu2 %v7447_v22  ;;  %v7143_v22 = vor.u32 %v9893_v57, %v7140_v62  ;;  %v9949_v49 = vld [vmem:[%s15625_s1 + $0x70c] sm:$0xf]  ;;  %v7732_v53 = vld [vmem:[%s15625_s1 + $0x9f8] sm:$0xf0] }
 0x28a   :  { %5832 = vmatpush.bf16.msrb.mxu3 %v6999_v35  ;;  %v7572_v35 = vld [vmem:[%s15625_s1 + $0x8b8] sm:$0xf0]  ;;  %v9997_v51 = vld [vmem:[%s15625_s1 + $0x88c] sm:$0xf]  ;;  %v7367_v62 = vor.u32 %v9949_v49, %v7364_v50 }
 0x28b   :  { %5842 = vmatpush.bf16.msra.mxu0 %v7175_v36  ;;  %v7127_v36 = vor.u32 %v9889_v11, %v7124_v14  ;;  %v7575_v56 = vor.u32 %v10001_v34, %v7572_v35  ;;  %v10041_v48 = vld [vmem:[%s15625_s1 + $0x9ec] sm:$0xf]  ;;  %v7559_v21 = vor.u32 %v9997_v51, %v7556_v52  ;;  %v7540_v4 = vld [vmem:[%s15625_s1 + $0x878] sm:$0xf0] }
 0x28c   :  { %5855 = vmatpush.bf16.msra.mxu1 %v7303_v45  ;;  %v9917_v45 = vld [vmem:[%s15625_s1 + $0x60c] sm:$0xf]  ;;  %v7716_v8 = vld [vmem:[%s15625_s1 + $0x9d8] sm:$0xf0] }
 0x28d   :  { %5868 = vmatpush.bf16.msra.mxu2 %v7431_v43  ;;  %v7236_v43 = vld [vmem:[%s15625_s1 + $0x618] sm:$0xf0]  ;;  %v10073_v54 = vld [vmem:[%s15625_s1 + $0xaec] sm:$0xf] }
 0x28e   :  { %5833 = vmatpush.bf16.msrb.mxu3 %v6983_v46  ;;  %v7111_v46 = vor.u32 %v9885_v38, %v7108_v39  ;;  %v7239_v57 = vor.u32 %v9917_v45, %v7236_v43  ;;  %v9993_v3 = vld [vmem:[%s15625_s1 + $0x86c] sm:$0xf]  ;;  %v7524_v30 = vld [vmem:[%s15625_s1 + $0x858] sm:$0xf0] }
 0x28f   :  { %5843 = vmatpush.bf16.msra.mxu0 %v7159_v58  ;;  %v7860_v58 = vld [vmem:[%s15625_s1 + $0xaf8] sm:$0xf0]  ;;  %v10037_v63 = vld [vmem:[%s15625_s1 + $0x9cc] sm:$0xf]  ;;  %v7543_v14 = vor.u32 %v9993_v3, %v7540_v4 }
 0x290   :  { %5856 = vmatpush.bf16.msra.mxu1 %v7287_v59  ;;  %v10105_v59 = vld [vmem:[%s15625_s1 + $0xbec] sm:$0xf]  ;;  %v7863_v5 = vor.u32 %v10073_v54, %v7860_v58  ;;  %v7956_v45 = vld [vmem:[%s15625_s1 + $0xbb8] sm:$0xf0] }
 0x291   :  { %5869 = vmatpush.bf16.msra.mxu2 %v7415_v60  ;;  %5834 = vmatmul.bf16.vlgmr.msrb.gmra.mxu3 %v10981_v0  ;;  %v7255_v0 = vor.u32 %v9921_v15, %v7252_v23  ;;  %v7988_v60 = vld [vmem:[%s15625_s1 + $0xbf8] sm:$0xf0]  ;;  %v10069_v10 = vld [vmem:[%s15625_s1 + $0xacc] sm:$0xf] }
 0x292   :  { %5878 = vmatpush.bf16.msra.mxu3 %v7607_v55  ;;  %v7735_v55 = vor.u32 %v10041_v48, %v7732_v53  ;;  %v7991_v6 = vor.u32 %v10105_v59, %v7988_v60  ;;  %v9989_v24 = vld [vmem:[%s15625_s1 + $0x84c] sm:$0xf]  ;;  %v7508_v49 = vld [vmem:[%s15625_s1 + $0x838] sm:$0xf0] }
 0x293   :  { %5844 = vmatpush.bf16.msra.mxu0 %v7143_v22  ;;  %v7844_v22 = vld [vmem:[%s15625_s1 + $0xad8] sm:$0xf0]  ;;  %v5614_v11 = vpop.f32.mrf.mxu2  ;;  %v10065_v38 = vld [vmem:[%s15625_s1 + $0xaac] sm:$0xf] }
 0x294   :  { %5857 = vmatpush.bf16.msra.mxu1 %v7271_v20  ;;  %v10101_v20 = vld [vmem:[%s15625_s1 + $0xbcc] sm:$0xf]  ;;  %v5615_v15 = vadd.f32 %v5614_v11, %v14611_v47  ;;  %v5627_v23 = vpop.f32.mrf.mxu3  ;;  %v7847_v34 = vor.u32 %v10069_v10, %v7844_v22  ;;  %v7700_v47 = vld [vmem:[%s15625_s1 + $0x9b8] sm:$0xf0] }
 0x295   :  { %5870 = vmatpush.bf16.msra.mxu2 %v7399_v26  ;;  %v7972_v26 = vld [vmem:[%s15625_s1 + $0xbd8] sm:$0xf0]  ;;  %v10061_v52 = vld [vmem:[%s15625_s1 + $0xa8c] sm:$0xf] }
 0x296   :  { %5879 = vmatpush.bf16.msra.mxu3 %v7591_v44  ;;  %v7719_v44 = vor.u32 %v10037_v63, %v7716_v8  ;;  %v7975_v35 = vor.u32 %v10101_v20, %v7972_v26  ;;  %v5628_v39 = vadd.f32 %v5627_v23, %v5615_v15  ;;  %v7684_v51 = vld [vmem:[%s15625_s1 + $0x998] sm:$0xf0]  ;;  %v10093_v54 = vld [vmem:[%s15625_s1 + $0xb8c] sm:$0xf] }
 0x297   :  { %5845 = vmatpush.bf16.msra.mxu0 %v7127_v36  ;;  %v10033_v36 = vld [vmem:[%s15625_s1 + $0x9ac] sm:$0xf]  ;;  %v7812_v53 = vld [vmem:[%s15625_s1 + $0xa98] sm:$0xf0] }
 0x298   :  { %5858 = vmatpush.bf16.msra.mxu1 %v7255_v0  ;;  %v7828_v0 = vld [vmem:[%s15625_s1 + $0xab8] sm:$0xf0]  ;;  %v7703_v43 = vor.u32 %v10033_v36, %v7700_v47  ;;  %v7815_v4 = vor.u32 %v10061_v52, %v7812_v53  ;;  %v10025_v63 = vld [vmem:[%s15625_s1 + $0x96c] sm:$0xf] }
 0x299   :  { %5871 = vmatpush.bf16.msra.mxu2 %v7383_v29  ;;  %v10097_v29 = vld [vmem:[%s15625_s1 + $0xbac] sm:$0xf]  ;;  %v7668_v8 = vld [vmem:[%s15625_s1 + $0x978] sm:$0xf0] }
 0x29a   :  { %5880 = vmatpush.bf16.msra.mxu3 %v7575_v56  ;;  %v7831_v56 = vor.u32 %v10065_v38, %v7828_v0  ;;  %v7959_v50 = vor.u32 %v10097_v29, %v7956_v45  ;;  %v10057_v10 = vld [vmem:[%s15625_s1 + $0xa6c] sm:$0xf]  ;;  %v7796_v22 = vld [vmem:[%s15625_s1 + $0xa78] sm:$0xf0] }
 0x29b   :  { %5846 = vmatpush.bf16.msra.mxu0 %v7111_v46  ;;  %v5640_v48 = vpop.f32.mrf.mxu0  ;;  %v7940_v46 = vld [vmem:[%s15625_s1 + $0xb98] sm:$0xf0]  ;;  %v5616_v60 = vpop.f32.mrf.mxu2  ;;  %v10089_v20 = vld [vmem:[%s15625_s1 + $0xb6c] sm:$0xf]  ;;  %v7799_v23 = vor.u32 %v10057_v10, %v7796_v22 }
 0x29c   :  { %5859 = vmatpush.bf16.msra.mxu1 %v7239_v57  ;;  %v5641_v58 = vadd.f32 %v5640_v48, %v5628_v39  ;;  %v5653_v59 = vpop.f32.mrf.mxu1  ;;  %v5629_v3 = vpop.f32.mrf.mxu3  ;;  %v7924_v26 = vld [vmem:[%s15625_s1 + $0xb78] sm:$0xf0]  ;;  %v10137_v11 = vld [vmem:[%s15625_s1 + $0xcec] sm:$0xf] }
 0x29d   :  { %5872 = vmatpush.bf16.msra.mxu2 %v7367_v62  ;;  %v7780_v47 = vld [vmem:[%s15625_s1 + $0xa58] sm:$0xf0]  ;;  %v10085_v38 = vld [vmem:[%s15625_s1 + $0xb4c] sm:$0xf] }
 0x29e   :  { %5881 = vmatpush.bf16.msra.mxu3 %v7559_v21  ;;  %5847 = vmatmul.bf16.vlgmr.msra.gmra.mxu0 %v10985_v2  ;;  %v9985_v2 = vld [vmem:[%s15625_s1 + $0x82c] sm:$0xf]  ;;  %v7908_v39 = vld [vmem:[%s15625_s1 + $0xb58] sm:$0xf0] }
 0x29f   :  { %5891 = vmatpush.bf16.msrb.mxu0 %v7735_v55  ;;  %5860 = vmatmul.bf16.vlgmr.msra.gmra.mxu1 %v10979_v61  ;;  %v10029_v61 = vld [vmem:[%s15625_s1 + $0x98c] sm:$0xf]  ;;  %v7511_v57 = vor.u32 %v9985_v2, %v7508_v49  ;;  %v7492_v55 = vld [vmem:[%s15625_s1 + $0x818] sm:$0xf0]  ;;  %v7911_v49 = vor.u32 %v10085_v38, %v7908_v39 }
 0x2a0   :  { %5904 = vmatpush.bf16.msrb.mxu1 %v7863_v5  ;;  %5873 = vmatmul.bf16.vlgmr.msra.gmra.mxu2 %v10983_v1  ;;  %v7527_v1 = vor.u32 %v9989_v24, %v7524_v30  ;;  %v7687_v62 = vor.u32 %v10029_v61, %v7684_v51  ;;  %v9981_v21 = vld [vmem:[%s15625_s1 + $0x80c] sm:$0xf]  ;;  %v7943_v5 = vor.u32 %v10093_v54, %v7940_v46  ;;  %v8100_v45 = vld [vmem:[%s15625_s1 + $0xcd8] sm:$0xf0] }
 0x2a1   :  { %5917 = vmatpush.bf16.msrb.mxu2 %v7991_v6  ;;  %v14810_v6 = vadd.f32 %v5653_v59, %v5641_v58  ;;  %v7495_v15 = vor.u32 %v9981_v21, %v7492_v55  ;;  %v7927_v24 = vor.u32 %v10089_v20, %v7924_v26  ;;  %v10021_v30 = vld [vmem:[%s15625_s1 + $0x94c] sm:$0xf]  ;;  %v7764_v52 = vld [vmem:[%s15625_s1 + $0xa38] sm:$0xf0] }
 0x2a2   :  { %5882 = vmatpush.bf16.msra.mxu3 %v7543_v14  ;;  %v8116_v14 = vld [vmem:[%s15625_s1 + $0xcf8] sm:$0xf0]  ;;  %v10133_v29 = vld [vmem:[%s15625_s1 + $0xccc] sm:$0xf] }
 0x2a3   :  { %5892 = vmatpush.bf16.msrb.mxu0 %v7719_v44  ;;  %v7671_v44 = vor.u32 %v10025_v63, %v7668_v8  ;;  %v8119_v36 = vor.u32 %v10137_v11, %v8116_v14  ;;  %v5642_v0 = vpop.f32.mrf.mxu0  ;;  %v10049_v61 = vld [vmem:[%s15625_s1 + $0xa2c] sm:$0xf]  ;;  %v8103_v51 = vor.u32 %v10133_v29, %v8100_v45  ;;  %v7892_v53 = vld [vmem:[%s15625_s1 + $0xb38] sm:$0xf0] }
 0x2a4   :  { %5905 = vmatpush.bf16.msrb.mxu1 %v7847_v34  ;;  %v7652_v34 = vld [vmem:[%s15625_s1 + $0x958] sm:$0xf0]  ;;  %v10081_v48 = vld [vmem:[%s15625_s1 + $0xb2c] sm:$0xf] }
 0x2a5   :  { %5918 = vmatpush.bf16.msrb.mxu2 %v7975_v35  ;;  %v10053_v35 = vld [vmem:[%s15625_s1 + $0xa4c] sm:$0xf]  ;;  %v8084_v46 = vld [vmem:[%s15625_s1 + $0xcb8] sm:$0xf0] }
 0x2a6   :  { %5883 = vmatpush.bf16.msra.mxu3 %v7527_v1  ;;  %v5655_v1 = vpop.f32.mrf.mxu1  ;;  %v7783_v2 = vor.u32 %v10053_v35, %v7780_v47  ;;  %v10129_v54 = vld [vmem:[%s15625_s1 + $0xcac] sm:$0xf]  ;;  %v7620_v60 = vld [vmem:[%s15625_s1 + $0x918] sm:$0xf0] }
 0x2a7   :  { %5893 = vmatpush.bf16.msrb.mxu0 %v7703_v43  ;;  %v7655_v43 = vor.u32 %v10021_v30, %v7652_v34  ;;  %v10013_v59 = vld [vmem:[%s15625_s1 + $0x90c] sm:$0xf]  ;;  %v7748_v21 = vld [vmem:[%s15625_s1 + $0xa18] sm:$0xf0]  ;;  %v8087_v3 = vor.u32 %v10129_v54, %v8084_v46 }
 0x2a8   :  { %5906 = vmatpush.bf16.msrb.mxu1 %v7831_v56  ;;  %v10017_v56 = vld [vmem:[%s15625_s1 + $0x92c] sm:$0xf]  ;;  %v8068_v63 = vld [vmem:[%s15625_s1 + $0xc98] sm:$0xf0]  ;;  %v7623_v20 = vor.u32 %v10013_v59, %v7620_v60 }
 0x2a9   :  { %5919 = vmatpush.bf16.msrb.mxu2 %v7959_v50  ;;  %v7636_v50 = vld [vmem:[%s15625_s1 + $0x938] sm:$0xf0]  ;;  %v10077_v55 = vld [vmem:[%s15625_s1 + $0xb0c] sm:$0xf] }
 0x2aa   :  { %5884 = vmatpush.bf16.msra.mxu3 %v7511_v57  ;;  %v7639_v58 = vor.u32 %v10017_v56, %v7636_v50  ;;  %v7895_v57 = vor.u32 %v10081_v48, %v7892_v53  ;;  %v10169_v8 = vld [vmem:[%s15625_s1 + $0xdec] sm:$0xf]  ;;  %v8244_v10 = vld [vmem:[%s15625_s1 + $0xdf8] sm:$0xf0] }
 0x2ab   :  { %5894 = vmatpush.bf16.msrb.mxu0 %v7687_v62  ;;  %v10045_v62 = vld [vmem:[%s15625_s1 + $0xa0c] sm:$0xf]  ;;  %v8372_v26 = vld [vmem:[%s15625_s1 + $0xef8] sm:$0xf0] }
 0x2ac   :  { %5907 = vmatpush.bf16.msrb.mxu1 %v7815_v4  ;;  %v7876_v4 = vld [vmem:[%s15625_s1 + $0xb18] sm:$0xf0]  ;;  %v10201_v22 = vld [vmem:[%s15625_s1 + $0xeec] sm:$0xf] }
 0x2ad   :  { %5920 = vmatpush.bf16.msrb.mxu2 %v7943_v5  ;;  %v10125_v5 = vld [vmem:[%s15625_s1 + $0xc8c] sm:$0xf]  ;;  %v8500_v14 = vld [vmem:[%s15625_s1 + $0xff8] sm:$0xf0]  ;;  %v8375_v35 = vor.u32 %v10201_v22, %v8372_v26 }
 0x2ae   :  { %5885 = vmatpush.bf16.msra.mxu3 %v7495_v15  ;;  %v10233_v11 = vld [vmem:[%s15625_s1 + $0xfec] sm:$0xf]  ;;  %v7751_v15 = vor.u32 %v10045_v62, %v7748_v21  ;;  %v8052_v34 = vld [vmem:[%s15625_s1 + $0xc78] sm:$0xf0] }
 0x2af   :  { %5895 = vmatpush.bf16.msrb.mxu0 %v7671_v44  ;;  %v7879_v44 = vor.u32 %v10077_v55, %v7876_v4  ;;  %v10121_v30 = vld [vmem:[%s15625_s1 + $0xc6c] sm:$0xf]  ;;  %v8228_v38 = vld [vmem:[%s15625_s1 + $0xdd8] sm:$0xf0] }
 0x2b0   :  { %5908 = vmatpush.bf16.msrb.mxu1 %v7799_v23  ;;  %v8071_v23 = vor.u32 %v10125_v5, %v8068_v63  ;;  %v10165_v47 = vld [vmem:[%s15625_s1 + $0xdcc] sm:$0xf]  ;;  %v8356_v0 = vld [vmem:[%s15625_s1 + $0xed8] sm:$0xf0] }
 0x2b1   :  { %5921 = vmatpush.bf16.msrb.mxu2 %v7927_v24  ;;  %5886 = vmatmul.bf16.vlgmr.msra.gmra.mxu3 %v11219_v7  ;;  %v7767_v7 = vor.u32 %v10049_v61, %v7764_v52  ;;  %v8247_v24 = vor.u32 %v10169_v8, %v8244_v10  ;;  %v10197_v39 = vld [vmem:[%s15625_s1 + $0xecc] sm:$0xf]  ;;  %v8484_v45 = vld [vmem:[%s15625_s1 + $0xfd8] sm:$0xf0] }
 0x2b2   :  { %5930 = vmatpush.bf16.msrb.mxu3 %v8119_v36  ;;  %v8503_v36 = vor.u32 %v10233_v11, %v8500_v14  ;;  %v10229_v29 = vld [vmem:[%s15625_s1 + $0xfcc] sm:$0xf]  ;;  %v8036_v61 = vld [vmem:[%s15625_s1 + $0xc58] sm:$0xf0] }
 0x2b3   :  { %5896 = vmatpush.bf16.msrb.mxu0 %v7655_v43  ;;  %v5666_v1 = vpop.f32.mrf.mxu2  ;;  %v8055_v43 = vor.u32 %v10121_v30, %v8052_v34  ;;  %v10117_v50 = vld [vmem:[%s15625_s1 + $0xc4c] sm:$0xf]  ;;  %v8487_v52 = vor.u32 %v10229_v29, %v8484_v45  ;;  %v8340_v46 = vld [vmem:[%s15625_s1 + $0xeb8] sm:$0xf0] }
 0x2b4   :  { %5909 = vmatpush.bf16.msrb.mxu1 %v7783_v2  ;;  %v5667_v2 = vadd.f32 %v5666_v1, %v14810_v6  ;;  %v5679_v56 = vpop.f32.mrf.mxu3  ;;  %v10161_v48 = vld [vmem:[%s15625_s1 + $0xdac] sm:$0xf]  ;;  %v8212_v6 = vld [vmem:[%s15625_s1 + $0xdb8] sm:$0xf0] }
 0x2b5   :  { %5922 = vmatpush.bf16.msrb.mxu2 %v7911_v49  ;;  %v8231_v49 = vor.u32 %v10165_v47, %v8228_v38  ;;  %v10193_v53 = vld [vmem:[%s15625_s1 + $0xeac] sm:$0xf]  ;;  %v8468_v59 = vld [vmem:[%s15625_s1 + $0xfb8] sm:$0xf0]  ;;  %v8215_v60 = vor.u32 %v10161_v48, %v8212_v6 }
 0x2b6   :  { %5931 = vmatpush.bf16.msrb.mxu3 %v8103_v51  ;;  %v8359_v51 = vor.u32 %v10197_v39, %v8356_v0  ;;  %v5680_v54 = vadd.f32 %v5679_v56, %v5667_v2  ;;  %v8196_v21 = vld [vmem:[%s15625_s1 + $0xd98] sm:$0xf0]  ;;  %v10189_v55 = vld [vmem:[%s15625_s1 + $0xe8c] sm:$0xf] }
 0x2b7   :  { %5897 = vmatpush.bf16.msrb.mxu0 %v7639_v58  ;;  %v10225_v58 = vld [vmem:[%s15625_s1 + $0xfac] sm:$0xf]  ;;  %v8324_v4 = vld [vmem:[%s15625_s1 + $0xe98] sm:$0xf0] }
 0x2b8   :  { %5910 = vmatpush.bf16.msrb.mxu1 %v7767_v7  ;;  %v8020_v7 = vld [vmem:[%s15625_s1 + $0xc38] sm:$0xf0]  ;;  %v8471_v62 = vor.u32 %v10225_v58, %v8468_v59  ;;  %v10221_v5 = vld [vmem:[%s15625_s1 + $0xf8c] sm:$0xf] }
 0x2b9   :  { %5923 = vmatpush.bf16.msrb.mxu2 %v7895_v57  ;;  %v8343_v57 = vor.u32 %v10193_v53, %v8340_v46  ;;  %v8452_v63 = vld [vmem:[%s15625_s1 + $0xf98] sm:$0xf0]  ;;  %v10109_v11 = vld [vmem:[%s15625_s1 + $0xc0c] sm:$0xf] }
 0x2ba   :  { %5932 = vmatpush.bf16.msrb.mxu3 %v8087_v3  ;;  %v8004_v14 = vld [vmem:[%s15625_s1 + $0xc18] sm:$0xf0]  ;;  %v10153_v30 = vld [vmem:[%s15625_s1 + $0xd6c] sm:$0xf] }
 0x2bb   :  { %5898 = vmatpush.bf16.msrb.mxu0 %v7623_v20  ;;  %v5692_v3 = vpop.f32.mrf.mxu0  ;;  %v5668_v22 = vpop.f32.mrf.mxu2  ;;  %v8180_v34 = vld [vmem:[%s15625_s1 + $0xd78] sm:$0xf0]  ;;  %v10217_v47 = vld [vmem:[%s15625_s1 + $0xf6c] sm:$0xf]  ;;  %v8007_v29 = vor.u32 %v10109_v11, %v8004_v14 }
 0x2bc   :  { %5911 = vmatpush.bf16.msrb.mxu1 %v7751_v15  ;;  %v5693_v8 = vadd.f32 %v5692_v3, %v5680_v54  ;;  %v5705_v10 = vpop.f32.mrf.mxu1  ;;  %v5681_v15 = vpop.f32.mrf.mxu3  ;;  %v8436_v38 = vld [vmem:[%s15625_s1 + $0xf78] sm:$0xf0]  ;;  %v10265_v39 = vld [vmem:[%s15625_s1 + $0x10ec] sm:$0xf]  ;;  %v8183_v45 = vor.u32 %v10153_v30, %v8180_v34 }
 0x2bd   :  { %5924 = vmatpush.bf16.msrb.mxu2 %v7879_v44  ;;  %v8327_v44 = vor.u32 %v10189_v55, %v8324_v4  ;;  %v8628_v0 = vld [vmem:[%s15625_s1 + $0x10f8] sm:$0xf0]  ;;  %v10149_v2 = vld [vmem:[%s15625_s1 + $0xd4c] sm:$0xf] }
 0x2be   :  { %5933 = vmatpush.bf16.msrb.mxu3 %v8071_v23  ;;  %5899 = vmatmul.bf16.vlgmr.msrb.gmra.mxu0 %v11232_v13  ;;  %v8039_v13 = vor.u32 %v10117_v50, %v8036_v61  ;;  %v8455_v23 = vor.u32 %v10221_v5, %v8452_v63  ;;  %v10181_v56 = vld [vmem:[%s15625_s1 + $0xe4c] sm:$0xf]  ;;  %v8631_v50 = vor.u32 %v10265_v39, %v8628_v0  ;;  %v8292_v61 = vld [vmem:[%s15625_s1 + $0xe58] sm:$0xf0] }
 0x2bf   :  { %5943 = vmatpush.bf16.msra.mxu0 %v8247_v24  ;;  %5912 = vmatmul.bf16.vlgmr.msrb.gmra.mxu1 %v11230_v12  ;;  %v10157_v12 = vld [vmem:[%s15625_s1 + $0xd8c] sm:$0xf]  ;;  %v15009_v24 = vadd.f32 %v5705_v10, %v5693_v8  ;;  %v8612_v53 = vld [vmem:[%s15625_s1 + $0x10d8] sm:$0xf0]  ;;  %v8295_v58 = vor.u32 %v10181_v56, %v8292_v61 }
 0x2c0   :  { %5956 = vmatpush.bf16.msra.mxu1 %v8375_v35  ;;  %5925 = vmatmul.bf16.vlgmr.msrb.gmra.mxu2 %v11243_v17  ;;  %v10113_v17 = vld [vmem:[%s15625_s1 + $0xc2c] sm:$0xf]  ;;  %v8199_v26 = vor.u32 %v10157_v12, %v8196_v21  ;;  %v8404_v12 = vld [vmem:[%s15625_s1 + $0xf38] sm:$0xf0] }
 0x2c1   :  { %5969 = vmatpush.bf16.msra.mxu2 %v8503_v36  ;;  %v8023_v20 = vor.u32 %v10113_v17, %v8020_v7  ;;  %v10185_v35 = vld [vmem:[%s15625_s1 + $0xe6c] sm:$0xf]  ;;  %v8308_v36 = vld [vmem:[%s15625_s1 + $0xe78] sm:$0xf0] }
 0x2c2   :  { %5934 = vmatpush.bf16.msrb.mxu3 %v8055_v43  ;;  %v8311_v1 = vor.u32 %v10185_v35, %v8308_v36  ;;  %v8439_v43 = vor.u32 %v10217_v47, %v8436_v38  ;;  %v10261_v6 = vld [vmem:[%s15625_s1 + $0x10cc] sm:$0xf]  ;;  %v8596_v55 = vld [vmem:[%s15625_s1 + $0x10b8] sm:$0xf0] }
 0x2c3   :  { %5944 = vmatpush.bf16.msra.mxu0 %v8231_v49  ;;  %v8164_v49 = vld [vmem:[%s15625_s1 + $0xd58] sm:$0xf0]  ;;  %v5694_v48 = vpop.f32.mrf.mxu0  ;;  %v10177_v17 = vld [vmem:[%s15625_s1 + $0xe2c] sm:$0xf]  ;;  %v8615_v7 = vor.u32 %v10261_v6, %v8612_v53 }
 0x2c4   :  { %5957 = vmatpush.bf16.msra.mxu1 %v8359_v51  ;;  %v10213_v51 = vld [vmem:[%s15625_s1 + $0xf4c] sm:$0xf]  ;;  %v5707_v54 = vpop.f32.mrf.mxu1  ;;  %v8167_v46 = vor.u32 %v10149_v2, %v8164_v49  ;;  %v8132_v5 = vld [vmem:[%s15625_s1 + $0xd18] sm:$0xf0] }
 0x2c5   :  { %5970 = vmatpush.bf16.msra.mxu2 %v8487_v52  ;;  %v8420_v52 = vld [vmem:[%s15625_s1 + $0xf58] sm:$0xf0]  ;;  %v10257_v21 = vld [vmem:[%s15625_s1 + $0x10ac] sm:$0xf] }
 0x2c6   :  { %5935 = vmatpush.bf16.msrb.mxu3 %v8039_v13  ;;  %v8423_v59 = vor.u32 %v10213_v51, %v8420_v52  ;;  %v10145_v13 = vld [vmem:[%s15625_s1 + $0xd2c] sm:$0xf]  ;;  %v8260_v10 = vld [vmem:[%s15625_s1 + $0xe18] sm:$0xf0] }
 0x2c7   :  { %5945 = vmatpush.bf16.msra.mxu0 %v8215_v60  ;;  %v8148_v60 = vld [vmem:[%s15625_s1 + $0xd38] sm:$0xf0]  ;;  %v10141_v4 = vld [vmem:[%s15625_s1 + $0xd0c] sm:$0xf] }
 0x2c8   :  { %5958 = vmatpush.bf16.msra.mxu1 %v8343_v57  ;;  %v8276_v57 = vld [vmem:[%s15625_s1 + $0xe38] sm:$0xf0]  ;;  %v8151_v3 = vor.u32 %v10145_v13, %v8148_v60  ;;  %v10173_v8 = vld [vmem:[%s15625_s1 + $0xe0c] sm:$0xf]  ;;  %v8135_v30 = vor.u32 %v10141_v4, %v8132_v5 }
 0x2c9   :  { %5971 = vmatpush.bf16.msra.mxu2 %v8471_v62  ;;  %v10209_v62 = vld [vmem:[%s15625_s1 + $0xf2c] sm:$0xf]  ;;  %v8580_v14 = vld [vmem:[%s15625_s1 + $0x1098] sm:$0xf0]  ;;  %v8263_v47 = vor.u32 %v10173_v8, %v8260_v10 }
 0x2ca   :  { %5936 = vmatpush.bf16.msrb.mxu3 %v8023_v20  ;;  %v8407_v63 = vor.u32 %v10209_v62, %v8404_v12  ;;  %v10205_v22 = vld [vmem:[%s15625_s1 + $0xf0c] sm:$0xf]  ;;  %v8599_v20 = vor.u32 %v10257_v21, %v8596_v55  ;;  %v8884_v34 = vld [vmem:[%s15625_s1 + $0x12f8] sm:$0xf0] }
 0x2cb   :  { %5946 = vmatpush.bf16.msra.mxu0 %v8199_v26  ;;  %v8388_v26 = vld [vmem:[%s15625_s1 + $0xf18] sm:$0xf0]  ;;  %v10253_v11 = vld [vmem:[%s15625_s1 + $0x108c] sm:$0xf] }
 0x2cc   :  { %5959 = vmatpush.bf16.msra.mxu1 %v8327_v44  ;;  %v10297_v15 = vld [vmem:[%s15625_s1 + $0x11ec] sm:$0xf]  ;;  %v8756_v44 = vld [vmem:[%s15625_s1 + $0x11f8] sm:$0xf0]  ;;  %v8391_v38 = vor.u32 %v10205_v22, %v8388_v26  ;;  %v8583_v39 = vor.u32 %v10253_v11, %v8580_v14 }
 0x2cd   :  { %5972 = vmatpush.bf16.msra.mxu2 %v8455_v23  ;;  %v10329_v23 = vld [vmem:[%s15625_s1 + $0x12ec] sm:$0xf]  ;;  %v9012_v36 = vld [vmem:[%s15625_s1 + $0x13f8] sm:$0xf0]  ;;  %v8759_v0 = vor.u32 %v10297_v15, %v8756_v44 }
 0x2ce   :  { %5937 = vmatpush.bf16.msrb.mxu3 %v8007_v29  ;;  %v10361_v35 = vld [vmem:[%s15625_s1 + $0x13ec] sm:$0xf]  ;;  %v8740_v49 = vld [vmem:[%s15625_s1 + $0x11d8] sm:$0xf0] }
 0x2cf   :  { %5947 = vmatpush.bf16.msra.mxu0 %v8183_v45  ;;  %v10249_v29 = vld [vmem:[%s15625_s1 + $0x106c] sm:$0xf]  ;;  %v8564_v45 = vld [vmem:[%s15625_s1 + $0x1078] sm:$0xf0] }
 0x2d0   :  { %5960 = vmatpush.bf16.msra.mxu1 %v8311_v1  ;;  %v8887_v1 = vor.u32 %v10329_v23, %v8884_v34  ;;  %v10293_v2 = vld [vmem:[%s15625_s1 + $0x11cc] sm:$0xf]  ;;  %v8996_v51 = vld [vmem:[%s15625_s1 + $0x13d8] sm:$0xf0]  ;;  %v8567_v48 = vor.u32 %v10249_v29, %v8564_v45 }
 0x2d1   :  { %5973 = vmatpush.bf16.msra.mxu2 %v8439_v43  ;;  %5938 = vmatmul.bf16.vlgmr.msrb.gmra.mxu3 %v11260_v28  ;;  %v8279_v28 = vor.u32 %v10177_v17, %v8276_v57  ;;  %v9015_v43 = vor.u32 %v10361_v35, %v9012_v36  ;;  %v10325_v56 = vld [vmem:[%s15625_s1 + $0x12cc] sm:$0xf]  ;;  %v8743_v53 = vor.u32 %v10293_v2, %v8740_v49  ;;  %v8852_v57 = vld [vmem:[%s15625_s1 + $0x12b8] sm:$0xf0] }
 0x2d2   :  { %5982 = vmatpush.bf16.msra.mxu3 %v8631_v50  ;;  %v8868_v50 = vld [vmem:[%s15625_s1 + $0x12d8] sm:$0xf0]  ;;  %v10357_v61 = vld [vmem:[%s15625_s1 + $0x13cc] sm:$0xf] }
 0x2d3   :  { %5948 = vmatpush.bf16.msra.mxu0 %v8167_v46  ;;  %v5718_v52 = vpop.f32.mrf.mxu2  ;;  %v10245_v46 = vld [vmem:[%s15625_s1 + $0x104c] sm:$0xf]  ;;  %v8999_v13 = vor.u32 %v10357_v61, %v8996_v51  ;;  %v8980_v12 = vld [vmem:[%s15625_s1 + $0x13b8] sm:$0xf0] }
 0x2d4   :  { %5961 = vmatpush.bf16.msra.mxu1 %v8295_v58  ;;  %v5719_v6 = vadd.f32 %v5718_v52, %v15009_v24  ;;  %v5731_v54 = vpop.f32.mrf.mxu3  ;;  %v8548_v58 = vld [vmem:[%s15625_s1 + $0x1058] sm:$0xf0]  ;;  %v10289_v60 = vld [vmem:[%s15625_s1 + $0x11ac] sm:$0xf] }
 0x2d5   :  { %5974 = vmatpush.bf16.msra.mxu2 %v8423_v59  ;;  %v8871_v59 = vor.u32 %v10325_v56, %v8868_v50  ;;  %v8724_v24 = vld [vmem:[%s15625_s1 + $0x11b8] sm:$0xf0]  ;;  %v10321_v17 = vld [vmem:[%s15625_s1 + $0x12ac] sm:$0xf] }
 0x2d6   :  { %5983 = vmatpush.bf16.msra.mxu3 %v8615_v7  ;;  %v5732_v7 = vadd.f32 %v5731_v54, %v5719_v6  ;;  %v10353_v62 = vld [vmem:[%s15625_s1 + $0x13ac] sm:$0xf]  ;;  %v8727_v21 = vor.u32 %v10289_v60, %v8724_v24  ;;  %v8532_v55 = vld [vmem:[%s15625_s1 + $0x1038] sm:$0xf0] }
 0x2d7   :  { %5949 = vmatpush.bf16.msra.mxu0 %v8151_v3  ;;  %v8855_v3 = vor.u32 %v10321_v17, %v8852_v57  ;;  %v8983_v4 = vor.u32 %v10353_v62, %v8980_v12  ;;  %v8708_v5 = vld [vmem:[%s15625_s1 + $0x1198] sm:$0xf0]  ;;  %v10349_v8 = vld [vmem:[%s15625_s1 + $0x138c] sm:$0xf] }
 0x2d8   :  { %5962 = vmatpush.bf16.msra.mxu1 %v8279_v28  ;;  %v10317_v28 = vld [vmem:[%s15625_s1 + $0x128c] sm:$0xf]  ;;  %v8964_v10 = vld [vmem:[%s15625_s1 + $0x1398] sm:$0xf0] }
 0x2d9   :  { %5975 = vmatpush.bf16.msra.mxu2 %v8407_v63  ;;  %v8836_v63 = vld [vmem:[%s15625_s1 + $0x1298] sm:$0xf0]  ;;  %v10237_v44 = vld [vmem:[%s15625_s1 + $0x100c] sm:$0xf]  ;;  %v8967_v35 = vor.u32 %v10349_v8, %v8964_v10 }
 0x2da   :  { %5984 = vmatpush.bf16.msra.mxu3 %v8599_v20  ;;  %v8516_v23 = vld [vmem:[%s15625_s1 + $0x1018] sm:$0xf0]  ;;  %v8839_v34 = vor.u32 %v10317_v28, %v8836_v63  ;;  %v10281_v36 = vld [vmem:[%s15625_s1 + $0x116c] sm:$0xf] }
 0x2db   :  { %5950 = vmatpush.bf16.msra.mxu0 %v8135_v30  ;;  %v5744_v22 = vpop.f32.mrf.mxu0  ;;  %v5720_v20 = vpop.f32.mrf.mxu2  ;;  %v10345_v29 = vld [vmem:[%s15625_s1 + $0x136c] sm:$0xf]  ;;  %v8948_v45 = vld [vmem:[%s15625_s1 + $0x1378] sm:$0xf0]  ;;  %v8519_v2 = vor.u32 %v10237_v44, %v8516_v23 }
 0x2dc   :  { %5963 = vmatpush.bf16.msra.mxu1 %v8263_v47  ;;  %v5745_v26 = vadd.f32 %v5744_v22, %v5732_v7  ;;  %v5757_v15 = vpop.f32.mrf.mxu1  ;;  %v5733_v30 = vpop.f32.mrf.mxu3  ;;  %v8692_v47 = vld [vmem:[%s15625_s1 + $0x1178] sm:$0xf0]  ;;  %v8951_v50 = vor.u32 %v10345_v29, %v8948_v45  ;;  %v10277_v61 = vld [vmem:[%s15625_s1 + $0x114c] sm:$0xf] }
 0x2dd   :  { %5976 = vmatpush.bf16.msra.mxu2 %v8391_v38  ;;  %v10313_v38 = vld [vmem:[%s15625_s1 + $0x126c] sm:$0xf]  ;;  %v8695_v49 = vor.u32 %v10281_v36, %v8692_v47  ;;  %v8676_v51 = vld [vmem:[%s15625_s1 + $0x1158] sm:$0xf0] }
 0x2de   :  { %5985 = vmatpush.bf16.msra.mxu3 %v8583_v39  ;;  %5951 = vmatmul.bf16.vlgmr.msra.gmra.mxu0 %v11264_v32  ;;  %v8551_v32 = vor.u32 %v10245_v46, %v8548_v58  ;;  %v5758_v39 = vadd.f32 %v5757_v15, %v5745_v26  ;;  %v10309_v52 = vld [vmem:[%s15625_s1 + $0x124c] sm:$0xf]  ;;  %v8804_v6 = vld [vmem:[%s15625_s1 + $0x1258] sm:$0xf0] }
 0x2df   :  { %5995 = vmatpush.bf16.msrb.mxu0 %v8759_v0  ;;  %5964 = vmatmul.bf16.vlgmr.msra.gmra.mxu1 %v11262_v31  ;;  %v10285_v31 = vld [vmem:[%s15625_s1 + $0x118c] sm:$0xf]  ;;  %v8820_v0 = vld [vmem:[%s15625_s1 + $0x1278] sm:$0xf0]  ;;  %v8807_v17 = vor.u32 %v10309_v52, %v8804_v6 }
 0x2e0   :  { %6008 = vmatpush.bf16.msrb.mxu1 %v8887_v1  ;;  %5977 = vmatmul.bf16.vlgmr.msra.gmra.mxu2 %v11266_v33  ;;  %v10241_v33 = vld [vmem:[%s15625_s1 + $0x102c] sm:$0xf]  ;;  %v8711_v14 = vor.u32 %v10285_v31, %v8708_v5  ;;  %v8823_v56 = vor.u32 %v10313_v38, %v8820_v0  ;;  %v8932_v54 = vld [vmem:[%s15625_s1 + $0x1358] sm:$0xf0] }
 0x2e1   :  { %6021 = vmatpush.bf16.msrb.mxu2 %v9015_v43  ;;  %v8535_v11 = vor.u32 %v10241_v33, %v8532_v55  ;;  %v10393_v1 = vld [vmem:[%s15625_s1 + $0x14ec] sm:$0xf]  ;;  %v9140_v43 = vld [vmem:[%s15625_s1 + $0x14f8] sm:$0xf0] }
 0x2e2   :  { %5986 = vmatpush.bf16.msra.mxu3 %v8567_v48  ;;  %v9143_v48 = vor.u32 %v10393_v1, %v9140_v43  ;;  %v10389_v46 = vld [vmem:[%s15625_s1 + $0x14cc] sm:$0xf]  ;;  %v9124_v58 = vld [vmem:[%s15625_s1 + $0x14d8] sm:$0xf0] }
 0x2e3   :  { %5996 = vmatpush.bf16.msrb.mxu0 %v8743_v53  ;;  %v10341_v53 = vld [vmem:[%s15625_s1 + $0x134c] sm:$0xf]  ;;  %v5770_v24 = vpop.f32.mrf.mxu2  ;;  %v8660_v62 = vld [vmem:[%s15625_s1 + $0x1138] sm:$0xf0] }
 0x2e4   :  { %6009 = vmatpush.bf16.msrb.mxu1 %v8871_v59  ;;  %v5746_v59 = vpop.f32.mrf.mxu0  ;;  %v5759_v60 = vpop.f32.mrf.mxu1  ;;  %v8935_v7 = vor.u32 %v10341_v53, %v8932_v54  ;;  %v10273_v57 = vld [vmem:[%s15625_s1 + $0x112c] sm:$0xf]  ;;  %v8788_v33 = vld [vmem:[%s15625_s1 + $0x1238] sm:$0xf0] }
 0x2e5   :  { %6022 = vmatpush.bf16.msrb.mxu2 %v8999_v13  ;;  %v8679_v13 = vor.u32 %v10277_v61, %v8676_v51  ;;  %v10305_v12 = vld [vmem:[%s15625_s1 + $0x122c] sm:$0xf]  ;;  %v9108_v31 = vld [vmem:[%s15625_s1 + $0x14b8] sm:$0xf0]  ;;  %v8663_v5 = vor.u32 %v10273_v57, %v8660_v62 }
 0x2e6   :  { %5987 = vmatpush.bf16.msra.mxu3 %v8551_v32  ;;  %v15265_v32 = vadd.f32 %v5770_v24, %v5758_v39  ;;  %v10337_v55 = vld [vmem:[%s15625_s1 + $0x132c] sm:$0xf]  ;;  %v8644_v63 = vld [vmem:[%s15625_s1 + $0x1118] sm:$0xf0] }
 0x2e7   :  { %5997 = vmatpush.bf16.msrb.mxu0 %v8727_v21  ;;  %v9127_v21 = vor.u32 %v10389_v46, %v9124_v58  ;;  %v10269_v28 = vld [vmem:[%s15625_s1 + $0x110c] sm:$0xf]  ;;  %v8772_v22 = vld [vmem:[%s15625_s1 + $0x1218] sm:$0xf0]  ;;  %v10551_v58 = vld [vmem:[%s15627_s2] sm:$0xf] }
 0x2e8   :  { %6010 = vmatpush.bf16.msrb.mxu1 %v8855_v3  ;;  %v8916_v3 = vld [vmem:[%s15625_s1 + $0x1338] sm:$0xf0]  ;;  %v10301_v10 = vld [vmem:[%s15625_s1 + $0x120c] sm:$0xf]  ;;  %v814_v59 = vperm.slane %v10551_v58, 3 }
 0x2e9   :  { %6023 = vmatpush.bf16.msrb.mxu2 %v8983_v4  ;;  %v10385_v4 = vld [vmem:[%s15625_s1 + $0x14ac] sm:$0xf]  ;;  %v8919_v8 = vor.u32 %v10337_v55, %v8916_v3  ;;  %v9092_v15 = vld [vmem:[%s15625_s1 + $0x1498] sm:$0xf0]  ;;  %v8775_v38 = vor.u32 %v10301_v10, %v8772_v22 }
 0x2ea   :  { %5988 = vmatpush.bf16.msra.mxu3 %v8535_v11  ;;  %v10333_v20 = vld [vmem:[%s15625_s1 + $0x130c] sm:$0xf]  ;;  %v9111_v26 = vor.u32 %v10385_v4, %v9108_v31  ;;  %v8900_v11 = vld [vmem:[%s15625_s1 + $0x1318] sm:$0xf0] }
 0x2eb   :  { %5998 = vmatpush.bf16.msrb.mxu0 %v8711_v14  ;;  %v10381_v14 = vld [vmem:[%s15625_s1 + $0x148c] sm:$0xf]  ;;  %v9268_v23 = vld [vmem:[%s15625_s1 + $0x15f8] sm:$0xf0]  ;;  %v8903_v39 = vor.u32 %v10333_v20, %v8900_v11  ;;  %v5772_v0 = vpop.f32.mrf.mxu2 }
 0x2ec   :  { %6011 = vmatpush.bf16.msrb.mxu1 %v8839_v34  ;;  %v10425_v44 = vld [vmem:[%s15625_s1 + $0x15ec] sm:$0xf]  ;;  %v8647_v34 = vor.u32 %v10269_v28, %v8644_v63  ;;  %v9524_v47 = vld [vmem:[%s15625_s1 + $0x17f8] sm:$0xf0]  ;;  %v9095_v29 = vor.u32 %v10381_v14, %v9092_v15 }
 0x2ed   :  { %6024 = vmatpush.bf16.msrb.mxu2 %v8967_v35  ;;  %v10457_v30 = vld [vmem:[%s15625_s1 + $0x16ec] sm:$0xf]  ;;  %v9396_v35 = vld [vmem:[%s15625_s1 + $0x16f8] sm:$0xf0]  ;;  %v9271_v45 = vor.u32 %v10425_v44, %v9268_v23 }
 0x2ee   :  { %5989 = vmatpush.bf16.msra.mxu3 %v8519_v2  ;;  %v10489_v36 = vld [vmem:[%s15625_s1 + $0x17ec] sm:$0xf]  ;;  %v9076_v43 = vld [vmem:[%s15625_s1 + $0x1478] sm:$0xf0]  ;;  %v9399_v2 = vor.u32 %v10457_v30, %v9396_v35 }
 0x2ef   :  { %5999 = vmatpush.bf16.msrb.mxu0 %v8695_v49  ;;  %v10377_v1 = vld [vmem:[%s15625_s1 + $0x146c] sm:$0xf]  ;;  %v9527_v49 = vor.u32 %v10489_v36, %v9524_v47  ;;  %v9380_v51 = vld [vmem:[%s15625_s1 + $0x16d8] sm:$0xf0] }
 0x2f0   :  { %6012 = vmatpush.bf16.msrb.mxu1 %v8823_v56  ;;  %v10421_v56 = vld [vmem:[%s15625_s1 + $0x15cc] sm:$0xf]  ;;  %v9079_v6 = vor.u32 %v10377_v1, %v9076_v43  ;;  %v9060_v46 = vld [vmem:[%s15625_s1 + $0x1458] sm:$0xf0] }
 0x2f1   :  { %6025 = vmatpush.bf16.msrb.mxu2 %v8951_v50  ;;  %5990 = vmatmul.bf16.vlgmr.msra.gmra.mxu3 %v11630_v9  ;;  %v8791_v9 = vor.u32 %v10305_v12, %v8788_v33  ;;  %v9252_v50 = vld [vmem:[%s15625_s1 + $0x15d8] sm:$0xf0]  ;;  %v10453_v61 = vld [vmem:[%s15625_s1 + $0x16cc] sm:$0xf] }
 0x2f2   :  { %6034 = vmatpush.bf16.msrb.mxu3 %v9143_v48  ;;  %v10485_v52 = vld [vmem:[%s15625_s1 + $0x17cc] sm:$0xf]  ;;  %v9508_v48 = vld [vmem:[%s15625_s1 + $0x17d8] sm:$0xf0]  ;;  %v9255_v53 = vor.u32 %v10421_v56, %v9252_v50  ;;  %v9383_v60 = vor.u32 %v10453_v61, %v9380_v51 }
 0x2f3   :  { %6000 = vmatpush.bf16.msrb.mxu0 %v8679_v13  ;;  %v10373_v54 = vld [vmem:[%s15625_s1 + $0x144c] sm:$0xf]  ;;  %v9511_v24 = vor.u32 %v10485_v52, %v9508_v48  ;;  %v9364_v62 = vld [vmem:[%s15625_s1 + $0x16b8] sm:$0xf0] }
 0x2f4   :  { %6013 = vmatpush.bf16.msrb.mxu1 %v8807_v17  ;;  %v5783_v13 = vpop.f32.mrf.mxu3  ;;  %v10417_v17 = vld [vmem:[%s15625_s1 + $0x15ac] sm:$0xf]  ;;  %v9063_v33 = vor.u32 %v10373_v54, %v9060_v46  ;;  %v9044_v55 = vld [vmem:[%s15625_s1 + $0x1438] sm:$0xf0] }
 0x2f5   :  { %6026 = vmatpush.bf16.msrb.mxu2 %v8935_v7  ;;  %v9236_v7 = vld [vmem:[%s15625_s1 + $0x15b8] sm:$0xf0]  ;;  %v10449_v57 = vld [vmem:[%s15625_s1 + $0x16ac] sm:$0xf]  ;;  %v5784_v3 = vadd.f32 %v5783_v13, %v814_v59 }
 0x2f6   :  { %6035 = vmatpush.bf16.msrb.mxu3 %v9127_v21  ;;  %v10481_v12 = vld [vmem:[%s15625_s1 + $0x17ac] sm:$0xf]  ;;  %v9492_v21 = vld [vmem:[%s15625_s1 + $0x17b8] sm:$0xf0]  ;;  %v9367_v4 = vor.u32 %v10449_v57, %v9364_v62 }
 0x2f7   :  { %6001 = vmatpush.bf16.msrb.mxu0 %v8663_v5  ;;  %v9495_v31 = vor.u32 %v10481_v12, %v9492_v21  ;;  %v9220_v5 = vld [vmem:[%s15625_s1 + $0x1598] sm:$0xf0]  ;;  %v10445_v28 = vld [vmem:[%s15625_s1 + $0x168c] sm:$0xf] }
 0x2f8   :  { %6014 = vmatpush.bf16.msrb.mxu1 %v8791_v9  ;;  %v9348_v63 = vld [vmem:[%s15625_s1 + $0x1698] sm:$0xf0]  ;;  %v10477_v9 = vld [vmem:[%s15625_s1 + $0x178c] sm:$0xf] }
 0x2f9   :  { %6027 = vmatpush.bf16.msrb.mxu2 %v8919_v8  ;;  %v9476_v8 = vld [vmem:[%s15625_s1 + $0x1798] sm:$0xf0]  ;;  %v9351_v23 = vor.u32 %v10445_v28, %v9348_v63  ;;  %v10441_v36 = vld [vmem:[%s15625_s1 + $0x166c] sm:$0xf] }
 0x2fa   :  { %6036 = vmatpush.bf16.msrb.mxu3 %v9111_v26  ;;  %v10365_v26 = vld [vmem:[%s15625_s1 + $0x140c] sm:$0xf]  ;;  %v9028_v11 = vld [vmem:[%s15625_s1 + $0x1418] sm:$0xf0]  ;;  %v9479_v30 = vor.u32 %v10477_v9, %v9476_v8 }
 0x2fb   :  { %6002 = vmatpush.bf16.msrb.mxu0 %v8647_v34  ;;  %v5796_v10 = vpop.f32.mrf.mxu0  ;;  %v10409_v34 = vld [vmem:[%s15625_s1 + $0x156c] sm:$0xf]  ;;  %v9204_v35 = vld [vmem:[%s15625_s1 + $0x1578] sm:$0xf0]  ;;  %v9031_v1 = vor.u32 %v10365_v26, %v9028_v11 }
 0x2fc   :  { %6015 = vmatpush.bf16.msrb.mxu1 %v8775_v38  ;;  %v5797_v14 = vadd.f32 %v5796_v10, %v5784_v3  ;;  %v5809_v15 = vpop.f32.mrf.mxu1  ;;  %v5785_v44 = vpop.f32.mrf.mxu3  ;;  %v9332_v47 = vld [vmem:[%s15625_s1 + $0x1678] sm:$0xf0]  ;;  %v10473_v38 = vld [vmem:[%s15625_s1 + $0x176c] sm:$0xf]  ;;  %v9207_v43 = vor.u32 %v10409_v34, %v9204_v35  ;;  %v10514_v34 = vld [vmem:[%s15628_s3 + $0x30] sm:$0xff] }
 0x2fd   :  { %6028 = vmatpush.bf16.msrb.mxu2 %v8903_v39  ;;  %v9460_v39 = vld [vmem:[%s15625_s1 + $0x1778] sm:$0xf0]  ;;  %v10405_v56 = vld [vmem:[%s15625_s1 + $0x154c] sm:$0xf]  ;;  %v10522_v35 = vld [vmem:[%s15628_s3 + $0x70] sm:$0xff] }
 0x2fe   :  { %6037 = vmatpush.bf16.msrb.mxu3 %v9095_v29  ;;  %6003 = vmatmul.bf16.vlgmr.msrb.gmra.mxu0 %v11643_v18  ;;  %v9239_v18 = vor.u32 %v10417_v17, %v9236_v7  ;;  %v5810_v0 = vadd.f32 %v5809_v15, %v5797_v14  ;;  %v10505_v29 = vld [vmem:[%s15625_s1 + $0x186c] sm:$0xf]  ;;  %v9188_v50 = vld [vmem:[%s15625_s1 + $0x1558] sm:$0xf0] }
 0x2ff   :  { %6047 = vmatpush.bf16.msra.mxu0 %v9271_v45  ;;  %6016 = vmatmul.bf16.vlgmr.msrb.gmra.mxu1 %v11641_v16  ;;  %v10413_v16 = vld [vmem:[%s15625_s1 + $0x158c] sm:$0xf]  ;;  %v9588_v45 = vld [vmem:[%s15625_s1 + $0x1878] sm:$0xf0]  ;;  %v9191_v13 = vor.u32 %v10405_v56, %v9188_v50 }
 0x300   :  { %6060 = vmatpush.bf16.msra.mxu1 %v9399_v2  ;;  %6029 = vmatmul.bf16.vlgmr.msrb.gmra.mxu2 %v11654_v25  ;;  %v10369_v25 = vld [vmem:[%s15625_s1 + $0x142c] sm:$0xf]  ;;  %v9223_v20 = vor.u32 %v10413_v16, %v9220_v5  ;;  %v9335_v2 = vor.u32 %v10441_v36, %v9332_v47  ;;  %v9591_v52 = vor.u32 %v10505_v29, %v9588_v45  ;;  %v9316_v48 = vld [vmem:[%s15625_s1 + $0x1658] sm:$0xf0]  ;;  %v10530_v47 = vld [vmem:[%s15628_s3 + $0xb0] sm:$0xff] }
 0x301   :  { %6073 = vmatpush.bf16.msra.mxu2 %v9527_v49  ;;  %v9047_v22 = vor.u32 %v10369_v25, %v9044_v55  ;;  %v9463_v49 = vor.u32 %v10473_v38, %v9460_v39  ;;  %v10437_v61 = vld [vmem:[%s15625_s1 + $0x164c] sm:$0xf]  ;;  %v9572_v58 = vld [vmem:[%s15625_s1 + $0x1858] sm:$0xf0]  ;;  %v10552_v29 = vld [vmem:[#allocation1] sm:$0xff] }
 0x302   :  { %6038 = vmatpush.bf16.msrb.mxu3 %v9079_v6  ;;  %v10469_v6 = vld [vmem:[%s15625_s1 + $0x174c] sm:$0xf]  ;;  %v9172_v57 = vld [vmem:[%s15625_s1 + $0x1538] sm:$0xf0]  ;;  %v10512_v45 = vld [vmem:[%s15628_s3 + $0x20] sm:$0xff] }
 0x303   :  { %6048 = vmatpush.bf16.msra.mxu0 %v9255_v53  ;;  %v5822_v51 = vpop.f32.mrf.mxu2  ;;  %v9444_v53 = vld [vmem:[%s15625_s1 + $0x1758] sm:$0xf0]  ;;  %v10501_v46 = vld [vmem:[%s15625_s1 + $0x184c] sm:$0xf]  ;;  %v5798_v59 = vpop.f32.mrf.mxu0 }
 0x304   :  { %6061 = vmatpush.bf16.msra.mxu1 %v9383_v60  ;;  %v15451_v54 = vadd.f32 %v5822_v51, %v5810_v0  ;;  %v5811_v60 = vpop.f32.mrf.mxu1  ;;  %v9447_v17 = vor.u32 %v10469_v6, %v9444_v53  ;;  %v10401_v7 = vld [vmem:[%s15625_s1 + $0x152c] sm:$0xf]  ;;  %v9575_v12 = vor.u32 %v10501_v46, %v9572_v58  ;;  %v9300_v21 = vld [vmem:[%s15625_s1 + $0x1638] sm:$0xf0]  ;;  %v10510_v53 = vld [vmem:[%s15628_s3 + $0x10] sm:$0xff] }
 0x305   :  { %6074 = vmatpush.bf16.msra.mxu2 %v9511_v24  ;;  %v9319_v24 = vor.u32 %v10437_v61, %v9316_v48  ;;  %v10433_v62 = vld [vmem:[%s15625_s1 + $0x162c] sm:$0xf]  ;;  %v9556_v55 = vld [vmem:[%s15625_s1 + $0x1838] sm:$0xf0]  ;;  %v9175_v3 = vor.u32 %v10401_v7, %v9172_v57  ;;  %v10526_v58 = vld [vmem:[%s15628_s3 + $0x90] sm:$0xff]  ;;  %v6099_v57 = vmax.f32 %v12832_v27, 0.0 }
 0x306   :  { %6039 = vmatpush.bf16.msrb.mxu3 %v9063_v33  ;;  %v10465_v33 = vld [vmem:[%s15625_s1 + $0x172c] sm:$0xf]  ;;  %v9284_v9 = vld [vmem:[%s15625_s1 + $0x1618] sm:$0xf0]  ;;  %v10516_v7 = vld [vmem:[%s15628_s3 + $0x40] sm:$0xff] }
 0x307   :  { %6049 = vmatpush.bf16.msra.mxu0 %v9239_v18  ;;  %v9428_v18 = vld [vmem:[%s15625_s1 + $0x1738] sm:$0xf0]  ;;  %v10497_v25 = vld [vmem:[%s15625_s1 + $0x182c] sm:$0xf] }
 0x308   :  { %6062 = vmatpush.bf16.msra.mxu1 %v9367_v4  ;;  %v9303_v4 = vor.u32 %v10433_v62, %v9300_v21  ;;  %v10397_v16 = vld [vmem:[%s15625_s1 + $0x150c] sm:$0xf]  ;;  %v9559_v63 = vor.u32 %v10497_v25, %v9556_v55  ;;  %v9412_v10 = vld [vmem:[%s15625_s1 + $0x1718] sm:$0xf0]  ;;  %v6100_v62 = vmax.f32 %v14035_v19, 0.0  ;;  %v6101_v21 = vmax.f32 %v15265_v32, 0.0 }
 0x309   :  { %6075 = vmatpush.bf16.msra.mxu2 %v9495_v31  ;;  %v9431_v31 = vor.u32 %v10465_v33, %v9428_v18  ;;  %v10429_v5 = vld [vmem:[%s15625_s1 + $0x160c] sm:$0xf]  ;;  %v9540_v26 = vld [vmem:[%s15625_s1 + $0x1818] sm:$0xf0]  ;;  %v6103_v33 = vpack.c.bf16 %v6099_v57, %v6099_v57 }
 0x30a   :  { %6040 = vmatpush.bf16.msrb.mxu3 %v9047_v22  ;;  %v10461_v8 = vld [vmem:[%s15625_s1 + $0x170c] sm:$0xf]  ;;  %v9287_v11 = vor.u32 %v10429_v5, %v9284_v9  ;;  %v10515_v15 = vld [vmem:[%s15628_s3 + $0x38] sm:$0xff]  ;;  %v6104_v18 = vpack.c.bf16 %v6100_v62, %v6100_v62  ;;  %v6105_v25 = vpack.c.bf16 %v6101_v21, %v6101_v21 }
 0x30b   :  { %6050 = vmatpush.bf16.msra.mxu0 %v9223_v20  ;;  %v5824_v28 = vpop.f32.mrf.mxu2  ;;  %v10493_v20 = vld [vmem:[%s15625_s1 + $0x180c] sm:$0xf]  ;;  %v9415_v14 = vor.u32 %v10461_v8, %v9412_v10  ;;  %v10523_v44 = vld [vmem:[%s15628_s3 + $0x78] sm:$0xff] }
 0x30c   :  { %6063 = vmatpush.bf16.msra.mxu1 %v9351_v23  ;;  %v10531_v23 = vld [vmem:[%s15628_s3 + $0xb8] sm:$0xff]  ;;  %v10513_v39 = vld [vmem:[%s15628_s3 + $0x28] sm:$0xff] }
 0x30d   :  { %6076 = vmatpush.bf16.msra.mxu2 %v9479_v30  ;;  %v9543_v30 = vor.u32 %v10493_v20, %v9540_v26  ;;  %v10521_v0 = vld [vmem:[%s15628_s3 + $0x68] sm:$0xff]  ;;  %v10511_v50 = vld [vmem:[%s15628_s3 + $0x18] sm:$0xff] }
 0x30e   :  { %6041 = vmatpush.bf16.msrb.mxu3 %v9031_v1  ;;  %v10520_v1 = vld [vmem:[%s15628_s3 + $0x60] sm:$0xff]  ;;  %v10519_v61 = vld [vmem:[%s15628_s3 + $0x58] sm:$0xff]  ;;  %v10509_v59 = vld [vmem:[%s15628_s3 + $0x8] sm:$0xff] }
 0x30f   :  { %6051 = vmatpush.bf16.msra.mxu0 %v9207_v43  ;;  %v10527_v51 = vld [vmem:[%s15628_s3 + $0x98] sm:$0xff]  ;;  %v10525_v60 = vld [vmem:[%s15628_s3 + $0x88] sm:$0xff] }
 0x310   :  { %6064 = vmatpush.bf16.msra.mxu1 %v9335_v2  ;;  %v10539_v20 = vld [vmem:[%s15628_s3 + $0xf8] sm:$0xff] }
 0x311   :  { %6077 = vmatpush.bf16.msra.mxu2 %v9463_v49  ;;  %6042 = vmatmul.bf16.vlgmr.msrb.gmra.mxu3 %v11671_v37  ;;  %v9156_v37 = vld [vmem:[%s15625_s1 + $0x1518] sm:$0xf0]  ;;  %v10528_v49 = vld [vmem:[%s15628_s3 + $0xa0] sm:$0xff] }
 0x312   :  { %6090 = vmatpush.bf16.msra.mxu3 %v9591_v52  ;;  %v9159_v22 = vor.u32 %v10397_v16, %v9156_v37 }
 0x313   :  { %6052 = vmatpush.bf16.msra.mxu0 %v9191_v13  ;;  %v10517_v13 = vld [vmem:[%s15628_s3 + $0x48] sm:$0xff] }
 0x314   :  { %6065 = vmatpush.bf16.msra.mxu1 %v9319_v24  ;;  %v5835_v36 = vpop.f32.mrf.mxu3 }
 0x315   :  { %6078 = vmatpush.bf16.msra.mxu2 %v9447_v17  ;;  %v5836_v38 = vadd.f32 %v5835_v36, %v15451_v54  ;;  %v10518_v54 = vld [vmem:[%s15628_s3 + $0x50] sm:$0xff]  ;;  %v10508_v17 = vld [vmem:[%s15628_s3] sm:$0xff] }
 0x316   :  { %6091 = vmatpush.bf16.msra.mxu3 %v9575_v12  ;;  %v10524_v12 = vld [vmem:[%s15628_s3 + $0x80] sm:$0xff] }
 0x317   :  { %6053 = vmatpush.bf16.msra.mxu0 %v9175_v3 }
 0x318   :  { %6066 = vmatpush.bf16.msra.mxu1 %v9303_v4 }
 0x319   :  { %6079 = vmatpush.bf16.msra.mxu2 %v9431_v31 }
 0x31a   :  { %6092 = vmatpush.bf16.msra.mxu3 %v9559_v63 }
 0x31b   :  { %6054 = vmatpush.bf16.msra.mxu0 %v9159_v22 }
 0x31c   :  { %6067 = vmatpush.bf16.msra.mxu1 %v9287_v11  ;;  %v5861_v43 = vpop.f32.mrf.mxu1  ;;  %v5837_v2 = vpop.f32.mrf.mxu3  ;;  %v10538_v11 = vld [vmem:[%s15628_s3 + $0xf0] sm:$0xff] }
 0x31d   :  { %6080 = vmatpush.bf16.msra.mxu2 %v9415_v14 }
 0x31e   :  { %6093 = vmatpush.bf16.msra.mxu3 %v9543_v30  ;;  %6055 = vmatmul.bf16.vlgmr.msra.gmra.mxu0 %v11675_v41  ;;  %v5848_v41 = vpop.f32.mrf.mxu0  ;;  %v10536_v30 = vld [vmem:[%s15628_s3 + $0xe0] sm:$0xff] }
 0x31f   :  { %6367 = vmatpush.bf16.msrb.mxu0 %v10515_v15  ;;  %6068 = vmatmul.bf16.vlgmr.msra.gmra.mxu1 %v11673_v40  ;;  %v10529_v40 = vld [vmem:[%s15628_s3 + $0xa8] sm:$0xff] }
 0x320   :  { %6380 = vmatpush.bf16.msrb.mxu1 %v10523_v44  ;;  %6081 = vmatmul.bf16.vlgmr.msra.gmra.mxu2 %v11677_v42  ;;  %v5849_v42 = vadd.f32 %v5848_v41, %v5836_v38 }
 0x321   :  { %6393 = vmatpush.bf16.msrb.mxu2 %v10531_v23  ;;  %9595 = vmatmul.msk.bf16.vlgmr.msra.gmra.mxu3 %vm4796_vm0, %v10552_v29  ;;  %v10537_v23 = vld [vmem:[%s15628_s3 + $0xe8] sm:$0xff] }
 0x322   :  { %v5862_v56 = vadd.f32 %v5861_v43, %v5849_v42  ;;  %6406 = vmatpush.bf16.msrb.mxu3 %v10539_v20  ;;  %v10533_v29 = vld [vmem:[%s15628_s3 + $0xc8] sm:$0xff] }
 0x323   :  { %6368 = vmatpush.bf16.msrb.mxu0 %v10514_v34  ;;  %v5874_v52 = vpop.f32.mrf.mxu2 }
 0x324   :  { %6381 = vmatpush.bf16.msrb.mxu1 %v10522_v35  ;;  %v5875_v48 = vadd.f32 %v5874_v52, %v5862_v56  ;;  %v5863_v46 = vpop.f32.mrf.mxu1  ;;  %v10535_v35 = vld [vmem:[%s15628_s3 + $0xd8] sm:$0xff] }
 0x325   :  { %6394 = vmatpush.bf16.msrb.mxu2 %v10530_v47 }
 0x326   :  { %v5850_v6 = vpop.f32.mrf.mxu0  ;;  %6407 = vmatpush.bf16.msrb.mxu3 %v10538_v11 }
 0x327   :  { %6369 = vmatpush.bf16.msrb.mxu0 %v10513_v39  ;;  %v10534_v39 = vld [vmem:[%s15628_s3 + $0xd0] sm:$0xff] }
 0x328   :  { %6382 = vmatpush.bf16.msrb.mxu1 %v10521_v0 }
 0x329   :  { %6395 = vmatpush.bf16.msrb.mxu2 %v10529_v40 }
 0x32a   :  { %6408 = vmatpush.bf16.msrb.mxu3 %v10537_v23 }
 0x32b   :  { %6370 = vmatpush.bf16.msrb.mxu0 %v10512_v45  ;;  %v5876_v24 = vpop.f32.mrf.mxu2  ;;  %v10532_v45 = vld [vmem:[%s15628_s3 + $0xc0] sm:$0xff] }
 0x32c   :  { %6383 = vmatpush.bf16.msrb.mxu1 %v10520_v1 }
 0x32d   :  { %6396 = vmatpush.bf16.msrb.mxu2 %v10528_v49 }
 0x32e   :  { %6409 = vmatpush.bf16.msrb.mxu3 %v10536_v30 }
 0x32f   :  { %6371 = vmatpush.bf16.msrb.mxu0 %v10511_v50 }
 0x330   :  { %6384 = vmatpush.bf16.msrb.mxu1 %v10519_v61 }
 0x331   :  { %6397 = vmatpush.bf16.msrb.mxu2 %v10527_v51 }
 0x332   :  { %6410 = vmatpush.bf16.msrb.mxu3 %v10535_v35 }
 0x333   :  { %6372 = vmatpush.bf16.msrb.mxu0 %v10510_v53 }
 0x334   :  { %6385 = vmatpush.bf16.msrb.mxu1 %v10518_v54  ;;  %v5887_v55 = vpop.f32.mrf.mxu3 }
 0x335   :  { %6398 = vmatpush.bf16.msrb.mxu2 %v10526_v58  ;;  %v5888_v3 = vadd.f32 %v5887_v55, %v5875_v48 }
 0x336   :  { %6411 = vmatpush.bf16.msrb.mxu3 %v10534_v39 }
 0x337   :  { %6373 = vmatpush.bf16.msrb.mxu0 %v10509_v59 }
 0x338   :  { %6386 = vmatpush.bf16.msrb.mxu1 %v10517_v13 }
 0x339   :  { %6399 = vmatpush.bf16.msrb.mxu2 %v10525_v60 }
 0x33a   :  { %6412 = vmatpush.bf16.msrb.mxu3 %v10533_v29 }
 0x33b   :  { %6374 = vmatpush.bf16.msrb.mxu0 %v10508_v17  ;;  %v5900_v27 = vpop.f32.mrf.mxu0 }
 0x33c   :  { %6387 = vmatpush.bf16.msrb.mxu1 %v10516_v7  ;;  %v5901_v19 = vadd.f32 %v5900_v27, %v5888_v3  ;;  %v5913_v4 = vpop.f32.mrf.mxu1  ;;  %v5889_v31 = vpop.f32.mrf.mxu3 }
 0x33d   :  { %6400 = vmatpush.bf16.msrb.mxu2 %v10524_v12 }
 0x33e   :  { %6375 = vmatmul.bf16.vlgmr.msrb.gmra.mxu0 %v6103_v33  ;;  %v5914_v16 = vadd.f32 %v5913_v4, %v5901_v19  ;;  %6413 = vmatpush.bf16.msrb.mxu3 %v10532_v45  ;;  %v10540_v33 = vld [vmem:[%s15629_s4] ss:$0 sm:$0xff] }
 0x33f   :  { %6388 = vmatmul.bf16.vlgmr.msrb.gmra.mxu1 %v6104_v18 }
 0x340   :  { %6401 = vmatmul.bf16.vlgmr.msrb.gmra.mxu2 %v6105_v25 }
 0x343   :  { %v5926_v37 = vpop.f32.mrf.mxu2  ;;  %v5902_v28 = vpop.f32.mrf.mxu0 }
 0x344   :  { %v5927_v5 = vadd.f32 %v5926_v37, %v5914_v16  ;;  %v5915_v32 = vpop.f32.mrf.mxu1  ;;  %v6419_v37 = vlaneseq }
 0x34b   :  { %v5928_v63 = vpop.f32.mrf.mxu2 }
 0x354   :  { %v5939_v9 = vpop.f32.mrf.mxu3 }
 0x355   :  { %v5940_v42 = vadd.f32 %v5939_v9, %v5927_v5  ;;  %v6420_v5 = vand.u32 127, %v6419_v37 }
 0x357   :  { %vm6421_vm1 = vcmp.lt.s32.totalorder %v6420_v5, 6  ;;  %vm6447_vm3 = vcmp.eq.s32.totalorder %v6420_v5, 6  ;;  %vm6449_vm4 = vcmp.eq.s32.totalorder %v6420_v5, 7 }
 0x35b   :  { %v5952_v8 = vpop.f32.mrf.mxu0 }
 0x35c   :  { %v5965_v10 = vpop.f32.mrf.mxu1  ;;  %v5941_v22 = vpop.f32.mrf.mxu3  ;;  %v5953_v1 = vadd.f32 %v5952_v8, %v5940_v42 }
 0x35e   :  { %v5966_v2 = vadd.f32 %v5965_v10, %v5953_v1 }
 0x363   :  { %v5978_v26 = vpop.f32.mrf.mxu2  ;;  %v5954_v14 = vpop.f32.mrf.mxu0 }
 0x364   :  { %v5967_v15 = vpop.f32.mrf.mxu1  ;;  %v5979_v49 = vadd.f32 %v5978_v26, %v5966_v2 }
 0x36b   :  { %v5980_v44 = vpop.f32.mrf.mxu2 }
 0x374   :  { %v5991_v34 = vpop.f32.mrf.mxu3 }
 0x375   :  { %v5992_v56 = vadd.f32 %v5991_v34, %v5979_v49 }
 0x37b   :  { %v6004_v36 = vpop.f32.mrf.mxu0 }
 0x37c   :  { %v6017_v47 = vpop.f32.mrf.mxu1  ;;  %v5993_v38 = vpop.f32.mrf.mxu3  ;;  %v6005_v50 = vadd.f32 %v6004_v36, %v5992_v56 }
 0x37e   :  { %v6018_v51 = vadd.f32 %v6017_v47, %v6005_v50 }
 0x383   :  { %v6030_v0 = vpop.f32.mrf.mxu2  ;;  %v6006_v40 = vpop.f32.mrf.mxu0 }
 0x384   :  { %v6019_v41 = vpop.f32.mrf.mxu1  ;;  %v6031_v52 = vadd.f32 %v6030_v0, %v6018_v51 }
 0x38b   :  { %v6032_v43 = vpop.f32.mrf.mxu2 }
 0x394   :  { %v6043_v61 = vpop.f32.mrf.mxu3 }
 0x395   :  { %v6044_v48 = vadd.f32 %v6043_v61, %v6031_v52 }
 0x39b   :  { %v6056_v6 = vpop.f32.mrf.mxu0 }
 0x39c   :  { %v6069_v53 = vpop.f32.mrf.mxu1  ;;  %v6045_v54 = vpop.f32.mrf.mxu3  ;;  %v6057_v46 = vadd.f32 %v6056_v6, %v6044_v48 }
 0x39e   :  { %v6070_v58 = vadd.f32 %v6069_v53, %v6057_v46 }
 0x3a3   :  { %v6082_v59 = vpop.f32.mrf.mxu2  ;;  %v6058_v60 = vpop.f32.mrf.mxu0 }
 0x3a4   :  { %v6083_v13 = vadd.f32 %v6082_v59, %v6070_v58  ;;  %v6071_v24 = vpop.f32.mrf.mxu1  ;;  %v6095_v17 = vpop.f32.mrf.mxu3 }
 0x3a6   :  { %v6096_v7 = vadd.f32 %v6095_v17, %v6083_v13 }
 0x3a8   :  { %v6102_v57 = vmax.f32 %v6096_v7, 0.0 }
 0x3aa   :  { %v6106_v62 = vpack.c.bf16 %v6102_v57, %v6102_v57 }
 0x3ab   :  { %v6084_v12 = vpop.f32.mrf.mxu2 }
 0x3ac   :  { %6414 = vmatmul.bf16.vlgmr.msrb.gmra.mxu3 %v6106_v62  ;;  %v6097_v21 = vpop.f32.mrf.mxu3 }
 0x3bb   :  { %v6376_v18 = vpop.f32.mrf.mxu0 }
 0x3bc   :  { %v6389_v25 = vpop.f32.mrf.mxu1  ;;  %v6377_v55 = vadd.f32 %v10540_v33, %v6376_v18 }
 0x3be   :  { %v6390_v3 = vadd.f32 %v6389_v25, %v6377_v55 }
 0x3c3   :  { %v6402_v27 = vpop.f32.mrf.mxu2  ;;  %v6378_v4 = vpop.f32.mrf.mxu0 }
 0x3c4   :  { %v6403_v19 = vadd.f32 %v6402_v27, %v6390_v3  ;;  %v6391_v31 = vpop.f32.mrf.mxu1 }
 0x3cb   :  { %v6404_v16 = vpop.f32.mrf.mxu2 }
 0x42f   :  { %v6415_v28 = vpop.f32.mrf.mxu3 }
 0x430   :  { %v6416_v32 = vadd.f32 %v6415_v28, %v6403_v19 }
 0x432   :  { %v6422_v63 = vsel %vm6421_vm1, %v6416_v32, -inf }
 0x433   :  { %v6424_v9 = vsel %vm6423_vm2, %v6422_v63, -inf }
 0x434   :  { %6425 = vmax.xlane.f32.xlu0 %v6424_v9 }
 0x437   :  { %v6417_v8 = vpop.f32.mrf.mxu3 }
 0x4a7   :  { %v6426_v10 = vpop.xlane.xlu0 %6425 }
 0x4a8   :  { %v6427_v22 = vsub.f32 %v6416_v32, %v6426_v10 }
 0x4aa   :  { %v6428_v20 = vmul.f32 1.442695, %v6427_v22 }
 0x4ac   :  { %10541 = vpow2.f32 %v6428_v20 }
 0x4b2   :  { %v10542_v26 = vpop.eup %10541 }
 0x4b3   :  { %v6430_v11 = vsel %vm6421_vm1, %v10542_v26, 0.0 }
 0x4b4   :  { %v6431_v14 = vsel %vm6423_vm2, %v6430_v11, 0.0 }
 0x4b5   :  { %6432 = vadd.xlane.f32.xlu0 %v6431_v14 }
 0x528   :  { %v6433_v15 = vpop.xlane.xlu0 %6432 }
 0x529   :  { %10543 = vlog2.f32 %v6433_v15 }
 0x52a   :  { %10545 = vrcp.f32 %v6433_v15 }
 0x52f   :  { %v10544_v44 = vpop.eup %10543 }
 0x530   :  { %v6435_v23 = vmul.f32 0.6931472, %v10544_v44  ;;  %v10546_v30 = vpop.eup %10545 }
 0x531   :  { %v6439_v36 = vmul.f32 %v10546_v30, %v6430_v11 }
 0x532   :  { %v6436_v34 = vadd.f32 %v6435_v23, %v6426_v10 }
 0x534   :  { %v6437_v35 = vsub.f32 %v6416_v32, %v6436_v34 }
 0x536   :  { %v6440_v47 = vmul.f32 %v6439_v36, %v6437_v35  ;;  %v6446_v40 = vsel %vm6421_vm1, %v6437_v35, 0.0 }
 0x538   :  { %v6441_v38 = vsel %vm6421_vm1, %v6440_v47, 0.0 }
 0x539   :  { %v6442_v39 = vsel %vm6423_vm2, %v6441_v38, 0.0 }
 0x53a   :  { %6443 = vadd.xlane.f32.xlu1 %v6442_v39 }
 0x5ad   :  { %v6444_v0 = vpop.xlane.xlu1 %6443 }
 0x5ae   :  { %v6445_v29 = vsub.f32 0.0, %v6444_v0 }
 0x5b0   :  { %v6448_v41 = vsel %vm6447_vm3, %v6445_v29, %v6446_v40 }
 0x5b1   :  { %v6450_v42 = vsel %vm6449_vm4, %v6416_v32, %v6448_v41 }
 0x5b2   :  { %6451 = vst [vmem:[%s15630_s5] sm:$0x3] %v6450_v42 }

</bundles_post_ra>
